<compile_context>
chip_gen: v6e
topology: v6e:2x2x1
jax: 0.10.0
libtpu: 0.0.40
codegen_flags: <defaults>
</compile_context>

<pallas_src>
import functools

import jax
import jax.numpy as jnp
from jax import lax
from jax.experimental import pallas as pl
from jax.experimental.pallas import tpu as pltpu

_LANE = 128
_SUBLANE = 8


def _round_up(x, m):
  return ((x + m - 1) // m) * m


def _decoder_kernel(emb_ref, mem_ref, bias_ref, hinit_ref,
                    w0_ref, b0_ref, w1_ref, b1_ref,
                    wattn_ref, battn_ref, wproj_ref, bproj_ref,
                    logp_ref, *, hidden_pad, steps):
  """Full teacher-forced decode loop for one batch tile (2 stacked LSTM layers)."""
  Hp = hidden_pad

  # Grid-invariant operands hoisted out of the time loop.
  mem = mem_ref[...]                       # (Bt, Sp, Hp)  bf16 encoder memory
  bias3 = bias_ref[...][:, None, :]        # (Bt, 1, Sp)   f32 additive mask bias

  def lstm_cell(gates, c_prev):
    # PyTorch LSTMCell gate order [i, f, g, o]; slices are 128-lane aligned.
    i = jax.nn.sigmoid(gates[:, 0 * Hp:1 * Hp])
    f = jax.nn.sigmoid(gates[:, 1 * Hp:2 * Hp])
    g = jnp.tanh(gates[:, 2 * Hp:3 * Hp])
    o = jax.nn.sigmoid(gates[:, 3 * Hp:4 * Hp])
    c = f * c_prev + i * g
    h = o * jnp.tanh(c)
    return h, c

  def step(t, carry):
    h0_prev, c0_prev, h1_prev, c1_prev, feed = carry
    emb = emb_ref[t]                                       # (Bt, Ep) f32

    # --- StackedLSTM layer 0: input = cat([input_feed, embedding], -1) ---
    x0 = jnp.concatenate([feed, emb, h0_prev], axis=-1).astype(jnp.bfloat16)
    gates0 = jnp.dot(x0, w0_ref[...],
                     preferred_element_type=jnp.float32) + b0_ref[...]
    h0, c0 = lstm_cell(gates0, c0_prev)

    # --- StackedLSTM layer 1 ---
    # TODO(synk): inter-layer dropout (dropout_p) omitted (eval / p=0 semantics).
    x1 = jnp.concatenate([h0, h1_prev], axis=-1).astype(jnp.bfloat16)
    gates1 = jnp.dot(x1, w1_ref[...],
                     preferred_element_type=jnp.float32) + b1_ref[...]
    h1, c1 = lstm_cell(gates1, c1_prev)
    dec_out = h1                                           # (Bt, Hp) f32

    # --- Luong dot attention on the MXU (flash-style batched contractions) ---
    q = dec_out[:, None, :].astype(jnp.bfloat16)           # (Bt, 1, Hp)
    scores = jnp.einsum('bqh,bsh->bqs', q, mem,
                        preferred_element_type=jnp.float32) + bias3
    scores = scores - jnp.max(scores, axis=-1, keepdims=True)
    p = jnp.exp(scores)
    p = p * pl.reciprocal(jnp.sum(p, axis=-1, keepdims=True), approx=True)
    ctx = jnp.einsum('bqs,bsh->bqh', p.astype(jnp.bfloat16), mem,
                     preferred_element_type=jnp.float32)[:, 0, :]   # (Bt, Hp)

    xa = jnp.concatenate([ctx, dec_out], axis=-1).astype(jnp.bfloat16)
    attn_h = jnp.tanh(
        jnp.dot(xa, wattn_ref[...],
                preferred_element_type=jnp.float32) + battn_ref[...])

    # --- vocab projection + log_softmax (class_log_probabilities) ---
    # TODO(synk): at very large vocab (v7x 64 MiB VMEM), tile w_proj over V with
    # an online logsumexp instead of holding the full padded row.
    proj = jnp.dot(attn_h.astype(jnp.bfloat16), wproj_ref[...],
                   preferred_element_type=jnp.float32) + bproj_ref[...]
    m = jnp.max(proj, axis=-1, keepdims=True)
    z = proj - m
    logp = z - jnp.log(jnp.sum(jnp.exp(z), axis=-1, keepdims=True))
    logp_ref[t] = logp                                     # lane-dense store

    return (h0, c0, h1, c1, attn_h)

  # init_state(): decoder_hidden <- encoder_hidden, cell / input_feed <- zeros.
  h0_init = hinit_ref[0]
  h1_init = hinit_ref[1]
  zeros = jnp.zeros_like(h0_init)
  lax.fori_loop(0, steps, step, (h0_init, zeros, h1_init, zeros, zeros),
                unroll=True)


def _pack_params(params, *, H, E, V, Hp, Ep, Vp):
  """Pad + fuse the LstmDecoder weights into lane-aligned kernel operands."""
  f32 = jnp.float32
  bf16 = jnp.bfloat16

  def pad_gate_cols(w):
    # (rows, 4H) -> (rows, 4*Hp): each of the [i,f,g,o] blocks padded to Hp.
    parts = [jnp.pad(w[:, k * H:(k + 1) * H], ((0, 0), (0, Hp - H)))
             for k in range(4)]
    return jnp.concatenate(parts, axis=1)

  def pad_rows(w, rows_to):
    return jnp.pad(w, ((0, rows_to - w.shape[0]), (0, 0)))

  def pad2(w, r_to, c_to):
    return jnp.pad(w, ((0, r_to - w.shape[0]), (0, c_to - w.shape[1])))

  w0 = jnp.concatenate([
      pad_rows(pad_gate_cols(params['w_if0']), Hp),   # input_feed part
      pad_rows(pad_gate_cols(params['w_ie0']), Ep),   # embedding part
      pad_rows(pad_gate_cols(params['w_hh0']), Hp),   # recurrent part
  ], axis=0)
  b0 = pad_gate_cols(params['b0']).astype(f32)
  w1 = jnp.concatenate([
      pad_rows(pad_gate_cols(params['w_ih1']), Hp),
      pad_rows(pad_gate_cols(params['w_hh1']), Hp),
  ], axis=0)
  b1 = pad_gate_cols(params['b1']).astype(f32)
  w_attn = jnp.concatenate([
      pad2(params['w_ac'], Hp, Hp),                   # context part
      pad2(params['w_ah'], Hp, Hp),                   # decoder-output part
  ], axis=0)
  b_attn = pad2(params['b_attn'], 1, Hp).astype(f32)
  w_proj = pad2(params['w_proj'], Hp, Vp)
  # Padded vocab columns get a large negative bias so log_softmax ignores them.
  b_proj = jnp.concatenate(
      [params['b_proj'].astype(f32), jnp.full((1, Vp - V), -1e30, f32)], axis=1)

  return {
      'w0': w0.astype(bf16), 'b0': b0,
      'w1': w1.astype(bf16), 'b1': b1,
      'w_attn': w_attn.astype(bf16), 'b_attn': b_attn,
      'w_proj': w_proj.astype(bf16), 'b_proj': b_proj,
  }


def run_decoder_steps(emb_seq, memory, mask_bias, h_init, wp, *, b_tile=8):
  """One pallas_call: grid over batch tiles; full decode loop inside the kernel."""
  steps, Bp, Ep = emb_seq.shape
  _, Sp, Hp = memory.shape
  L = h_init.shape[0]
  Vp = wp['w_proj'].shape[1]
  nb = Bp // b_tile

  def const_spec(arr):
    n = arr.ndim
    return pl.BlockSpec(arr.shape, lambda b, _n=n: (0,) * _n)

  grid_spec = pltpu.PrefetchScalarGridSpec(
      num_scalar_prefetch=0,
      grid=(nb,),
      in_specs=[
          pl.BlockSpec((steps, b_tile, Ep), lambda b: (0, b, 0)),  # embeddings
          pl.BlockSpec((b_tile, Sp, Hp), lambda b: (b, 0, 0)),     # memory bank
          pl.BlockSpec((b_tile, Sp), lambda b: (b, 0)),            # mask bias
          pl.BlockSpec((L, b_tile, Hp), lambda b: (0, b, 0)),      # encoder hidden
          const_spec(wp['w0']), const_spec(wp['b0']),
          const_spec(wp['w1']), const_spec(wp['b1']),
          const_spec(wp['w_attn']), const_spec(wp['b_attn']),
          const_spec(wp['w_proj']), const_spec(wp['b_proj']),
      ],
      out_specs=pl.BlockSpec((steps, b_tile, Vp), lambda b: (0, b, 0)),
  )

  kernel = functools.partial(_decoder_kernel, hidden_pad=Hp, steps=steps)
  return pl.pallas_call(
      kernel,
      out_shape=jax.ShapeDtypeStruct((steps, Bp, Vp), jnp.float32),
      grid_spec=grid_spec,
      compiler_params=pltpu.CompilerParams(
          dimension_semantics=("parallel",)),   # batch tiles -> v7x dual-TC
  )(emb_seq, memory, mask_bias, h_init,
    wp['w0'], wp['b0'], wp['w1'], wp['b1'],
    wp['w_attn'], wp['b_attn'], wp['w_proj'], wp['b_proj'])


def lstm_decoder_forward(params, state, targets, *, hidden_dim, pad_index):
  """Mirrors LstmDecoder.forward with target_tokens (teacher forcing)."""
  B, T = targets.shape
  steps = T - 1                                   # num_decoding_steps
  H = hidden_dim
  E = params['embed'].shape[1]
  V = params['w_proj'].shape[1]
  memory = state['encoder_memory_bank']
  mask = state['source_mask']
  h_init = state['encoder_hidden']
  S = memory.shape[1]
  # TODO(synk): kernel hard-codes num_layers == 2 (matches this module config).

  Bp = _round_up(B, _SUBLANE)
  Sp = _round_up(S, _SUBLANE)
  Hp = _round_up(H, _LANE)
  Ep = _round_up(E, _LANE)
  Vp = _round_up(V, _LANE)

  # Embedding gather (JAX glue), laid out time-major and padded lane/sublane.
  emb_seq = jnp.transpose(params['embed'][targets[:, :steps]], (1, 0, 2))
  emb_seq = jnp.pad(emb_seq, ((0, 0), (0, Bp - B), (0, Ep - E)))

  mem_p = jnp.pad(memory, ((0, Bp - B), (0, Sp - S), (0, Hp - H)))
  mem_p = mem_p.astype(jnp.bfloat16)
  mask_p = jnp.pad(mask, ((0, Bp - B), (0, Sp - S)))
  mask_bias = (1.0 - mask_p.astype(jnp.float32)) * (-1e9)   # additive mask
  h_init_p = jnp.pad(h_init, ((0, 0), (0, Bp - B), (0, Hp - H)))

  wp = _pack_params(params, H=H, E=E, V=V, Hp=Hp, Ep=Ep, Vp=Vp)

  logp = run_decoder_steps(emb_seq, mem_p, mask_bias, h_init_p, wp)

  logits = jnp.transpose(logp, (1, 0, 2))[:B, :, :V]         # (B, steps, V)
  # argmax(softmax(log_probs)) == argmax(log_probs)
  predictions = jnp.argmax(logits, axis=-1).astype(jnp.int32)

  # _get_loss: cross_entropy on log_softmax output with ignore_index=pad.
  relevant = targets[:, 1:]                                  # (B, steps)
  nll = -jnp.take_along_axis(logits, relevant[..., None], axis=-1)[..., 0]
  valid = (relevant != pad_index).astype(jnp.float32)
  loss = jnp.sum(nll * valid) / jnp.maximum(jnp.sum(valid), 1.0)

  return {'predictions': predictions, 'loss': loss, 'logits': logits}


if __name__ == "__main__":
  # Small deterministic configuration.
  B, S, H, E, V, L, T = 4, 16, 32, 16, 32, 2, 8   # 7 decoding steps
  PAD, START, EOS = 0, 1, 2
  scale = 0.1

  key = jax.random.PRNGKey(0)
  ks = jax.random.split(key, 24)

  params = {
      'embed':  jax.random.normal(ks[0], (V, E), jnp.float32) * scale,
      # StackedLSTM layer 0: input dim = E + H  (split: input_feed part / embed part)
      'w_if0':  jax.random.normal(ks[1], (H, 4 * H), jnp.float32) * scale,
      'w_ie0':  jax.random.normal(ks[2], (E, 4 * H), jnp.float32) * scale,
      'w_hh0':  jax.random.normal(ks[3], (H, 4 * H), jnp.float32) * scale,
      'b0':     jax.random.normal(ks[4], (1, 4 * H), jnp.float32) * scale,
      # StackedLSTM layer 1
      'w_ih1':  jax.random.normal(ks[5], (H, 4 * H), jnp.float32) * scale,
      'w_hh1':  jax.random.normal(ks[6], (H, 4 * H), jnp.float32) * scale,
      'b1':     jax.random.normal(ks[7], (1, 4 * H), jnp.float32) * scale,
      # attention output layer: W_out [context ; decoder_output] -> H (split)
      'w_ac':   jax.random.normal(ks[8], (H, H), jnp.float32) * scale,
      'w_ah':   jax.random.normal(ks[9], (H, H), jnp.float32) * scale,
      'b_attn': jax.random.normal(ks[10], (1, H), jnp.float32) * scale,
      # output projection: H -> vocab
      'w_proj': jax.random.normal(ks[11], (H, V), jnp.float32) * scale,
      'b_proj': jax.random.normal(ks[12], (1, V), jnp.float32) * scale,
  }

  # Encoder-side state (as produced by init_state / the encoder).
  encoder_hidden = jax.random.normal(ks[13], (L, B, H), jnp.float32) * scale
  memory_bank = jax.random.normal(ks[14], (B, S, H), jnp.float32) * scale
  src_lens = jnp.array([16, 12, 9, 16], dtype=jnp.int32)
  source_mask = (jnp.arange(S)[None, :] < src_lens[:, None]).astype(jnp.float32)

  # Teacher-forcing targets: start token, random content tokens, some padding.
  targets = jax.random.randint(ks[15], (B, T), 3, V, dtype=jnp.int32)
  targets = targets.at[:, 0].set(START)
  targets = targets.at[3, 6:].set(PAD)     # exercise ignore_index in the loss

  state = {
      'encoder_hidden': encoder_hidden,
      'encoder_memory_bank': memory_bank,
      'source_mask': source_mask,
  }

  out = jax.jit(
      functools.partial(lstm_decoder_forward, hidden_dim=H, pad_index=PAD)
  )(params, state, targets)
  jax.block_until_ready(out)

  assert out['predictions'].shape == (B, T - 1)
  assert out['logits'].shape == (B, T - 1, V)
  assert out['loss'].shape == ()
  assert bool(jnp.isfinite(out['loss']))
  print("KERNEL_OK")
</pallas_src>

<mosaic_0001>
module attributes {stable_mosaic.version = 11 : i64} {
  func.func @_decoder_kernel(%arg0: i32, %arg1: memref<7x8x128xf32, #tpu.memory_space<vmem>>, %arg2: memref<8x16x128xbf16, #tpu.memory_space<vmem>>, %arg3: memref<8x16xf32, #tpu.memory_space<vmem>>, %arg4: memref<2x8x128xf32, #tpu.memory_space<vmem>>, %arg5: memref<384x512xbf16, #tpu.memory_space<vmem>>, %arg6: memref<1x512xf32, #tpu.memory_space<vmem>>, %arg7: memref<256x512xbf16, #tpu.memory_space<vmem>>, %arg8: memref<1x512xf32, #tpu.memory_space<vmem>>, %arg9: memref<256x128xbf16, #tpu.memory_space<vmem>>, %arg10: memref<1x128xf32, #tpu.memory_space<vmem>>, %arg11: memref<128x128xbf16, #tpu.memory_space<vmem>>, %arg12: memref<1x128xf32, #tpu.memory_space<vmem>>, %arg13: memref<7x8x128xf32, #tpu.memory_space<vmem>>) attributes {dimension_semantics = [#tpu.dimension_semantics<parallel>], iteration_bounds = array<i64: 1>, scalar_prefetch = 0 : i64, scratch_operands = 0 : i64, tpu.core_type = #tpu.core_type<tc>, window_params = [{transform_indices = @transform_0, window_bounds = array<i64: 7, 8, 128>}, {transform_indices = @transform_1, window_bounds = array<i64: 8, 16, 128>}, {transform_indices = @transform_2, window_bounds = array<i64: 8, 16>}, {transform_indices = @transform_3, window_bounds = array<i64: 2, 8, 128>}, {pipeline_mode = #tpu.pipeline_mode<synchronous>, transform_indices = @transform_4, window_bounds = array<i64: 384, 512>}, {pipeline_mode = #tpu.pipeline_mode<synchronous>, transform_indices = @transform_5, window_bounds = array<i64: 1, 512>}, {pipeline_mode = #tpu.pipeline_mode<synchronous>, transform_indices = @transform_6, window_bounds = array<i64: 256, 512>}, {pipeline_mode = #tpu.pipeline_mode<synchronous>, transform_indices = @transform_7, window_bounds = array<i64: 1, 512>}, {pipeline_mode = #tpu.pipeline_mode<synchronous>, transform_indices = @transform_8, window_bounds = array<i64: 256, 128>}, {pipeline_mode = #tpu.pipeline_mode<synchronous>, transform_indices = @transform_9, window_bounds = array<i64: 1, 128>}, {pipeline_mode = #tpu.pipeline_mode<synchronous>, transform_indices = @transform_10, window_bounds = array<i64: 128, 128>}, {pipeline_mode = #tpu.pipeline_mode<synchronous>, transform_indices = @transform_11, window_bounds = array<i64: 1, 128>}, {transform_indices = @transform_12, window_bounds = array<i64: 7, 8, 128>}]} {
    %c0 = arith.constant 0 : index
    %c0_0 = arith.constant 0 : index
    %c0_1 = arith.constant 0 : index
    %0 = vector.load %arg2[%c0, %c0_0, %c0_1] : memref<8x16x128xbf16, #tpu.memory_space<vmem>>, vector<8x16x128xbf16>
    %c0_2 = arith.constant 0 : index
    %c0_3 = arith.constant 0 : index
    %1 = vector.load %arg3[%c0_2, %c0_3] : memref<8x16xf32, #tpu.memory_space<vmem>>, vector<8x16xf32>
    %2 = vector.shape_cast %1 : vector<8x16xf32> to vector<8x1x16xf32>
    %c0_4 = arith.constant 0 : index
    %c0_5 = arith.constant 0 : index
    %c0_6 = arith.constant 0 : index
    %3 = vector.load %arg4[%c0_4, %c0_5, %c0_6] : memref<2x8x128xf32, #tpu.memory_space<vmem>>, vector<1x8x128xf32>
    %4 = vector.shape_cast %3 : vector<1x8x128xf32> to vector<8x128xf32>
    %c1 = arith.constant 1 : index
    %c0_7 = arith.constant 0 : index
    %c0_8 = arith.constant 0 : index
    %5 = vector.load %arg4[%c1, %c0_7, %c0_8] : memref<2x8x128xf32, #tpu.memory_space<vmem>>, vector<1x8x128xf32>
    %6 = vector.shape_cast %5 : vector<1x8x128xf32> to vector<8x128xf32>
    %cst = arith.constant 0.000000e+00 : f32
    %7 = vector.broadcast %cst : f32 to vector<8x128xf32>
    %c0_i32 = arith.constant 0 : i32
    %8 = arith.index_cast %c0_i32 : i32 to index
    %c0_9 = arith.constant 0 : index
    %c0_10 = arith.constant 0 : index
    %9 = vector.load %arg1[%8, %c0_9, %c0_10] : memref<7x8x128xf32, #tpu.memory_space<vmem>>, vector<1x8x128xf32>
    %10 = vector.shape_cast %9 : vector<1x8x128xf32> to vector<8x128xf32>
    %11 = tpu.concatenate %7, %10, %4 in 1 : vector<8x128xf32>, vector<8x128xf32>, vector<8x128xf32> -> vector<8x384xf32>
    %12 = arith.truncf %11 : vector<8x384xf32> to vector<8x384xbf16>
    %c0_11 = arith.constant 0 : index
    %c0_12 = arith.constant 0 : index
    %13 = vector.load %arg5[%c0_11, %c0_12] : memref<384x512xbf16, #tpu.memory_space<vmem>>, vector<384x512xbf16>
    %cst_13 = arith.constant dense<0.000000e+00> : vector<8x512xf32>
    %14 = tpu.matmul %12, %13, %cst_13 {dimension_numbers = #tpu.dot_dimension_numbers<[1], [0], [0], [1], [0, 0, 1, 1], [], []>} : vector<8x384xbf16>, vector<384x512xbf16>, vector<8x512xf32> -> vector<8x512xf32>
    %c0_14 = arith.constant 0 : index
    %c0_15 = arith.constant 0 : index
    %15 = vector.load %arg6[%c0_14, %c0_15] : memref<1x512xf32, #tpu.memory_space<vmem>>, vector<1x512xf32>
    %16 = vector.broadcast %15 : vector<1x512xf32> to vector<8x512xf32>
    %17 = arith.addf %14, %16 : vector<8x512xf32>
    %18 = vector.extract_strided_slice %17 {offsets = [0, 0], sizes = [8, 128], strides = [1, 1]} : vector<8x512xf32> to vector<8x128xf32>
    %19 = arith.negf %18 : vector<8x128xf32>
    %20 = math.exp %19 : vector<8x128xf32>
    %cst_16 = arith.constant 1.000000e+00 : f32
    %21 = vector.broadcast %cst_16 : f32 to vector<8x128xf32>
    %22 = arith.addf %21, %20 : vector<8x128xf32>
    %23 = arith.divf %21, %22 : vector<8x128xf32>
    %24 = vector.extract_strided_slice %17 {offsets = [0, 128], sizes = [8, 128], strides = [1, 1]} : vector<8x512xf32> to vector<8x128xf32>
    %25 = arith.negf %24 : vector<8x128xf32>
    %26 = math.exp %25 : vector<8x128xf32>
    %cst_17 = arith.constant 1.000000e+00 : f32
    %27 = vector.broadcast %cst_17 : f32 to vector<8x128xf32>
    %28 = arith.addf %27, %26 : vector<8x128xf32>
    %29 = arith.divf %27, %28 : vector<8x128xf32>
    %30 = vector.extract_strided_slice %17 {offsets = [0, 256], sizes = [8, 128], strides = [1, 1]} : vector<8x512xf32> to vector<8x128xf32>
    %31 = math.tanh %30 : vector<8x128xf32>
    %32 = vector.extract_strided_slice %17 {offsets = [0, 384], sizes = [8, 128], strides = [1, 1]} : vector<8x512xf32> to vector<8x128xf32>
    %33 = arith.negf %32 : vector<8x128xf32>
    %34 = math.exp %33 : vector<8x128xf32>
    %cst_18 = arith.constant 1.000000e+00 : f32
    %35 = vector.broadcast %cst_18 : f32 to vector<8x128xf32>
    %36 = arith.addf %35, %34 : vector<8x128xf32>
    %37 = arith.divf %35, %36 : vector<8x128xf32>
    %38 = arith.mulf %29, %7 : vector<8x128xf32>
    %39 = arith.mulf %23, %31 : vector<8x128xf32>
    %40 = arith.addf %38, %39 : vector<8x128xf32>
    %41 = math.tanh %40 : vector<8x128xf32>
    %42 = arith.mulf %37, %41 : vector<8x128xf32>
    %43 = tpu.concatenate %42, %6 in 1 : vector<8x128xf32>, vector<8x128xf32> -> vector<8x256xf32>
    %44 = arith.truncf %43 : vector<8x256xf32> to vector<8x256xbf16>
    %c0_19 = arith.constant 0 : index
    %c0_20 = arith.constant 0 : index
    %45 = vector.load %arg7[%c0_19, %c0_20] : memref<256x512xbf16, #tpu.memory_space<vmem>>, vector<256x512xbf16>
    %cst_21 = arith.constant dense<0.000000e+00> : vector<8x512xf32>
    %46 = tpu.matmul %44, %45, %cst_21 {dimension_numbers = #tpu.dot_dimension_numbers<[1], [0], [0], [1], [0, 0, 1, 1], [], []>} : vector<8x256xbf16>, vector<256x512xbf16>, vector<8x512xf32> -> vector<8x512xf32>
    %c0_22 = arith.constant 0 : index
    %c0_23 = arith.constant 0 : index
    %47 = vector.load %arg8[%c0_22, %c0_23] : memref<1x512xf32, #tpu.memory_space<vmem>>, vector<1x512xf32>
    %48 = vector.broadcast %47 : vector<1x512xf32> to vector<8x512xf32>
    %49 = arith.addf %46, %48 : vector<8x512xf32>
    %50 = vector.extract_strided_slice %49 {offsets = [0, 0], sizes = [8, 128], strides = [1, 1]} : vector<8x512xf32> to vector<8x128xf32>
    %51 = arith.negf %50 : vector<8x128xf32>
    %52 = math.exp %51 : vector<8x128xf32>
    %cst_24 = arith.constant 1.000000e+00 : f32
    %53 = vector.broadcast %cst_24 : f32 to vector<8x128xf32>
    %54 = arith.addf %53, %52 : vector<8x128xf32>
    %55 = arith.divf %53, %54 : vector<8x128xf32>
    %56 = vector.extract_strided_slice %49 {offsets = [0, 128], sizes = [8, 128], strides = [1, 1]} : vector<8x512xf32> to vector<8x128xf32>
    %57 = arith.negf %56 : vector<8x128xf32>
    %58 = math.exp %57 : vector<8x128xf32>
    %cst_25 = arith.constant 1.000000e+00 : f32
    %59 = vector.broadcast %cst_25 : f32 to vector<8x128xf32>
    %60 = arith.addf %59, %58 : vector<8x128xf32>
    %61 = arith.divf %59, %60 : vector<8x128xf32>
    %62 = vector.extract_strided_slice %49 {offsets = [0, 256], sizes = [8, 128], strides = [1, 1]} : vector<8x512xf32> to vector<8x128xf32>
    %63 = math.tanh %62 : vector<8x128xf32>
    %64 = vector.extract_strided_slice %49 {offsets = [0, 384], sizes = [8, 128], strides = [1, 1]} : vector<8x512xf32> to vector<8x128xf32>
    %65 = arith.negf %64 : vector<8x128xf32>
    %66 = math.exp %65 : vector<8x128xf32>
    %cst_26 = arith.constant 1.000000e+00 : f32
    %67 = vector.broadcast %cst_26 : f32 to vector<8x128xf32>
    %68 = arith.addf %67, %66 : vector<8x128xf32>
    %69 = arith.divf %67, %68 : vector<8x128xf32>
    %70 = arith.mulf %61, %7 : vector<8x128xf32>
    %71 = arith.mulf %55, %63 : vector<8x128xf32>
    %72 = arith.addf %70, %71 : vector<8x128xf32>
    %73 = math.tanh %72 : vector<8x128xf32>
    %74 = arith.mulf %69, %73 : vector<8x128xf32>
    %75 = vector.shape_cast %74 : vector<8x128xf32> to vector<8x1x128xf32>
    %76 = arith.truncf %75 : vector<8x1x128xf32> to vector<8x1x128xbf16>
    "tpu.trace_start"() <{level = 10 : i32, message = "bqh,bsh->bqs"}> : () -> ()
    %cst_27 = arith.constant dense<0.000000e+00> : vector<8x1x16xf32>
    %77 = tpu.matmul %76, %0, %cst_27 {dimension_numbers = #tpu.dot_dimension_numbers<[2], [2], [1], [1], [0, 0, 0, 1, 1, 1], [0], [0]>} : vector<8x1x128xbf16>, vector<8x16x128xbf16>, vector<8x1x16xf32> -> vector<8x1x16xf32>
    "tpu.trace_stop"() : () -> ()
    %78 = arith.addf %77, %2 : vector<8x1x16xf32>
    %cst_28 = arith.constant dense<0xFF800000> : vector<8x1xf32>
    %79 = vector.multi_reduction <maximumf>, %78, %cst_28 [2] : vector<8x1x16xf32> to vector<8x1xf32>
    %80 = vector.shape_cast %79 : vector<8x1xf32> to vector<8x1x1xf32>
    %81 = vector.broadcast %80 : vector<8x1x1xf32> to vector<8x1x16xf32>
    %82 = arith.subf %78, %81 : vector<8x1x16xf32>
    %83 = math.exp %82 : vector<8x1x16xf32>
    %cst_29 = arith.constant dense<0.000000e+00> : vector<8x1xf32>
    %84 = vector.multi_reduction <add>, %83, %cst_29 [2] : vector<8x1x16xf32> to vector<8x1xf32>
    %85 = vector.shape_cast %84 : vector<8x1xf32> to vector<8x1x1xf32>
    %86 = tpu.reciprocal %85 {approx = true} : vector<8x1x1xf32> -> vector<8x1x1xf32>
    %87 = vector.broadcast %86 : vector<8x1x1xf32> to vector<8x1x16xf32>
    %88 = arith.mulf %83, %87 : vector<8x1x16xf32>
    %89 = arith.truncf %88 : vector<8x1x16xf32> to vector<8x1x16xbf16>
    "tpu.trace_start"() <{level = 10 : i32, message = "bqs,bsh->bqh"}> : () -> ()
    %cst_30 = arith.constant dense<0.000000e+00> : vector<8x1x128xf32>
    %90 = tpu.matmul %89, %0, %cst_30 {dimension_numbers = #tpu.dot_dimension_numbers<[2], [1], [1], [2], [0, 0, 0, 1, 1, 2], [0], [0]>} : vector<8x1x16xbf16>, vector<8x16x128xbf16>, vector<8x1x128xf32> -> vector<8x1x128xf32>
    "tpu.trace_stop"() : () -> ()
    %91 = vector.shape_cast %90 : vector<8x1x128xf32> to vector<8x128xf32>
    %92 = tpu.concatenate %91, %74 in 1 : vector<8x128xf32>, vector<8x128xf32> -> vector<8x256xf32>
    %93 = arith.truncf %92 : vector<8x256xf32> to vector<8x256xbf16>
    %c0_31 = arith.constant 0 : index
    %c0_32 = arith.constant 0 : index
    %94 = vector.load %arg9[%c0_31, %c0_32] : memref<256x128xbf16, #tpu.memory_space<vmem>>, vector<256x128xbf16>
    %cst_33 = arith.constant dense<0.000000e+00> : vector<8x128xf32>
    %95 = tpu.matmul %93, %94, %cst_33 {dimension_numbers = #tpu.dot_dimension_numbers<[1], [0], [0], [1], [0, 0, 1, 1], [], []>} : vector<8x256xbf16>, vector<256x128xbf16>, vector<8x128xf32> -> vector<8x128xf32>
    %c0_34 = arith.constant 0 : index
    %c0_35 = arith.constant 0 : index
    %96 = vector.load %arg10[%c0_34, %c0_35] : memref<1x128xf32, #tpu.memory_space<vmem>>, vector<1x128xf32>
    %97 = vector.broadcast %96 : vector<1x128xf32> to vector<8x128xf32>
    %98 = arith.addf %95, %97 : vector<8x128xf32>
    %99 = math.tanh %98 : vector<8x128xf32>
    %100 = arith.truncf %99 : vector<8x128xf32> to vector<8x128xbf16>
    %c0_36 = arith.constant 0 : index
    %c0_37 = arith.constant 0 : index
    %101 = vector.load %arg11[%c0_36, %c0_37] : memref<128x128xbf16, #tpu.memory_space<vmem>>, vector<128x128xbf16>
    %cst_38 = arith.constant dense<0.000000e+00> : vector<8x128xf32>
    %102 = tpu.matmul %100, %101, %cst_38 {dimension_numbers = #tpu.dot_dimension_numbers<[1], [0], [0], [1], [0, 0, 1, 1], [], []>} : vector<8x128xbf16>, vector<128x128xbf16>, vector<8x128xf32> -> vector<8x128xf32>
    %c0_39 = arith.constant 0 : index
    %c0_40 = arith.constant 0 : index
    %103 = vector.load %arg12[%c0_39, %c0_40] : memref<1x128xf32, #tpu.memory_space<vmem>>, vector<1x128xf32>
    %104 = vector.broadcast %103 : vector<1x128xf32> to vector<8x128xf32>
    %105 = arith.addf %102, %104 : vector<8x128xf32>
    %cst_41 = arith.constant dense<0xFF800000> : vector<8xf32>
    %106 = vector.multi_reduction <maximumf>, %105, %cst_41 [1] : vector<8x128xf32> to vector<8xf32>
    %107 = vector.shape_cast %106 : vector<8xf32> to vector<8x1xf32>
    %108 = vector.broadcast %107 : vector<8x1xf32> to vector<8x128xf32>
    %109 = arith.subf %105, %108 : vector<8x128xf32>
    %110 = math.exp %109 : vector<8x128xf32>
    %cst_42 = arith.constant dense<0.000000e+00> : vector<8xf32>
    %111 = vector.multi_reduction <add>, %110, %cst_42 [1] : vector<8x128xf32> to vector<8xf32>
    %112 = vector.shape_cast %111 : vector<8xf32> to vector<8x1xf32>
    %113 = math.log %112 : vector<8x1xf32>
    %114 = vector.broadcast %113 : vector<8x1xf32> to vector<8x128xf32>
    %115 = arith.subf %109, %114 : vector<8x128xf32>
    %116 = arith.index_cast %c0_i32 : i32 to index
    %c0_43 = arith.constant 0 : index
    %c0_44 = arith.constant 0 : index
    %117 = vector.load %arg13[%116, %c0_43, %c0_44] : memref<7x8x128xf32, #tpu.memory_space<vmem>>, vector<1x8x128xf32>
    %118 = vector.shape_cast %117 : vector<1x8x128xf32> to vector<8x128xf32>
    %119 = vector.shape_cast %115 : vector<8x128xf32> to vector<1x8x128xf32>
    tpu.vector_store %arg13[%116, %c0_43, %c0_44], %119 {strides = array<i32>} : memref<7x8x128xf32, #tpu.memory_space<vmem>>, vector<1x8x128xf32>,
    %c1_i32 = arith.constant 1 : i32
    %120 = arith.index_cast %c1_i32 : i32 to index
    %c0_45 = arith.constant 0 : index
    %c0_46 = arith.constant 0 : index
    %121 = vector.load %arg1[%120, %c0_45, %c0_46] : memref<7x8x128xf32, #tpu.memory_space<vmem>>, vector<1x8x128xf32>
    %122 = vector.shape_cast %121 : vector<1x8x128xf32> to vector<8x128xf32>
    %123 = tpu.concatenate %99, %122, %42 in 1 : vector<8x128xf32>, vector<8x128xf32>, vector<8x128xf32> -> vector<8x384xf32>
    %124 = arith.truncf %123 : vector<8x384xf32> to vector<8x384xbf16>
    %c0_47 = arith.constant 0 : index
    %c0_48 = arith.constant 0 : index
    %125 = vector.load %arg5[%c0_47, %c0_48] : memref<384x512xbf16, #tpu.memory_space<vmem>>, vector<384x512xbf16>
    %cst_49 = arith.constant dense<0.000000e+00> : vector<8x512xf32>
    %126 = tpu.matmul %124, %125, %cst_49 {dimension_numbers = #tpu.dot_dimension_numbers<[1], [0], [0], [1], [0, 0, 1, 1], [], []>} : vector<8x384xbf16>, vector<384x512xbf16>, vector<8x512xf32> -> vector<8x512xf32>
    %c0_50 = arith.constant 0 : index
    %c0_51 = arith.constant 0 : index
    %127 = vector.load %arg6[%c0_50, %c0_51] : memref<1x512xf32, #tpu.memory_space<vmem>>, vector<1x512xf32>
    %128 = vector.broadcast %127 : vector<1x512xf32> to vector<8x512xf32>
    %129 = arith.addf %126, %128 : vector<8x512xf32>
    %130 = vector.extract_strided_slice %129 {offsets = [0, 0], sizes = [8, 128], strides = [1, 1]} : vector<8x512xf32> to vector<8x128xf32>
    %131 = arith.negf %130 : vector<8x128xf32>
    %132 = math.exp %131 : vector<8x128xf32>
    %cst_52 = arith.constant 1.000000e+00 : f32
    %133 = vector.broadcast %cst_52 : f32 to vector<8x128xf32>
    %134 = arith.addf %133, %132 : vector<8x128xf32>
    %135 = arith.divf %133, %134 : vector<8x128xf32>
    %136 = vector.extract_strided_slice %129 {offsets = [0, 128], sizes = [8, 128], strides = [1, 1]} : vector<8x512xf32> to vector<8x128xf32>
    %137 = arith.negf %136 : vector<8x128xf32>
    %138 = math.exp %137 : vector<8x128xf32>
    %cst_53 = arith.constant 1.000000e+00 : f32
    %139 = vector.broadcast %cst_53 : f32 to vector<8x128xf32>
    %140 = arith.addf %139, %138 : vector<8x128xf32>
    %141 = arith.divf %139, %140 : vector<8x128xf32>
    %142 = vector.extract_strided_slice %129 {offsets = [0, 256], sizes = [8, 128], strides = [1, 1]} : vector<8x512xf32> to vector<8x128xf32>
    %143 = math.tanh %142 : vector<8x128xf32>
    %144 = vector.extract_strided_slice %129 {offsets = [0, 384], sizes = [8, 128], strides = [1, 1]} : vector<8x512xf32> to vector<8x128xf32>
    %145 = arith.negf %144 : vector<8x128xf32>
    %146 = math.exp %145 : vector<8x128xf32>
    %cst_54 = arith.constant 1.000000e+00 : f32
    %147 = vector.broadcast %cst_54 : f32 to vector<8x128xf32>
    %148 = arith.addf %147, %146 : vector<8x128xf32>
    %149 = arith.divf %147, %148 : vector<8x128xf32>
    %150 = arith.mulf %141, %40 : vector<8x128xf32>
    %151 = arith.mulf %135, %143 : vector<8x128xf32>
    %152 = arith.addf %150, %151 : vector<8x128xf32>
    %153 = math.tanh %152 : vector<8x128xf32>
    %154 = arith.mulf %149, %153 : vector<8x128xf32>
    %155 = tpu.concatenate %154, %74 in 1 : vector<8x128xf32>, vector<8x128xf32> -> vector<8x256xf32>
    %156 = arith.truncf %155 : vector<8x256xf32> to vector<8x256xbf16>
    %c0_55 = arith.constant 0 : index
    %c0_56 = arith.constant 0 : index
    %157 = vector.load %arg7[%c0_55, %c0_56] : memref<256x512xbf16, #tpu.memory_space<vmem>>, vector<256x512xbf16>
    %cst_57 = arith.constant dense<0.000000e+00> : vector<8x512xf32>
    %158 = tpu.matmul %156, %157, %cst_57 {dimension_numbers = #tpu.dot_dimension_numbers<[1], [0], [0], [1], [0, 0, 1, 1], [], []>} : vector<8x256xbf16>, vector<256x512xbf16>, vector<8x512xf32> -> vector<8x512xf32>
    %c0_58 = arith.constant 0 : index
    %c0_59 = arith.constant 0 : index
    %159 = vector.load %arg8[%c0_58, %c0_59] : memref<1x512xf32, #tpu.memory_space<vmem>>, vector<1x512xf32>
    %160 = vector.broadcast %159 : vector<1x512xf32> to vector<8x512xf32>
    %161 = arith.addf %158, %160 : vector<8x512xf32>
    %162 = vector.extract_strided_slice %161 {offsets = [0, 0], sizes = [8, 128], strides = [1, 1]} : vector<8x512xf32> to vector<8x128xf32>
    %163 = arith.negf %162 : vector<8x128xf32>
    %164 = math.exp %163 : vector<8x128xf32>
    %cst_60 = arith.constant 1.000000e+00 : f32
    %165 = vector.broadcast %cst_60 : f32 to vector<8x128xf32>
    %166 = arith.addf %165, %164 : vector<8x128xf32>
    %167 = arith.divf %165, %166 : vector<8x128xf32>
    %168 = vector.extract_strided_slice %161 {offsets = [0, 128], sizes = [8, 128], strides = [1, 1]} : vector<8x512xf32> to vector<8x128xf32>
    %169 = arith.negf %168 : vector<8x128xf32>
    %170 = math.exp %169 : vector<8x128xf32>
    %cst_61 = arith.constant 1.000000e+00 : f32
    %171 = vector.broadcast %cst_61 : f32 to vector<8x128xf32>
    %172 = arith.addf %171, %170 : vector<8x128xf32>
    %173 = arith.divf %171, %172 : vector<8x128xf32>
    %174 = vector.extract_strided_slice %161 {offsets = [0, 256], sizes = [8, 128], strides = [1, 1]} : vector<8x512xf32> to vector<8x128xf32>
    %175 = math.tanh %174 : vector<8x128xf32>
    %176 = vector.extract_strided_slice %161 {offsets = [0, 384], sizes = [8, 128], strides = [1, 1]} : vector<8x512xf32> to vector<8x128xf32>
    %177 = arith.negf %176 : vector<8x128xf32>
    %178 = math.exp %177 : vector<8x128xf32>
    %cst_62 = arith.constant 1.000000e+00 : f32
    %179 = vector.broadcast %cst_62 : f32 to vector<8x128xf32>
    %180 = arith.addf %179, %178 : vector<8x128xf32>
    %181 = arith.divf %179, %180 : vector<8x128xf32>
    %182 = arith.mulf %173, %72 : vector<8x128xf32>
    %183 = arith.mulf %167, %175 : vector<8x128xf32>
    %184 = arith.addf %182, %183 : vector<8x128xf32>
    %185 = math.tanh %184 : vector<8x128xf32>
    %186 = arith.mulf %181, %185 : vector<8x128xf32>
    %187 = vector.shape_cast %186 : vector<8x128xf32> to vector<8x1x128xf32>
    %188 = arith.truncf %187 : vector<8x1x128xf32> to vector<8x1x128xbf16>
    "tpu.trace_start"() <{level = 10 : i32, message = "bqh,bsh->bqs"}> : () -> ()
    %cst_63 = arith.constant dense<0.000000e+00> : vector<8x1x16xf32>
    %189 = tpu.matmul %188, %0, %cst_63 {dimension_numbers = #tpu.dot_dimension_numbers<[2], [2], [1], [1], [0, 0, 0, 1, 1, 1], [0], [0]>} : vector<8x1x128xbf16>, vector<8x16x128xbf16>, vector<8x1x16xf32> -> vector<8x1x16xf32>
    "tpu.trace_stop"() : () -> ()
    %190 = arith.addf %189, %2 : vector<8x1x16xf32>
    %cst_64 = arith.constant dense<0xFF800000> : vector<8x1xf32>
    %191 = vector.multi_reduction <maximumf>, %190, %cst_64 [2] : vector<8x1x16xf32> to vector<8x1xf32>
    %192 = vector.shape_cast %191 : vector<8x1xf32> to vector<8x1x1xf32>
    %193 = vector.broadcast %192 : vector<8x1x1xf32> to vector<8x1x16xf32>
    %194 = arith.subf %190, %193 : vector<8x1x16xf32>
    %195 = math.exp %194 : vector<8x1x16xf32>
    %cst_65 = arith.constant dense<0.000000e+00> : vector<8x1xf32>
    %196 = vector.multi_reduction <add>, %195, %cst_65 [2] : vector<8x1x16xf32> to vector<8x1xf32>
    %197 = vector.shape_cast %196 : vector<8x1xf32> to vector<8x1x1xf32>
    %198 = tpu.reciprocal %197 {approx = true} : vector<8x1x1xf32> -> vector<8x1x1xf32>
    %199 = vector.broadcast %198 : vector<8x1x1xf32> to vector<8x1x16xf32>
    %200 = arith.mulf %195, %199 : vector<8x1x16xf32>
    %201 = arith.truncf %200 : vector<8x1x16xf32> to vector<8x1x16xbf16>
    "tpu.trace_start"() <{level = 10 : i32, message = "bqs,bsh->bqh"}> : () -> ()
    %cst_66 = arith.constant dense<0.000000e+00> : vector<8x1x128xf32>
    %202 = tpu.matmul %201, %0, %cst_66 {dimension_numbers = #tpu.dot_dimension_numbers<[2], [1], [1], [2], [0, 0, 0, 1, 1, 2], [0], [0]>} : vector<8x1x16xbf16>, vector<8x16x128xbf16>, vector<8x1x128xf32> -> vector<8x1x128xf32>
    "tpu.trace_stop"() : () -> ()
    %203 = vector.shape_cast %202 : vector<8x1x128xf32> to vector<8x128xf32>
    %204 = tpu.concatenate %203, %186 in 1 : vector<8x128xf32>, vector<8x128xf32> -> vector<8x256xf32>
    %205 = arith.truncf %204 : vector<8x256xf32> to vector<8x256xbf16>
    %c0_67 = arith.constant 0 : index
    %c0_68 = arith.constant 0 : index
    %206 = vector.load %arg9[%c0_67, %c0_68] : memref<256x128xbf16, #tpu.memory_space<vmem>>, vector<256x128xbf16>
    %cst_69 = arith.constant dense<0.000000e+00> : vector<8x128xf32>
    %207 = tpu.matmul %205, %206, %cst_69 {dimension_numbers = #tpu.dot_dimension_numbers<[1], [0], [0], [1], [0, 0, 1, 1], [], []>} : vector<8x256xbf16>, vector<256x128xbf16>, vector<8x128xf32> -> vector<8x128xf32>
    %c0_70 = arith.constant 0 : index
    %c0_71 = arith.constant 0 : index
    %208 = vector.load %arg10[%c0_70, %c0_71] : memref<1x128xf32, #tpu.memory_space<vmem>>, vector<1x128xf32>
    %209 = vector.broadcast %208 : vector<1x128xf32> to vector<8x128xf32>
    %210 = arith.addf %207, %209 : vector<8x128xf32>
    %211 = math.tanh %210 : vector<8x128xf32>
    %212 = arith.truncf %211 : vector<8x128xf32> to vector<8x128xbf16>
    %c0_72 = arith.constant 0 : index
    %c0_73 = arith.constant 0 : index
    %213 = vector.load %arg11[%c0_72, %c0_73] : memref<128x128xbf16, #tpu.memory_space<vmem>>, vector<128x128xbf16>
    %cst_74 = arith.constant dense<0.000000e+00> : vector<8x128xf32>
    %214 = tpu.matmul %212, %213, %cst_74 {dimension_numbers = #tpu.dot_dimension_numbers<[1], [0], [0], [1], [0, 0, 1, 1], [], []>} : vector<8x128xbf16>, vector<128x128xbf16>, vector<8x128xf32> -> vector<8x128xf32>
    %c0_75 = arith.constant 0 : index
    %c0_76 = arith.constant 0 : index
    %215 = vector.load %arg12[%c0_75, %c0_76] : memref<1x128xf32, #tpu.memory_space<vmem>>, vector<1x128xf32>
    %216 = vector.broadcast %215 : vector<1x128xf32> to vector<8x128xf32>
    %217 = arith.addf %214, %216 : vector<8x128xf32>
    %cst_77 = arith.constant dense<0xFF800000> : vector<8xf32>
    %218 = vector.multi_reduction <maximumf>, %217, %cst_77 [1] : vector<8x128xf32> to vector<8xf32>
    %219 = vector.shape_cast %218 : vector<8xf32> to vector<8x1xf32>
    %220 = vector.broadcast %219 : vector<8x1xf32> to vector<8x128xf32>
    %221 = arith.subf %217, %220 : vector<8x128xf32>
    %222 = math.exp %221 : vector<8x128xf32>
    %cst_78 = arith.constant dense<0.000000e+00> : vector<8xf32>
    %223 = vector.multi_reduction <add>, %222, %cst_78 [1] : vector<8x128xf32> to vector<8xf32>
    %224 = vector.shape_cast %223 : vector<8xf32> to vector<8x1xf32>
    %225 = math.log %224 : vector<8x1xf32>
    %226 = vector.broadcast %225 : vector<8x1xf32> to vector<8x128xf32>
    %227 = arith.subf %221, %226 : vector<8x128xf32>
    %228 = arith.index_cast %c1_i32 : i32 to index
    %c0_79 = arith.constant 0 : index
    %c0_80 = arith.constant 0 : index
    %229 = vector.load %arg13[%228, %c0_79, %c0_80] : memref<7x8x128xf32, #tpu.memory_space<vmem>>, vector<1x8x128xf32>
    %230 = vector.shape_cast %229 : vector<1x8x128xf32> to vector<8x128xf32>
    %231 = vector.shape_cast %227 : vector<8x128xf32> to vector<1x8x128xf32>
    tpu.vector_store %arg13[%228, %c0_79, %c0_80], %231 {strides = array<i32>} : memref<7x8x128xf32, #tpu.memory_space<vmem>>, vector<1x8x128xf32>,
    %c2_i32 = arith.constant 2 : i32
    %232 = arith.index_cast %c2_i32 : i32 to index
    %c0_81 = arith.constant 0 : index
    %c0_82 = arith.constant 0 : index
    %233 = vector.load %arg1[%232, %c0_81, %c0_82] : memref<7x8x128xf32, #tpu.memory_space<vmem>>, vector<1x8x128xf32>
    %234 = vector.shape_cast %233 : vector<1x8x128xf32> to vector<8x128xf32>
    %235 = tpu.concatenate %211, %234, %154 in 1 : vector<8x128xf32>, vector<8x128xf32>, vector<8x128xf32> -> vector<8x384xf32>
    %236 = arith.truncf %235 : vector<8x384xf32> to vector<8x384xbf16>
    %c0_83 = arith.constant 0 : index
    %c0_84 = arith.constant 0 : index
    %237 = vector.load %arg5[%c0_83, %c0_84] : memref<384x512xbf16, #tpu.memory_space<vmem>>, vector<384x512xbf16>
    %cst_85 = arith.constant dense<0.000000e+00> : vector<8x512xf32>
    %238 = tpu.matmul %236, %237, %cst_85 {dimension_numbers = #tpu.dot_dimension_numbers<[1], [0], [0], [1], [0, 0, 1, 1], [], []>} : vector<8x384xbf16>, vector<384x512xbf16>, vector<8x512xf32> -> vector<8x512xf32>
    %c0_86 = arith.constant 0 : index
    %c0_87 = arith.constant 0 : index
    %239 = vector.load %arg6[%c0_86, %c0_87] : memref<1x512xf32, #tpu.memory_space<vmem>>, vector<1x512xf32>
    %240 = vector.broadcast %239 : vector<1x512xf32> to vector<8x512xf32>
    %241 = arith.addf %238, %240 : vector<8x512xf32>
    %242 = vector.extract_strided_slice %241 {offsets = [0, 0], sizes = [8, 128], strides = [1, 1]} : vector<8x512xf32> to vector<8x128xf32>
    %243 = arith.negf %242 : vector<8x128xf32>
    %244 = math.exp %243 : vector<8x128xf32>
    %cst_88 = arith.constant 1.000000e+00 : f32
    %245 = vector.broadcast %cst_88 : f32 to vector<8x128xf32>
    %246 = arith.addf %245, %244 : vector<8x128xf32>
    %247 = arith.divf %245, %246 : vector<8x128xf32>
    %248 = vector.extract_strided_slice %241 {offsets = [0, 128], sizes = [8, 128], strides = [1, 1]} : vector<8x512xf32> to vector<8x128xf32>
    %249 = arith.negf %248 : vector<8x128xf32>
    %250 = math.exp %249 : vector<8x128xf32>
    %cst_89 = arith.constant 1.000000e+00 : f32
    %251 = vector.broadcast %cst_89 : f32 to vector<8x128xf32>
    %252 = arith.addf %251, %250 : vector<8x128xf32>
    %253 = arith.divf %251, %252 : vector<8x128xf32>
    %254 = vector.extract_strided_slice %241 {offsets = [0, 256], sizes = [8, 128], strides = [1, 1]} : vector<8x512xf32> to vector<8x128xf32>
    %255 = math.tanh %254 : vector<8x128xf32>
    %256 = vector.extract_strided_slice %241 {offsets = [0, 384], sizes = [8, 128], strides = [1, 1]} : vector<8x512xf32> to vector<8x128xf32>
    %257 = arith.negf %256 : vector<8x128xf32>
    %258 = math.exp %257 : vector<8x128xf32>
    %cst_90 = arith.constant 1.000000e+00 : f32
    %259 = vector.broadcast %cst_90 : f32 to vector<8x128xf32>
    %260 = arith.addf %259, %258 : vector<8x128xf32>
    %261 = arith.divf %259, %260 : vector<8x128xf32>
    %262 = arith.mulf %253, %152 : vector<8x128xf32>
    %263 = arith.mulf %247, %255 : vector<8x128xf32>
    %264 = arith.addf %262, %263 : vector<8x128xf32>
    %265 = math.tanh %264 : vector<8x128xf32>
    %266 = arith.mulf %261, %265 : vector<8x128xf32>
    %267 = tpu.concatenate %266, %186 in 1 : vector<8x128xf32>, vector<8x128xf32> -> vector<8x256xf32>
    %268 = arith.truncf %267 : vector<8x256xf32> to vector<8x256xbf16>
    %c0_91 = arith.constant 0 : index
    %c0_92 = arith.constant 0 : index
    %269 = vector.load %arg7[%c0_91, %c0_92] : memref<256x512xbf16, #tpu.memory_space<vmem>>, vector<256x512xbf16>
    %cst_93 = arith.constant dense<0.000000e+00> : vector<8x512xf32>
    %270 = tpu.matmul %268, %269, %cst_93 {dimension_numbers = #tpu.dot_dimension_numbers<[1], [0], [0], [1], [0, 0, 1, 1], [], []>} : vector<8x256xbf16>, vector<256x512xbf16>, vector<8x512xf32> -> vector<8x512xf32>
    %c0_94 = arith.constant 0 : index
    %c0_95 = arith.constant 0 : index
    %271 = vector.load %arg8[%c0_94, %c0_95] : memref<1x512xf32, #tpu.memory_space<vmem>>, vector<1x512xf32>
    %272 = vector.broadcast %271 : vector<1x512xf32> to vector<8x512xf32>
    %273 = arith.addf %270, %272 : vector<8x512xf32>
    %274 = vector.extract_strided_slice %273 {offsets = [0, 0], sizes = [8, 128], strides = [1, 1]} : vector<8x512xf32> to vector<8x128xf32>
    %275 = arith.negf %274 : vector<8x128xf32>
    %276 = math.exp %275 : vector<8x128xf32>
    %cst_96 = arith.constant 1.000000e+00 : f32
    %277 = vector.broadcast %cst_96 : f32 to vector<8x128xf32>
    %278 = arith.addf %277, %276 : vector<8x128xf32>
    %279 = arith.divf %277, %278 : vector<8x128xf32>
    %280 = vector.extract_strided_slice %273 {offsets = [0, 128], sizes = [8, 128], strides = [1, 1]} : vector<8x512xf32> to vector<8x128xf32>
    %281 = arith.negf %280 : vector<8x128xf32>
    %282 = math.exp %281 : vector<8x128xf32>
    %cst_97 = arith.constant 1.000000e+00 : f32
    %283 = vector.broadcast %cst_97 : f32 to vector<8x128xf32>
    %284 = arith.addf %283, %282 : vector<8x128xf32>
    %285 = arith.divf %283, %284 : vector<8x128xf32>
    %286 = vector.extract_strided_slice %273 {offsets = [0, 256], sizes = [8, 128], strides = [1, 1]} : vector<8x512xf32> to vector<8x128xf32>
    %287 = math.tanh %286 : vector<8x128xf32>
    %288 = vector.extract_strided_slice %273 {offsets = [0, 384], sizes = [8, 128], strides = [1, 1]} : vector<8x512xf32> to vector<8x128xf32>
    %289 = arith.negf %288 : vector<8x128xf32>
    %290 = math.exp %289 : vector<8x128xf32>
    %cst_98 = arith.constant 1.000000e+00 : f32
    %291 = vector.broadcast %cst_98 : f32 to vector<8x128xf32>
    %292 = arith.addf %291, %290 : vector<8x128xf32>
    %293 = arith.divf %291, %292 : vector<8x128xf32>
    %294 = arith.mulf %285, %184 : vector<8x128xf32>
    %295 = arith.mulf %279, %287 : vector<8x128xf32>
    %296 = arith.addf %294, %295 : vector<8x128xf32>
    %297 = math.tanh %296 : vector<8x128xf32>
    %298 = arith.mulf %293, %297 : vector<8x128xf32>
    %299 = vector.shape_cast %298 : vector<8x128xf32> to vector<8x1x128xf32>
    %300 = arith.truncf %299 : vector<8x1x128xf32> to vector<8x1x128xbf16>
    "tpu.trace_start"() <{level = 10 : i32, message = "bqh,bsh->bqs"}> : () -> ()
    %cst_99 = arith.constant dense<0.000000e+00> : vector<8x1x16xf32>
    %301 = tpu.matmul %300, %0, %cst_99 {dimension_numbers = #tpu.dot_dimension_numbers<[2], [2], [1], [1], [0, 0, 0, 1, 1, 1], [0], [0]>} : vector<8x1x128xbf16>, vector<8x16x128xbf16>, vector<8x1x16xf32> -> vector<8x1x16xf32>
    "tpu.trace_stop"() : () -> ()
    %302 = arith.addf %301, %2 : vector<8x1x16xf32>
    %cst_100 = arith.constant dense<0xFF800000> : vector<8x1xf32>
    %303 = vector.multi_reduction <maximumf>, %302, %cst_100 [2] : vector<8x1x16xf32> to vector<8x1xf32>
    %304 = vector.shape_cast %303 : vector<8x1xf32> to vector<8x1x1xf32>
    %305 = vector.broadcast %304 : vector<8x1x1xf32> to vector<8x1x16xf32>
    %306 = arith.subf %302, %305 : vector<8x1x16xf32>
    %307 = math.exp %306 : vector<8x1x16xf32>
    %cst_101 = arith.constant dense<0.000000e+00> : vector<8x1xf32>
    %308 = vector.multi_reduction <add>, %307, %cst_101 [2] : vector<8x1x16xf32> to vector<8x1xf32>
    %309 = vector.shape_cast %308 : vector<8x1xf32> to vector<8x1x1xf32>
    %310 = tpu.reciprocal %309 {approx = true} : vector<8x1x1xf32> -> vector<8x1x1xf32>
    %311 = vector.broadcast %310 : vector<8x1x1xf32> to vector<8x1x16xf32>
    %312 = arith.mulf %307, %311 : vector<8x1x16xf32>
    %313 = arith.truncf %312 : vector<8x1x16xf32> to vector<8x1x16xbf16>
    "tpu.trace_start"() <{level = 10 : i32, message = "bqs,bsh->bqh"}> : () -> ()
    %cst_102 = arith.constant dense<0.000000e+00> : vector<8x1x128xf32>
    %314 = tpu.matmul %313, %0, %cst_102 {dimension_numbers = #tpu.dot_dimension_numbers<[2], [1], [1], [2], [0, 0, 0, 1, 1, 2], [0], [0]>} : vector<8x1x16xbf16>, vector<8x16x128xbf16>, vector<8x1x128xf32> -> vector<8x1x128xf32>
    "tpu.trace_stop"() : () -> ()
    %315 = vector.shape_cast %314 : vector<8x1x128xf32> to vector<8x128xf32>
    %316 = tpu.concatenate %315, %298 in 1 : vector<8x128xf32>, vector<8x128xf32> -> vector<8x256xf32>
    %317 = arith.truncf %316 : vector<8x256xf32> to vector<8x256xbf16>
    %c0_103 = arith.constant 0 : index
    %c0_104 = arith.constant 0 : index
    %318 = vector.load %arg9[%c0_103, %c0_104] : memref<256x128xbf16, #tpu.memory_space<vmem>>, vector<256x128xbf16>
    %cst_105 = arith.constant dense<0.000000e+00> : vector<8x128xf32>
    %319 = tpu.matmul %317, %318, %cst_105 {dimension_numbers = #tpu.dot_dimension_numbers<[1], [0], [0], [1], [0, 0, 1, 1], [], []>} : vector<8x256xbf16>, vector<256x128xbf16>, vector<8x128xf32> -> vector<8x128xf32>
    %c0_106 = arith.constant 0 : index
    %c0_107 = arith.constant 0 : index
    %320 = vector.load %arg10[%c0_106, %c0_107] : memref<1x128xf32, #tpu.memory_space<vmem>>, vector<1x128xf32>
    %321 = vector.broadcast %320 : vector<1x128xf32> to vector<8x128xf32>
    %322 = arith.addf %319, %321 : vector<8x128xf32>
    %323 = math.tanh %322 : vector<8x128xf32>
    %324 = arith.truncf %323 : vector<8x128xf32> to vector<8x128xbf16>
    %c0_108 = arith.constant 0 : index
    %c0_109 = arith.constant 0 : index
    %325 = vector.load %arg11[%c0_108, %c0_109] : memref<128x128xbf16, #tpu.memory_space<vmem>>, vector<128x128xbf16>
    %cst_110 = arith.constant dense<0.000000e+00> : vector<8x128xf32>
    %326 = tpu.matmul %324, %325, %cst_110 {dimension_numbers = #tpu.dot_dimension_numbers<[1], [0], [0], [1], [0, 0, 1, 1], [], []>} : vector<8x128xbf16>, vector<128x128xbf16>, vector<8x128xf32> -> vector<8x128xf32>
    %c0_111 = arith.constant 0 : index
    %c0_112 = arith.constant 0 : index
    %327 = vector.load %arg12[%c0_111, %c0_112] : memref<1x128xf32, #tpu.memory_space<vmem>>, vector<1x128xf32>
    %328 = vector.broadcast %327 : vector<1x128xf32> to vector<8x128xf32>
    %329 = arith.addf %326, %328 : vector<8x128xf32>
    %cst_113 = arith.constant dense<0xFF800000> : vector<8xf32>
    %330 = vector.multi_reduction <maximumf>, %329, %cst_113 [1] : vector<8x128xf32> to vector<8xf32>
    %331 = vector.shape_cast %330 : vector<8xf32> to vector<8x1xf32>
    %332 = vector.broadcast %331 : vector<8x1xf32> to vector<8x128xf32>
    %333 = arith.subf %329, %332 : vector<8x128xf32>
    %334 = math.exp %333 : vector<8x128xf32>
    %cst_114 = arith.constant dense<0.000000e+00> : vector<8xf32>
    %335 = vector.multi_reduction <add>, %334, %cst_114 [1] : vector<8x128xf32> to vector<8xf32>
    %336 = vector.shape_cast %335 : vector<8xf32> to vector<8x1xf32>
    %337 = math.log %336 : vector<8x1xf32>
    %338 = vector.broadcast %337 : vector<8x1xf32> to vector<8x128xf32>
    %339 = arith.subf %333, %338 : vector<8x128xf32>
    %340 = arith.index_cast %c2_i32 : i32 to index
    %c0_115 = arith.constant 0 : index
    %c0_116 = arith.constant 0 : index
    %341 = vector.load %arg13[%340, %c0_115, %c0_116] : memref<7x8x128xf32, #tpu.memory_space<vmem>>, vector<1x8x128xf32>
    %342 = vector.shape_cast %341 : vector<1x8x128xf32> to vector<8x128xf32>
    %343 = vector.shape_cast %339 : vector<8x128xf32> to vector<1x8x128xf32>
    tpu.vector_store %arg13[%340, %c0_115, %c0_116], %343 {strides = array<i32>} : memref<7x8x128xf32, #tpu.memory_space<vmem>>, vector<1x8x128xf32>,
    %c3_i32 = arith.constant 3 : i32
    %344 = arith.index_cast %c3_i32 : i32 to index
    %c0_117 = arith.constant 0 : index
    %c0_118 = arith.constant 0 : index
    %345 = vector.load %arg1[%344, %c0_117, %c0_118] : memref<7x8x128xf32, #tpu.memory_space<vmem>>, vector<1x8x128xf32>
    %346 = vector.shape_cast %345 : vector<1x8x128xf32> to vector<8x128xf32>
    %347 = tpu.concatenate %323, %346, %266 in 1 : vector<8x128xf32>, vector<8x128xf32>, vector<8x128xf32> -> vector<8x384xf32>
    %348 = arith.truncf %347 : vector<8x384xf32> to vector<8x384xbf16>
    %c0_119 = arith.constant 0 : index
    %c0_120 = arith.constant 0 : index
    %349 = vector.load %arg5[%c0_119, %c0_120] : memref<384x512xbf16, #tpu.memory_space<vmem>>, vector<384x512xbf16>
    %cst_121 = arith.constant dense<0.000000e+00> : vector<8x512xf32>
    %350 = tpu.matmul %348, %349, %cst_121 {dimension_numbers = #tpu.dot_dimension_numbers<[1], [0], [0], [1], [0, 0, 1, 1], [], []>} : vector<8x384xbf16>, vector<384x512xbf16>, vector<8x512xf32> -> vector<8x512xf32>
    %c0_122 = arith.constant 0 : index
    %c0_123 = arith.constant 0 : index
    %351 = vector.load %arg6[%c0_122, %c0_123] : memref<1x512xf32, #tpu.memory_space<vmem>>, vector<1x512xf32>
    %352 = vector.broadcast %351 : vector<1x512xf32> to vector<8x512xf32>
    %353 = arith.addf %350, %352 : vector<8x512xf32>
    %354 = vector.extract_strided_slice %353 {offsets = [0, 0], sizes = [8, 128], strides = [1, 1]} : vector<8x512xf32> to vector<8x128xf32>
    %355 = arith.negf %354 : vector<8x128xf32>
    %356 = math.exp %355 : vector<8x128xf32>
    %cst_124 = arith.constant 1.000000e+00 : f32
    %357 = vector.broadcast %cst_124 : f32 to vector<8x128xf32>
    %358 = arith.addf %357, %356 : vector<8x128xf32>
    %359 = arith.divf %357, %358 : vector<8x128xf32>
    %360 = vector.extract_strided_slice %353 {offsets = [0, 128], sizes = [8, 128], strides = [1, 1]} : vector<8x512xf32> to vector<8x128xf32>
    %361 = arith.negf %360 : vector<8x128xf32>
    %362 = math.exp %361 : vector<8x128xf32>
    %cst_125 = arith.constant 1.000000e+00 : f32
    %363 = vector.broadcast %cst_125 : f32 to vector<8x128xf32>
    %364 = arith.addf %363, %362 : vector<8x128xf32>
    %365 = arith.divf %363, %364 : vector<8x128xf32>
    %366 = vector.extract_strided_slice %353 {offsets = [0, 256], sizes = [8, 128], strides = [1, 1]} : vector<8x512xf32> to vector<8x128xf32>
    %367 = math.tanh %366 : vector<8x128xf32>
    %368 = vector.extract_strided_slice %353 {offsets = [0, 384], sizes = [8, 128], strides = [1, 1]} : vector<8x512xf32> to vector<8x128xf32>
    %369 = arith.negf %368 : vector<8x128xf32>
    %370 = math.exp %369 : vector<8x128xf32>
    %cst_126 = arith.constant 1.000000e+00 : f32
    %371 = vector.broadcast %cst_126 : f32 to vector<8x128xf32>
    %372 = arith.addf %371, %370 : vector<8x128xf32>
    %373 = arith.divf %371, %372 : vector<8x128xf32>
    %374 = arith.mulf %365, %264 : vector<8x128xf32>
    %375 = arith.mulf %359, %367 : vector<8x128xf32>
    %376 = arith.addf %374, %375 : vector<8x128xf32>
    %377 = math.tanh %376 : vector<8x128xf32>
    %378 = arith.mulf %373, %377 : vector<8x128xf32>
    %379 = tpu.concatenate %378, %298 in 1 : vector<8x128xf32>, vector<8x128xf32> -> vector<8x256xf32>
    %380 = arith.truncf %379 : vector<8x256xf32> to vector<8x256xbf16>
    %c0_127 = arith.constant 0 : index
    %c0_128 = arith.constant 0 : index
    %381 = vector.load %arg7[%c0_127, %c0_128] : memref<256x512xbf16, #tpu.memory_space<vmem>>, vector<256x512xbf16>
    %cst_129 = arith.constant dense<0.000000e+00> : vector<8x512xf32>
    %382 = tpu.matmul %380, %381, %cst_129 {dimension_numbers = #tpu.dot_dimension_numbers<[1], [0], [0], [1], [0, 0, 1, 1], [], []>} : vector<8x256xbf16>, vector<256x512xbf16>, vector<8x512xf32> -> vector<8x512xf32>
    %c0_130 = arith.constant 0 : index
    %c0_131 = arith.constant 0 : index
    %383 = vector.load %arg8[%c0_130, %c0_131] : memref<1x512xf32, #tpu.memory_space<vmem>>, vector<1x512xf32>
    %384 = vector.broadcast %383 : vector<1x512xf32> to vector<8x512xf32>
    %385 = arith.addf %382, %384 : vector<8x512xf32>
    %386 = vector.extract_strided_slice %385 {offsets = [0, 0], sizes = [8, 128], strides = [1, 1]} : vector<8x512xf32> to vector<8x128xf32>
    %387 = arith.negf %386 : vector<8x128xf32>
    %388 = math.exp %387 : vector<8x128xf32>
    %cst_132 = arith.constant 1.000000e+00 : f32
    %389 = vector.broadcast %cst_132 : f32 to vector<8x128xf32>
    %390 = arith.addf %389, %388 : vector<8x128xf32>
    %391 = arith.divf %389, %390 : vector<8x128xf32>
    %392 = vector.extract_strided_slice %385 {offsets = [0, 128], sizes = [8, 128], strides = [1, 1]} : vector<8x512xf32> to vector<8x128xf32>
    %393 = arith.negf %392 : vector<8x128xf32>
    %394 = math.exp %393 : vector<8x128xf32>
    %cst_133 = arith.constant 1.000000e+00 : f32
    %395 = vector.broadcast %cst_133 : f32 to vector<8x128xf32>
    %396 = arith.addf %395, %394 : vector<8x128xf32>
    %397 = arith.divf %395, %396 : vector<8x128xf32>
    %398 = vector.extract_strided_slice %385 {offsets = [0, 256], sizes = [8, 128], strides = [1, 1]} : vector<8x512xf32> to vector<8x128xf32>
    %399 = math.tanh %398 : vector<8x128xf32>
    %400 = vector.extract_strided_slice %385 {offsets = [0, 384], sizes = [8, 128], strides = [1, 1]} : vector<8x512xf32> to vector<8x128xf32>
    %401 = arith.negf %400 : vector<8x128xf32>
    %402 = math.exp %401 : vector<8x128xf32>
    %cst_134 = arith.constant 1.000000e+00 : f32
    %403 = vector.broadcast %cst_134 : f32 to vector<8x128xf32>
    %404 = arith.addf %403, %402 : vector<8x128xf32>
    %405 = arith.divf %403, %404 : vector<8x128xf32>
    %406 = arith.mulf %397, %296 : vector<8x128xf32>
    %407 = arith.mulf %391, %399 : vector<8x128xf32>
    %408 = arith.addf %406, %407 : vector<8x128xf32>
    %409 = math.tanh %408 : vector<8x128xf32>
    %410 = arith.mulf %405, %409 : vector<8x128xf32>
    %411 = vector.shape_cast %410 : vector<8x128xf32> to vector<8x1x128xf32>
    %412 = arith.truncf %411 : vector<8x1x128xf32> to vector<8x1x128xbf16>
    "tpu.trace_start"() <{level = 10 : i32, message = "bqh,bsh->bqs"}> : () -> ()
    %cst_135 = arith.constant dense<0.000000e+00> : vector<8x1x16xf32>
    %413 = tpu.matmul %412, %0, %cst_135 {dimension_numbers = #tpu.dot_dimension_numbers<[2], [2], [1], [1], [0, 0, 0, 1, 1, 1], [0], [0]>} : vector<8x1x128xbf16>, vector<8x16x128xbf16>, vector<8x1x16xf32> -> vector<8x1x16xf32>
    "tpu.trace_stop"() : () -> ()
    %414 = arith.addf %413, %2 : vector<8x1x16xf32>
    %cst_136 = arith.constant dense<0xFF800000> : vector<8x1xf32>
    %415 = vector.multi_reduction <maximumf>, %414, %cst_136 [2] : vector<8x1x16xf32> to vector<8x1xf32>
    %416 = vector.shape_cast %415 : vector<8x1xf32> to vector<8x1x1xf32>
    %417 = vector.broadcast %416 : vector<8x1x1xf32> to vector<8x1x16xf32>
    %418 = arith.subf %414, %417 : vector<8x1x16xf32>
    %419 = math.exp %418 : vector<8x1x16xf32>
    %cst_137 = arith.constant dense<0.000000e+00> : vector<8x1xf32>
    %420 = vector.multi_reduction <add>, %419, %cst_137 [2] : vector<8x1x16xf32> to vector<8x1xf32>
    %421 = vector.shape_cast %420 : vector<8x1xf32> to vector<8x1x1xf32>
    %422 = tpu.reciprocal %421 {approx = true} : vector<8x1x1xf32> -> vector<8x1x1xf32>
    %423 = vector.broadcast %422 : vector<8x1x1xf32> to vector<8x1x16xf32>
    %424 = arith.mulf %419, %423 : vector<8x1x16xf32>
    %425 = arith.truncf %424 : vector<8x1x16xf32> to vector<8x1x16xbf16>
    "tpu.trace_start"() <{level = 10 : i32, message = "bqs,bsh->bqh"}> : () -> ()
    %cst_138 = arith.constant dense<0.000000e+00> : vector<8x1x128xf32>
    %426 = tpu.matmul %425, %0, %cst_138 {dimension_numbers = #tpu.dot_dimension_numbers<[2], [1], [1], [2], [0, 0, 0, 1, 1, 2], [0], [0]>} : vector<8x1x16xbf16>, vector<8x16x128xbf16>, vector<8x1x128xf32> -> vector<8x1x128xf32>
    "tpu.trace_stop"() : () -> ()
    %427 = vector.shape_cast %426 : vector<8x1x128xf32> to vector<8x128xf32>
    %428 = tpu.concatenate %427, %410 in 1 : vector<8x128xf32>, vector<8x128xf32> -> vector<8x256xf32>
    %429 = arith.truncf %428 : vector<8x256xf32> to vector<8x256xbf16>
    %c0_139 = arith.constant 0 : index
    %c0_140 = arith.constant 0 : index
    %430 = vector.load %arg9[%c0_139, %c0_140] : memref<256x128xbf16, #tpu.memory_space<vmem>>, vector<256x128xbf16>
    %cst_141 = arith.constant dense<0.000000e+00> : vector<8x128xf32>
    %431 = tpu.matmul %429, %430, %cst_141 {dimension_numbers = #tpu.dot_dimension_numbers<[1], [0], [0], [1], [0, 0, 1, 1], [], []>} : vector<8x256xbf16>, vector<256x128xbf16>, vector<8x128xf32> -> vector<8x128xf32>
    %c0_142 = arith.constant 0 : index
    %c0_143 = arith.constant 0 : index
    %432 = vector.load %arg10[%c0_142, %c0_143] : memref<1x128xf32, #tpu.memory_space<vmem>>, vector<1x128xf32>
    %433 = vector.broadcast %432 : vector<1x128xf32> to vector<8x128xf32>
    %434 = arith.addf %431, %433 : vector<8x128xf32>
    %435 = math.tanh %434 : vector<8x128xf32>
    %436 = arith.truncf %435 : vector<8x128xf32> to vector<8x128xbf16>
    %c0_144 = arith.constant 0 : index
    %c0_145 = arith.constant 0 : index
    %437 = vector.load %arg11[%c0_144, %c0_145] : memref<128x128xbf16, #tpu.memory_space<vmem>>, vector<128x128xbf16>
    %cst_146 = arith.constant dense<0.000000e+00> : vector<8x128xf32>
    %438 = tpu.matmul %436, %437, %cst_146 {dimension_numbers = #tpu.dot_dimension_numbers<[1], [0], [0], [1], [0, 0, 1, 1], [], []>} : vector<8x128xbf16>, vector<128x128xbf16>, vector<8x128xf32> -> vector<8x128xf32>
    %c0_147 = arith.constant 0 : index
    %c0_148 = arith.constant 0 : index
    %439 = vector.load %arg12[%c0_147, %c0_148] : memref<1x128xf32, #tpu.memory_space<vmem>>, vector<1x128xf32>
    %440 = vector.broadcast %439 : vector<1x128xf32> to vector<8x128xf32>
    %441 = arith.addf %438, %440 : vector<8x128xf32>
    %cst_149 = arith.constant dense<0xFF800000> : vector<8xf32>
    %442 = vector.multi_reduction <maximumf>, %441, %cst_149 [1] : vector<8x128xf32> to vector<8xf32>
    %443 = vector.shape_cast %442 : vector<8xf32> to vector<8x1xf32>
    %444 = vector.broadcast %443 : vector<8x1xf32> to vector<8x128xf32>
    %445 = arith.subf %441, %444 : vector<8x128xf32>
    %446 = math.exp %445 : vector<8x128xf32>
    %cst_150 = arith.constant dense<0.000000e+00> : vector<8xf32>
    %447 = vector.multi_reduction <add>, %446, %cst_150 [1] : vector<8x128xf32> to vector<8xf32>
    %448 = vector.shape_cast %447 : vector<8xf32> to vector<8x1xf32>
    %449 = math.log %448 : vector<8x1xf32>
    %450 = vector.broadcast %449 : vector<8x1xf32> to vector<8x128xf32>
    %451 = arith.subf %445, %450 : vector<8x128xf32>
    %452 = arith.index_cast %c3_i32 : i32 to index
    %c0_151 = arith.constant 0 : index
    %c0_152 = arith.constant 0 : index
    %453 = vector.load %arg13[%452, %c0_151, %c0_152] : memref<7x8x128xf32, #tpu.memory_space<vmem>>, vector<1x8x128xf32>
    %454 = vector.shape_cast %453 : vector<1x8x128xf32> to vector<8x128xf32>
    %455 = vector.shape_cast %451 : vector<8x128xf32> to vector<1x8x128xf32>
    tpu.vector_store %arg13[%452, %c0_151, %c0_152], %455 {strides = array<i32>} : memref<7x8x128xf32, #tpu.memory_space<vmem>>, vector<1x8x128xf32>,
    %c4_i32 = arith.constant 4 : i32
    %456 = arith.index_cast %c4_i32 : i32 to index
    %c0_153 = arith.constant 0 : index
    %c0_154 = arith.constant 0 : index
    %457 = vector.load %arg1[%456, %c0_153, %c0_154] : memref<7x8x128xf32, #tpu.memory_space<vmem>>, vector<1x8x128xf32>
    %458 = vector.shape_cast %457 : vector<1x8x128xf32> to vector<8x128xf32>
    %459 = tpu.concatenate %435, %458, %378 in 1 : vector<8x128xf32>, vector<8x128xf32>, vector<8x128xf32> -> vector<8x384xf32>
    %460 = arith.truncf %459 : vector<8x384xf32> to vector<8x384xbf16>
    %c0_155 = arith.constant 0 : index
    %c0_156 = arith.constant 0 : index
    %461 = vector.load %arg5[%c0_155, %c0_156] : memref<384x512xbf16, #tpu.memory_space<vmem>>, vector<384x512xbf16>
    %cst_157 = arith.constant dense<0.000000e+00> : vector<8x512xf32>
    %462 = tpu.matmul %460, %461, %cst_157 {dimension_numbers = #tpu.dot_dimension_numbers<[1], [0], [0], [1], [0, 0, 1, 1], [], []>} : vector<8x384xbf16>, vector<384x512xbf16>, vector<8x512xf32> -> vector<8x512xf32>
    %c0_158 = arith.constant 0 : index
    %c0_159 = arith.constant 0 : index
    %463 = vector.load %arg6[%c0_158, %c0_159] : memref<1x512xf32, #tpu.memory_space<vmem>>, vector<1x512xf32>
    %464 = vector.broadcast %463 : vector<1x512xf32> to vector<8x512xf32>
    %465 = arith.addf %462, %464 : vector<8x512xf32>
    %466 = vector.extract_strided_slice %465 {offsets = [0, 0], sizes = [8, 128], strides = [1, 1]} : vector<8x512xf32> to vector<8x128xf32>
    %467 = arith.negf %466 : vector<8x128xf32>
    %468 = math.exp %467 : vector<8x128xf32>
    %cst_160 = arith.constant 1.000000e+00 : f32
    %469 = vector.broadcast %cst_160 : f32 to vector<8x128xf32>
    %470 = arith.addf %469, %468 : vector<8x128xf32>
    %471 = arith.divf %469, %470 : vector<8x128xf32>
    %472 = vector.extract_strided_slice %465 {offsets = [0, 128], sizes = [8, 128], strides = [1, 1]} : vector<8x512xf32> to vector<8x128xf32>
    %473 = arith.negf %472 : vector<8x128xf32>
    %474 = math.exp %473 : vector<8x128xf32>
    %cst_161 = arith.constant 1.000000e+00 : f32
    %475 = vector.broadcast %cst_161 : f32 to vector<8x128xf32>
    %476 = arith.addf %475, %474 : vector<8x128xf32>
    %477 = arith.divf %475, %476 : vector<8x128xf32>
    %478 = vector.extract_strided_slice %465 {offsets = [0, 256], sizes = [8, 128], strides = [1, 1]} : vector<8x512xf32> to vector<8x128xf32>
    %479 = math.tanh %478 : vector<8x128xf32>
    %480 = vector.extract_strided_slice %465 {offsets = [0, 384], sizes = [8, 128], strides = [1, 1]} : vector<8x512xf32> to vector<8x128xf32>
    %481 = arith.negf %480 : vector<8x128xf32>
    %482 = math.exp %481 : vector<8x128xf32>
    %cst_162 = arith.constant 1.000000e+00 : f32
    %483 = vector.broadcast %cst_162 : f32 to vector<8x128xf32>
    %484 = arith.addf %483, %482 : vector<8x128xf32>
    %485 = arith.divf %483, %484 : vector<8x128xf32>
    %486 = arith.mulf %477, %376 : vector<8x128xf32>
    %487 = arith.mulf %471, %479 : vector<8x128xf32>
    %488 = arith.addf %486, %487 : vector<8x128xf32>
    %489 = math.tanh %488 : vector<8x128xf32>
    %490 = arith.mulf %485, %489 : vector<8x128xf32>
    %491 = tpu.concatenate %490, %410 in 1 : vector<8x128xf32>, vector<8x128xf32> -> vector<8x256xf32>
    %492 = arith.truncf %491 : vector<8x256xf32> to vector<8x256xbf16>
    %c0_163 = arith.constant 0 : index
    %c0_164 = arith.constant 0 : index
    %493 = vector.load %arg7[%c0_163, %c0_164] : memref<256x512xbf16, #tpu.memory_space<vmem>>, vector<256x512xbf16>
    %cst_165 = arith.constant dense<0.000000e+00> : vector<8x512xf32>
    %494 = tpu.matmul %492, %493, %cst_165 {dimension_numbers = #tpu.dot_dimension_numbers<[1], [0], [0], [1], [0, 0, 1, 1], [], []>} : vector<8x256xbf16>, vector<256x512xbf16>, vector<8x512xf32> -> vector<8x512xf32>
    %c0_166 = arith.constant 0 : index
    %c0_167 = arith.constant 0 : index
    %495 = vector.load %arg8[%c0_166, %c0_167] : memref<1x512xf32, #tpu.memory_space<vmem>>, vector<1x512xf32>
    %496 = vector.broadcast %495 : vector<1x512xf32> to vector<8x512xf32>
    %497 = arith.addf %494, %496 : vector<8x512xf32>
    %498 = vector.extract_strided_slice %497 {offsets = [0, 0], sizes = [8, 128], strides = [1, 1]} : vector<8x512xf32> to vector<8x128xf32>
    %499 = arith.negf %498 : vector<8x128xf32>
    %500 = math.exp %499 : vector<8x128xf32>
    %cst_168 = arith.constant 1.000000e+00 : f32
    %501 = vector.broadcast %cst_168 : f32 to vector<8x128xf32>
    %502 = arith.addf %501, %500 : vector<8x128xf32>
    %503 = arith.divf %501, %502 : vector<8x128xf32>
    %504 = vector.extract_strided_slice %497 {offsets = [0, 128], sizes = [8, 128], strides = [1, 1]} : vector<8x512xf32> to vector<8x128xf32>
    %505 = arith.negf %504 : vector<8x128xf32>
    %506 = math.exp %505 : vector<8x128xf32>
    %cst_169 = arith.constant 1.000000e+00 : f32
    %507 = vector.broadcast %cst_169 : f32 to vector<8x128xf32>
    %508 = arith.addf %507, %506 : vector<8x128xf32>
    %509 = arith.divf %507, %508 : vector<8x128xf32>
    %510 = vector.extract_strided_slice %497 {offsets = [0, 256], sizes = [8, 128], strides = [1, 1]} : vector<8x512xf32> to vector<8x128xf32>
    %511 = math.tanh %510 : vector<8x128xf32>
    %512 = vector.extract_strided_slice %497 {offsets = [0, 384], sizes = [8, 128], strides = [1, 1]} : vector<8x512xf32> to vector<8x128xf32>
    %513 = arith.negf %512 : vector<8x128xf32>
    %514 = math.exp %513 : vector<8x128xf32>
    %cst_170 = arith.constant 1.000000e+00 : f32
    %515 = vector.broadcast %cst_170 : f32 to vector<8x128xf32>
    %516 = arith.addf %515, %514 : vector<8x128xf32>
    %517 = arith.divf %515, %516 : vector<8x128xf32>
    %518 = arith.mulf %509, %408 : vector<8x128xf32>
    %519 = arith.mulf %503, %511 : vector<8x128xf32>
    %520 = arith.addf %518, %519 : vector<8x128xf32>
    %521 = math.tanh %520 : vector<8x128xf32>
    %522 = arith.mulf %517, %521 : vector<8x128xf32>
    %523 = vector.shape_cast %522 : vector<8x128xf32> to vector<8x1x128xf32>
    %524 = arith.truncf %523 : vector<8x1x128xf32> to vector<8x1x128xbf16>
    "tpu.trace_start"() <{level = 10 : i32, message = "bqh,bsh->bqs"}> : () -> ()
    %cst_171 = arith.constant dense<0.000000e+00> : vector<8x1x16xf32>
    %525 = tpu.matmul %524, %0, %cst_171 {dimension_numbers = #tpu.dot_dimension_numbers<[2], [2], [1], [1], [0, 0, 0, 1, 1, 1], [0], [0]>} : vector<8x1x128xbf16>, vector<8x16x128xbf16>, vector<8x1x16xf32> -> vector<8x1x16xf32>
    "tpu.trace_stop"() : () -> ()
    %526 = arith.addf %525, %2 : vector<8x1x16xf32>
    %cst_172 = arith.constant dense<0xFF800000> : vector<8x1xf32>
    %527 = vector.multi_reduction <maximumf>, %526, %cst_172 [2] : vector<8x1x16xf32> to vector<8x1xf32>
    %528 = vector.shape_cast %527 : vector<8x1xf32> to vector<8x1x1xf32>
    %529 = vector.broadcast %528 : vector<8x1x1xf32> to vector<8x1x16xf32>
    %530 = arith.subf %526, %529 : vector<8x1x16xf32>
    %531 = math.exp %530 : vector<8x1x16xf32>
    %cst_173 = arith.constant dense<0.000000e+00> : vector<8x1xf32>
    %532 = vector.multi_reduction <add>, %531, %cst_173 [2] : vector<8x1x16xf32> to vector<8x1xf32>
    %533 = vector.shape_cast %532 : vector<8x1xf32> to vector<8x1x1xf32>
    %534 = tpu.reciprocal %533 {approx = true} : vector<8x1x1xf32> -> vector<8x1x1xf32>
    %535 = vector.broadcast %534 : vector<8x1x1xf32> to vector<8x1x16xf32>
    %536 = arith.mulf %531, %535 : vector<8x1x16xf32>
    %537 = arith.truncf %536 : vector<8x1x16xf32> to vector<8x1x16xbf16>
    "tpu.trace_start"() <{level = 10 : i32, message = "bqs,bsh->bqh"}> : () -> ()
    %cst_174 = arith.constant dense<0.000000e+00> : vector<8x1x128xf32>
    %538 = tpu.matmul %537, %0, %cst_174 {dimension_numbers = #tpu.dot_dimension_numbers<[2], [1], [1], [2], [0, 0, 0, 1, 1, 2], [0], [0]>} : vector<8x1x16xbf16>, vector<8x16x128xbf16>, vector<8x1x128xf32> -> vector<8x1x128xf32>
    "tpu.trace_stop"() : () -> ()
    %539 = vector.shape_cast %538 : vector<8x1x128xf32> to vector<8x128xf32>
    %540 = tpu.concatenate %539, %522 in 1 : vector<8x128xf32>, vector<8x128xf32> -> vector<8x256xf32>
    %541 = arith.truncf %540 : vector<8x256xf32> to vector<8x256xbf16>
    %c0_175 = arith.constant 0 : index
    %c0_176 = arith.constant 0 : index
    %542 = vector.load %arg9[%c0_175, %c0_176] : memref<256x128xbf16, #tpu.memory_space<vmem>>, vector<256x128xbf16>
    %cst_177 = arith.constant dense<0.000000e+00> : vector<8x128xf32>
    %543 = tpu.matmul %541, %542, %cst_177 {dimension_numbers = #tpu.dot_dimension_numbers<[1], [0], [0], [1], [0, 0, 1, 1], [], []>} : vector<8x256xbf16>, vector<256x128xbf16>, vector<8x128xf32> -> vector<8x128xf32>
    %c0_178 = arith.constant 0 : index
    %c0_179 = arith.constant 0 : index
    %544 = vector.load %arg10[%c0_178, %c0_179] : memref<1x128xf32, #tpu.memory_space<vmem>>, vector<1x128xf32>
    %545 = vector.broadcast %544 : vector<1x128xf32> to vector<8x128xf32>
    %546 = arith.addf %543, %545 : vector<8x128xf32>
    %547 = math.tanh %546 : vector<8x128xf32>
    %548 = arith.truncf %547 : vector<8x128xf32> to vector<8x128xbf16>
    %c0_180 = arith.constant 0 : index
    %c0_181 = arith.constant 0 : index
    %549 = vector.load %arg11[%c0_180, %c0_181] : memref<128x128xbf16, #tpu.memory_space<vmem>>, vector<128x128xbf16>
    %cst_182 = arith.constant dense<0.000000e+00> : vector<8x128xf32>
    %550 = tpu.matmul %548, %549, %cst_182 {dimension_numbers = #tpu.dot_dimension_numbers<[1], [0], [0], [1], [0, 0, 1, 1], [], []>} : vector<8x128xbf16>, vector<128x128xbf16>, vector<8x128xf32> -> vector<8x128xf32>
    %c0_183 = arith.constant 0 : index
    %c0_184 = arith.constant 0 : index
    %551 = vector.load %arg12[%c0_183, %c0_184] : memref<1x128xf32, #tpu.memory_space<vmem>>, vector<1x128xf32>
    %552 = vector.broadcast %551 : vector<1x128xf32> to vector<8x128xf32>
    %553 = arith.addf %550, %552 : vector<8x128xf32>
    %cst_185 = arith.constant dense<0xFF800000> : vector<8xf32>
    %554 = vector.multi_reduction <maximumf>, %553, %cst_185 [1] : vector<8x128xf32> to vector<8xf32>
    %555 = vector.shape_cast %554 : vector<8xf32> to vector<8x1xf32>
    %556 = vector.broadcast %555 : vector<8x1xf32> to vector<8x128xf32>
    %557 = arith.subf %553, %556 : vector<8x128xf32>
    %558 = math.exp %557 : vector<8x128xf32>
    %cst_186 = arith.constant dense<0.000000e+00> : vector<8xf32>
    %559 = vector.multi_reduction <add>, %558, %cst_186 [1] : vector<8x128xf32> to vector<8xf32>
    %560 = vector.shape_cast %559 : vector<8xf32> to vector<8x1xf32>
    %561 = math.log %560 : vector<8x1xf32>
    %562 = vector.broadcast %561 : vector<8x1xf32> to vector<8x128xf32>
    %563 = arith.subf %557, %562 : vector<8x128xf32>
    %564 = arith.index_cast %c4_i32 : i32 to index
    %c0_187 = arith.constant 0 : index
    %c0_188 = arith.constant 0 : index
    %565 = vector.load %arg13[%564, %c0_187, %c0_188] : memref<7x8x128xf32, #tpu.memory_space<vmem>>, vector<1x8x128xf32>
    %566 = vector.shape_cast %565 : vector<1x8x128xf32> to vector<8x128xf32>
    %567 = vector.shape_cast %563 : vector<8x128xf32> to vector<1x8x128xf32>
    tpu.vector_store %arg13[%564, %c0_187, %c0_188], %567 {strides = array<i32>} : memref<7x8x128xf32, #tpu.memory_space<vmem>>, vector<1x8x128xf32>,
    %c5_i32 = arith.constant 5 : i32
    %568 = arith.index_cast %c5_i32 : i32 to index
    %c0_189 = arith.constant 0 : index
    %c0_190 = arith.constant 0 : index
    %569 = vector.load %arg1[%568, %c0_189, %c0_190] : memref<7x8x128xf32, #tpu.memory_space<vmem>>, vector<1x8x128xf32>
    %570 = vector.shape_cast %569 : vector<1x8x128xf32> to vector<8x128xf32>
    %571 = tpu.concatenate %547, %570, %490 in 1 : vector<8x128xf32>, vector<8x128xf32>, vector<8x128xf32> -> vector<8x384xf32>
    %572 = arith.truncf %571 : vector<8x384xf32> to vector<8x384xbf16>
    %c0_191 = arith.constant 0 : index
    %c0_192 = arith.constant 0 : index
    %573 = vector.load %arg5[%c0_191, %c0_192] : memref<384x512xbf16, #tpu.memory_space<vmem>>, vector<384x512xbf16>
    %cst_193 = arith.constant dense<0.000000e+00> : vector<8x512xf32>
    %574 = tpu.matmul %572, %573, %cst_193 {dimension_numbers = #tpu.dot_dimension_numbers<[1], [0], [0], [1], [0, 0, 1, 1], [], []>} : vector<8x384xbf16>, vector<384x512xbf16>, vector<8x512xf32> -> vector<8x512xf32>
    %c0_194 = arith.constant 0 : index
    %c0_195 = arith.constant 0 : index
    %575 = vector.load %arg6[%c0_194, %c0_195] : memref<1x512xf32, #tpu.memory_space<vmem>>, vector<1x512xf32>
    %576 = vector.broadcast %575 : vector<1x512xf32> to vector<8x512xf32>
    %577 = arith.addf %574, %576 : vector<8x512xf32>
    %578 = vector.extract_strided_slice %577 {offsets = [0, 0], sizes = [8, 128], strides = [1, 1]} : vector<8x512xf32> to vector<8x128xf32>
    %579 = arith.negf %578 : vector<8x128xf32>
    %580 = math.exp %579 : vector<8x128xf32>
    %cst_196 = arith.constant 1.000000e+00 : f32
    %581 = vector.broadcast %cst_196 : f32 to vector<8x128xf32>
    %582 = arith.addf %581, %580 : vector<8x128xf32>
    %583 = arith.divf %581, %582 : vector<8x128xf32>
    %584 = vector.extract_strided_slice %577 {offsets = [0, 128], sizes = [8, 128], strides = [1, 1]} : vector<8x512xf32> to vector<8x128xf32>
    %585 = arith.negf %584 : vector<8x128xf32>
    %586 = math.exp %585 : vector<8x128xf32>
    %cst_197 = arith.constant 1.000000e+00 : f32
    %587 = vector.broadcast %cst_197 : f32 to vector<8x128xf32>
    %588 = arith.addf %587, %586 : vector<8x128xf32>
    %589 = arith.divf %587, %588 : vector<8x128xf32>
    %590 = vector.extract_strided_slice %577 {offsets = [0, 256], sizes = [8, 128], strides = [1, 1]} : vector<8x512xf32> to vector<8x128xf32>
    %591 = math.tanh %590 : vector<8x128xf32>
    %592 = vector.extract_strided_slice %577 {offsets = [0, 384], sizes = [8, 128], strides = [1, 1]} : vector<8x512xf32> to vector<8x128xf32>
    %593 = arith.negf %592 : vector<8x128xf32>
    %594 = math.exp %593 : vector<8x128xf32>
    %cst_198 = arith.constant 1.000000e+00 : f32
    %595 = vector.broadcast %cst_198 : f32 to vector<8x128xf32>
    %596 = arith.addf %595, %594 : vector<8x128xf32>
    %597 = arith.divf %595, %596 : vector<8x128xf32>
    %598 = arith.mulf %589, %488 : vector<8x128xf32>
    %599 = arith.mulf %583, %591 : vector<8x128xf32>
    %600 = arith.addf %598, %599 : vector<8x128xf32>
    %601 = math.tanh %600 : vector<8x128xf32>
    %602 = arith.mulf %597, %601 : vector<8x128xf32>
    %603 = tpu.concatenate %602, %522 in 1 : vector<8x128xf32>, vector<8x128xf32> -> vector<8x256xf32>
    %604 = arith.truncf %603 : vector<8x256xf32> to vector<8x256xbf16>
    %c0_199 = arith.constant 0 : index
    %c0_200 = arith.constant 0 : index
    %605 = vector.load %arg7[%c0_199, %c0_200] : memref<256x512xbf16, #tpu.memory_space<vmem>>, vector<256x512xbf16>
    %cst_201 = arith.constant dense<0.000000e+00> : vector<8x512xf32>
    %606 = tpu.matmul %604, %605, %cst_201 {dimension_numbers = #tpu.dot_dimension_numbers<[1], [0], [0], [1], [0, 0, 1, 1], [], []>} : vector<8x256xbf16>, vector<256x512xbf16>, vector<8x512xf32> -> vector<8x512xf32>
    %c0_202 = arith.constant 0 : index
    %c0_203 = arith.constant 0 : index
    %607 = vector.load %arg8[%c0_202, %c0_203] : memref<1x512xf32, #tpu.memory_space<vmem>>, vector<1x512xf32>
    %608 = vector.broadcast %607 : vector<1x512xf32> to vector<8x512xf32>
    %609 = arith.addf %606, %608 : vector<8x512xf32>
    %610 = vector.extract_strided_slice %609 {offsets = [0, 0], sizes = [8, 128], strides = [1, 1]} : vector<8x512xf32> to vector<8x128xf32>
    %611 = arith.negf %610 : vector<8x128xf32>
    %612 = math.exp %611 : vector<8x128xf32>
    %cst_204 = arith.constant 1.000000e+00 : f32
    %613 = vector.broadcast %cst_204 : f32 to vector<8x128xf32>
    %614 = arith.addf %613, %612 : vector<8x128xf32>
    %615 = arith.divf %613, %614 : vector<8x128xf32>
    %616 = vector.extract_strided_slice %609 {offsets = [0, 128], sizes = [8, 128], strides = [1, 1]} : vector<8x512xf32> to vector<8x128xf32>
    %617 = arith.negf %616 : vector<8x128xf32>
    %618 = math.exp %617 : vector<8x128xf32>
    %cst_205 = arith.constant 1.000000e+00 : f32
    %619 = vector.broadcast %cst_205 : f32 to vector<8x128xf32>
    %620 = arith.addf %619, %618 : vector<8x128xf32>
    %621 = arith.divf %619, %620 : vector<8x128xf32>
    %622 = vector.extract_strided_slice %609 {offsets = [0, 256], sizes = [8, 128], strides = [1, 1]} : vector<8x512xf32> to vector<8x128xf32>
    %623 = math.tanh %622 : vector<8x128xf32>
    %624 = vector.extract_strided_slice %609 {offsets = [0, 384], sizes = [8, 128], strides = [1, 1]} : vector<8x512xf32> to vector<8x128xf32>
    %625 = arith.negf %624 : vector<8x128xf32>
    %626 = math.exp %625 : vector<8x128xf32>
    %cst_206 = arith.constant 1.000000e+00 : f32
    %627 = vector.broadcast %cst_206 : f32 to vector<8x128xf32>
    %628 = arith.addf %627, %626 : vector<8x128xf32>
    %629 = arith.divf %627, %628 : vector<8x128xf32>
    %630 = arith.mulf %621, %520 : vector<8x128xf32>
    %631 = arith.mulf %615, %623 : vector<8x128xf32>
    %632 = arith.addf %630, %631 : vector<8x128xf32>
    %633 = math.tanh %632 : vector<8x128xf32>
    %634 = arith.mulf %629, %633 : vector<8x128xf32>
    %635 = vector.shape_cast %634 : vector<8x128xf32> to vector<8x1x128xf32>
    %636 = arith.truncf %635 : vector<8x1x128xf32> to vector<8x1x128xbf16>
    "tpu.trace_start"() <{level = 10 : i32, message = "bqh,bsh->bqs"}> : () -> ()
    %cst_207 = arith.constant dense<0.000000e+00> : vector<8x1x16xf32>
    %637 = tpu.matmul %636, %0, %cst_207 {dimension_numbers = #tpu.dot_dimension_numbers<[2], [2], [1], [1], [0, 0, 0, 1, 1, 1], [0], [0]>} : vector<8x1x128xbf16>, vector<8x16x128xbf16>, vector<8x1x16xf32> -> vector<8x1x16xf32>
    "tpu.trace_stop"() : () -> ()
    %638 = arith.addf %637, %2 : vector<8x1x16xf32>
    %cst_208 = arith.constant dense<0xFF800000> : vector<8x1xf32>
    %639 = vector.multi_reduction <maximumf>, %638, %cst_208 [2] : vector<8x1x16xf32> to vector<8x1xf32>
    %640 = vector.shape_cast %639 : vector<8x1xf32> to vector<8x1x1xf32>
    %641 = vector.broadcast %640 : vector<8x1x1xf32> to vector<8x1x16xf32>
    %642 = arith.subf %638, %641 : vector<8x1x16xf32>
    %643 = math.exp %642 : vector<8x1x16xf32>
    %cst_209 = arith.constant dense<0.000000e+00> : vector<8x1xf32>
    %644 = vector.multi_reduction <add>, %643, %cst_209 [2] : vector<8x1x16xf32> to vector<8x1xf32>
    %645 = vector.shape_cast %644 : vector<8x1xf32> to vector<8x1x1xf32>
    %646 = tpu.reciprocal %645 {approx = true} : vector<8x1x1xf32> -> vector<8x1x1xf32>
    %647 = vector.broadcast %646 : vector<8x1x1xf32> to vector<8x1x16xf32>
    %648 = arith.mulf %643, %647 : vector<8x1x16xf32>
    %649 = arith.truncf %648 : vector<8x1x16xf32> to vector<8x1x16xbf16>
    "tpu.trace_start"() <{level = 10 : i32, message = "bqs,bsh->bqh"}> : () -> ()
    %cst_210 = arith.constant dense<0.000000e+00> : vector<8x1x128xf32>
    %650 = tpu.matmul %649, %0, %cst_210 {dimension_numbers = #tpu.dot_dimension_numbers<[2], [1], [1], [2], [0, 0, 0, 1, 1, 2], [0], [0]>} : vector<8x1x16xbf16>, vector<8x16x128xbf16>, vector<8x1x128xf32> -> vector<8x1x128xf32>
    "tpu.trace_stop"() : () -> ()
    %651 = vector.shape_cast %650 : vector<8x1x128xf32> to vector<8x128xf32>
    %652 = tpu.concatenate %651, %634 in 1 : vector<8x128xf32>, vector<8x128xf32> -> vector<8x256xf32>
    %653 = arith.truncf %652 : vector<8x256xf32> to vector<8x256xbf16>
    %c0_211 = arith.constant 0 : index
    %c0_212 = arith.constant 0 : index
    %654 = vector.load %arg9[%c0_211, %c0_212] : memref<256x128xbf16, #tpu.memory_space<vmem>>, vector<256x128xbf16>
    %cst_213 = arith.constant dense<0.000000e+00> : vector<8x128xf32>
    %655 = tpu.matmul %653, %654, %cst_213 {dimension_numbers = #tpu.dot_dimension_numbers<[1], [0], [0], [1], [0, 0, 1, 1], [], []>} : vector<8x256xbf16>, vector<256x128xbf16>, vector<8x128xf32> -> vector<8x128xf32>
    %c0_214 = arith.constant 0 : index
    %c0_215 = arith.constant 0 : index
    %656 = vector.load %arg10[%c0_214, %c0_215] : memref<1x128xf32, #tpu.memory_space<vmem>>, vector<1x128xf32>
    %657 = vector.broadcast %656 : vector<1x128xf32> to vector<8x128xf32>
    %658 = arith.addf %655, %657 : vector<8x128xf32>
    %659 = math.tanh %658 : vector<8x128xf32>
    %660 = arith.truncf %659 : vector<8x128xf32> to vector<8x128xbf16>
    %c0_216 = arith.constant 0 : index
    %c0_217 = arith.constant 0 : index
    %661 = vector.load %arg11[%c0_216, %c0_217] : memref<128x128xbf16, #tpu.memory_space<vmem>>, vector<128x128xbf16>
    %cst_218 = arith.constant dense<0.000000e+00> : vector<8x128xf32>
    %662 = tpu.matmul %660, %661, %cst_218 {dimension_numbers = #tpu.dot_dimension_numbers<[1], [0], [0], [1], [0, 0, 1, 1], [], []>} : vector<8x128xbf16>, vector<128x128xbf16>, vector<8x128xf32> -> vector<8x128xf32>
    %c0_219 = arith.constant 0 : index
    %c0_220 = arith.constant 0 : index
    %663 = vector.load %arg12[%c0_219, %c0_220] : memref<1x128xf32, #tpu.memory_space<vmem>>, vector<1x128xf32>
    %664 = vector.broadcast %663 : vector<1x128xf32> to vector<8x128xf32>
    %665 = arith.addf %662, %664 : vector<8x128xf32>
    %cst_221 = arith.constant dense<0xFF800000> : vector<8xf32>
    %666 = vector.multi_reduction <maximumf>, %665, %cst_221 [1] : vector<8x128xf32> to vector<8xf32>
    %667 = vector.shape_cast %666 : vector<8xf32> to vector<8x1xf32>
    %668 = vector.broadcast %667 : vector<8x1xf32> to vector<8x128xf32>
    %669 = arith.subf %665, %668 : vector<8x128xf32>
    %670 = math.exp %669 : vector<8x128xf32>
    %cst_222 = arith.constant dense<0.000000e+00> : vector<8xf32>
    %671 = vector.multi_reduction <add>, %670, %cst_222 [1] : vector<8x128xf32> to vector<8xf32>
    %672 = vector.shape_cast %671 : vector<8xf32> to vector<8x1xf32>
    %673 = math.log %672 : vector<8x1xf32>
    %674 = vector.broadcast %673 : vector<8x1xf32> to vector<8x128xf32>
    %675 = arith.subf %669, %674 : vector<8x128xf32>
    %676 = arith.index_cast %c5_i32 : i32 to index
    %c0_223 = arith.constant 0 : index
    %c0_224 = arith.constant 0 : index
    %677 = vector.load %arg13[%676, %c0_223, %c0_224] : memref<7x8x128xf32, #tpu.memory_space<vmem>>, vector<1x8x128xf32>
    %678 = vector.shape_cast %677 : vector<1x8x128xf32> to vector<8x128xf32>
    %679 = vector.shape_cast %675 : vector<8x128xf32> to vector<1x8x128xf32>
    tpu.vector_store %arg13[%676, %c0_223, %c0_224], %679 {strides = array<i32>} : memref<7x8x128xf32, #tpu.memory_space<vmem>>, vector<1x8x128xf32>,
    %c6_i32 = arith.constant 6 : i32
    %680 = arith.index_cast %c6_i32 : i32 to index
    %c0_225 = arith.constant 0 : index
    %c0_226 = arith.constant 0 : index
    %681 = vector.load %arg1[%680, %c0_225, %c0_226] : memref<7x8x128xf32, #tpu.memory_space<vmem>>, vector<1x8x128xf32>
    %682 = vector.shape_cast %681 : vector<1x8x128xf32> to vector<8x128xf32>
    %683 = tpu.concatenate %659, %682, %602 in 1 : vector<8x128xf32>, vector<8x128xf32>, vector<8x128xf32> -> vector<8x384xf32>
    %684 = arith.truncf %683 : vector<8x384xf32> to vector<8x384xbf16>
    %c0_227 = arith.constant 0 : index
    %c0_228 = arith.constant 0 : index
    %685 = vector.load %arg5[%c0_227, %c0_228] : memref<384x512xbf16, #tpu.memory_space<vmem>>, vector<384x512xbf16>
    %cst_229 = arith.constant dense<0.000000e+00> : vector<8x512xf32>
    %686 = tpu.matmul %684, %685, %cst_229 {dimension_numbers = #tpu.dot_dimension_numbers<[1], [0], [0], [1], [0, 0, 1, 1], [], []>} : vector<8x384xbf16>, vector<384x512xbf16>, vector<8x512xf32> -> vector<8x512xf32>
    %c0_230 = arith.constant 0 : index
    %c0_231 = arith.constant 0 : index
    %687 = vector.load %arg6[%c0_230, %c0_231] : memref<1x512xf32, #tpu.memory_space<vmem>>, vector<1x512xf32>
    %688 = vector.broadcast %687 : vector<1x512xf32> to vector<8x512xf32>
    %689 = arith.addf %686, %688 : vector<8x512xf32>
    %690 = vector.extract_strided_slice %689 {offsets = [0, 0], sizes = [8, 128], strides = [1, 1]} : vector<8x512xf32> to vector<8x128xf32>
    %691 = arith.negf %690 : vector<8x128xf32>
    %692 = math.exp %691 : vector<8x128xf32>
    %cst_232 = arith.constant 1.000000e+00 : f32
    %693 = vector.broadcast %cst_232 : f32 to vector<8x128xf32>
    %694 = arith.addf %693, %692 : vector<8x128xf32>
    %695 = arith.divf %693, %694 : vector<8x128xf32>
    %696 = vector.extract_strided_slice %689 {offsets = [0, 128], sizes = [8, 128], strides = [1, 1]} : vector<8x512xf32> to vector<8x128xf32>
    %697 = arith.negf %696 : vector<8x128xf32>
    %698 = math.exp %697 : vector<8x128xf32>
    %cst_233 = arith.constant 1.000000e+00 : f32
    %699 = vector.broadcast %cst_233 : f32 to vector<8x128xf32>
    %700 = arith.addf %699, %698 : vector<8x128xf32>
    %701 = arith.divf %699, %700 : vector<8x128xf32>
    %702 = vector.extract_strided_slice %689 {offsets = [0, 256], sizes = [8, 128], strides = [1, 1]} : vector<8x512xf32> to vector<8x128xf32>
    %703 = math.tanh %702 : vector<8x128xf32>
    %704 = vector.extract_strided_slice %689 {offsets = [0, 384], sizes = [8, 128], strides = [1, 1]} : vector<8x512xf32> to vector<8x128xf32>
    %705 = arith.negf %704 : vector<8x128xf32>
    %706 = math.exp %705 : vector<8x128xf32>
    %cst_234 = arith.constant 1.000000e+00 : f32
    %707 = vector.broadcast %cst_234 : f32 to vector<8x128xf32>
    %708 = arith.addf %707, %706 : vector<8x128xf32>
    %709 = arith.divf %707, %708 : vector<8x128xf32>
    %710 = arith.mulf %701, %600 : vector<8x128xf32>
    %711 = arith.mulf %695, %703 : vector<8x128xf32>
    %712 = arith.addf %710, %711 : vector<8x128xf32>
    %713 = math.tanh %712 : vector<8x128xf32>
    %714 = arith.mulf %709, %713 : vector<8x128xf32>
    %715 = tpu.concatenate %714, %634 in 1 : vector<8x128xf32>, vector<8x128xf32> -> vector<8x256xf32>
    %716 = arith.truncf %715 : vector<8x256xf32> to vector<8x256xbf16>
    %c0_235 = arith.constant 0 : index
    %c0_236 = arith.constant 0 : index
    %717 = vector.load %arg7[%c0_235, %c0_236] : memref<256x512xbf16, #tpu.memory_space<vmem>>, vector<256x512xbf16>
    %cst_237 = arith.constant dense<0.000000e+00> : vector<8x512xf32>
    %718 = tpu.matmul %716, %717, %cst_237 {dimension_numbers = #tpu.dot_dimension_numbers<[1], [0], [0], [1], [0, 0, 1, 1], [], []>} : vector<8x256xbf16>, vector<256x512xbf16>, vector<8x512xf32> -> vector<8x512xf32>
    %c0_238 = arith.constant 0 : index
    %c0_239 = arith.constant 0 : index
    %719 = vector.load %arg8[%c0_238, %c0_239] : memref<1x512xf32, #tpu.memory_space<vmem>>, vector<1x512xf32>
    %720 = vector.broadcast %719 : vector<1x512xf32> to vector<8x512xf32>
    %721 = arith.addf %718, %720 : vector<8x512xf32>
    %722 = vector.extract_strided_slice %721 {offsets = [0, 0], sizes = [8, 128], strides = [1, 1]} : vector<8x512xf32> to vector<8x128xf32>
    %723 = arith.negf %722 : vector<8x128xf32>
    %724 = math.exp %723 : vector<8x128xf32>
    %cst_240 = arith.constant 1.000000e+00 : f32
    %725 = vector.broadcast %cst_240 : f32 to vector<8x128xf32>
    %726 = arith.addf %725, %724 : vector<8x128xf32>
    %727 = arith.divf %725, %726 : vector<8x128xf32>
    %728 = vector.extract_strided_slice %721 {offsets = [0, 128], sizes = [8, 128], strides = [1, 1]} : vector<8x512xf32> to vector<8x128xf32>
    %729 = arith.negf %728 : vector<8x128xf32>
    %730 = math.exp %729 : vector<8x128xf32>
    %cst_241 = arith.constant 1.000000e+00 : f32
    %731 = vector.broadcast %cst_241 : f32 to vector<8x128xf32>
    %732 = arith.addf %731, %730 : vector<8x128xf32>
    %733 = arith.divf %731, %732 : vector<8x128xf32>
    %734 = vector.extract_strided_slice %721 {offsets = [0, 256], sizes = [8, 128], strides = [1, 1]} : vector<8x512xf32> to vector<8x128xf32>
    %735 = math.tanh %734 : vector<8x128xf32>
    %736 = vector.extract_strided_slice %721 {offsets = [0, 384], sizes = [8, 128], strides = [1, 1]} : vector<8x512xf32> to vector<8x128xf32>
    %737 = arith.negf %736 : vector<8x128xf32>
    %738 = math.exp %737 : vector<8x128xf32>
    %cst_242 = arith.constant 1.000000e+00 : f32
    %739 = vector.broadcast %cst_242 : f32 to vector<8x128xf32>
    %740 = arith.addf %739, %738 : vector<8x128xf32>
    %741 = arith.divf %739, %740 : vector<8x128xf32>
    %742 = arith.mulf %733, %632 : vector<8x128xf32>
    %743 = arith.mulf %727, %735 : vector<8x128xf32>
    %744 = arith.addf %742, %743 : vector<8x128xf32>
    %745 = math.tanh %744 : vector<8x128xf32>
    %746 = arith.mulf %741, %745 : vector<8x128xf32>
    %747 = vector.shape_cast %746 : vector<8x128xf32> to vector<8x1x128xf32>
    %748 = arith.truncf %747 : vector<8x1x128xf32> to vector<8x1x128xbf16>
    "tpu.trace_start"() <{level = 10 : i32, message = "bqh,bsh->bqs"}> : () -> ()
    %cst_243 = arith.constant dense<0.000000e+00> : vector<8x1x16xf32>
    %749 = tpu.matmul %748, %0, %cst_243 {dimension_numbers = #tpu.dot_dimension_numbers<[2], [2], [1], [1], [0, 0, 0, 1, 1, 1], [0], [0]>} : vector<8x1x128xbf16>, vector<8x16x128xbf16>, vector<8x1x16xf32> -> vector<8x1x16xf32>
    "tpu.trace_stop"() : () -> ()
    %750 = arith.addf %749, %2 : vector<8x1x16xf32>
    %cst_244 = arith.constant dense<0xFF800000> : vector<8x1xf32>
    %751 = vector.multi_reduction <maximumf>, %750, %cst_244 [2] : vector<8x1x16xf32> to vector<8x1xf32>
    %752 = vector.shape_cast %751 : vector<8x1xf32> to vector<8x1x1xf32>
    %753 = vector.broadcast %752 : vector<8x1x1xf32> to vector<8x1x16xf32>
    %754 = arith.subf %750, %753 : vector<8x1x16xf32>
    %755 = math.exp %754 : vector<8x1x16xf32>
    %cst_245 = arith.constant dense<0.000000e+00> : vector<8x1xf32>
    %756 = vector.multi_reduction <add>, %755, %cst_245 [2] : vector<8x1x16xf32> to vector<8x1xf32>
    %757 = vector.shape_cast %756 : vector<8x1xf32> to vector<8x1x1xf32>
    %758 = tpu.reciprocal %757 {approx = true} : vector<8x1x1xf32> -> vector<8x1x1xf32>
    %759 = vector.broadcast %758 : vector<8x1x1xf32> to vector<8x1x16xf32>
    %760 = arith.mulf %755, %759 : vector<8x1x16xf32>
    %761 = arith.truncf %760 : vector<8x1x16xf32> to vector<8x1x16xbf16>
    "tpu.trace_start"() <{level = 10 : i32, message = "bqs,bsh->bqh"}> : () -> ()
    %cst_246 = arith.constant dense<0.000000e+00> : vector<8x1x128xf32>
    %762 = tpu.matmul %761, %0, %cst_246 {dimension_numbers = #tpu.dot_dimension_numbers<[2], [1], [1], [2], [0, 0, 0, 1, 1, 2], [0], [0]>} : vector<8x1x16xbf16>, vector<8x16x128xbf16>, vector<8x1x128xf32> -> vector<8x1x128xf32>
    "tpu.trace_stop"() : () -> ()
    %763 = vector.shape_cast %762 : vector<8x1x128xf32> to vector<8x128xf32>
    %764 = tpu.concatenate %763, %746 in 1 : vector<8x128xf32>, vector<8x128xf32> -> vector<8x256xf32>
    %765 = arith.truncf %764 : vector<8x256xf32> to vector<8x256xbf16>
    %c0_247 = arith.constant 0 : index
    %c0_248 = arith.constant 0 : index
    %766 = vector.load %arg9[%c0_247, %c0_248] : memref<256x128xbf16, #tpu.memory_space<vmem>>, vector<256x128xbf16>
    %cst_249 = arith.constant dense<0.000000e+00> : vector<8x128xf32>
    %767 = tpu.matmul %765, %766, %cst_249 {dimension_numbers = #tpu.dot_dimension_numbers<[1], [0], [0], [1], [0, 0, 1, 1], [], []>} : vector<8x256xbf16>, vector<256x128xbf16>, vector<8x128xf32> -> vector<8x128xf32>
    %c0_250 = arith.constant 0 : index
    %c0_251 = arith.constant 0 : index
    %768 = vector.load %arg10[%c0_250, %c0_251] : memref<1x128xf32, #tpu.memory_space<vmem>>, vector<1x128xf32>
    %769 = vector.broadcast %768 : vector<1x128xf32> to vector<8x128xf32>
    %770 = arith.addf %767, %769 : vector<8x128xf32>
    %771 = math.tanh %770 : vector<8x128xf32>
    %772 = arith.truncf %771 : vector<8x128xf32> to vector<8x128xbf16>
    %c0_252 = arith.constant 0 : index
    %c0_253 = arith.constant 0 : index
    %773 = vector.load %arg11[%c0_252, %c0_253] : memref<128x128xbf16, #tpu.memory_space<vmem>>, vector<128x128xbf16>
    %cst_254 = arith.constant dense<0.000000e+00> : vector<8x128xf32>
    %774 = tpu.matmul %772, %773, %cst_254 {dimension_numbers = #tpu.dot_dimension_numbers<[1], [0], [0], [1], [0, 0, 1, 1], [], []>} : vector<8x128xbf16>, vector<128x128xbf16>, vector<8x128xf32> -> vector<8x128xf32>
    %c0_255 = arith.constant 0 : index
    %c0_256 = arith.constant 0 : index
    %775 = vector.load %arg12[%c0_255, %c0_256] : memref<1x128xf32, #tpu.memory_space<vmem>>, vector<1x128xf32>
    %776 = vector.broadcast %775 : vector<1x128xf32> to vector<8x128xf32>
    %777 = arith.addf %774, %776 : vector<8x128xf32>
    %cst_257 = arith.constant dense<0xFF800000> : vector<8xf32>
    %778 = vector.multi_reduction <maximumf>, %777, %cst_257 [1] : vector<8x128xf32> to vector<8xf32>
    %779 = vector.shape_cast %778 : vector<8xf32> to vector<8x1xf32>
    %780 = vector.broadcast %779 : vector<8x1xf32> to vector<8x128xf32>
    %781 = arith.subf %777, %780 : vector<8x128xf32>
    %782 = math.exp %781 : vector<8x128xf32>
    %cst_258 = arith.constant dense<0.000000e+00> : vector<8xf32>
    %783 = vector.multi_reduction <add>, %782, %cst_258 [1] : vector<8x128xf32> to vector<8xf32>
    %784 = vector.shape_cast %783 : vector<8xf32> to vector<8x1xf32>
    %785 = math.log %784 : vector<8x1xf32>
    %786 = vector.broadcast %785 : vector<8x1xf32> to vector<8x128xf32>
    %787 = arith.subf %781, %786 : vector<8x128xf32>
    %788 = arith.index_cast %c6_i32 : i32 to index
    %c0_259 = arith.constant 0 : index
    %c0_260 = arith.constant 0 : index
    %789 = vector.load %arg13[%788, %c0_259, %c0_260] : memref<7x8x128xf32, #tpu.memory_space<vmem>>, vector<1x8x128xf32>
    %790 = vector.shape_cast %789 : vector<1x8x128xf32> to vector<8x128xf32>
    %791 = vector.shape_cast %787 : vector<8x128xf32> to vector<1x8x128xf32>
    tpu.vector_store %arg13[%788, %c0_259, %c0_260], %791 {strides = array<i32>} : memref<7x8x128xf32, #tpu.memory_space<vmem>>, vector<1x8x128xf32>,
    %c7_i32 = arith.constant 7 : i32
    return
  }
  func.func @transform_0(%arg0: i32) -> (i32, i32, i32) {
    %c0_i32 = arith.constant 0 : i32
    %c0_i32_0 = arith.constant 0 : i32
    %c0_i32_1 = arith.constant 0 : i32
    return %c0_i32, %arg0, %c0_i32_0 : i32, i32, i32
  }
  func.func @transform_1(%arg0: i32) -> (i32, i32, i32) {
    %c0_i32 = arith.constant 0 : i32
    %c0_i32_0 = arith.constant 0 : i32
    %c0_i32_1 = arith.constant 0 : i32
    return %arg0, %c0_i32, %c0_i32_0 : i32, i32, i32
  }
  func.func @transform_2(%arg0: i32) -> (i32, i32) {
    %c0_i32 = arith.constant 0 : i32
    %c0_i32_0 = arith.constant 0 : i32
    return %arg0, %c0_i32 : i32, i32
  }
  func.func @transform_3(%arg0: i32) -> (i32, i32, i32) {
    %c0_i32 = arith.constant 0 : i32
    %c0_i32_0 = arith.constant 0 : i32
    %c0_i32_1 = arith.constant 0 : i32
    return %c0_i32, %arg0, %c0_i32_0 : i32, i32, i32
  }
  func.func @transform_4(%arg0: i32) -> (i32, i32) {
    %c0_i32 = arith.constant 0 : i32
    %c0_i32_0 = arith.constant 0 : i32
    %c0_i32_1 = arith.constant 0 : i32
    return %c0_i32, %c0_i32_0 : i32, i32
  }
  func.func @transform_5(%arg0: i32) -> (i32, i32) {
    %c0_i32 = arith.constant 0 : i32
    %c0_i32_0 = arith.constant 0 : i32
    %c0_i32_1 = arith.constant 0 : i32
    return %c0_i32, %c0_i32_0 : i32, i32
  }
  func.func @transform_6(%arg0: i32) -> (i32, i32) {
    %c0_i32 = arith.constant 0 : i32
    %c0_i32_0 = arith.constant 0 : i32
    %c0_i32_1 = arith.constant 0 : i32
    return %c0_i32, %c0_i32_0 : i32, i32
  }
  func.func @transform_7(%arg0: i32) -> (i32, i32) {
    %c0_i32 = arith.constant 0 : i32
    %c0_i32_0 = arith.constant 0 : i32
    %c0_i32_1 = arith.constant 0 : i32
    return %c0_i32, %c0_i32_0 : i32, i32
  }
  func.func @transform_8(%arg0: i32) -> (i32, i32) {
    %c0_i32 = arith.constant 0 : i32
    %c0_i32_0 = arith.constant 0 : i32
    %c0_i32_1 = arith.constant 0 : i32
    return %c0_i32, %c0_i32_0 : i32, i32
  }
  func.func @transform_9(%arg0: i32) -> (i32, i32) {
    %c0_i32 = arith.constant 0 : i32
    %c0_i32_0 = arith.constant 0 : i32
    %c0_i32_1 = arith.constant 0 : i32
    return %c0_i32, %c0_i32_0 : i32, i32
  }
  func.func @transform_10(%arg0: i32) -> (i32, i32) {
    %c0_i32 = arith.constant 0 : i32
    %c0_i32_0 = arith.constant 0 : i32
    %c0_i32_1 = arith.constant 0 : i32
    return %c0_i32, %c0_i32_0 : i32, i32
  }
  func.func @transform_11(%arg0: i32) -> (i32, i32) {
    %c0_i32 = arith.constant 0 : i32
    %c0_i32_0 = arith.constant 0 : i32
    %c0_i32_1 = arith.constant 0 : i32
    return %c0_i32, %c0_i32_0 : i32, i32
  }
  func.func @transform_12(%arg0: i32) -> (i32, i32, i32) {
    %c0_i32 = arith.constant 0 : i32
    %c0_i32_0 = arith.constant 0 : i32
    %c0_i32_1 = arith.constant 0 : i32
    return %c0_i32, %arg0, %c0_i32_0 : i32, i32, i32
  }
}

</mosaic_0001>

<bundles_post_ra>
// kernel: lstm_decoder_forward.1
= control target key start
LH: loop header
LB: loop body
LE: loop exit
PB: predicated region body
PF: predicated region fallthrough
CT: control target
= control target key end

     0   :  { %v22427_v1 = vmov 0   ;;  %vm22430_vm0 = vmmov 0   ;;  %vm1858_vm1 = vcmask 122880   ;;  %vm1955_vm2 = vcmask 130048   ;;  %s28090_s4 = inlined_call_operand.vmem [shape: bf16[384,512], index: 4, kind: input, shape index: {}]   ;;  %s28091_s3 = inlined_call_operand.vmem [shape: f32[2,8,128], index: 3, kind: input, shape index: {}]   ;;  %s28092_s0 = inlined_call_operand.vmem [shape: f32[7,8,128], index: 0, kind: input, shape index: {}]   ;;  %s28093_s6 = inlined_call_operand.vmem [shape: bf16[256,512], index: 6, kind: input, shape index: {}]   ;;  %s28094_s5 = inlined_call_operand.vmem [shape: f32[1,512], index: 5, kind: input, shape index: {}]   ;;  %s28095_s1 = inlined_call_operand.vmem [shape: bf16[8,16,128], index: 1, kind: input, shape index: {}]   ;;  %s28096_s7 = inlined_call_operand.vmem [shape: f32[1,512], index: 7, kind: input, shape index: {}]   ;;  %s28097_s2 = inlined_call_operand.vmem [shape: f32[8,16], index: 2, kind: input, shape index: {}]   ;;  %s28098_s8 = inlined_call_operand.vmem [shape: bf16[256,128], index: 8, kind: input, shape index: {}]   ;;  %s28099_s10 = inlined_call_operand.vmem [shape: bf16[128,128], index: 10, kind: input, shape index: {}]   ;;  %s28100_s9 = inlined_call_operand.vmem [shape: f32[1,128], index: 9, kind: input, shape index: {}]   ;;  %s28101_s11 = inlined_call_operand.vmem [shape: f32[1,128], index: 11, kind: input, shape index: {}]   ;;  %s28102_s12 = inlined_call_operand.vmem [shape: f32[7,8,128], index: 12, kind: output, shape index: {}]  }
   0x1   :  { %v20032_v0 = vld [vmem:[%s28090_s4 + $0xe4] ss:$16 sps:$4 sm:$0xff]   ;;  %795 = vmatprep.mubr.bf16.mxu1 %v22427_v1  ;;  %v20036_v3 = vld [vmem:[%s28090_s4 + $0xe0] ss:$16 sps:$4 sm:$0xff]   ;;  %v20084_v35 = vld [vmem:[%s28090_s4 + $0xec] ss:$16 sps:$4 sm:$0xff]  }
   0x2   :  { %v20034_v2 = vld [vmem:[%s28090_s4 + $0x2e4] ss:$16 sps:$4 sm:$0xff]   ;;  %722 = vmatprep.subr.bf16.mxu0 %v20032_v0  ;;  %v20037_v4 = vld [vmem:[%s28090_s4 + $0x2e0] ss:$16 sps:$4 sm:$0xff]   ;;  %v20082_v37 = vld [vmem:[%s28090_s4 + $0xe8] ss:$16 sps:$4 sm:$0xff]  }
   0x3   :  { %763 = vmatprep.subr.bf16.mxu1 %v20034_v2  ;;  %v20038_v5 = vld [vmem:[%s28090_s4 + $0xc4] ss:$16 sps:$4 sm:$0xff]   ;;  %723 = vmatpush1.bf16.msra.mxu0 %v20036_v3  ;;  %v20042_v7 = vld [vmem:[%s28090_s4 + $0xc0] ss:$16 sps:$4 sm:$0xff]   ;;  %v20090_v40 = vld [vmem:[%s28090_s4 + $0xcc] ss:$16 sps:$4 sm:$0xff]  }
   0x4   :  { %764 = vmatpush1.bf16.msra.mxu1 %v20037_v4  ;;  %v20040_v6 = vld [vmem:[%s28090_s4 + $0x2c4] ss:$16 sps:$4 sm:$0xff]   ;;  %724 = vmatprep.subr.bf16.mxu0 %v20038_v5  ;;  %v20043_v8 = vld [vmem:[%s28090_s4 + $0x2c0] ss:$16 sps:$4 sm:$0xff]   ;;  %v20088_v41 = vld [vmem:[%s28090_s4 + $0xc8] ss:$16 sps:$4 sm:$0xff]  }
   0x5   :  { %765 = vmatprep.subr.bf16.mxu1 %v20040_v6  ;;  %v20044_v9 = vld [vmem:[%s28090_s4 + $0xa4] ss:$16 sps:$4 sm:$0xff]   ;;  %v20048_v11 = vld [vmem:[%s28090_s4 + $0xa0] ss:$16 sps:$4 sm:$0xff]   ;;  %v20096_v44 = vld [vmem:[%s28090_s4 + $0xac] ss:$16 sps:$4 sm:$0xff]  }
   0x6   :  { %v20046_v10 = vld [vmem:[%s28090_s4 + $0x2a4] ss:$16 sps:$4 sm:$0xff]   ;;  %v20049_v12 = vld [vmem:[%s28090_s4 + $0x2a0] ss:$16 sps:$4 sm:$0xff]   ;;  %v20094_v45 = vld [vmem:[%s28090_s4 + $0xa8] ss:$16 sps:$4 sm:$0xff]  }
   0x7   :  { %725 = vmatpush1.bf16.msra.mxu0 %v20042_v7  ;;  %v20050_v13 = vld [vmem:[%s28090_s4 + $0x84] ss:$16 sps:$4 sm:$0xff]   ;;  %v20054_v15 = vld [vmem:[%s28090_s4 + $0x80] ss:$16 sps:$4 sm:$0xff]   ;;  %v20102_v48 = vld [vmem:[%s28090_s4 + $0x8c] ss:$16 sps:$4 sm:$0xff]  }
   0x8   :  { %766 = vmatpush1.bf16.msra.mxu1 %v20043_v8  ;;  %726 = vmatprep.subr.bf16.mxu0 %v20044_v9  ;;  %v20052_v14 = vld [vmem:[%s28090_s4 + $0x284] ss:$16 sps:$4 sm:$0xff]   ;;  %v20055_v16 = vld [vmem:[%s28090_s4 + $0x280] ss:$16 sps:$4 sm:$0xff]   ;;  %v20100_v50 = vld [vmem:[%s28090_s4 + $0x88] ss:$16 sps:$4 sm:$0xff]  }
   0x9   :  { %767 = vmatprep.subr.bf16.mxu1 %v20046_v10  ;;  %v20056_v17 = vld [vmem:[%s28090_s4 + $0x64] ss:$16 sps:$4 sm:$0xff]   ;;  %v20060_v19 = vld [vmem:[%s28090_s4 + $0x60] ss:$16 sps:$4 sm:$0xff]   ;;  %v20108_v54 = vld [vmem:[%s28090_s4 + $0x6c] ss:$16 sps:$4 sm:$0xff]  }
   0xa   :  { %v20058_v18 = vld [vmem:[%s28090_s4 + $0x264] ss:$16 sps:$4 sm:$0xff]   ;;  %v20061_v20 = vld [vmem:[%s28090_s4 + $0x260] ss:$16 sps:$4 sm:$0xff]   ;;  %v20106_v55 = vld [vmem:[%s28090_s4 + $0x68] ss:$16 sps:$4 sm:$0xff]  }
   0xb   :  { %727 = vmatpush1.bf16.msra.mxu0 %v20048_v11  ;;  %v20062_v21 = vld [vmem:[%s28090_s4 + $0x44] ss:$16 sps:$4 sm:$0xff]   ;;  %v20066_v23 = vld [vmem:[%s28090_s4 + $0x40] ss:$16 sps:$4 sm:$0xff]   ;;  %v20114_v58 = vld [vmem:[%s28090_s4 + $0x4c] ss:$16 sps:$4 sm:$0xff]  }
   0xc   :  { %768 = vmatpush1.bf16.msra.mxu1 %v20049_v12  ;;  %728 = vmatprep.subr.bf16.mxu0 %v20050_v13  ;;  %v20064_v22 = vld [vmem:[%s28090_s4 + $0x244] ss:$16 sps:$4 sm:$0xff]   ;;  %v20067_v24 = vld [vmem:[%s28090_s4 + $0x240] ss:$16 sps:$4 sm:$0xff]   ;;  %v20112_v59 = vld [vmem:[%s28090_s4 + $0x48] ss:$16 sps:$4 sm:$0xff]  }
   0xd   :  { %769 = vmatprep.subr.bf16.mxu1 %v20052_v14  ;;  %v20068_v25 = vld [vmem:[%s28090_s4 + $0x24] ss:$16 sps:$4 sm:$0xff]   ;;  %v20072_v27 = vld [vmem:[%s28090_s4 + $0x20] ss:$16 sps:$4 sm:$0xff]   ;;  %v20120_v62 = vld [vmem:[%s28090_s4 + $0x2c] ss:$16 sps:$4 sm:$0xff]  }
   0xe   :  { %v20070_v26 = vld [vmem:[%s28090_s4 + $0x224] ss:$16 sps:$4 sm:$0xff]   ;;  %v20073_v28 = vld [vmem:[%s28090_s4 + $0x220] ss:$16 sps:$4 sm:$0xff]   ;;  %v20118_v63 = vld [vmem:[%s28090_s4 + $0x28] ss:$16 sps:$4 sm:$0xff]  }
   0xf   :  { %729 = vmatpush1.bf16.msra.mxu0 %v20054_v15  ;;  %v20074_v29 = vld [vmem:[%s28090_s4 + $0x4] ss:$16 sps:$4 sm:$0xff]   ;;  %v20078_v31 = vld [vmem:[%s28090_s4] ss:$16 sps:$4 sm:$0xff]   ;;  %v20126_v3 = vld [vmem:[%s28090_s4 + $0xc] ss:$16 sps:$4 sm:$0xff]  }
  0x10   :  { %770 = vmatpush1.bf16.msra.mxu1 %v20055_v16  ;;  %730 = vmatprep.subr.bf16.mxu0 %v20056_v17  ;;  %v20076_v30 = vld [vmem:[%s28090_s4 + $0x204] ss:$16 sps:$4 sm:$0xff]   ;;  %v20079_v32 = vld [vmem:[%s28090_s4 + $0x200] ss:$16 sps:$4 sm:$0xff]   ;;  %v20124_v4 = vld [vmem:[%s28090_s4 + $0x8] ss:$16 sps:$4 sm:$0xff]  }
  0x11   :  { %771 = vmatprep.subr.bf16.mxu1 %v20058_v18  ;;  %v117_v33 = vld [vmem:[%s28091_s3] sm:$0xff]  ;;  %v20130_v6 = vld [vmem:[%s28090_s4 + $0x1ec] ss:$16 sps:$4 sm:$0xff]   ;;  %v20128_v8 = vld [vmem:[%s28090_s4 + $0x1e8] ss:$16 sps:$4 sm:$0xff]   ;;  %v22428_v14 = vmov 0.0|0.0  }
  0x12   :  { %v20080_v34 = vld [vmem:[%s28090_s4 + $0x1e4] ss:$16 sps:$4 sm:$0xff]   ;;  %v22603_v36 = vpack.c.bf16 %v117_v33, %v117_v33  ;;  %v20085_v38 = vld [vmem:[%s28090_s4 + $0x1e0] ss:$16 sps:$4 sm:$0xff]   ;;  %v20133_v7 = vld [vmem:[%s28090_s4 + $0x2ec] ss:$16 sps:$4 sm:$0xff]  }
  0x13   :  { %731 = vmatpush1.bf16.msra.mxu0 %v20060_v19  ;;  %v20086_v39 = vld [vmem:[%s28090_s4 + $0x1c4] ss:$16 sps:$4 sm:$0xff]   ;;  %v20091_v42 = vld [vmem:[%s28090_s4 + $0x1c0] ss:$16 sps:$4 sm:$0xff]   ;;  %v20131_v9 = vld [vmem:[%s28090_s4 + $0x2e8] ss:$16 sps:$4 sm:$0xff]  }
  0x14   :  { %772 = vmatpush1.bf16.msra.mxu1 %v20061_v20  ;;  %732 = vmatprep.subr.bf16.mxu0 %v20062_v21  ;;  %v20092_v43 = vld [vmem:[%s28090_s4 + $0x1a4] ss:$16 sps:$4 sm:$0xff]   ;;  %v20097_v46 = vld [vmem:[%s28090_s4 + $0x1a0] ss:$16 sps:$4 sm:$0xff]   ;;  %v20136_v10 = vld [vmem:[%s28090_s4 + $0x1cc] ss:$16 sps:$4 sm:$0xff]  }
  0x15   :  { %773 = vmatprep.subr.bf16.mxu1 %v20064_v22  ;;  %v20098_v47 = vld [vmem:[%s28090_s4 + $0x184] ss:$16 sps:$4 sm:$0xff]   ;;  %v20103_v51 = vld [vmem:[%s28090_s4 + $0x180] ss:$16 sps:$4 sm:$0xff]   ;;  %v20139_v11 = vld [vmem:[%s28090_s4 + $0x2cc] ss:$16 sps:$4 sm:$0xff]  }
  0x16   :  { %v120_v49 = vld [vmem:[%s28092_s0] sm:$0xff]  ;;  %v20134_v12 = vld [vmem:[%s28090_s4 + $0x1c8] ss:$16 sps:$4 sm:$0xff]   ;;  %v20142_v15 = vld [vmem:[%s28090_s4 + $0x1ac] ss:$16 sps:$4 sm:$0xff]   ;;  %vm2309_vm3 = vcmask 1041409  }
  0x17   :  { %733 = vmatpush1.bf16.msra.mxu0 %v20066_v23  ;;  %v122_v52 = vpack.c.bf16 %v120_v49, %v120_v49  ;;  %v20104_v53 = vld [vmem:[%s28090_s4 + $0x164] ss:$16 sps:$4 sm:$0xff]   ;;  %v20109_v56 = vld [vmem:[%s28090_s4 + $0x160] ss:$16 sps:$4 sm:$0xff]   ;;  %v20137_v13 = vld [vmem:[%s28090_s4 + $0x2c8] ss:$16 sps:$4 sm:$0xff]  }
  0x18   :  { %774 = vmatpush1.bf16.msra.mxu1 %v20067_v24  ;;  %734 = vmatprep.subr.bf16.mxu0 %v20068_v25  ;;  %v20110_v57 = vld [vmem:[%s28090_s4 + $0x144] ss:$16 sps:$4 sm:$0xff]   ;;  %v20115_v60 = vld [vmem:[%s28090_s4 + $0x140] ss:$16 sps:$4 sm:$0xff]   ;;  %v20145_v16 = vld [vmem:[%s28090_s4 + $0x2ac] ss:$16 sps:$4 sm:$0xff]  }
  0x19   :  { %775 = vmatprep.subr.bf16.mxu1 %v20070_v26  ;;  %754 = vmatprep.mubr.bf16.mxu0 %v122_v52  ;;  %v20116_v61 = vld [vmem:[%s28090_s4 + $0x124] ss:$16 sps:$4 sm:$0xff]   ;;  %v20121_v0 = vld [vmem:[%s28090_s4 + $0x120] ss:$16 sps:$4 sm:$0xff]   ;;  %v20140_v17 = vld [vmem:[%s28090_s4 + $0x1a8] ss:$16 sps:$4 sm:$0xff]  }
  0x1a   :  { %v20122_v2 = vld [vmem:[%s28090_s4 + $0x104] ss:$16 sps:$4 sm:$0xff]   ;;  %v20127_v5 = vld [vmem:[%s28090_s4 + $0x100] ss:$16 sps:$4 sm:$0xff]   ;;  %v20143_v18 = vld [vmem:[%s28090_s4 + $0x2a8] ss:$16 sps:$4 sm:$0xff]  }
  0x1b   :  { %735 = vmatpush1.bf16.msra.mxu0 %v20072_v27  ;;  %v20148_v19 = vld [vmem:[%s28090_s4 + $0x18c] ss:$16 sps:$4 sm:$0xff]   ;;  %v20146_v21 = vld [vmem:[%s28090_s4 + $0x188] ss:$16 sps:$4 sm:$0xff]   ;;  %v20188_v49 = vld [vmem:[%s28093_s6 + $0xa0] ss:$16 sps:$4 sm:$0xff]  }
  0x1c   :  { %776 = vmatpush1.bf16.msra.mxu1 %v20073_v28  ;;  %736 = vmatprep.subr.bf16.mxu0 %v20074_v29  ;;  %v20151_v20 = vld [vmem:[%s28090_s4 + $0x28c] ss:$16 sps:$4 sm:$0xff]   ;;  %v20149_v22 = vld [vmem:[%s28090_s4 + $0x288] ss:$16 sps:$4 sm:$0xff]   ;;  %vm2312_vm4 = vcmask 1042434   ;;  %vm2315_vm5 = vcmask 1043459  }
  0x1d   :  { %777 = vmatprep.subr.bf16.mxu1 %v20076_v30  ;;  %v20154_v23 = vld [vmem:[%s28090_s4 + $0x16c] ss:$16 sps:$4 sm:$0xff]   ;;  %v20152_v25 = vld [vmem:[%s28090_s4 + $0x168] ss:$16 sps:$4 sm:$0xff]   ;;  %vm2318_vm6 = vcmask 1044484   ;;  %vm2321_vm7 = vcmask 1045509  }
  0x1e   :  { %v20157_v24 = vld [vmem:[%s28090_s4 + $0x26c] ss:$16 sps:$4 sm:$0xff]   ;;  %v20155_v26 = vld [vmem:[%s28090_s4 + $0x268] ss:$16 sps:$4 sm:$0xff]   ;;  %vm2324_vm8 = vcmask 1046534   ;;  %vm2327_vm9 = vcmask 1047559  }
  0x1f   :  { %737 = vmatpush1.bf16.msra.mxu0 %v20078_v31  ;;  %v20160_v27 = vld [vmem:[%s28090_s4 + $0x14c] ss:$16 sps:$4 sm:$0xff]   ;;  %v20158_v29 = vld [vmem:[%s28090_s4 + $0x148] ss:$16 sps:$4 sm:$0xff]  }
  0x20   :  { %778 = vmatpush1.bf16.msra.mxu1 %v20079_v32  ;;  %738 = vmatprep.subr.bf16.mxu0 %v20080_v34  ;;  %v20163_v28 = vld [vmem:[%s28090_s4 + $0x24c] ss:$16 sps:$4 sm:$0xff]   ;;  %v20161_v30 = vld [vmem:[%s28090_s4 + $0x248] ss:$16 sps:$4 sm:$0xff]  }
  0x21   :  { %804 = vmatprep.subr.bf16.mxu1 %v20084_v35  ;;  %v20166_v31 = vld [vmem:[%s28090_s4 + $0x12c] ss:$16 sps:$4 sm:$0xff]   ;;  %v20164_v33 = vld [vmem:[%s28090_s4 + $0x128] ss:$16 sps:$4 sm:$0xff]  }
  0x22   :  { %v20169_v32 = vld [vmem:[%s28090_s4 + $0x22c] ss:$16 sps:$4 sm:$0xff]   ;;  %v20167_v34 = vld [vmem:[%s28090_s4 + $0x228] ss:$16 sps:$4 sm:$0xff]  }
  0x23   :  { %796 = vmatmul.mubr.bf16.vlgmr.msra.gmra.mxu1 %v22603_v36  ;;  %739 = vmatpush2.bf16.msra.mxu0 %v20085_v38  ;;  %v20172_v35 = vld [vmem:[%s28090_s4 + $0x10c] ss:$16 sps:$4 sm:$0xff]   ;;  %v20170_v38 = vld [vmem:[%s28090_s4 + $0x108] ss:$16 sps:$4 sm:$0xff]  }
  0x24   :  { %805 = vmatpush1.bf16.msra.mxu1 %v20082_v37  ;;  %740 = vmatprep.subr.bf16.mxu0 %v20086_v39  ;;  %v20175_v37 = vld [vmem:[%s28090_s4 + $0x20c] ss:$16 sps:$4 sm:$0xff]   ;;  %v20173_v39 = vld [vmem:[%s28090_s4 + $0x208] ss:$16 sps:$4 sm:$0xff]  }
  0x25   :  { %806 = vmatprep.subr.bf16.mxu1 %v20090_v40  ;;  %836 = vmatprep.mubr.bf16.mxu1 %v122_v52  ;;  %v20178_v40 = vld [vmem:[%s28093_s6 + $0xe4] ss:$16 sps:$4 sm:$0xff]   ;;  %v20199_v52 = vld [vmem:[%s28093_s6 + $0x8c] ss:$16 sps:$4 sm:$0xff]  }
  0x27   :  { %741 = vmatpush2.bf16.msra.mxu0 %v20091_v42  ;;  %v20179_v42 = vld [vmem:[%s28093_s6 + $0xe8] ss:$16 sps:$4 sm:$0xff]  }
  0x28   :  { %807 = vmatpush1.bf16.msra.mxu1 %v20088_v41  ;;  %742 = vmatprep.subr.bf16.mxu0 %v20092_v43  ;;  %v20176_v41 = vld [vmem:[%s28093_s6 + $0xe0] ss:$16 sps:$4 sm:$0xff]   ;;  %v20181_v43 = vld [vmem:[%s28093_s6 + $0xec] ss:$16 sps:$4 sm:$0xff]  }
  0x29   :  { %808 = vmatprep.subr.bf16.mxu1 %v20096_v44  ;;  %v20187_v44 = vld [vmem:[%s28093_s6 + $0xcc] ss:$16 sps:$4 sm:$0xff]  }
  0x2b   :  { %743 = vmatpush2.bf16.msra.mxu0 %v20097_v46  ;;  %v20185_v46 = vld [vmem:[%s28093_s6 + $0xc8] ss:$16 sps:$4 sm:$0xff]  }
  0x2c   :  { %809 = vmatpush1.bf16.msra.mxu1 %v20094_v45  ;;  %744 = vmatprep.subr.bf16.mxu0 %v20098_v47  ;;  %v20182_v45 = vld [vmem:[%s28093_s6 + $0xc0] ss:$16 sps:$4 sm:$0xff]   ;;  %v20190_v47 = vld [vmem:[%s28093_s6 + $0xa4] ss:$16 sps:$4 sm:$0xff]  }
  0x2d   :  { %810 = vmatprep.subr.bf16.mxu1 %v20102_v48  ;;  %v20193_v48 = vld [vmem:[%s28093_s6 + $0xac] ss:$16 sps:$4 sm:$0xff]  }
  0x2f   :  { %745 = vmatpush2.bf16.msra.mxu0 %v20103_v51  ;;  %v20196_v51 = vld [vmem:[%s28093_s6 + $0x84] ss:$16 sps:$4 sm:$0xff]  }
  0x30   :  { %811 = vmatpush1.bf16.msra.mxu1 %v20100_v50  ;;  %746 = vmatprep.subr.bf16.mxu0 %v20104_v53  ;;  %v20191_v50 = vld [vmem:[%s28093_s6 + $0xa8] ss:$16 sps:$4 sm:$0xff]   ;;  %v20194_v53 = vld [vmem:[%s28093_s6 + $0x80] ss:$16 sps:$4 sm:$0xff]  }
  0x31   :  { %812 = vmatprep.subr.bf16.mxu1 %v20108_v54  ;;  %v20197_v54 = vld [vmem:[%s28093_s6 + $0x88] ss:$16 sps:$4 sm:$0xff]  }
  0x33   :  { %747 = vmatpush2.bf16.msra.mxu0 %v20109_v56  ;;  %v20205_v56 = vld [vmem:[%s28093_s6 + $0x6c] ss:$16 sps:$4 sm:$0xff]  }
  0x34   :  { %813 = vmatpush1.bf16.msra.mxu1 %v20106_v55  ;;  %748 = vmatprep.subr.bf16.mxu0 %v20110_v57  ;;  %v20202_v55 = vld [vmem:[%s28093_s6 + $0x64] ss:$16 sps:$4 sm:$0xff]   ;;  %v20200_v57 = vld [vmem:[%s28093_s6 + $0x60] ss:$16 sps:$4 sm:$0xff]  }
  0x35   :  { %814 = vmatprep.subr.bf16.mxu1 %v20114_v58  ;;  %v20203_v58 = vld [vmem:[%s28093_s6 + $0x68] ss:$16 sps:$4 sm:$0xff]  }
  0x37   :  { %749 = vmatpush2.bf16.msra.mxu0 %v20115_v60  ;;  %v20211_v60 = vld [vmem:[%s28093_s6 + $0x4c] ss:$16 sps:$4 sm:$0xff]  }
  0x38   :  { %815 = vmatpush1.bf16.msra.mxu1 %v20112_v59  ;;  %750 = vmatprep.subr.bf16.mxu0 %v20116_v61  ;;  %v20208_v59 = vld [vmem:[%s28093_s6 + $0x44] ss:$16 sps:$4 sm:$0xff]   ;;  %v20206_v61 = vld [vmem:[%s28093_s6 + $0x40] ss:$16 sps:$4 sm:$0xff]  }
  0x39   :  { %816 = vmatprep.subr.bf16.mxu1 %v20120_v62  ;;  %v20209_v62 = vld [vmem:[%s28093_s6 + $0x48] ss:$16 sps:$4 sm:$0xff]  }
  0x3b   :  { %751 = vmatpush2.bf16.msra.mxu0 %v20121_v0  ;;  %v20217_v0 = vld [vmem:[%s28093_s6 + $0x2c] ss:$16 sps:$4 sm:$0xff]  }
  0x3c   :  { %817 = vmatpush1.bf16.msra.mxu1 %v20118_v63  ;;  %752 = vmatprep.subr.bf16.mxu0 %v20122_v2  ;;  %v20214_v63 = vld [vmem:[%s28093_s6 + $0x24] ss:$16 sps:$4 sm:$0xff]   ;;  %v20212_v2 = vld [vmem:[%s28093_s6 + $0x20] ss:$16 sps:$4 sm:$0xff]  }
  0x3d   :  { %818 = vmatprep.subr.bf16.mxu1 %v20126_v3  ;;  %v20215_v3 = vld [vmem:[%s28093_s6 + $0x28] ss:$16 sps:$4 sm:$0xff]  }
  0x3f   :  { %753 = vmatpush2.bf16.msra.mxu0 %v20127_v5  ;;  %v20223_v5 = vld [vmem:[%s28093_s6 + $0xc] ss:$16 sps:$4 sm:$0xff]  }
  0x40   :  { %819 = vmatpush1.bf16.msra.mxu1 %v20124_v4  ;;  %845 = vmatprep.subr.bf16.mxu0 %v20133_v7  ;;  %v20220_v4 = vld [vmem:[%s28093_s6 + $0x4] ss:$16 sps:$4 sm:$0xff]   ;;  %v20221_v7 = vld [vmem:[%s28093_s6 + $0x8] ss:$16 sps:$4 sm:$0xff]  }
  0x41   :  { %820 = vmatprep.subr.bf16.mxu1 %v20130_v6  ;;  %v20218_v6 = vld [vmem:[%s28093_s6] ss:$16 sps:$4 sm:$0xff]  }
  0x42   :  { %755 = vmatmul.mubr.bf16.vlgmr.msra.gmra.mxu0 %v22428_v14 }
  0x43   :  { %846 = vmatpush1.bf16.msra.mxu0 %v20131_v9  ;;  %877 = vmatprep.mubr.bf16.mxu0 %v22427_v1  ;;  %v20229_v9 = vld [vmem:[%s28093_s6 + $0x1ec] ss:$16 sps:$4 sm:$0xff]  }
  0x44   :  { %821 = vmatpush2.bf16.msra.mxu1 %v20128_v8  ;;  %847 = vmatprep.subr.bf16.mxu0 %v20139_v11  ;;  %v20226_v8 = vld [vmem:[%s28093_s6 + $0x1e4] ss:$16 sps:$4 sm:$0xff]   ;;  %v20227_v11 = vld [vmem:[%s28093_s6 + $0x1e8] ss:$16 sps:$4 sm:$0xff]  }
  0x45   :  { %822 = vmatprep.subr.bf16.mxu1 %v20136_v10  ;;  %v20224_v10 = vld [vmem:[%s28093_s6 + $0x1e0] ss:$16 sps:$4 sm:$0xff]  }
  0x47   :  { %848 = vmatpush1.bf16.msra.mxu0 %v20137_v13  ;;  %v20235_v13 = vld [vmem:[%s28093_s6 + $0x1cc] ss:$16 sps:$4 sm:$0xff]  }
  0x48   :  { %823 = vmatpush2.bf16.msra.mxu1 %v20134_v12  ;;  %849 = vmatprep.subr.bf16.mxu0 %v20145_v16  ;;  %v20232_v12 = vld [vmem:[%s28093_s6 + $0x1c4] ss:$16 sps:$4 sm:$0xff]  }
  0x49   :  { %824 = vmatprep.subr.bf16.mxu1 %v20142_v15  ;;  %v20233_v15 = vld [vmem:[%s28093_s6 + $0x1c8] ss:$16 sps:$4 sm:$0xff]   ;;  %v20238_v16 = vld [vmem:[%s28093_s6 + $0x1a4] ss:$16 sps:$4 sm:$0xff]  }
  0x4b   :  { %850 = vmatpush1.bf16.msra.mxu0 %v20143_v18  ;;  %v20236_v18 = vld [vmem:[%s28093_s6 + $0x1a0] ss:$16 sps:$4 sm:$0xff]  }
  0x4c   :  { %825 = vmatpush2.bf16.msra.mxu1 %v20140_v17  ;;  %851 = vmatprep.subr.bf16.mxu0 %v20151_v20  ;;  %v20241_v17 = vld [vmem:[%s28093_s6 + $0x1ac] ss:$16 sps:$4 sm:$0xff]   ;;  %v20244_v20 = vld [vmem:[%s28093_s6 + $0x184] ss:$16 sps:$4 sm:$0xff]  }
  0x4d   :  { %826 = vmatprep.subr.bf16.mxu1 %v20148_v19  ;;  %v20239_v19 = vld [vmem:[%s28093_s6 + $0x1a8] ss:$16 sps:$4 sm:$0xff]  }
  0x4f   :  { %852 = vmatpush1.bf16.msra.mxu0 %v20149_v22  ;;  %v20242_v22 = vld [vmem:[%s28093_s6 + $0x180] ss:$16 sps:$4 sm:$0xff]  }
  0x50   :  { %827 = vmatpush2.bf16.msra.mxu1 %v20146_v21  ;;  %853 = vmatprep.subr.bf16.mxu0 %v20157_v24  ;;  %v20247_v21 = vld [vmem:[%s28093_s6 + $0x18c] ss:$16 sps:$4 sm:$0xff]   ;;  %v20248_v24 = vld [vmem:[%s28093_s6 + $0x160] ss:$16 sps:$4 sm:$0xff]  }
  0x51   :  { %828 = vmatprep.subr.bf16.mxu1 %v20154_v23  ;;  %v20245_v23 = vld [vmem:[%s28093_s6 + $0x188] ss:$16 sps:$4 sm:$0xff]  }
  0x53   :  { %854 = vmatpush1.bf16.msra.mxu0 %v20155_v26  ;;  %v20251_v26 = vld [vmem:[%s28093_s6 + $0x168] ss:$16 sps:$4 sm:$0xff]  }
  0x54   :  { %829 = vmatpush2.bf16.msra.mxu1 %v20152_v25  ;;  %855 = vmatprep.subr.bf16.mxu0 %v20163_v28  ;;  %v20250_v25 = vld [vmem:[%s28093_s6 + $0x164] ss:$16 sps:$4 sm:$0xff]  }
  0x55   :  { %830 = vmatprep.subr.bf16.mxu1 %v20160_v27  ;;  %v20253_v27 = vld [vmem:[%s28093_s6 + $0x16c] ss:$16 sps:$4 sm:$0xff]   ;;  %v20256_v28 = vld [vmem:[%s28093_s6 + $0x144] ss:$16 sps:$4 sm:$0xff]  }
  0x57   :  { %856 = vmatpush1.bf16.msra.mxu0 %v20161_v30  ;;  %v20254_v30 = vld [vmem:[%s28093_s6 + $0x140] ss:$16 sps:$4 sm:$0xff]  }
  0x58   :  { %831 = vmatpush2.bf16.msra.mxu1 %v20158_v29  ;;  %857 = vmatprep.subr.bf16.mxu0 %v20169_v32  ;;  %v20259_v29 = vld [vmem:[%s28093_s6 + $0x14c] ss:$16 sps:$4 sm:$0xff]   ;;  %v20262_v32 = vld [vmem:[%s28093_s6 + $0x124] ss:$16 sps:$4 sm:$0xff]  }
  0x59   :  { %832 = vmatprep.subr.bf16.mxu1 %v20166_v31  ;;  %v20257_v31 = vld [vmem:[%s28093_s6 + $0x148] ss:$16 sps:$4 sm:$0xff]  }
  0x5b   :  { %858 = vmatpush1.bf16.msra.mxu0 %v20167_v34  ;;  %v20265_v34 = vld [vmem:[%s28093_s6 + $0x12c] ss:$16 sps:$4 sm:$0xff]  }
  0x5c   :  { %833 = vmatpush2.bf16.msra.mxu1 %v20164_v33  ;;  %859 = vmatprep.subr.bf16.mxu0 %v20175_v37  ;;  %v20260_v33 = vld [vmem:[%s28093_s6 + $0x120] ss:$16 sps:$4 sm:$0xff]   ;;  %v20268_v37 = vld [vmem:[%s28093_s6 + $0x104] ss:$16 sps:$4 sm:$0xff]  }
  0x5d   :  { %834 = vmatprep.subr.bf16.mxu1 %v20172_v35  ;;  %v17353_v35 = vld [vmem:[%s28091_s3 + $0x8] sm:$0xff] }
  0x5f   :  { %860 = vmatpush1.bf16.msra.mxu0 %v20173_v39  ;;  %v20263_v39 = vld [vmem:[%s28093_s6 + $0x128] ss:$16 sps:$4 sm:$0xff]  }
  0x60   :  { %835 = vmatpush2.bf16.msra.mxu1 %v20170_v38  ;;  %1318 = vmatprep.subr.bf16.mxu0 %v20178_v40  ;;  %v911_v38 = vpack.c.bf16 %v17353_v35, %v17353_v35  ;;  %v20271_v40 = vld [vmem:[%s28093_s6 + $0x10c] ss:$16 sps:$4 sm:$0xff]  }
  0x61   :  { %1359 = vmatprep.subr.bf16.mxu1 %v20181_v43  ;;  %v23030_v35 = vld [vmem:[%s28095_s1 + $0x8] sm:$0xff]  }
  0x62   :  { %878 = vmatmul.mubr.bf16.vlgmr.msra.gmra.mxu0 %v22603_v36  ;;  %v20184_v36 = vld [vmem:[%s28093_s6 + $0xc4] ss:$16 sps:$4 sm:$0xff]  }
  0x63   :  { %837 = vmatmul.mubr.bf16.vlgmr.msra.gmra.mxu1 %v22428_v14  ;;  %1319 = vmatpush1.bf16.msra.mxu0 %v20176_v41  ;;  %v20230_v14 = vld [vmem:[%s28093_s6 + $0x1c0] ss:$16 sps:$4 sm:$0xff]  }
  0x64   :  { %1360 = vmatpush1.bf16.msra.mxu1 %v20179_v42  ;;  %1320 = vmatprep.subr.bf16.mxu0 %v20184_v36  ;;  %v20266_v41 = vld [vmem:[%s28093_s6 + $0x100] ss:$16 sps:$4 sm:$0xff]   ;;  %v20269_v42 = vld [vmem:[%s28093_s6 + $0x108] ss:$16 sps:$4 sm:$0xff]  }
  0x65   :  { %1361 = vmatprep.subr.bf16.mxu1 %v20187_v44  ;;  %1350 = vmatprep.mubr.bf16.mxu0 %v911_v38 }
  0x66   :  { %1391 = vmatprep.mubr.bf16.mxu1 %v911_v38 }
  0x67   :  { %1321 = vmatpush1.bf16.msra.mxu0 %v20182_v45 }
  0x68   :  { %1362 = vmatpush1.bf16.msra.mxu1 %v20185_v46  ;;  %1322 = vmatprep.subr.bf16.mxu0 %v20190_v47  ;;  %v64_v46 = vlaneseq }
  0x69   :  { %1363 = vmatprep.subr.bf16.mxu1 %v20193_v48  ;;  %v220_v48 = vld [vmem:[%s28094_s5] sm:$0xf] }
  0x6a   :  { %v22992_v47 = vshrl.u32 %v64_v46, 7 }
  0x6b   :  { %1323 = vmatpush1.bf16.msra.mxu0 %v20188_v49 }
  0x6c   :  { %1364 = vmatpush1.bf16.msra.mxu1 %v20191_v50  ;;  %1324 = vmatprep.subr.bf16.mxu0 %v20196_v51  ;;  %v22998_v49 = vsub.s32 1, %v22992_v47  ;;  %v23001_v50 = vsub.s32 0, %v22992_v47 }
  0x6d   :  { %1365 = vmatprep.subr.bf16.mxu1 %v20199_v52 }
  0x6e   :  { %v229_v51 = vrot.slane %v220_v48, %v22998_v49  ;;  %v225_v52 = vrot.slane %v220_v48, %v23001_v50 }
  0x6f   :  { %1325 = vmatpush1.bf16.msra.mxu0 %v20194_v53 }
  0x70   :  { %1366 = vmatpush1.bf16.msra.mxu1 %v20197_v54  ;;  %1326 = vmatprep.subr.bf16.mxu0 %v20202_v55 }
  0x71   :  { %1367 = vmatprep.subr.bf16.mxu1 %v20205_v56 }
  0x73   :  { %1327 = vmatpush1.bf16.msra.mxu0 %v20200_v57 }
  0x74   :  { %1368 = vmatpush1.bf16.msra.mxu1 %v20203_v58  ;;  %1328 = vmatprep.subr.bf16.mxu0 %v20208_v59 }
  0x75   :  { %1369 = vmatprep.subr.bf16.mxu1 %v20211_v60 }
  0x77   :  { %1329 = vmatpush1.bf16.msra.mxu0 %v20206_v61 }
  0x78   :  { %1370 = vmatpush1.bf16.msra.mxu1 %v20209_v62  ;;  %1330 = vmatprep.subr.bf16.mxu0 %v20214_v63  ;;  %v23006_v63 = vsub.s32 2, %v22992_v47 }
  0x79   :  { %1371 = vmatprep.subr.bf16.mxu1 %v20217_v0  ;;  %v23009_v0 = vsub.s32 3, %v22992_v47 }
  0x7b   :  { %1331 = vmatpush1.bf16.msra.mxu0 %v20212_v2 }
  0x7c   :  { %1372 = vmatpush1.bf16.msra.mxu1 %v20215_v3  ;;  %1332 = vmatprep.subr.bf16.mxu0 %v20220_v4  ;;  %v233_v4 = vrot.slane %v220_v48, %v23006_v63 }
  0x7d   :  { %1373 = vmatprep.subr.bf16.mxu1 %v20223_v5 }
  0x7f   :  { %1333 = vmatpush1.bf16.msra.mxu0 %v20218_v6  ;;  %v237_v6 = vrot.slane %v220_v48, %v23009_v0 }
  0x80   :  { %1374 = vmatpush1.bf16.msra.mxu1 %v20221_v7  ;;  %1334 = vmatprep.subr.bf16.mxu0 %v20226_v8 }
  0x81   :  { %1375 = vmatprep.subr.bf16.mxu1 %v20229_v9 }
  0x83   :  { %1335 = vmatpush2.bf16.msra.mxu0 %v20224_v10 }
  0x84   :  { %1376 = vmatpush2.bf16.msra.mxu1 %v20227_v11  ;;  %1336 = vmatprep.subr.bf16.mxu0 %v20232_v12 }
  0x85   :  { %1377 = vmatprep.subr.bf16.mxu1 %v20235_v13 }
  0x87   :  { %1337 = vmatpush2.bf16.msra.mxu0 %v20230_v14 }
  0x88   :  { %1378 = vmatpush2.bf16.msra.mxu1 %v20233_v15  ;;  %1338 = vmatprep.subr.bf16.mxu0 %v20238_v16 }
  0x89   :  { %1379 = vmatprep.subr.bf16.mxu1 %v20241_v17 }
  0x8b   :  { %1339 = vmatpush2.bf16.msra.mxu0 %v20236_v18 }
  0x8c   :  { %1380 = vmatpush2.bf16.msra.mxu1 %v20239_v19  ;;  %1340 = vmatprep.subr.bf16.mxu0 %v20244_v20 }
  0x8d   :  { %1381 = vmatprep.subr.bf16.mxu1 %v20247_v21 }
  0x8f   :  { %1341 = vmatpush2.bf16.msra.mxu0 %v20242_v22 }
  0x90   :  { %1382 = vmatpush2.bf16.msra.mxu1 %v20245_v23  ;;  %1342 = vmatprep.subr.bf16.mxu0 %v20250_v25 }
  0x91   :  { %1383 = vmatprep.subr.bf16.mxu1 %v20253_v27 }
  0x93   :  { %1343 = vmatpush2.bf16.msra.mxu0 %v20248_v24 }
  0x94   :  { %1344 = vmatprep.subr.bf16.mxu0 %v20256_v28  ;;  %1384 = vmatpush2.bf16.msra.mxu1 %v20251_v26 }
  0x95   :  { %1385 = vmatprep.subr.bf16.mxu1 %v20259_v29 }
  0x97   :  { %1345 = vmatpush2.bf16.msra.mxu0 %v20254_v30 }
  0x98   :  { %1346 = vmatprep.subr.bf16.mxu0 %v20262_v32  ;;  %1386 = vmatpush2.bf16.msra.mxu1 %v20257_v31 }
  0x99   :  { %1387 = vmatprep.subr.bf16.mxu1 %v20265_v34  ;;  %v23024_v34 = vld [vmem:[%s28095_s1] sm:$0xff]  }
  0x9b   :  { %1347 = vmatpush2.bf16.msra.mxu0 %v20260_v33  ;;  %v22429_v33 = vmov 0.0  }
  0x9c   :  { %1348 = vmatprep.subr.bf16.mxu0 %v20268_v37  ;;  %1388 = vmatpush2.bf16.msra.mxu1 %v20263_v39  ;;  %v976_v37 = vld [vmem:[%s28096_s7] sm:$0xf] }
  0x9d   :  { %1389 = vmatprep.subr.bf16.mxu1 %v20271_v40  ;;  %v981_v38 = vrot.slane %v976_v37, %v23001_v50  ;;  %v985_v39 = vrot.slane %v976_v37, %v22998_v49 }
  0x9f   :  { %1349 = vmatpush2.bf16.msra.mxu0 %v20266_v41 }
  0xa0   :  { %1390 = vmatpush2.bf16.msra.mxu1 %v20269_v42  ;;  %19215 = vmatprep.subr.bf16.mxu0 %v22429_v33 }
  0xa1   :  { %19221 = vmatprep.subr.bf16.mxu1 %v22429_v33 }
  0xe3   :  { %v797_v43 = vpop.f32.mrf.mxu1 }
  0xe5   :  { %v799_v36 = vpop.f32.mrf.mxu1 }
  0xe7   :  { %v801_v44 = vpop.f32.mrf.mxu1 }
  0xe9   :  { %v802_v45 = vpop.f32.mrf.mxu1 }
 0x102   :  { %v756_v53 = vpop.f32.mrf.mxu0 }
 0x103   :  { %v757_v56 = vadd.f32 %v756_v53, %v225_v52 }
 0x104   :  { %v758_v54 = vpop.f32.mrf.mxu0 }
 0x105   :  { %v759_v55 = vadd.f32 %v758_v54, %v229_v51  ;;  %v798_v60 = vadd.f32 %v797_v43, %v757_v56  ;;  %v993_v54 = vrot.slane %v976_v37, %v23009_v0  ;;  %v989_v56 = vrot.slane %v976_v37, %v23006_v63 }
 0x106   :  { %v760_v57 = vpop.f32.mrf.mxu0 }
 0x107   :  { %v800_v59 = vadd.f32 %v799_v36, %v759_v55  ;;  %v17450_v62 = vmul.f32 -1.442695, %v798_v60 }
 0x108   :  { %v761_v58 = vpop.f32.mrf.mxu0 }
 0x109   :  { %v17451_v61 = vmul.f32 -1.442695, %v800_v59 }
 0x10b   :  { %21889 = vpow2.f32 %v17451_v61 }
 0x10c   :  { %21891 = vpow2.f32 %v17450_v62 }
 0x118   :  { %v21890_v2 = vpop.eup %21889 }
 0x119   :  { %v21892_v3 = vpop.eup %21891  ;;  %v895_v5 = vadd.f32 1.0, %v21890_v2 }
 0x11a   :  { %v889_v7 = vadd.f32 1.0, %v21892_v3 }
 0x11b   :  { %21893 = vrcp.f32 %v895_v5 }
 0x11c   :  { %21895 = vrcp.f32 %v889_v7 }
 0x122   :  { %v879_v9 = vpop.f32.mrf.mxu0 }
 0x123   :  { %v838_v8 = vpop.f32.mrf.mxu1 }
 0x124   :  { %v839_v10 = vadd.f32 %v838_v8, %v233_v4  ;;  %v881_v12 = vpop.f32.mrf.mxu0 }
 0x125   :  { %v840_v11 = vpop.f32.mrf.mxu1 }
 0x126   :  { %v880_v13 = vadd.f32 %v879_v9, %v839_v10  ;;  %v841_v14 = vadd.f32 %v840_v11, %v237_v6  ;;  %v883_v16 = vpop.f32.mrf.mxu0  ;;  %v22431_v10 = vmov 1966171168  }
 0x127   :  { %v842_v15 = vpop.f32.mrf.mxu1  ;;  %v62_v11 = vunpack.c.l.s4 %v22431_v10 }
 0x128   :  { %21897 = vtanh.f32 %v880_v13  ;;  %v882_v17 = vadd.f32 %v881_v12, %v841_v14  ;;  %v884_v19 = vpop.f32.mrf.mxu0  ;;  %v21894_v21 = vpop.eup %21893 }
 0x129   :  { %v843_v18 = vpop.f32.mrf.mxu1  ;;  %v21896_v22 = vpop.eup %21895  ;;  %v905_v24 = vmul.f32 0.0, %v21894_v21  ;;  %v63_v12 = vunpack.c.0.s8 %v62_v11 }
 0x12a   :  { %v17452_v20 = vmul.f32 -1.442695, %v882_v17 }
 0x12b   :  { %v23051_v14 = vsub.s32 %v63_v12, %v22992_v47  ;;  %v23067_v47 = vld [vmem:[%s28095_s1 + $0x18] sm:$0xff]  }
 0x12c   :  { %21899 = vpow2.f32 %v17452_v20  ;;  %v23061_v20 = vld [vmem:[%s28095_s1 + $0x10] sm:$0xff]  }
 0x135   :  { %v21898_v23 = vpop.eup %21897 }
 0x136   :  { %v906_v25 = vmul.f32 %v21898_v23, %v21896_v22 }
 0x138   :  { %v23013_v26 = vadd.f32 %v906_v25, %v905_v24 }
 0x139   :  { %v21900_v27 = vpop.eup %21899 }
 0x13a   :  { %v902_v28 = vadd.f32 1.0, %v21900_v27  ;;  %21901 = vtanh.f32 %v23013_v26 }
 0x13c   :  { %21903 = vrcp.f32 %v902_v28 }
 0x147   :  { %v21902_v29 = vpop.eup %21901 }
 0x149   :  { %v21904_v30 = vpop.eup %21903 }
 0x14a   :  { %v909_v31 = vmul.f32 %v21904_v30, %v21902_v29  ;;  %v23083_v29 = vld [vmem:[%s28095_s1 + $0x20] sm:$0xff]  }
 0x14c   :  { %v23016_v32 = vpack.c.bf16 %v909_v31, %v909_v31  ;;  %v23088_v31 = vld [vmem:[%s28095_s1 + $0x28] sm:$0xff]  }
 0x14e   :  { %1351 = vmatmul.mubr.bf16.vlgmr.msra.gmra.mxu0 %v23016_v32  ;;  %1392 = vmatmul.mubr.bf16.vlgmr.msra.gmra.mxu1 %v23016_v32 }
 0x14f   :  { %19217 = vmatprep.mubr.msk.bf16.mxu0 %vm22430_vm0, %v22429_v33  ;;  %19223 = vmatprep.mubr.msk.bf16.mxu1 %vm22430_vm0, %v22429_v33 }
 0x150   :  { %19216 = vmatpush3.bf16.xpose.msra.mxu0 %v23024_v34  ;;  %19222 = vmatpush3.bf16.xpose.msra.mxu1 %v23030_v35 }
 0x151   :  { %19227 = vmatprep.subr.bf16.mxu0 %v22429_v33  ;;  %19233 = vmatprep.subr.bf16.mxu1 %v22429_v33 }
 0x20e   :  { %v1352_v40 = vpop.f32.mrf.mxu0  ;;  %v1393_v41 = vpop.f32.mrf.mxu1 }
 0x20f   :  { %v1353_v42 = vadd.f32 %v1352_v40, %v981_v38  ;;  %v1394_v59 = vadd.f32 %v1393_v41, %v989_v56  ;;  %v23103_v41 = vld [vmem:[%s28095_s1 + $0x30] sm:$0xff]  }
 0x210   :  { %v1354_v43 = vpop.f32.mrf.mxu0  ;;  %v1395_v36 = vpop.f32.mrf.mxu1 }
 0x211   :  { %v17517_v44 = vmul.f32 -1.442695, %v1353_v42  ;;  %v1355_v45 = vadd.f32 %v1354_v43, %v985_v39  ;;  %v1396_v55 = vadd.f32 %v1395_v36, %v993_v54  ;;  %v23108_v43 = vld [vmem:[%s28095_s1 + $0x38] sm:$0xff]  }
 0x212   :  { %v1356_v46 = vpop.f32.mrf.mxu0  ;;  %v1397_v48 = vpop.f32.mrf.mxu1 }
 0x213   :  { %21905 = vpow2.f32 %v17517_v44  ;;  %v17518_v51 = vmul.f32 -1.442695, %v1355_v45  ;;  %v17519_v57 = vmul.f32 -1.442695, %v1396_v55 }
 0x214   :  { %v1357_v52 = vpop.f32.mrf.mxu0  ;;  %v1398_v53 = vpop.f32.mrf.mxu1 }
 0x215   :  { %21907 = vpow2.f32 %v17518_v51  ;;  %v58_v51 = vld [vmem:[%s28097_s2] sm:$0xff] }
 0x216   :  { %21909 = vpow2.f32 %v17519_v57  ;;  %v67_v52 = vrot.slane %v58_v51, %v23051_v14 }
 0x218   :  { %v23131_v53 = vrot.slane %v67_v52, %v23051_v14 }
 0x220   :  { %v21906_v58 = vpop.eup %21905 }
 0x221   :  { %v1403_v60 = vadd.f32 1.0, %v21906_v58 }
 0x222   :  { %v21908_v61 = vpop.eup %21907 }
 0x223   :  { %21911 = vrcp.f32 %v1403_v60  ;;  %v1409_v62 = vadd.f32 1.0, %v21908_v61  ;;  %v21910_v2 = vpop.eup %21909  ;;  %v60_v60 = vcombine.high %v58_v51, %v58_v51 }
 0x224   :  { %21913 = vtanh.f32 %v1394_v59  ;;  %v1416_v6 = vadd.f32 1.0, %v21910_v2  ;;  %v23146_v2 = vcombine.high %v23131_v53, %v23131_v53 }
 0x225   :  { %21915 = vrcp.f32 %v1409_v62 }
 0x226   :  { %21917 = vrcp.f32 %v1416_v6 }
 0x230   :  { %v21912_v3 = vpop.eup %21911 }
 0x231   :  { %v21914_v4 = vpop.eup %21913 }
 0x232   :  { %v21916_v5 = vpop.eup %21915  ;;  %v1420_v8 = vmul.f32 %v21914_v4, %v21912_v3 }
 0x233   :  { %v1419_v7 = vmul.f32 0.0, %v21916_v5  ;;  %v21918_v13 = vpop.eup %21917 }
 0x235   :  { %v23047_v9 = vadd.f32 %v1420_v8, %v1419_v7  ;;  %v74_v7 = vrot.slane %v60_v60, %v23051_v14 }
 0x237   :  { %21919 = vtanh.f32 %v23047_v9 }
 0x244   :  { %v21920_v15 = vpop.eup %21919 }
 0x245   :  { %v23053_v16 = vmul.f32 %v21920_v15, %v21918_v13 }
 0x247   :  { %v1432_v17 = vrot.slane %v23053_v16, %v23051_v14  ;;  %v1425_v24 = vcombine.high %v23053_v16, %v23053_v16 }
 0x249   :  { %v1448_v18 = vrot.slane %v1432_v17, %v23051_v14  ;;  %v1440_v19 = vcombine.high %v1432_v17, %v1432_v17  ;;  %v1439_v28 = vrot.slane %v1425_v24, %v23051_v14 }
 0x24b   :  { %v1482_v21 = vpack.c.bf16 %v1448_v18, %v1448_v18  ;;  %v1462_v22 = vrot.slane %v1440_v19, %v23051_v14  ;;  %v1470_v25 = vcombine.high %v1448_v18, %v1448_v18  ;;  %v1441_v38 = vcombine.high %v1439_v28, %v1439_v28 }
 0x24c   :  { %v1455_v39 = vrot.slane %v1439_v28, %v23051_v14  ;;  %v76_v18 = vcombine.high %v74_v7, %v74_v7 }
 0x24d   :  { %19218 = vmatmul.mubr.bf16.vlgmr.msra.gmra.mxu0 %v1482_v21  ;;  %v1483_v23 = vpack.c.bf16 %v1462_v22, %v1462_v22  ;;  %v1472_v27 = vcombine.high %v1462_v22, %v1462_v22  ;;  %v1484_v30 = vpack.c.bf16 %v1470_v25, %v1470_v25  ;;  %v1469_v40 = vrot.slane %v1441_v38, %v23051_v14 }
 0x24e   :  { %19228 = vmatpush3.bf16.xpose.msra.mxu0 %v23061_v20  ;;  %19229 = vmatprep.mubr.msk.bf16.mxu0 %vm22430_vm0, %v22429_v33  ;;  %v1486_v42 = vpack.c.bf16 %v1455_v39, %v1455_v39  ;;  %v1471_v44 = vcombine.high %v1455_v39, %v1455_v39  ;;  %v23159_v22 = vrot.slane %v74_v7, %v23051_v14 }
 0x24f   :  { %19224 = vmatmul.mubr.bf16.vlgmr.msra.gmra.mxu1 %v1483_v23  ;;  %19239 = vmatprep.subr.bf16.mxu0 %v22429_v33  ;;  %v1485_v37 = vpack.c.bf16 %v1472_v27, %v1472_v27  ;;  %v1487_v36 = vpack.c.bf16 %v1469_v40, %v1469_v40  ;;  %v1473_v45 = vcombine.high %v1469_v40, %v1469_v40 }
 0x250   :  { %19234 = vmatpush3.bf16.xpose.msra.mxu1 %v23067_v47  ;;  %19235 = vmatprep.mubr.msk.bf16.mxu1 %vm22430_vm0, %v22429_v33  ;;  %v1488_v46 = vpack.c.bf16 %v1471_v44, %v1471_v44  ;;  %v23163_v27 = vrot.slane %v76_v18, %v23051_v14 }
 0x251   :  { %19245 = vmatprep.subr.bf16.mxu1 %v22429_v33  ;;  %v1489_v48 = vpack.c.bf16 %v1473_v45, %v1473_v45 }
 0x255   :  { %19230 = vmatmul.mubr.bf16.vlgmr.msra.gmra.mxu0 %v1484_v30 }
 0x256   :  { %19240 = vmatpush3.bf16.xpose.msra.mxu0 %v23083_v29  ;;  %19241 = vmatprep.mubr.msk.bf16.mxu0 %vm22430_vm0, %v22429_v33 }
 0x257   :  { %19236 = vmatmul.mubr.bf16.vlgmr.msra.gmra.mxu1 %v1485_v37  ;;  %19251 = vmatprep.subr.bf16.mxu0 %v22429_v33 }
 0x258   :  { %19246 = vmatpush3.bf16.xpose.msra.mxu1 %v23088_v31  ;;  %19247 = vmatprep.mubr.msk.bf16.mxu1 %vm22430_vm0, %v22429_v33 }
 0x259   :  { %19257 = vmatprep.subr.bf16.mxu1 %v22429_v33 }
 0x25d   :  { %19242 = vmatmul.mubr.bf16.vlgmr.msra.gmra.mxu0 %v1486_v42 }
 0x25e   :  { %19252 = vmatpush3.bf16.xpose.msra.mxu0 %v23103_v41  ;;  %19253 = vmatprep.mubr.msk.bf16.mxu0 %vm22430_vm0, %v22429_v33 }
 0x25f   :  { %19248 = vmatmul.mubr.bf16.vlgmr.msra.gmra.mxu1 %v1487_v36  ;;  %19263 = vmatprep.subr.bf16.mxu0 %v22429_v33 }
 0x260   :  { %19258 = vmatpush3.bf16.xpose.msra.mxu1 %v23108_v43  ;;  %19259 = vmatprep.mubr.msk.bf16.mxu1 %vm22430_vm0, %v22429_v33 }
 0x261   :  { %19269 = vmatprep.subr.bf16.mxu1 %v22429_v33 }
 0x265   :  { %19254 = vmatmul.mubr.bf16.vlgmr.msra.gmra.mxu0 %v1488_v46  ;;  %v23171_v46 = vcombine.high %v23159_v22, %v23159_v22 }
 0x266   :  { %19264 = vmatpush3.bf16.msra.mxu0 %v23024_v34  ;;  %19265 = vmatprep.mubr.msk.bf16.mxu0 %vm22430_vm0, %v22429_v33  ;;  %v75_v34 = vcombine.high %v67_v52, %v67_v52  ;;  %v23175_v52 = vcombine.high %v23163_v27, %v23163_v27 }
 0x267   :  { %19260 = vmatmul.mubr.bf16.vlgmr.msra.gmra.mxu1 %v1489_v48  ;;  %19275 = vmatprep.subr.bf16.mxu0 %v22429_v33 }
 0x268   :  { %19270 = vmatpush3.bf16.msra.mxu1 %v23030_v35  ;;  %19271 = vmatprep.mubr.msk.bf16.mxu1 %vm22430_vm0, %v22429_v33  ;;  %v23134_v54 = vrot.slane %v75_v34, %v23051_v14 }
 0x269   :  { %19281 = vmatprep.subr.bf16.mxu1 %v22429_v33 }
 0x26a   :  { %v23152_v6 = vcombine.high %v23134_v54, %v23134_v54 }
 0x30d   :  { %v1530_v55 = vpop.f32.mrf.mxu0 }
 0x30e   :  { %v23137_v35 = vadd.f32 %v1530_v55, %v23131_v53 }
 0x30f   :  { %v19219_v56 = vpop.f32.mrf.mxu0  ;;  %v1576_v57 = vpop.f32.mrf.mxu1 }
 0x310   :  { %v23140_v58 = vadd.f32 %v1576_v57, %v23134_v54  ;;  %v1859_v59 = vsel %vm1858_vm1, %v23137_v35, -inf }
 0x311   :  { %1860 = vmax.xlane.f32.xlu0 %v1859_v59  ;;  %v1533_v61 = vpop.f32.mrf.mxu0  ;;  %v19225_v62 = vpop.f32.mrf.mxu1 }
 0x312   :  { %v1862_v5 = vsel %vm1858_vm1, %v23140_v58, -inf }
 0x313   :  { %v19220_v3 = vpop.f32.mrf.mxu0  ;;  %v1579_v4 = vpop.f32.mrf.mxu1 }
 0x315   :  { %v1622_v8 = vpop.f32.mrf.mxu0  ;;  %1863 = vmax.xlane.f32.xlu0 %v1862_v5  ;;  %v19226_v10 = vpop.f32.mrf.mxu1 }
 0x316   :  { %v1623_v11 = vadd.f32 %v1622_v8, %v23146_v2 }
 0x317   :  { %v19231_v12 = vpop.f32.mrf.mxu0  ;;  %v1668_v13 = vpop.f32.mrf.mxu1 }
 0x318   :  { %v1669_v15 = vadd.f32 %v1668_v13, %v23152_v6  ;;  %v1865_v17 = vsel %vm1858_vm1, %v1623_v11, -inf }
 0x319   :  { %1866 = vmax.xlane.f32.xlu1 %v1865_v17  ;;  %v1625_v19 = vpop.f32.mrf.mxu0  ;;  %v19237_v21 = vpop.f32.mrf.mxu1 }
 0x31a   :  { %v1868_v25 = vsel %vm1858_vm1, %v1669_v15, -inf }
 0x31b   :  { %v19232_v23 = vpop.f32.mrf.mxu0  ;;  %v1671_v24 = vpop.f32.mrf.mxu1 }
 0x31d   :  { %1869 = vmax.xlane.f32.xlu1 %v1868_v25  ;;  %v19238_v28 = vpop.f32.mrf.mxu1  ;;  %v1714_v30 = vpop.f32.mrf.mxu0 }
 0x31e   :  { %v1715_v37 = vadd.f32 %v1714_v30, %v23159_v22 }
 0x31f   :  { %v19243_v38 = vpop.f32.mrf.mxu0  ;;  %v1760_v39 = vpop.f32.mrf.mxu1 }
 0x320   :  { %v1761_v40 = vadd.f32 %v1760_v39, %v23163_v27  ;;  %v1871_v42 = vsel %vm1858_vm1, %v1715_v37, -inf }
 0x321   :  { %1872 = vmax.xlane.f32.xlu0 %v1871_v42  ;;  %v1717_v36 = vpop.f32.mrf.mxu0  ;;  %v19249_v44 = vpop.f32.mrf.mxu1 }
 0x322   :  { %v1874_v45 = vsel %vm1858_vm1, %v1761_v40, -inf }
 0x323   :  { %v19244_v48 = vpop.f32.mrf.mxu0  ;;  %1875 = vmax.xlane.f32.xlu1 %v1874_v45  ;;  %v1763_v51 = vpop.f32.mrf.mxu1 }
 0x325   :  { %v19250_v34 = vpop.f32.mrf.mxu1  ;;  %v1806_v55 = vpop.f32.mrf.mxu0 }
 0x326   :  { %v1807_v56 = vadd.f32 %v1806_v55, %v23171_v46 }
 0x327   :  { %v19255_v57 = vpop.f32.mrf.mxu0  ;;  %v1852_v59 = vpop.f32.mrf.mxu1 }
 0x328   :  { %v1853_v60 = vadd.f32 %v1852_v59, %v23175_v52  ;;  %v1877_v61 = vsel %vm1858_vm1, %v1807_v56, -inf }
 0x329   :  { %1878 = vmax.xlane.f32.xlu0 %v1877_v61  ;;  %v1809_v62 = vpop.f32.mrf.mxu0  ;;  %v19261_v3 = vpop.f32.mrf.mxu1 }
 0x32a   :  { %v1880_v4 = vsel %vm1858_vm1, %v1853_v60, -inf }
 0x32b   :  { %v19256_v5 = vpop.f32.mrf.mxu0  ;;  %1881 = vmax.xlane.f32.xlu1 %v1880_v4  ;;  %v1855_v7 = vpop.f32.mrf.mxu1 }
 0x32d   :  { %v19262_v8 = vpop.f32.mrf.mxu1 }
 0x39a   :  { %v1861_v10 = vpop.xlane.xlu0 %1860 }
 0x39b   :  { %v1883_v12 = vsub.f32 %v23137_v35, %v1861_v10 }
 0x39d   :  { %v1891_v13 = vmul.f32 1.442695, %v1883_v12 }
 0x39e   :  { %v1864_v17 = vpop.xlane.xlu0 %1863 }
 0x39f   :  { %21921 = vpow2.f32 %v1891_v13  ;;  %v1884_v18 = vsub.f32 %v23140_v58, %v1864_v17 }
 0x3a1   :  { %v1893_v19 = vmul.f32 1.442695, %v1884_v18 }
 0x3a2   :  { %v1867_v21 = vpop.xlane.xlu1 %1866 }
 0x3a3   :  { %21923 = vpow2.f32 %v1893_v19  ;;  %v1885_v23 = vsub.f32 %v1623_v11, %v1867_v21 }
 0x3a5   :  { %v1895_v24 = vmul.f32 1.442695, %v1885_v23 }
 0x3a6   :  { %v1870_v25 = vpop.xlane.xlu1 %1869 }
 0x3a7   :  { %21925 = vpow2.f32 %v1895_v24  ;;  %v1886_v28 = vsub.f32 %v1669_v15, %v1870_v25 }
 0x3a9   :  { %v1897_v30 = vmul.f32 1.442695, %v1886_v28 }
 0x3aa   :  { %v1873_v38 = vpop.xlane.xlu0 %1872 }
 0x3ab   :  { %21927 = vpow2.f32 %v1897_v30  ;;  %v1887_v39 = vsub.f32 %v1715_v37, %v1873_v38 }
 0x3ac   :  { %v21922_v42 = vpop.eup %21921  ;;  %v1876_v36 = vpop.xlane.xlu1 %1875 }
 0x3ad   :  { %v1899_v35 = vmul.f32 1.442695, %v1887_v39  ;;  %v1888_v44 = vsub.f32 %v1761_v40, %v1876_v36  ;;  %v1907_v45 = vsel %vm1858_vm1, %v21922_v42, 0.0 }
 0x3ae   :  { %1908 = vadd.xlane.f32.xlu0 %v1907_v45 }
 0x3af   :  { %21929 = vpow2.f32 %v1899_v35  ;;  %v1901_v58 = vmul.f32 1.442695, %v1888_v44 }
 0x3b0   :  { %v21924_v48 = vpop.eup %21923 }
 0x3b1   :  { %21931 = vpow2.f32 %v1901_v58  ;;  %v1910_v11 = vsel %vm1858_vm1, %v21924_v48, 0.0 }
 0x3b2   :  { %v1879_v51 = vpop.xlane.xlu0 %1878  ;;  %1911 = vadd.xlane.f32.xlu1 %v1910_v11 }
 0x3b3   :  { %v1889_v15 = vsub.f32 %v1807_v56, %v1879_v51 }
 0x3b4   :  { %v21926_v34 = vpop.eup %21925  ;;  %v1882_v55 = vpop.xlane.xlu1 %1881 }
 0x3b5   :  { %v1903_v57 = vmul.f32 1.442695, %v1889_v15  ;;  %v1890_v37 = vsub.f32 %v1853_v60, %v1882_v55  ;;  %v1913_v59 = vsel %vm1858_vm1, %v21926_v34, 0.0 }
 0x3b6   :  { %1914 = vadd.xlane.f32.xlu0 %v1913_v59 }
 0x3b7   :  { %21933 = vpow2.f32 %v1903_v57  ;;  %v1905_v40 = vmul.f32 1.442695, %v1890_v37 }
 0x3b8   :  { %v21928_v61 = vpop.eup %21927 }
 0x3b9   :  { %21935 = vpow2.f32 %v1905_v40  ;;  %v1916_v62 = vsel %vm1858_vm1, %v21928_v61, 0.0  ;;  %v20282_v40 = vld [vmem:[%s28098_s8 + $0x38] sm:$0xff]  }
 0x3ba   :  { %1917 = vadd.xlane.f32.xlu1 %v1916_v62  ;;  %v20285_v62 = vld [vmem:[%s28098_s8 + $0x68] sm:$0xff]  }
 0x3bc   :  { %v21930_v3 = vpop.eup %21929 }
 0x3bd   :  { %v1919_v4 = vsel %vm1858_vm1, %v21930_v3, 0.0 }
 0x3be   :  { %v21932_v5 = vpop.eup %21931  ;;  %1920 = vadd.xlane.f32.xlu0 %v1919_v4  ;;  %v20287_v4 = vld [vmem:[%s28098_s8 + $0x60] sm:$0xff]  }
 0x3bf   :  { %v1922_v56 = vsel %vm1858_vm1, %v21932_v5, 0.0 }
 0x3c0   :  { %1923 = vadd.xlane.f32.xlu1 %v1922_v56  ;;  %v20289_v56 = vld [vmem:[%s28098_s8 + $0x58] sm:$0xff]  }
 0x3c4   :  { %v21934_v7 = vpop.eup %21933 }
 0x3c5   :  { %v1925_v60 = vsel %vm1858_vm1, %v21934_v7, 0.0 }
 0x3c6   :  { %v23190_v8 = vpop.eup %21935  ;;  %1926 = vadd.xlane.f32.xlu0 %v1925_v60  ;;  %v20291_v60 = vld [vmem:[%s28098_s8 + $0x50] sm:$0xff]  }
 0x3c7   :  { %v1928_v10 = vsel %vm1858_vm1, %v23190_v8, 0.0 }
 0x3c8   :  { %1929 = vadd.xlane.f32.xlu1 %v1928_v10  ;;  %v20293_v10 = vld [vmem:[%s28098_s8 + $0x48] sm:$0xff]  }
 0x437   :  { %v1909_v12 = vpop.xlane.xlu0 %1908 }
 0x438   :  { %21937 = vrcp.f32 %v1909_v12  ;;  %v20294_v12 = vld [vmem:[%s28098_s8 + $0x8] sm:$0xff]  }
 0x43b   :  { %v1912_v13 = vpop.xlane.xlu1 %1911 }
 0x43c   :  { %21939 = vrcp.f32 %v1912_v13  ;;  %v20295_v13 = vld [vmem:[%s28098_s8 + $0x40] sm:$0xff]  }
 0x43f   :  { %v1915_v17 = vpop.xlane.xlu0 %1914 }
 0x440   :  { %21941 = vrcp.f32 %v1915_v17  ;;  %v20296_v17 = vld [vmem:[%s28098_s8] sm:$0xff]  }
 0x443   :  { %v1918_v18 = vpop.xlane.xlu1 %1917 }
 0x444   :  { %21943 = vrcp.f32 %v1918_v18  ;;  %v20299_v18 = vld [vmem:[%s28090_s4 + $0xe4] ss:$16 sps:$4 sm:$0xff]  }
 0x445   :  { %v21938_v19 = vpop.eup %21937 }
 0x446   :  { %v1939_v21 = vmul.f32 %v21938_v19, %v21922_v42  ;;  %v20324_v19 = vld [vmem:[%s28099_s10 + $0x38] sm:$0xff]  }
 0x447   :  { %v1921_v23 = vpop.xlane.xlu0 %1920 }
 0x448   :  { %21945 = vrcp.f32 %v1921_v23  ;;  %v1947_v24 = vpack.c.bf16 %v1939_v21, %v1939_v21  ;;  %v20328_v21 = vld [vmem:[%s28099_s10 + $0x30] sm:$0xff]   ;;  %v20332_v23 = vld [vmem:[%s28099_s10 + $0x28] sm:$0xff]  }
 0x449   :  { %v21940_v25 = vpop.eup %21939  ;;  %v1924_v28 = vpop.xlane.xlu1 %1923 }
 0x44a   :  { %21947 = vrcp.f32 %v1924_v28  ;;  %19266 = vmatmul.mubr.msk.bf16.vlgmr.msra.gmra.mxu0 %vm1955_vm2, %v1947_v24  ;;  %v1940_v30 = vmul.f32 %v21940_v25, %v21924_v48 }
 0x44b   :  { %19276 = vmatpush3.bf16.msra.mxu0 %v23061_v20  ;;  %19277 = vmatprep.mubr.msk.bf16.mxu0 %vm22430_vm0, %v22429_v33 }
 0x44c   :  { %v1948_v38 = vpack.c.bf16 %v1940_v30, %v1940_v30  ;;  %19287 = vmatprep.subr.bf16.mxu0 %v22429_v33 }
 0x44d   :  { %v21942_v39 = vpop.eup %21941 }
 0x44e   :  { %19272 = vmatmul.mubr.msk.bf16.vlgmr.msra.gmra.mxu1 %vm1955_vm2, %v1948_v38  ;;  %v1941_v42 = vmul.f32 %v21942_v39, %v21926_v34 }
 0x44f   :  { %19282 = vmatpush3.bf16.msra.mxu1 %v23067_v47  ;;  %v1927_v36 = vpop.xlane.xlu0 %1926  ;;  %19283 = vmatprep.mubr.msk.bf16.mxu1 %vm22430_vm0, %v22429_v33 }
 0x450   :  { %21949 = vrcp.f32 %v1927_v36  ;;  %v1949_v35 = vpack.c.bf16 %v1941_v42, %v1941_v42  ;;  %19293 = vmatprep.subr.bf16.mxu1 %v22429_v33 }
 0x451   :  { %v21944_v20 = vpop.eup %21943  ;;  %v1930_v44 = vpop.xlane.xlu1 %1929 }
 0x452   :  { %21951 = vrcp.f32 %v1930_v44  ;;  %19278 = vmatmul.mubr.msk.bf16.vlgmr.msra.gmra.mxu0 %vm1955_vm2, %v1949_v35  ;;  %v1942_v45 = vmul.f32 %v21944_v20, %v21928_v61  ;;  %v20284_v61 = vld [vmem:[%s28098_s8 + $0x30] sm:$0xff]  }
 0x453   :  { %19288 = vmatpush3.bf16.msra.mxu0 %v23083_v29  ;;  %19289 = vmatprep.mubr.msk.bf16.mxu0 %vm22430_vm0, %v22429_v33 }
 0x454   :  { %v1950_v47 = vpack.c.bf16 %v1942_v45, %v1942_v45  ;;  %19299 = vmatprep.subr.bf16.mxu0 %v22429_v33 }
 0x455   :  { %v21946_v58 = vpop.eup %21945 }
 0x456   :  { %19284 = vmatmul.mubr.msk.bf16.vlgmr.msra.gmra.mxu1 %vm1955_vm2, %v1950_v47  ;;  %v1943_v48 = vmul.f32 %v21946_v58, %v21930_v3  ;;  %v20286_v3 = vld [vmem:[%s28098_s8 + $0x28] sm:$0xff]  }
 0x457   :  { %v21948_v11 = vpop.eup %21947  ;;  %19294 = vmatpush3.bf16.msra.mxu1 %v23088_v31  ;;  %19295 = vmatprep.mubr.msk.bf16.mxu1 %vm22430_vm0, %v22429_v33 }
 0x458   :  { %v1951_v51 = vpack.c.bf16 %v1943_v48, %v1943_v48  ;;  %19305 = vmatprep.subr.bf16.mxu1 %v22429_v33  ;;  %v1944_v29 = vmul.f32 %v21948_v11, %v21932_v5  ;;  %v20288_v5 = vld [vmem:[%s28098_s8 + $0x20] sm:$0xff]  }
 0x45a   :  { %19290 = vmatmul.mubr.msk.bf16.vlgmr.msra.gmra.mxu0 %vm1955_vm2, %v1951_v51  ;;  %v1952_v15 = vpack.c.bf16 %v1944_v29, %v1944_v29 }
 0x45b   :  { %19300 = vmatpush3.bf16.msra.mxu0 %v23103_v41  ;;  %19301 = vmatprep.mubr.msk.bf16.mxu0 %vm22430_vm0, %v22429_v33  ;;  %v23226_v41 = vpack.c.bf16 %v23053_v16, %v23053_v16  ;;  %v20283_v16 = vld [vmem:[%s28098_s8 + $0x70] sm:$0xff]  }
 0x45d   :  { %v21950_v34 = vpop.eup %21949 }
 0x45e   :  { %19296 = vmatmul.mubr.msk.bf16.vlgmr.msra.gmra.mxu1 %vm1955_vm2, %v1952_v15  ;;  %v1945_v55 = vmul.f32 %v21950_v34, %v21934_v7  ;;  %v20290_v7 = vld [vmem:[%s28098_s8 + $0x18] sm:$0xff]  }
 0x45f   :  { %v21952_v31 = vpop.eup %21951  ;;  %19306 = vmatpush3.bf16.msra.mxu1 %v23108_v43  ;;  %19307 = vmatprep.mubr.msk.bf16.mxu1 %vm22430_vm0, %v22429_v33  ;;  %v20281_v43 = vld [vmem:[%s28098_s8 + $0x78] sm:$0xff]  }
 0x460   :  { %v1953_v57 = vpack.c.bf16 %v1945_v55, %v1945_v55  ;;  %v1946_v37 = vmul.f32 %v21952_v31, %v23190_v8  ;;  %19311 = vmatprep.subr.bf16.mxu1 %v22429_v33  ;;  %18806 = vmatprep.subr.bf16.mxu0 %v20281_v43  ;;  %v20292_v8 = vld [vmem:[%s28098_s8 + $0x10] sm:$0xff]  }
 0x462   :  { %19302 = vmatmul.mubr.msk.bf16.vlgmr.msra.gmra.mxu0 %vm1955_vm2, %v1953_v57  ;;  %v1954_v59 = vpack.c.bf16 %v1946_v37, %v1946_v37 }
 0x463   :  { %2499 = vmatprep.mubr.bf16.mxu0 %v23226_v41  ;;  %18807 = vmatpush3.bf16.msra.mxu0 %v20282_v40 }
 0x464   :  { %18808 = vmatprep.subr.bf16.mxu0 %v20283_v16 }
 0x466   :  { %19308 = vmatmul.mubr.msk.bf16.vlgmr.msra.gmra.mxu1 %vm1955_vm2, %v1954_v59 }
 0x467   :  { %19327 = vmatprep.mubr.msk.bf16.mxu1 %vm22430_vm0, %v22429_v33  ;;  %18809 = vmatpush3.bf16.msra.mxu0 %v20284_v61 }
 0x468   :  { %18810 = vmatprep.subr.bf16.mxu0 %v20285_v62  ;;  %19312 = vmatpush3.bf16.msra.mxu1 %v20324_v19 }
 0x469   :  { %19313 = vmatprep.subr.bf16.mxu1 %v22429_v33 }
 0x46b   :  { %18811 = vmatpush3.bf16.msra.mxu0 %v20286_v3 }
 0x46c   :  { %18812 = vmatprep.subr.bf16.mxu0 %v20287_v4  ;;  %19314 = vmatpush3.bf16.msra.mxu1 %v20328_v21 }
 0x46d   :  { %19315 = vmatprep.subr.bf16.mxu1 %v22429_v33 }
 0x46f   :  { %18813 = vmatpush3.bf16.msra.mxu0 %v20288_v5 }
 0x470   :  { %18814 = vmatprep.subr.bf16.mxu0 %v20289_v56  ;;  %19316 = vmatpush3.bf16.msra.mxu1 %v20332_v23  ;;  %v20297_v23 = vld [vmem:[%s28090_s4 + $0xe0] ss:$16 sps:$4 sm:$0xff]  }
 0x471   :  { %19317 = vmatprep.subr.bf16.mxu1 %v22429_v33 }
 0x473   :  { %18815 = vmatpush3.bf16.msra.mxu0 %v20290_v7 }
 0x474   :  { %18816 = vmatprep.subr.bf16.mxu0 %v20291_v60 }
 0x477   :  { %18817 = vmatpush3.bf16.msra.mxu0 %v20292_v8 }
 0x478   :  { %18818 = vmatprep.subr.bf16.mxu0 %v20293_v10 }
 0x47b   :  { %18819 = vmatpush3.bf16.msra.mxu0 %v20294_v12 }
 0x47c   :  { %18820 = vmatprep.subr.bf16.mxu0 %v20295_v13 }
 0x47f   :  { %18821 = vmatpush3.bf16.msra.mxu0 %v20296_v17 }
 0x480   :  { %3232 = vmatprep.subr.bf16.mxu0 %v20299_v18 }
 0x50a   :  { %v1993_v24 = vpop.f32.mrf.mxu0 }
 0x50c   :  { %v19267_v25 = vpop.f32.mrf.mxu0 }
 0x50e   :  { %v1996_v28 = vpop.f32.mrf.mxu0  ;;  %v2036_v30 = vpop.f32.mrf.mxu1 }
 0x50f   :  { %v2308_v55 = vrot.slane %v2036_v30, 7  ;;  %v20302_v28 = vld [vmem:[%s28090_s4 + $0xc4] ss:$16 sps:$4 sm:$0xff]  }
 0x510   :  { %v19268_v38 = vpop.f32.mrf.mxu0  ;;  %v19273_v39 = vpop.f32.mrf.mxu1 }
 0x511   :  { %v2310_v61 = vsel %vm2309_vm3, %v2308_v55, %v1993_v24  ;;  %v20300_v38 = vld [vmem:[%s28090_s4 + $0xc0] ss:$16 sps:$4 sm:$0xff]   ;;  %v20305_v39 = vld [vmem:[%s28090_s4 + $0xa4] ss:$16 sps:$4 sm:$0xff]  }
 0x512   :  { %v2039_v42 = vpop.f32.mrf.mxu1  ;;  %v2079_v36 = vpop.f32.mrf.mxu0  ;;  %v20325_v55 = vld [vmem:[%s28090_s4 + $0x1c0] ss:$16 sps:$4 sm:$0xff]  }
 0x513   :  { %v2311_v31 = vrot.slane %v2079_v36, 6  ;;  %v20303_v42 = vld [vmem:[%s28090_s4 + $0xa0] ss:$16 sps:$4 sm:$0xff]   ;;  %v20308_v36 = vld [vmem:[%s28090_s4 + $0x84] ss:$16 sps:$4 sm:$0xff]  }
 0x514   :  { %v19274_v35 = vpop.f32.mrf.mxu1  ;;  %v19279_v20 = vpop.f32.mrf.mxu0 }
 0x515   :  { %v2313_v3 = vsel %vm2312_vm4, %v2311_v31, %v2310_v61  ;;  %v20306_v35 = vld [vmem:[%s28090_s4 + $0x80] ss:$16 sps:$4 sm:$0xff]   ;;  %v20311_v20 = vld [vmem:[%s28090_s4 + $0x64] ss:$16 sps:$4 sm:$0xff]   ;;  %v20340_v61 = vld [vmem:[%s28099_s10 + $0x18] sm:$0xff]  }
 0x516   :  { %v2082_v44 = vpop.f32.mrf.mxu0  ;;  %v2122_v45 = vpop.f32.mrf.mxu1  ;;  %v20331_v31 = vld [vmem:[%s28090_s4 + $0x1a4] ss:$16 sps:$4 sm:$0xff]  }
 0x517   :  { %v2314_v59 = vrot.slane %v2122_v45, 5  ;;  %v20309_v44 = vld [vmem:[%s28090_s4 + $0x60] ss:$16 sps:$4 sm:$0xff]   ;;  %v20314_v45 = vld [vmem:[%s28090_s4 + $0x44] ss:$16 sps:$4 sm:$0xff]  }
 0x518   :  { %v19280_v47 = vpop.f32.mrf.mxu0  ;;  %v19285_v58 = vpop.f32.mrf.mxu1 }
 0x519   :  { %v2316_v7 = vsel %vm2315_vm5, %v2314_v59, %v2313_v3  ;;  %v20312_v47 = vld [vmem:[%s28090_s4 + $0x40] ss:$16 sps:$4 sm:$0xff]   ;;  %v20317_v58 = vld [vmem:[%s28090_s4 + $0x24] ss:$16 sps:$4 sm:$0xff]  }
 0x51a   :  { %v2125_v48 = vpop.f32.mrf.mxu1  ;;  %v2165_v11 = vpop.f32.mrf.mxu0  ;;  %v20333_v59 = vld [vmem:[%s28090_s4 + $0x180] ss:$16 sps:$4 sm:$0xff]  }
 0x51b   :  { %v2317_v43 = vrot.slane %v2165_v11, 4  ;;  %v20315_v48 = vld [vmem:[%s28090_s4 + $0x20] ss:$16 sps:$4 sm:$0xff]   ;;  %v20320_v11 = vld [vmem:[%s28090_s4 + $0x4] ss:$16 sps:$4 sm:$0xff]  }
 0x51c   :  { %v19286_v51 = vpop.f32.mrf.mxu1  ;;  %v19291_v29 = vpop.f32.mrf.mxu0  ;;  %v20341_v3 = vld [vmem:[%s28090_s4 + $0x140] ss:$16 sps:$4 sm:$0xff]  }
 0x51d   :  { %v2319_v60 = vsel %vm2318_vm6, %v2317_v43, %v2316_v7  ;;  %v20318_v51 = vld [vmem:[%s28090_s4] ss:$16 sps:$4 sm:$0xff]   ;;  %v20323_v29 = vld [vmem:[%s28090_s4 + $0x1e4] ss:$16 sps:$4 sm:$0xff]   ;;  %v20348_v7 = vld [vmem:[%s28099_s10 + $0x8] sm:$0xff]  }
 0x51e   :  { %v2168_v15 = vpop.f32.mrf.mxu0  ;;  %v2208_v34 = vpop.f32.mrf.mxu1  ;;  %v20336_v43 = vld [vmem:[%s28099_s10 + $0x20] sm:$0xff]  }
 0x51f   :  { %v2320_v62 = vrot.slane %v2208_v34, 3  ;;  %v20321_v15 = vld [vmem:[%s28090_s4 + $0x1e0] ss:$16 sps:$4 sm:$0xff]   ;;  %v20327_v34 = vld [vmem:[%s28090_s4 + $0x1c4] ss:$16 sps:$4 sm:$0xff]   ;;  %19318 = vmatpush3.bf16.msra.mxu1 %v20336_v43 }
 0x520   :  { %v19292_v57 = vpop.f32.mrf.mxu0  ;;  %v19297_v37 = vpop.f32.mrf.mxu1  ;;  %19319 = vmatprep.subr.bf16.mxu1 %v22429_v33  ;;  %v20388_v43 = vld [vmem:[%s28090_s4 + $0x24c] ss:$16 sps:$4 sm:$0xff]  }
 0x521   :  { %v2322_v12 = vsel %vm2321_vm7, %v2320_v62, %v2319_v60  ;;  %v20329_v57 = vld [vmem:[%s28090_s4 + $0x1a0] ss:$16 sps:$4 sm:$0xff]   ;;  %v20335_v37 = vld [vmem:[%s28090_s4 + $0x184] ss:$16 sps:$4 sm:$0xff]  }
 0x522   :  { %v2211_v40 = vpop.f32.mrf.mxu1  ;;  %v2251_v16 = vpop.f32.mrf.mxu0  ;;  %v20343_v62 = vld [vmem:[%s28090_s4 + $0x144] ss:$16 sps:$4 sm:$0xff]  }
 0x523   :  { %v2323_v4 = vrot.slane %v2251_v16, 2  ;;  %v20339_v40 = vld [vmem:[%s28090_s4 + $0x164] ss:$16 sps:$4 sm:$0xff]   ;;  %v20337_v16 = vld [vmem:[%s28090_s4 + $0x160] ss:$16 sps:$4 sm:$0xff]   ;;  %19320 = vmatpush3.bf16.msra.mxu1 %v20340_v61 }
 0x524   :  { %v19298_v5 = vpop.f32.mrf.mxu1  ;;  %v19303_v56 = vpop.f32.mrf.mxu0  ;;  %19321 = vmatprep.subr.bf16.mxu1 %v22429_v33  ;;  %v20351_v60 = vld [vmem:[%s28090_s4 + $0x104] ss:$16 sps:$4 sm:$0xff]  }
 0x525   :  { %v2325_v17 = vsel %vm2324_vm8, %v2323_v4, %v2322_v12  ;;  %v20344_v4 = vld [vmem:[%s28099_s10 + $0x10] sm:$0xff]   ;;  %v17562_v12 = vld [vmem:[%s28092_s0 + $0x8] sm:$0xff] }
 0x526   :  { %v2254_v8 = vpop.f32.mrf.mxu0  ;;  %v2294_v10 = vpop.f32.mrf.mxu1  ;;  %v20347_v5 = vld [vmem:[%s28090_s4 + $0x124] ss:$16 sps:$4 sm:$0xff]   ;;  %v20345_v56 = vld [vmem:[%s28090_s4 + $0x120] ss:$16 sps:$4 sm:$0xff]  }
 0x527   :  { %v2326_v13 = vrot.slane %v2294_v10, 1  ;;  %19322 = vmatpush3.bf16.msra.mxu1 %v20344_v4  ;;  %v20349_v8 = vld [vmem:[%s28090_s4 + $0x100] ss:$16 sps:$4 sm:$0xff]   ;;  %v20391_v61 = vld [vmem:[%s28090_s4 + $0x224] ss:$16 sps:$4 sm:$0xff]  }
 0x528   :  { %v19304_v18 = vpop.f32.mrf.mxu0  ;;  %v19309_v19 = vpop.f32.mrf.mxu1  ;;  %19323 = vmatprep.subr.bf16.mxu1 %v22429_v33  ;;  %v20352_v10 = vld [vmem:[%s28099_s10] sm:$0xff]   ;;  %v20392_v4 = vld [vmem:[%s28090_s4 + $0x228] ss:$16 sps:$4 sm:$0xff]  }
 0x529   :  { %v2328_v21 = vsel %vm2327_vm9, %v2326_v13, %v2325_v17  ;;  %v23418_v13 = vpack.c.bf16 %v17562_v12, %v17562_v12  ;;  %v20355_v17 = vld [vmem:[%s28090_s4 + $0x2e4] ss:$16 sps:$4 sm:$0xff]   ;;  %v20358_v18 = vld [vmem:[%s28090_s4 + $0x2ec] ss:$16 sps:$4 sm:$0xff]  }
 0x52a   :  { %v2330_v24 = vpack.c.bf16 %v2328_v21, %v2328_v21  ;;  %v2297_v25 = vpop.f32.mrf.mxu1  ;;  %v17536_v21 = vld [vmem:[%s28100_s9] ss:$0 sm:$0xff]  ;;  %v20406_v12 = vld [vmem:[%s28090_s4 + $0xcc] ss:$16 sps:$4 sm:$0xff]  }
 0x52b   :  { %19324 = vmatpush3.bf16.msra.mxu1 %v20348_v7  ;;  %v20395_v7 = vld [vmem:[%s28090_s4 + $0x200] ss:$16 sps:$4 sm:$0xff]  }
 0x52c   :  { %v19310_v30 = vpop.f32.mrf.mxu1  ;;  %2500 = vmatmul.mubr.bf16.vlgmr.msra.gmra.mxu0 %v2330_v24  ;;  %19325 = vmatprep.subr.bf16.mxu1 %v22429_v33 }
 0x52d   :  { %3233 = vmatpush1.bf16.msra.mxu0 %v20297_v23  ;;  %3264 = vmatprep.mubr.bf16.mxu0 %v23418_v13 }
 0x52e   :  { %3234 = vmatprep.subr.bf16.mxu0 %v20302_v28 }
 0x52f   :  { %19326 = vmatpush3.bf16.msra.mxu1 %v20352_v10  ;;  %v20401_v10 = vld [vmem:[%s28090_s4 + $0xe8] ss:$16 sps:$4 sm:$0xff]  }
 0x530   :  { %3273 = vmatprep.subr.bf16.mxu1 %v20355_v17  ;;  %v20404_v17 = vld [vmem:[%s28090_s4 + $0xc8] ss:$16 sps:$4 sm:$0xff]  }
 0x531   :  { %3235 = vmatpush1.bf16.msra.mxu0 %v20300_v38 }
 0x532   :  { %3236 = vmatprep.subr.bf16.mxu0 %v20305_v39  ;;  %v20353_v39 = vld [vmem:[%s28090_s4 + $0x2e0] ss:$16 sps:$4 sm:$0xff]  }
 0x535   :  { %3237 = vmatpush1.bf16.msra.mxu0 %v20303_v42  ;;  %v20356_v42 = vld [vmem:[%s28090_s4 + $0x2e8] ss:$16 sps:$4 sm:$0xff]  }
 0x536   :  { %3238 = vmatprep.subr.bf16.mxu0 %v20308_v36 }
 0x539   :  { %3239 = vmatpush1.bf16.msra.mxu0 %v20306_v35  ;;  %v20361_v35 = vld [vmem:[%s28090_s4 + $0x2c4] ss:$16 sps:$4 sm:$0xff]  }
 0x53a   :  { %3240 = vmatprep.subr.bf16.mxu0 %v20311_v20  ;;  %v20364_v20 = vld [vmem:[%s28090_s4 + $0x2cc] ss:$16 sps:$4 sm:$0xff]  }
 0x53d   :  { %3241 = vmatpush1.bf16.msra.mxu0 %v20309_v44  ;;  %v20359_v44 = vld [vmem:[%s28090_s4 + $0x2c0] ss:$16 sps:$4 sm:$0xff]  }
 0x53e   :  { %3242 = vmatprep.subr.bf16.mxu0 %v20314_v45  ;;  %v20362_v45 = vld [vmem:[%s28090_s4 + $0x2c8] ss:$16 sps:$4 sm:$0xff]  }
 0x541   :  { %3243 = vmatpush1.bf16.msra.mxu0 %v20312_v47  ;;  %v20367_v47 = vld [vmem:[%s28090_s4 + $0x2a4] ss:$16 sps:$4 sm:$0xff]  }
 0x542   :  { %3244 = vmatprep.subr.bf16.mxu0 %v20317_v58  ;;  %v20370_v58 = vld [vmem:[%s28090_s4 + $0x2ac] ss:$16 sps:$4 sm:$0xff]  }
 0x545   :  { %3245 = vmatpush1.bf16.msra.mxu0 %v20315_v48  ;;  %v20365_v48 = vld [vmem:[%s28090_s4 + $0x2a0] ss:$16 sps:$4 sm:$0xff]  }
 0x546   :  { %3246 = vmatprep.subr.bf16.mxu0 %v20320_v11  ;;  %v20368_v11 = vld [vmem:[%s28090_s4 + $0x2a8] ss:$16 sps:$4 sm:$0xff]  }
 0x549   :  { %3247 = vmatpush1.bf16.msra.mxu0 %v20318_v51  ;;  %v20373_v51 = vld [vmem:[%s28090_s4 + $0x284] ss:$16 sps:$4 sm:$0xff]  }
 0x54a   :  { %3248 = vmatprep.subr.bf16.mxu0 %v20323_v29  ;;  %v20376_v29 = vld [vmem:[%s28090_s4 + $0x28c] ss:$16 sps:$4 sm:$0xff]  }
 0x54d   :  { %3249 = vmatpush2.bf16.msra.mxu0 %v20321_v15  ;;  %v20371_v15 = vld [vmem:[%s28090_s4 + $0x280] ss:$16 sps:$4 sm:$0xff]  }
 0x54e   :  { %3250 = vmatprep.subr.bf16.mxu0 %v20327_v34  ;;  %v20374_v34 = vld [vmem:[%s28090_s4 + $0x288] ss:$16 sps:$4 sm:$0xff]  }
 0x551   :  { %3251 = vmatpush2.bf16.msra.mxu0 %v20325_v55  ;;  %v20379_v55 = vld [vmem:[%s28090_s4 + $0x264] ss:$16 sps:$4 sm:$0xff]  }
 0x552   :  { %3252 = vmatprep.subr.bf16.mxu0 %v20331_v31  ;;  %v20382_v31 = vld [vmem:[%s28090_s4 + $0x26c] ss:$16 sps:$4 sm:$0xff]  }
 0x555   :  { %3253 = vmatpush2.bf16.msra.mxu0 %v20329_v57  ;;  %v20377_v57 = vld [vmem:[%s28090_s4 + $0x260] ss:$16 sps:$4 sm:$0xff]  }
 0x556   :  { %3254 = vmatprep.subr.bf16.mxu0 %v20335_v37  ;;  %v20380_v37 = vld [vmem:[%s28090_s4 + $0x268] ss:$16 sps:$4 sm:$0xff]  }
 0x559   :  { %3255 = vmatpush2.bf16.msra.mxu0 %v20333_v59  ;;  %v20385_v59 = vld [vmem:[%s28090_s4 + $0x244] ss:$16 sps:$4 sm:$0xff]  }
 0x55a   :  { %3256 = vmatprep.subr.bf16.mxu0 %v20339_v40  ;;  %v20383_v40 = vld [vmem:[%s28090_s4 + $0x240] ss:$16 sps:$4 sm:$0xff]  }
 0x55d   :  { %3257 = vmatpush2.bf16.msra.mxu0 %v20337_v16  ;;  %v20386_v16 = vld [vmem:[%s28090_s4 + $0x248] ss:$16 sps:$4 sm:$0xff]  }
 0x55e   :  { %3258 = vmatprep.subr.bf16.mxu0 %v20343_v62  ;;  %v20394_v62 = vld [vmem:[%s28090_s4 + $0x22c] ss:$16 sps:$4 sm:$0xff]  }
 0x561   :  { %3259 = vmatpush2.bf16.msra.mxu0 %v20341_v3  ;;  %v20389_v3 = vld [vmem:[%s28090_s4 + $0x220] ss:$16 sps:$4 sm:$0xff]  }
 0x562   :  { %3260 = vmatprep.subr.bf16.mxu0 %v20347_v5  ;;  %v20397_v5 = vld [vmem:[%s28090_s4 + $0x204] ss:$16 sps:$4 sm:$0xff]  }
 0x565   :  { %3261 = vmatpush2.bf16.msra.mxu0 %v20345_v56  ;;  %v20400_v56 = vld [vmem:[%s28090_s4 + $0x20c] ss:$16 sps:$4 sm:$0xff]  }
 0x566   :  { %3262 = vmatprep.subr.bf16.mxu0 %v20351_v60  ;;  %v20398_v60 = vld [vmem:[%s28090_s4 + $0x208] ss:$16 sps:$4 sm:$0xff]  }
 0x569   :  { %3263 = vmatpush2.bf16.msra.mxu0 %v20349_v8  ;;  %v20403_v8 = vld [vmem:[%s28090_s4 + $0xec] ss:$16 sps:$4 sm:$0xff]  }
 0x56a   :  { %3355 = vmatprep.subr.bf16.mxu0 %v20358_v18  ;;  %v20409_v18 = vld [vmem:[%s28090_s4 + $0xac] ss:$16 sps:$4 sm:$0xff]  }
 0x5ec   :  { %v18822_v19 = vpop.f32.mrf.mxu0 }
 0x5ee   :  { %v18823_v23 = vpop.f32.mrf.mxu0 }
 0x5ef   :  { %v18824_v24 = vadd.f32 %v18823_v23, %v18822_v19  ;;  %v20407_v19 = vld [vmem:[%s28090_s4 + $0xa8] ss:$16 sps:$4 sm:$0xff]  }
 0x5f0   :  { %v18825_v25 = vpop.f32.mrf.mxu0  ;;  %v20413_v23 = vld [vmem:[%s28090_s4 + $0x68] ss:$16 sps:$4 sm:$0xff]  }
 0x5f1   :  { %v2502_v28 = vadd.f32 %v18824_v24, %v17536_v21  ;;  %v20410_v21 = vld [vmem:[%s28090_s4 + $0x88] ss:$16 sps:$4 sm:$0xff]   ;;  %v20418_v24 = vld [vmem:[%s28090_s4 + $0x4c] ss:$16 sps:$4 sm:$0xff]  }
 0x5f2   :  { %v18826_v30 = vpop.f32.mrf.mxu0  ;;  %v20416_v25 = vld [vmem:[%s28090_s4 + $0x48] ss:$16 sps:$4 sm:$0xff]  }
 0x5f3   :  { %21953 = vtanh.f32 %v2502_v28  ;;  %v20421_v28 = vld [vmem:[%s28090_s4 + $0x2c] ss:$16 sps:$4 sm:$0xff]   ;;  %v20419_v30 = vld [vmem:[%s28090_s4 + $0x28] ss:$16 sps:$4 sm:$0xff]  }
 0x600   :  { %v21954_v38 = vpop.eup %21953 }
 0x601   :  { %v23436_v36 = vpack.c.bf16 %v21954_v38, %v21954_v38  ;;  %v20424_v38 = vld [vmem:[%s28090_s4 + $0xc] ss:$16 sps:$4 sm:$0xff]  }
 0x603   :  { %19328 = vmatmul.mubr.bf16.vlgmr.msra.gmra.mxu1 %v23436_v36  ;;  %3265 = vmatmul.mubr.bf16.vlgmr.msra.gmra.mxu0 %v23436_v36 }
 0x604   :  { %3274 = vmatpush1.bf16.msra.mxu1 %v20353_v39  ;;  %3356 = vmatpush1.bf16.msra.mxu0 %v20356_v42  ;;  %v20422_v39 = vld [vmem:[%s28090_s4 + $0x8] ss:$16 sps:$4 sm:$0xff]   ;;  %v20427_v42 = vld [vmem:[%s28090_s4 + $0x1ec] ss:$16 sps:$4 sm:$0xff]  }
 0x605   :  { %3275 = vmatprep.subr.bf16.mxu1 %v20361_v35  ;;  %3357 = vmatprep.subr.bf16.mxu0 %v20364_v20  ;;  %v20425_v35 = vld [vmem:[%s28090_s4 + $0x1e8] ss:$16 sps:$4 sm:$0xff]   ;;  %v20430_v20 = vld [vmem:[%s28090_s4 + $0x1cc] ss:$16 sps:$4 sm:$0xff]  }
 0x606   :  { %3305 = vmatprep.mubr.bf16.mxu1 %v22427_v1  ;;  %3387 = vmatprep.mubr.bf16.mxu0 %v22427_v1 }
 0x608   :  { %3276 = vmatpush1.bf16.msra.mxu1 %v20359_v44  ;;  %3358 = vmatpush1.bf16.msra.mxu0 %v20362_v45  ;;  %v20428_v44 = vld [vmem:[%s28090_s4 + $0x1c8] ss:$16 sps:$4 sm:$0xff]   ;;  %v20433_v45 = vld [vmem:[%s28090_s4 + $0x1ac] ss:$16 sps:$4 sm:$0xff]  }
 0x609   :  { %3277 = vmatprep.subr.bf16.mxu1 %v20367_v47  ;;  %3359 = vmatprep.subr.bf16.mxu0 %v20370_v58  ;;  %v20431_v47 = vld [vmem:[%s28090_s4 + $0x1a8] ss:$16 sps:$4 sm:$0xff]   ;;  %v20436_v58 = vld [vmem:[%s28090_s4 + $0x18c] ss:$16 sps:$4 sm:$0xff]  }
 0x60c   :  { %3278 = vmatpush1.bf16.msra.mxu1 %v20365_v48  ;;  %3360 = vmatpush1.bf16.msra.mxu0 %v20368_v11  ;;  %v20434_v48 = vld [vmem:[%s28090_s4 + $0x188] ss:$16 sps:$4 sm:$0xff]   ;;  %v20439_v11 = vld [vmem:[%s28090_s4 + $0x16c] ss:$16 sps:$4 sm:$0xff]  }
 0x60d   :  { %3279 = vmatprep.subr.bf16.mxu1 %v20373_v51  ;;  %3361 = vmatprep.subr.bf16.mxu0 %v20376_v29  ;;  %v20437_v51 = vld [vmem:[%s28090_s4 + $0x168] ss:$16 sps:$4 sm:$0xff]   ;;  %v20442_v29 = vld [vmem:[%s28090_s4 + $0x14c] ss:$16 sps:$4 sm:$0xff]  }
 0x610   :  { %3280 = vmatpush1.bf16.msra.mxu1 %v20371_v15  ;;  %3362 = vmatpush1.bf16.msra.mxu0 %v20374_v34  ;;  %v20440_v15 = vld [vmem:[%s28090_s4 + $0x148] ss:$16 sps:$4 sm:$0xff]   ;;  %v20445_v34 = vld [vmem:[%s28090_s4 + $0x12c] ss:$16 sps:$4 sm:$0xff]  }
 0x611   :  { %3281 = vmatprep.subr.bf16.mxu1 %v20379_v55  ;;  %3363 = vmatprep.subr.bf16.mxu0 %v20382_v31  ;;  %v20443_v55 = vld [vmem:[%s28090_s4 + $0x128] ss:$16 sps:$4 sm:$0xff]   ;;  %v20448_v31 = vld [vmem:[%s28090_s4 + $0x10c] ss:$16 sps:$4 sm:$0xff]  }
 0x614   :  { %3282 = vmatpush1.bf16.msra.mxu1 %v20377_v57  ;;  %3364 = vmatpush1.bf16.msra.mxu0 %v20380_v37  ;;  %v20446_v57 = vld [vmem:[%s28090_s4 + $0x108] ss:$16 sps:$4 sm:$0xff]   ;;  %v20449_v37 = vld [vmem:[%s28093_s6 + $0xe0] ss:$16 sps:$4 sm:$0xff]  }
 0x615   :  { %3283 = vmatprep.subr.bf16.mxu1 %v20385_v59  ;;  %3365 = vmatprep.subr.bf16.mxu0 %v20388_v43  ;;  %v20451_v59 = vld [vmem:[%s28093_s6 + $0xe4] ss:$16 sps:$4 sm:$0xff]   ;;  %v20452_v43 = vld [vmem:[%s28093_s6 + $0xe8] ss:$16 sps:$4 sm:$0xff]  }
 0x618   :  { %3284 = vmatpush1.bf16.msra.mxu1 %v20383_v40  ;;  %3366 = vmatpush1.bf16.msra.mxu0 %v20386_v16  ;;  %v20454_v40 = vld [vmem:[%s28093_s6 + $0xec] ss:$16 sps:$4 sm:$0xff]   ;;  %v20455_v16 = vld [vmem:[%s28093_s6 + $0xc0] ss:$16 sps:$4 sm:$0xff]  }
 0x619   :  { %3285 = vmatprep.subr.bf16.mxu1 %v20391_v61  ;;  %3367 = vmatprep.subr.bf16.mxu0 %v20394_v62  ;;  %v20458_v61 = vld [vmem:[%s28093_s6 + $0xc8] ss:$16 sps:$4 sm:$0xff]   ;;  %v20463_v62 = vld [vmem:[%s28093_s6 + $0xa4] ss:$16 sps:$4 sm:$0xff]  }
 0x61c   :  { %3286 = vmatpush1.bf16.msra.mxu1 %v20389_v3  ;;  %3368 = vmatpush1.bf16.msra.mxu0 %v20392_v4  ;;  %v20466_v3 = vld [vmem:[%s28093_s6 + $0xac] ss:$16 sps:$4 sm:$0xff]   ;;  %v20461_v4 = vld [vmem:[%s28093_s6 + $0xa0] ss:$16 sps:$4 sm:$0xff]  }
 0x61d   :  { %3287 = vmatprep.subr.bf16.mxu1 %v20397_v5  ;;  %3369 = vmatprep.subr.bf16.mxu0 %v20400_v56  ;;  %v20464_v5 = vld [vmem:[%s28093_s6 + $0xa8] ss:$16 sps:$4 sm:$0xff]   ;;  %v20469_v56 = vld [vmem:[%s28093_s6 + $0x84] ss:$16 sps:$4 sm:$0xff]  }
 0x620   :  { %3288 = vmatpush1.bf16.msra.mxu1 %v20395_v7  ;;  %3370 = vmatpush1.bf16.msra.mxu0 %v20398_v60  ;;  %v20472_v7 = vld [vmem:[%s28093_s6 + $0x8c] ss:$16 sps:$4 sm:$0xff]   ;;  %v20467_v60 = vld [vmem:[%s28093_s6 + $0x80] ss:$16 sps:$4 sm:$0xff]  }
 0x621   :  { %3314 = vmatprep.subr.bf16.mxu1 %v20403_v8  ;;  %3827 = vmatprep.subr.bf16.mxu0 %v20451_v59  ;;  %v20470_v8 = vld [vmem:[%s28093_s6 + $0x88] ss:$16 sps:$4 sm:$0xff]   ;;  %v20521_v59 = vld [vmem:[%s28093_s6 + $0x160] ss:$16 sps:$4 sm:$0xff]  }
 0x623   :  { %3306 = vmatmul.mubr.bf16.vlgmr.msra.gmra.mxu1 %v23016_v32  ;;  %3388 = vmatmul.mubr.bf16.vlgmr.msra.gmra.mxu0 %v23016_v32  ;;  %v20412_v32 = vld [vmem:[%s28090_s4 + $0x8c] ss:$16 sps:$4 sm:$0xff]  }
 0x624   :  { %3315 = vmatpush1.bf16.msra.mxu1 %v20401_v10  ;;  %3859 = vmatprep.mubr.bf16.mxu0 %v23226_v41  ;;  %v20475_v10 = vld [vmem:[%s28093_s6 + $0x64] ss:$16 sps:$4 sm:$0xff]  }
 0x625   :  { %3316 = vmatprep.subr.bf16.mxu1 %v20406_v12  ;;  %3346 = vmatprep.mubr.bf16.mxu1 %v23418_v13  ;;  %v20415_v13 = vld [vmem:[%s28090_s4 + $0x6c] ss:$16 sps:$4 sm:$0xff]  }
 0x626   :  { %3828 = vmatpush1.bf16.msra.mxu0 %v20449_v37  ;;  %v20478_v12 = vld [vmem:[%s28093_s6 + $0x6c] ss:$16 sps:$4 sm:$0xff]   ;;  %v20518_v37 = vld [vmem:[%s28093_s6 + $0x188] ss:$16 sps:$4 sm:$0xff]  }
 0x628   :  { %3317 = vmatpush1.bf16.msra.mxu1 %v20404_v17  ;;  %v20473_v17 = vld [vmem:[%s28093_s6 + $0x60] ss:$16 sps:$4 sm:$0xff]  }
 0x629   :  { %3318 = vmatprep.subr.bf16.mxu1 %v20409_v18  ;;  %v20476_v18 = vld [vmem:[%s28093_s6 + $0x68] ss:$16 sps:$4 sm:$0xff]  }
 0x62c   :  { %3319 = vmatpush1.bf16.msra.mxu1 %v20407_v19  ;;  %v20481_v19 = vld [vmem:[%s28093_s6 + $0x44] ss:$16 sps:$4 sm:$0xff]  }
 0x62d   :  { %3320 = vmatprep.subr.bf16.mxu1 %v20412_v32  ;;  %v20484_v32 = vld [vmem:[%s28093_s6 + $0x4c] ss:$16 sps:$4 sm:$0xff]  }
 0x630   :  { %3321 = vmatpush1.bf16.msra.mxu1 %v20410_v21  ;;  %v20479_v21 = vld [vmem:[%s28093_s6 + $0x40] ss:$16 sps:$4 sm:$0xff]  }
 0x631   :  { %3322 = vmatprep.subr.bf16.mxu1 %v20415_v13  ;;  %v20482_v13 = vld [vmem:[%s28093_s6 + $0x48] ss:$16 sps:$4 sm:$0xff]  }
 0x634   :  { %3323 = vmatpush1.bf16.msra.mxu1 %v20413_v23  ;;  %v20487_v23 = vld [vmem:[%s28093_s6 + $0x24] ss:$16 sps:$4 sm:$0xff]  }
 0x635   :  { %3324 = vmatprep.subr.bf16.mxu1 %v20418_v24  ;;  %v20490_v24 = vld [vmem:[%s28093_s6 + $0x2c] ss:$16 sps:$4 sm:$0xff]  }
 0x638   :  { %3325 = vmatpush1.bf16.msra.mxu1 %v20416_v25  ;;  %v20485_v25 = vld [vmem:[%s28093_s6 + $0x20] ss:$16 sps:$4 sm:$0xff]  }
 0x639   :  { %3326 = vmatprep.subr.bf16.mxu1 %v20421_v28  ;;  %v20488_v28 = vld [vmem:[%s28093_s6 + $0x28] ss:$16 sps:$4 sm:$0xff]  }
 0x63c   :  { %3327 = vmatpush1.bf16.msra.mxu1 %v20419_v30  ;;  %v20493_v30 = vld [vmem:[%s28093_s6 + $0x4] ss:$16 sps:$4 sm:$0xff]  }
 0x63d   :  { %3328 = vmatprep.subr.bf16.mxu1 %v20424_v38  ;;  %v20496_v38 = vld [vmem:[%s28093_s6 + $0xc] ss:$16 sps:$4 sm:$0xff]  }
 0x640   :  { %3329 = vmatpush1.bf16.msra.mxu1 %v20422_v39  ;;  %v20491_v39 = vld [vmem:[%s28093_s6] ss:$16 sps:$4 sm:$0xff]  }
 0x641   :  { %3330 = vmatprep.subr.bf16.mxu1 %v20427_v42  ;;  %v20494_v42 = vld [vmem:[%s28093_s6 + $0x8] ss:$16 sps:$4 sm:$0xff]  }
 0x644   :  { %3331 = vmatpush2.bf16.msra.mxu1 %v20425_v35  ;;  %v20499_v35 = vld [vmem:[%s28093_s6 + $0x1e4] ss:$16 sps:$4 sm:$0xff]  }
 0x645   :  { %3332 = vmatprep.subr.bf16.mxu1 %v20430_v20  ;;  %v20502_v20 = vld [vmem:[%s28093_s6 + $0x1ec] ss:$16 sps:$4 sm:$0xff]  }
 0x648   :  { %3333 = vmatpush2.bf16.msra.mxu1 %v20428_v44  ;;  %v20497_v44 = vld [vmem:[%s28093_s6 + $0x1e0] ss:$16 sps:$4 sm:$0xff]  }
 0x649   :  { %3334 = vmatprep.subr.bf16.mxu1 %v20433_v45  ;;  %v20500_v45 = vld [vmem:[%s28093_s6 + $0x1e8] ss:$16 sps:$4 sm:$0xff]  }
 0x64c   :  { %3335 = vmatpush2.bf16.msra.mxu1 %v20431_v47  ;;  %v20505_v47 = vld [vmem:[%s28093_s6 + $0x1c4] ss:$16 sps:$4 sm:$0xff]  }
 0x64d   :  { %3336 = vmatprep.subr.bf16.mxu1 %v20436_v58  ;;  %v20508_v58 = vld [vmem:[%s28093_s6 + $0x1cc] ss:$16 sps:$4 sm:$0xff]  }
 0x650   :  { %3337 = vmatpush2.bf16.msra.mxu1 %v20434_v48  ;;  %v20503_v48 = vld [vmem:[%s28093_s6 + $0x1c0] ss:$16 sps:$4 sm:$0xff]  }
 0x651   :  { %3338 = vmatprep.subr.bf16.mxu1 %v20439_v11  ;;  %v20506_v11 = vld [vmem:[%s28093_s6 + $0x1c8] ss:$16 sps:$4 sm:$0xff]  }
 0x654   :  { %3339 = vmatpush2.bf16.msra.mxu1 %v20437_v51  ;;  %v20511_v51 = vld [vmem:[%s28093_s6 + $0x1a4] ss:$16 sps:$4 sm:$0xff]  }
 0x655   :  { %3340 = vmatprep.subr.bf16.mxu1 %v20442_v29  ;;  %v20514_v29 = vld [vmem:[%s28093_s6 + $0x1ac] ss:$16 sps:$4 sm:$0xff]  }
 0x658   :  { %3341 = vmatpush2.bf16.msra.mxu1 %v20440_v15  ;;  %v20509_v15 = vld [vmem:[%s28093_s6 + $0x1a0] ss:$16 sps:$4 sm:$0xff]  }
 0x659   :  { %3342 = vmatprep.subr.bf16.mxu1 %v20445_v34  ;;  %v20512_v34 = vld [vmem:[%s28093_s6 + $0x1a8] ss:$16 sps:$4 sm:$0xff]  }
 0x65c   :  { %3343 = vmatpush2.bf16.msra.mxu1 %v20443_v55  ;;  %v20517_v55 = vld [vmem:[%s28093_s6 + $0x184] ss:$16 sps:$4 sm:$0xff]  }
 0x65d   :  { %3344 = vmatprep.subr.bf16.mxu1 %v20448_v31  ;;  %v20520_v31 = vld [vmem:[%s28093_s6 + $0x18c] ss:$16 sps:$4 sm:$0xff]  }
 0x660   :  { %3345 = vmatpush2.bf16.msra.mxu1 %v20446_v57  ;;  %v20515_v57 = vld [vmem:[%s28093_s6 + $0x180] ss:$16 sps:$4 sm:$0xff]  }
 0x661   :  { %3868 = vmatprep.subr.bf16.mxu1 %v20454_v40  ;;  %v20524_v40 = vld [vmem:[%s28093_s6 + $0x168] ss:$16 sps:$4 sm:$0xff]  }
 0x663   :  { %3347 = vmatmul.mubr.bf16.vlgmr.msra.gmra.mxu1 %v23436_v36  ;;  %v20460_v36 = vld [vmem:[%s28093_s6 + $0xcc] ss:$16 sps:$4 sm:$0xff]  }
 0x664   :  { %3900 = vmatprep.mubr.bf16.mxu1 %v23226_v41  ;;  %v20457_v41 = vld [vmem:[%s28093_s6 + $0xc4] ss:$16 sps:$4 sm:$0xff]   ;;  %3869 = vmatpush1.bf16.msra.mxu1 %v20452_v43 }
 0x665   :  { %3829 = vmatprep.subr.bf16.mxu0 %v20457_v41  ;;  %3870 = vmatprep.subr.bf16.mxu1 %v20460_v36  ;;  %v20523_v43 = vld [vmem:[%s28093_s6 + $0x164] ss:$16 sps:$4 sm:$0xff]   ;;  %v20526_v41 = vld [vmem:[%s28093_s6 + $0x16c] ss:$16 sps:$4 sm:$0xff]  }
 0x666   :  { %3830 = vmatpush1.bf16.msra.mxu0 %v20455_v16  ;;  %v20529_v36 = vld [vmem:[%s28093_s6 + $0x144] ss:$16 sps:$4 sm:$0xff]   ;;  %v20532_v16 = vld [vmem:[%s28093_s6 + $0x14c] ss:$16 sps:$4 sm:$0xff]  }
 0x667   :  { %3831 = vmatprep.subr.bf16.mxu0 %v20463_v62  ;;  %v20530_v62 = vld [vmem:[%s28093_s6 + $0x148] ss:$16 sps:$4 sm:$0xff]  }
 0x668   :  { %3871 = vmatpush1.bf16.msra.mxu1 %v20458_v61  ;;  %v20527_v61 = vld [vmem:[%s28093_s6 + $0x140] ss:$16 sps:$4 sm:$0xff]  }
 0x669   :  { %3872 = vmatprep.subr.bf16.mxu1 %v20466_v3  ;;  %v20535_v3 = vld [vmem:[%s28093_s6 + $0x124] ss:$16 sps:$4 sm:$0xff]  }
 0x66a   :  { %3832 = vmatpush1.bf16.msra.mxu0 %v20461_v4  ;;  %v20538_v4 = vld [vmem:[%s28093_s6 + $0x12c] ss:$16 sps:$4 sm:$0xff]  }
 0x66b   :  { %3833 = vmatprep.subr.bf16.mxu0 %v20469_v56 }
 0x66c   :  { %3873 = vmatpush1.bf16.msra.mxu1 %v20464_v5 }
 0x66d   :  { %3874 = vmatprep.subr.bf16.mxu1 %v20472_v7  ;;  %v20533_v7 = vld [vmem:[%s28093_s6 + $0x120] ss:$16 sps:$4 sm:$0xff]  }
 0x66e   :  { %3834 = vmatpush1.bf16.msra.mxu0 %v20467_v60  ;;  %v20536_v60 = vld [vmem:[%s28093_s6 + $0x128] ss:$16 sps:$4 sm:$0xff]  }
 0x66f   :  { %3835 = vmatprep.subr.bf16.mxu0 %v20475_v10 }
 0x670   :  { %3875 = vmatpush1.bf16.msra.mxu1 %v20470_v8  ;;  %v20541_v8 = vld [vmem:[%s28093_s6 + $0x104] ss:$16 sps:$4 sm:$0xff]  }
 0x671   :  { %3876 = vmatprep.subr.bf16.mxu1 %v20478_v12 }
 0x672   :  { %3836 = vmatpush1.bf16.msra.mxu0 %v20473_v17  ;;  %v20544_v17 = vld [vmem:[%s28093_s6 + $0x10c] ss:$16 sps:$4 sm:$0xff]  }
 0x673   :  { %3837 = vmatprep.subr.bf16.mxu0 %v20481_v19 }
 0x674   :  { %3877 = vmatpush1.bf16.msra.mxu1 %v20476_v18 }
 0x675   :  { %3878 = vmatprep.subr.bf16.mxu1 %v20484_v32  ;;  %v20539_v32 = vld [vmem:[%s28093_s6 + $0x100] ss:$16 sps:$4 sm:$0xff]  }
 0x676   :  { %3838 = vmatpush1.bf16.msra.mxu0 %v20479_v21  ;;  %v20542_v21 = vld [vmem:[%s28093_s6 + $0x108] ss:$16 sps:$4 sm:$0xff]  }
 0x677   :  { %3839 = vmatprep.subr.bf16.mxu0 %v20487_v23 }
 0x678   :  { %3879 = vmatpush1.bf16.msra.mxu1 %v20482_v13 }
 0x679   :  { %3880 = vmatprep.subr.bf16.mxu1 %v20490_v24 }
 0x67a   :  { %3840 = vmatpush1.bf16.msra.mxu0 %v20485_v25 }
 0x67b   :  { %3841 = vmatprep.subr.bf16.mxu0 %v20493_v30 }
 0x67c   :  { %3881 = vmatpush1.bf16.msra.mxu1 %v20488_v28 }
 0x67d   :  { %3882 = vmatprep.subr.bf16.mxu1 %v20496_v38 }
 0x67e   :  { %3842 = vmatpush1.bf16.msra.mxu0 %v20491_v39 }
 0x67f   :  { %3843 = vmatprep.subr.bf16.mxu0 %v20499_v35 }
 0x680   :  { %3883 = vmatpush1.bf16.msra.mxu1 %v20494_v42 }
 0x681   :  { %3884 = vmatprep.subr.bf16.mxu1 %v20502_v20  ;;  %v2730_v20 = vld [vmem:[%s28094_s5] sm:$0xf] }
 0x682   :  { %3844 = vmatpush2.bf16.msra.mxu0 %v20497_v44  ;;  %v2739_v44 = vrot.slane %v2730_v20, %v22998_v49 }
 0x683   :  { %3845 = vmatprep.subr.bf16.mxu0 %v20505_v47 }
 0x684   :  { %3885 = vmatpush2.bf16.msra.mxu1 %v20500_v45  ;;  %v2735_v45 = vrot.slane %v2730_v20, %v23001_v50 }
 0x685   :  { %3886 = vmatprep.subr.bf16.mxu1 %v20508_v58 }
 0x686   :  { %3846 = vmatpush2.bf16.msra.mxu0 %v20503_v48 }
 0x687   :  { %3847 = vmatprep.subr.bf16.mxu0 %v20511_v51 }
 0x688   :  { %3887 = vmatpush2.bf16.msra.mxu1 %v20506_v11 }
 0x689   :  { %3888 = vmatprep.subr.bf16.mxu1 %v20514_v29 }
 0x68a   :  { %3848 = vmatpush2.bf16.msra.mxu0 %v20509_v15 }
 0x68b   :  { %3849 = vmatprep.subr.bf16.mxu0 %v20517_v55  ;;  %v2743_v55 = vrot.slane %v2730_v20, %v23006_v63 }
 0x68c   :  { %3889 = vmatpush2.bf16.msra.mxu1 %v20512_v34 }
 0x68d   :  { %3890 = vmatprep.subr.bf16.mxu1 %v20520_v31 }
 0x68e   :  { %3850 = vmatpush2.bf16.msra.mxu0 %v20515_v57  ;;  %v2747_v57 = vrot.slane %v2730_v20, %v23009_v0 }
 0x68f   :  { %3851 = vmatprep.subr.bf16.mxu0 %v20523_v43 }
 0x690   :  { %3891 = vmatpush2.bf16.msra.mxu1 %v20518_v37 }
 0x691   :  { %3892 = vmatprep.subr.bf16.mxu1 %v20526_v41 }
 0x692   :  { %3852 = vmatpush2.bf16.msra.mxu0 %v20521_v59 }
 0x693   :  { %3853 = vmatprep.subr.bf16.mxu0 %v20529_v36 }
 0x694   :  { %3893 = vmatpush2.bf16.msra.mxu1 %v20524_v40 }
 0x695   :  { %3894 = vmatprep.subr.bf16.mxu1 %v20532_v16 }
 0x696   :  { %3854 = vmatpush2.bf16.msra.mxu0 %v20527_v61 }
 0x697   :  { %3855 = vmatprep.subr.bf16.mxu0 %v20535_v3 }
 0x698   :  { %3895 = vmatpush2.bf16.msra.mxu1 %v20530_v62 }
 0x699   :  { %3896 = vmatprep.subr.bf16.mxu1 %v20538_v4 }
 0x69a   :  { %3856 = vmatpush2.bf16.msra.mxu0 %v20533_v7 }
 0x69b   :  { %3857 = vmatprep.subr.bf16.mxu0 %v20541_v8 }
 0x69c   :  { %3897 = vmatpush2.bf16.msra.mxu1 %v20536_v60 }
 0x69d   :  { %3898 = vmatprep.subr.bf16.mxu1 %v20544_v17 }
 0x69e   :  { %3858 = vmatpush2.bf16.msra.mxu0 %v20539_v32 }
 0x69f   :  { %19331 = vmatprep.subr.bf16.mxu0 %v22429_v33 }
 0x6a0   :  { %3899 = vmatpush2.bf16.msra.mxu1 %v20542_v21 }
 0x6a1   :  { %19337 = vmatprep.subr.bf16.mxu1 %v22429_v33 }
 0x6c3   :  { %v23802_v5 = vpop.f32.mrf.mxu1  ;;  %v3266_v56 = vpop.f32.mrf.mxu0 }
 0x6c4   :  { %v3267_v58 = vadd.f32 %v3266_v56, %v2735_v45 }
 0x6c5   :  { %v19329_v10 = vpop.f32.mrf.mxu1  ;;  %v3268_v12 = vpop.f32.mrf.mxu0 }
 0x6c6   :  { %v3269_v47 = vadd.f32 %v3268_v12, %v2739_v44 }
 0x6c7   :  { %v2617_v18 = vpop.f32.mrf.mxu1  ;;  %v3270_v19 = vpop.f32.mrf.mxu0 }
 0x6c9   :  { %v19330_v13 = vpop.f32.mrf.mxu1  ;;  %v3271_v23 = vpop.f32.mrf.mxu0 }
 0x6ca   :  { %v23848_v13 = vld [vmem:[%s28095_s1 + $0x8] sm:$0xff]   ;;  %v3485_v23 = vld [vmem:[%s28096_s7] sm:$0xf] }
 0x6e3   :  { %v3307_v24 = vpop.f32.mrf.mxu1  ;;  %v3389_v25 = vpop.f32.mrf.mxu0 }
 0x6e4   :  { %v3308_v11 = vadd.f32 %v3307_v24, %v3267_v58  ;;  %v3490_v24 = vrot.slane %v3485_v23, %v23001_v50 }
 0x6e5   :  { %v3309_v28 = vpop.f32.mrf.mxu1  ;;  %v3391_v30 = vpop.f32.mrf.mxu0 }
 0x6e6   :  { %v3310_v48 = vadd.f32 %v3309_v28, %v3269_v47  ;;  %v17659_v29 = vmul.f32 -1.442695, %v3308_v11  ;;  %v3502_v11 = vrot.slane %v3485_v23, %v23009_v0 }
 0x6e7   :  { %v3311_v38 = vpop.f32.mrf.mxu1  ;;  %v3393_v39 = vpop.f32.mrf.mxu0 }
 0x6e8   :  { %v17660_v51 = vmul.f32 -1.442695, %v3310_v48 }
 0x6e9   :  { %v3312_v42 = vpop.f32.mrf.mxu1  ;;  %v3394_v35 = vpop.f32.mrf.mxu0 }
 0x6ea   :  { %21955 = vpow2.f32 %v17660_v51 }
 0x6eb   :  { %21957 = vpow2.f32 %v17659_v29  ;;  %v3498_v29 = vrot.slane %v3485_v23, %v23006_v63 }
 0x6f7   :  { %v21956_v15 = vpop.eup %21955 }
 0x6f8   :  { %v21958_v34 = vpop.eup %21957  ;;  %v3405_v31 = vadd.f32 1.0, %v21956_v15 }
 0x6f9   :  { %v3399_v37 = vadd.f32 1.0, %v21958_v34 }
 0x6fa   :  { %21959 = vrcp.f32 %v3405_v31 }
 0x6fb   :  { %21961 = vrcp.f32 %v3399_v37 }
 0x707   :  { %v21960_v4 = vpop.eup %21959 }
 0x708   :  { %v21962_v56 = vpop.eup %21961  ;;  %v3415_v60 = vmul.f32 %v21960_v4, %v23013_v26  ;;  %v23842_v26 = vld [vmem:[%s28095_s1] sm:$0xff]  }
 0x723   :  { %v3348_v59 = vpop.f32.mrf.mxu1 }
 0x724   :  { %v3349_v43 = vadd.f32 %v3348_v59, %v2743_v55 }
 0x725   :  { %v3350_v40 = vpop.f32.mrf.mxu1 }
 0x726   :  { %v3390_v41 = vadd.f32 %v3389_v25, %v3349_v43  ;;  %v3351_v36 = vadd.f32 %v3350_v40, %v2747_v57  ;;  %v3494_v25 = vrot.slane %v3485_v23, %v22998_v49  ;;  %v23888_v23 = vld [vmem:[%s28095_s1 + $0x18] sm:$0xff]  }
 0x727   :  { %v3352_v16 = vpop.f32.mrf.mxu1 }
 0x728   :  { %21963 = vtanh.f32 %v3390_v41  ;;  %v3392_v61 = vadd.f32 %v3391_v30, %v3351_v36 }
 0x729   :  { %v3353_v62 = vpop.f32.mrf.mxu1 }
 0x72a   :  { %v17661_v3 = vmul.f32 -1.442695, %v3392_v61 }
 0x72c   :  { %21965 = vpow2.f32 %v17661_v3 }
 0x735   :  { %v21964_v7 = vpop.eup %21963 }
 0x736   :  { %v3416_v8 = vmul.f32 %v21964_v7, %v21962_v56 }
 0x738   :  { %v23832_v10 = vadd.f32 %v3416_v8, %v3415_v60 }
 0x739   :  { %v21966_v12 = vpop.eup %21965 }
 0x73a   :  { %v3412_v17 = vadd.f32 1.0, %v21966_v12  ;;  %21967 = vtanh.f32 %v23832_v10 }
 0x73c   :  { %21969 = vrcp.f32 %v3412_v17 }
 0x747   :  { %v21968_v18 = vpop.eup %21967 }
 0x749   :  { %v21970_v19 = vpop.eup %21969 }
 0x74a   :  { %v3419_v32 = vmul.f32 %v21970_v19, %v21968_v18  ;;  %v23879_v19 = vld [vmem:[%s28095_s1 + $0x10] sm:$0xff]  }
 0x74c   :  { %v23835_v21 = vpack.c.bf16 %v3419_v32, %v3419_v32 }
 0x74e   :  { %3860 = vmatmul.mubr.bf16.vlgmr.msra.gmra.mxu0 %v23835_v21  ;;  %3901 = vmatmul.mubr.bf16.vlgmr.msra.gmra.mxu1 %v23835_v21 }
 0x74f   :  { %19332 = vmatpush3.bf16.xpose.msra.mxu0 %v23842_v26  ;;  %19338 = vmatpush3.bf16.xpose.msra.mxu1 %v23848_v13 }
 0x750   :  { %19333 = vmatprep.mubr.msk.bf16.mxu0 %vm22430_vm0, %v22429_v33  ;;  %19343 = vmatprep.subr.bf16.mxu0 %v22429_v33 }
 0x751   :  { %19339 = vmatprep.mubr.msk.bf16.mxu1 %vm22430_vm0, %v22429_v33  ;;  %19349 = vmatprep.subr.bf16.mxu1 %v22429_v33 }
 0x80e   :  { %v3861_v28 = vpop.f32.mrf.mxu0  ;;  %v3902_v30 = vpop.f32.mrf.mxu1 }
 0x80f   :  { %v3862_v38 = vadd.f32 %v3861_v28, %v3490_v24  ;;  %v3903_v55 = vadd.f32 %v3902_v30, %v3498_v29 }
 0x810   :  { %v3863_v39 = vpop.f32.mrf.mxu0  ;;  %v3904_v42 = vpop.f32.mrf.mxu1 }
 0x811   :  { %v17726_v35 = vmul.f32 -1.442695, %v3862_v38  ;;  %v3864_v20 = vadd.f32 %v3863_v39, %v3494_v25  ;;  %v3905_v51 = vadd.f32 %v3904_v42, %v3502_v11  ;;  %v23898_v39 = vld [vmem:[%s28095_s1 + $0x20] sm:$0xff]  }
 0x812   :  { %v3865_v44 = vpop.f32.mrf.mxu0  ;;  %v3906_v45 = vpop.f32.mrf.mxu1 }
 0x813   :  { %21971 = vpow2.f32 %v17726_v35  ;;  %v17727_v47 = vmul.f32 -1.442695, %v3864_v20  ;;  %v17728_v15 = vmul.f32 -1.442695, %v3905_v51  ;;  %v23908_v35 = vld [vmem:[%s28095_s1 + $0x28] sm:$0xff]  }
 0x814   :  { %v3866_v58 = vpop.f32.mrf.mxu0  ;;  %v3907_v48 = vpop.f32.mrf.mxu1 }
 0x815   :  { %21973 = vpow2.f32 %v17727_v47  ;;  %v23918_v47 = vld [vmem:[%s28095_s1 + $0x30] sm:$0xff]   ;;  %v23927_v48 = vld [vmem:[%s28095_s1 + $0x38] sm:$0xff]  }
 0x816   :  { %21975 = vpow2.f32 %v17728_v15 }
 0x820   :  { %v21972_v34 = vpop.eup %21971 }
 0x821   :  { %v3912_v31 = vadd.f32 1.0, %v21972_v34 }
 0x822   :  { %v21974_v57 = vpop.eup %21973 }
 0x823   :  { %21977 = vrcp.f32 %v3912_v31  ;;  %v3918_v37 = vadd.f32 1.0, %v21974_v57  ;;  %v21976_v59 = vpop.eup %21975 }
 0x824   :  { %21979 = vtanh.f32 %v3903_v55  ;;  %v3925_v36 = vadd.f32 1.0, %v21976_v59 }
 0x825   :  { %21981 = vrcp.f32 %v3918_v37 }
 0x826   :  { %21983 = vrcp.f32 %v3925_v36 }
 0x830   :  { %v21978_v43 = vpop.eup %21977 }
 0x831   :  { %v21980_v40 = vpop.eup %21979 }
 0x832   :  { %v21982_v41 = vpop.eup %21981  ;;  %v3929_v16 = vmul.f32 %v21980_v40, %v21978_v43 }
 0x833   :  { %v3928_v61 = vmul.f32 %v21982_v41, %v23047_v9  ;;  %v21984_v3 = vpop.eup %21983 }
 0x835   :  { %v23865_v62 = vadd.f32 %v3929_v16, %v3928_v61 }
 0x837   :  { %21985 = vtanh.f32 %v23865_v62 }
 0x844   :  { %v21986_v4 = vpop.eup %21985 }
 0x845   :  { %v23868_v56 = vmul.f32 %v21986_v4, %v21984_v3 }
 0x847   :  { %v3941_v7 = vrot.slane %v23868_v56, %v23051_v14  ;;  %v3934_v18 = vcombine.high %v23868_v56, %v23868_v56 }
 0x849   :  { %v3957_v60 = vrot.slane %v3941_v7, %v23051_v14  ;;  %v3949_v8 = vcombine.high %v3941_v7, %v3941_v7  ;;  %v3948_v25 = vrot.slane %v3934_v18, %v23051_v14 }
 0x84b   :  { %v3991_v12 = vpack.c.bf16 %v3957_v60, %v3957_v60  ;;  %v3971_v17 = vrot.slane %v3949_v8, %v23051_v14  ;;  %v3979_v32 = vcombine.high %v3957_v60, %v3957_v60  ;;  %v3950_v38 = vcombine.high %v3948_v25, %v3948_v25 }
 0x84c   :  { %v3964_v42 = vrot.slane %v3948_v25, %v23051_v14 }
 0x84d   :  { %19334 = vmatmul.mubr.bf16.vlgmr.msra.gmra.mxu0 %v3991_v12  ;;  %v3992_v9 = vpack.c.bf16 %v3971_v17, %v3971_v17  ;;  %v3981_v24 = vcombine.high %v3971_v17, %v3971_v17  ;;  %v3993_v28 = vpack.c.bf16 %v3979_v32, %v3979_v32  ;;  %v3978_v20 = vrot.slane %v3950_v38, %v23051_v14 }
 0x84e   :  { %19344 = vmatpush3.bf16.xpose.msra.mxu0 %v23879_v19  ;;  %19345 = vmatprep.mubr.msk.bf16.mxu0 %vm22430_vm0, %v22429_v33  ;;  %v3995_v44 = vpack.c.bf16 %v3964_v42, %v3964_v42  ;;  %v3980_v58 = vcombine.high %v3964_v42, %v3964_v42 }
 0x84f   :  { %19340 = vmatmul.mubr.bf16.vlgmr.msra.gmra.mxu1 %v3992_v9  ;;  %19355 = vmatprep.subr.bf16.mxu0 %v22429_v33  ;;  %v3994_v30 = vpack.c.bf16 %v3981_v24, %v3981_v24  ;;  %v3996_v45 = vpack.c.bf16 %v3978_v20, %v3978_v20  ;;  %v3982_v11 = vcombine.high %v3978_v20, %v3978_v20 }
 0x850   :  { %19350 = vmatpush3.bf16.xpose.msra.mxu1 %v23888_v23  ;;  %19351 = vmatprep.mubr.msk.bf16.mxu1 %vm22430_vm0, %v22429_v33  ;;  %v3997_v51 = vpack.c.bf16 %v3980_v58, %v3980_v58 }
 0x851   :  { %19361 = vmatprep.subr.bf16.mxu1 %v22429_v33  ;;  %v3998_v29 = vpack.c.bf16 %v3982_v11, %v3982_v11 }
 0x855   :  { %19346 = vmatmul.mubr.bf16.vlgmr.msra.gmra.mxu0 %v3993_v28 }
 0x856   :  { %19356 = vmatpush3.bf16.xpose.msra.mxu0 %v23898_v39  ;;  %19357 = vmatprep.mubr.msk.bf16.mxu0 %vm22430_vm0, %v22429_v33 }
 0x857   :  { %19352 = vmatmul.mubr.bf16.vlgmr.msra.gmra.mxu1 %v3994_v30  ;;  %19367 = vmatprep.subr.bf16.mxu0 %v22429_v33 }
 0x858   :  { %19362 = vmatpush3.bf16.xpose.msra.mxu1 %v23908_v35  ;;  %19363 = vmatprep.mubr.msk.bf16.mxu1 %vm22430_vm0, %v22429_v33 }
 0x859   :  { %19373 = vmatprep.subr.bf16.mxu1 %v22429_v33 }
 0x85d   :  { %19358 = vmatmul.mubr.bf16.vlgmr.msra.gmra.mxu0 %v3995_v44 }
 0x85e   :  { %19368 = vmatpush3.bf16.xpose.msra.mxu0 %v23918_v47  ;;  %19369 = vmatprep.mubr.msk.bf16.mxu0 %vm22430_vm0, %v22429_v33 }
 0x85f   :  { %19364 = vmatmul.mubr.bf16.vlgmr.msra.gmra.mxu1 %v3996_v45  ;;  %19379 = vmatprep.subr.bf16.mxu0 %v22429_v33 }
 0x860   :  { %19374 = vmatpush3.bf16.xpose.msra.mxu1 %v23927_v48  ;;  %19375 = vmatprep.mubr.msk.bf16.mxu1 %vm22430_vm0, %v22429_v33 }
 0x861   :  { %19385 = vmatprep.subr.bf16.mxu1 %v22429_v33 }
 0x865   :  { %19370 = vmatmul.mubr.bf16.vlgmr.msra.gmra.mxu0 %v3997_v51 }
 0x866   :  { %19380 = vmatpush3.bf16.msra.mxu0 %v23842_v26  ;;  %19381 = vmatprep.mubr.msk.bf16.mxu0 %vm22430_vm0, %v22429_v33 }
 0x867   :  { %19376 = vmatmul.mubr.bf16.vlgmr.msra.gmra.mxu1 %v3998_v29  ;;  %19391 = vmatprep.subr.bf16.mxu0 %v22429_v33 }
 0x868   :  { %19386 = vmatpush3.bf16.msra.mxu1 %v23848_v13  ;;  %19387 = vmatprep.mubr.msk.bf16.mxu1 %vm22430_vm0, %v22429_v33 }
 0x869   :  { %19397 = vmatprep.subr.bf16.mxu1 %v22429_v33 }
 0x90d   :  { %v4033_v15 = vpop.f32.mrf.mxu0 }
 0x90e   :  { %v4034_v34 = vadd.f32 %v4033_v15, %v23131_v53 }
 0x90f   :  { %v19335_v55 = vpop.f32.mrf.mxu0  ;;  %v4073_v31 = vpop.f32.mrf.mxu1 }
 0x910   :  { %v4074_v26 = vadd.f32 %v4073_v31, %v23134_v54  ;;  %v4319_v57 = vsel %vm1858_vm1, %v4034_v34, -inf }
 0x911   :  { %4320 = vmax.xlane.f32.xlu0 %v4319_v57  ;;  %v4036_v37 = vpop.f32.mrf.mxu0  ;;  %v19341_v59 = vpop.f32.mrf.mxu1 }
 0x912   :  { %v4322_v43 = vsel %vm1858_vm1, %v4074_v26, -inf }
 0x913   :  { %v19336_v13 = vpop.f32.mrf.mxu0  ;;  %4323 = vmax.xlane.f32.xlu1 %v4322_v43  ;;  %v4076_v40 = vpop.f32.mrf.mxu1 }
 0x915   :  { %v19342_v41 = vpop.f32.mrf.mxu1  ;;  %v4113_v36 = vpop.f32.mrf.mxu0 }
 0x916   :  { %v4114_v16 = vadd.f32 %v4113_v36, %v23146_v2 }
 0x917   :  { %v19347_v61 = vpop.f32.mrf.mxu0  ;;  %v4153_v3 = vpop.f32.mrf.mxu1 }
 0x918   :  { %v4154_v4 = vadd.f32 %v4153_v3, %v23152_v6  ;;  %v4325_v7 = vsel %vm1858_vm1, %v4114_v16, -inf }
 0x919   :  { %4326 = vmax.xlane.f32.xlu0 %v4325_v7  ;;  %v4116_v60 = vpop.f32.mrf.mxu0  ;;  %v19353_v8 = vpop.f32.mrf.mxu1 }
 0x91a   :  { %v4328_v12 = vsel %vm1858_vm1, %v4154_v4, -inf }
 0x91b   :  { %v19348_v17 = vpop.f32.mrf.mxu0  ;;  %4329 = vmax.xlane.f32.xlu1 %v4328_v12  ;;  %v4156_v9 = vpop.f32.mrf.mxu1 }
 0x91d   :  { %v19354_v18 = vpop.f32.mrf.mxu1  ;;  %v4193_v32 = vpop.f32.mrf.mxu0 }
 0x91e   :  { %v4194_v24 = vadd.f32 %v4193_v32, %v23159_v22 }
 0x91f   :  { %v19359_v25 = vpop.f32.mrf.mxu0  ;;  %v4233_v28 = vpop.f32.mrf.mxu1 }
 0x920   :  { %v4234_v30 = vadd.f32 %v4233_v28, %v23163_v27  ;;  %v4331_v38 = vsel %vm1858_vm1, %v4194_v24, -inf }
 0x921   :  { %4332 = vmax.xlane.f32.xlu0 %v4331_v38  ;;  %v4196_v42 = vpop.f32.mrf.mxu0  ;;  %v19365_v20 = vpop.f32.mrf.mxu1 }
 0x922   :  { %v4334_v44 = vsel %vm1858_vm1, %v4234_v30, -inf }
 0x923   :  { %v19360_v45 = vpop.f32.mrf.mxu0  ;;  %4335 = vmax.xlane.f32.xlu1 %v4334_v44  ;;  %v4236_v58 = vpop.f32.mrf.mxu1 }
 0x925   :  { %v19366_v11 = vpop.f32.mrf.mxu1  ;;  %v4273_v51 = vpop.f32.mrf.mxu0 }
 0x926   :  { %v4274_v29 = vadd.f32 %v4273_v51, %v23171_v46 }
 0x927   :  { %v19371_v15 = vpop.f32.mrf.mxu0  ;;  %v4313_v55 = vpop.f32.mrf.mxu1 }
 0x928   :  { %v4314_v31 = vadd.f32 %v4313_v55, %v23175_v52  ;;  %v4337_v57 = vsel %vm1858_vm1, %v4274_v29, -inf }
 0x929   :  { %4338 = vmax.xlane.f32.xlu0 %v4337_v57  ;;  %v4276_v37 = vpop.f32.mrf.mxu0  ;;  %v19377_v59 = vpop.f32.mrf.mxu1 }
 0x92a   :  { %v4340_v43 = vsel %vm1858_vm1, %v4314_v31, -inf }
 0x92b   :  { %v19372_v13 = vpop.f32.mrf.mxu0  ;;  %4341 = vmax.xlane.f32.xlu1 %v4340_v43  ;;  %v4316_v40 = vpop.f32.mrf.mxu1 }
 0x92d   :  { %v19378_v41 = vpop.f32.mrf.mxu1 }
 0x99a   :  { %v4321_v36 = vpop.xlane.xlu0 %4320 }
 0x99b   :  { %v4343_v61 = vsub.f32 %v4034_v34, %v4321_v36 }
 0x99c   :  { %v4324_v3 = vpop.xlane.xlu1 %4323 }
 0x99d   :  { %v4351_v7 = vmul.f32 1.442695, %v4343_v61  ;;  %v4344_v60 = vsub.f32 %v4074_v26, %v4324_v3 }
 0x99f   :  { %21987 = vpow2.f32 %v4351_v7  ;;  %v4353_v8 = vmul.f32 1.442695, %v4344_v60 }
 0x9a1   :  { %21989 = vpow2.f32 %v4353_v8 }
 0x9a2   :  { %v4327_v12 = vpop.xlane.xlu0 %4326 }
 0x9a3   :  { %v4345_v17 = vsub.f32 %v4114_v16, %v4327_v12 }
 0x9a4   :  { %v4330_v9 = vpop.xlane.xlu1 %4329 }
 0x9a5   :  { %v4355_v18 = vmul.f32 1.442695, %v4345_v17  ;;  %v4346_v32 = vsub.f32 %v4154_v4, %v4330_v9 }
 0x9a7   :  { %21991 = vpow2.f32 %v4355_v18  ;;  %v4357_v25 = vmul.f32 1.442695, %v4346_v32 }
 0x9a9   :  { %21993 = vpow2.f32 %v4357_v25 }
 0x9aa   :  { %v4333_v28 = vpop.xlane.xlu0 %4332 }
 0x9ab   :  { %v4347_v38 = vsub.f32 %v4194_v24, %v4333_v28 }
 0x9ac   :  { %v21988_v42 = vpop.eup %21987  ;;  %v4336_v20 = vpop.xlane.xlu1 %4335 }
 0x9ad   :  { %v4359_v44 = vmul.f32 1.442695, %v4347_v38  ;;  %v4348_v34 = vsub.f32 %v4234_v30, %v4336_v20  ;;  %v4367_v45 = vsel %vm1858_vm1, %v21988_v42, 0.0 }
 0x9ae   :  { %v21990_v26 = vpop.eup %21989  ;;  %4368 = vadd.xlane.f32.xlu0 %v4367_v45 }
 0x9af   :  { %21995 = vpow2.f32 %v4359_v44  ;;  %v4361_v58 = vmul.f32 1.442695, %v4348_v34  ;;  %v4370_v16 = vsel %vm1858_vm1, %v21990_v26, 0.0 }
 0x9b0   :  { %4371 = vadd.xlane.f32.xlu1 %v4370_v16 }
 0x9b1   :  { %21997 = vpow2.f32 %v4361_v58 }
 0x9b2   :  { %v4339_v4 = vpop.xlane.xlu0 %4338 }
 0x9b3   :  { %v4349_v11 = vsub.f32 %v4274_v29, %v4339_v4 }
 0x9b4   :  { %v21992_v51 = vpop.eup %21991  ;;  %v4342_v15 = vpop.xlane.xlu1 %4341 }
 0x9b5   :  { %v4363_v55 = vmul.f32 1.442695, %v4349_v11  ;;  %v4350_v24 = vsub.f32 %v4314_v31, %v4342_v15  ;;  %v4373_v57 = vsel %vm1858_vm1, %v21992_v51, 0.0 }
 0x9b6   :  { %v21994_v37 = vpop.eup %21993  ;;  %4374 = vadd.xlane.f32.xlu0 %v4373_v57 }
 0x9b7   :  { %21999 = vpow2.f32 %v4363_v55  ;;  %v4365_v30 = vmul.f32 1.442695, %v4350_v24  ;;  %v4376_v59 = vsel %vm1858_vm1, %v21994_v37, 0.0 }
 0x9b8   :  { %4377 = vadd.xlane.f32.xlu1 %v4376_v59  ;;  %v20548_v59 = vld [vmem:[%s28098_s8 + $0x30] sm:$0xff]  }
 0x9b9   :  { %22001 = vpow2.f32 %v4365_v30  ;;  %v20546_v30 = vld [vmem:[%s28098_s8 + $0x38] sm:$0xff]  }
 0x9bc   :  { %v21996_v43 = vpop.eup %21995 }
 0x9bd   :  { %v4379_v13 = vsel %vm1858_vm1, %v21996_v43, 0.0 }
 0x9be   :  { %v21998_v40 = vpop.eup %21997  ;;  %4380 = vadd.xlane.f32.xlu0 %v4379_v13  ;;  %v20550_v13 = vld [vmem:[%s28098_s8 + $0x28] sm:$0xff]  }
 0x9bf   :  { %v4382_v29 = vsel %vm1858_vm1, %v21998_v40, 0.0 }
 0x9c0   :  { %4383 = vadd.xlane.f32.xlu1 %v4382_v29  ;;  %v20552_v29 = vld [vmem:[%s28098_s8 + $0x20] sm:$0xff]  }
 0x9c4   :  { %v23963_v41 = vpop.eup %21999 }
 0x9c5   :  { %v4385_v31 = vsel %vm1858_vm1, %v23963_v41, 0.0 }
 0x9c6   :  { %v23967_v36 = vpop.eup %22001  ;;  %4386 = vadd.xlane.f32.xlu0 %v4385_v31  ;;  %v20554_v31 = vld [vmem:[%s28098_s8 + $0x18] sm:$0xff]  }
 0x9c7   :  { %v4388_v61 = vsel %vm1858_vm1, %v23967_v36, 0.0 }
 0x9c8   :  { %4389 = vadd.xlane.f32.xlu1 %v4388_v61  ;;  %v20556_v61 = vld [vmem:[%s28098_s8 + $0x10] sm:$0xff]  }
 0xa37   :  { %v4369_v3 = vpop.xlane.xlu0 %4368 }
 0xa38   :  { %22003 = vrcp.f32 %v4369_v3  ;;  %v20557_v3 = vld [vmem:[%s28098_s8 + $0x48] sm:$0xff]  }
 0xa39   :  { %v4372_v7 = vpop.xlane.xlu1 %4371 }
 0xa3a   :  { %22005 = vrcp.f32 %v4372_v7  ;;  %v20558_v7 = vld [vmem:[%s28098_s8 + $0x8] sm:$0xff]  }
 0xa3f   :  { %v4375_v60 = vpop.xlane.xlu0 %4374 }
 0xa40   :  { %22007 = vrcp.f32 %v4375_v60  ;;  %v20559_v60 = vld [vmem:[%s28098_s8 + $0x40] sm:$0xff]  }
 0xa41   :  { %v4378_v8 = vpop.xlane.xlu1 %4377 }
 0xa42   :  { %22009 = vrcp.f32 %v4378_v8  ;;  %v20560_v8 = vld [vmem:[%s28098_s8] sm:$0xff]  }
 0xa45   :  { %v22004_v12 = vpop.eup %22003 }
 0xa46   :  { %v4399_v17 = vmul.f32 %v22004_v12, %v21988_v42  ;;  %v20563_v12 = vld [vmem:[%s28090_s4 + $0xe4] ss:$16 sps:$4 sm:$0xff]  }
 0xa47   :  { %v22006_v9 = vpop.eup %22005  ;;  %v4381_v18 = vpop.xlane.xlu0 %4380 }
 0xa48   :  { %22011 = vrcp.f32 %v4381_v18  ;;  %v4407_v32 = vpack.c.bf16 %v4399_v17, %v4399_v17  ;;  %v4400_v25 = vmul.f32 %v22006_v9, %v21990_v26  ;;  %v20588_v17 = vld [vmem:[%s28099_s10 + $0x38] sm:$0xff]   ;;  %v20592_v9 = vld [vmem:[%s28099_s10 + $0x30] sm:$0xff]   ;;  %v20596_v18 = vld [vmem:[%s28099_s10 + $0x28] sm:$0xff]  }
 0xa49   :  { %v4384_v28 = vpop.xlane.xlu1 %4383 }
 0xa4a   :  { %22013 = vrcp.f32 %v4384_v28  ;;  %19382 = vmatmul.mubr.msk.bf16.vlgmr.msra.gmra.mxu0 %vm1955_vm2, %v4407_v32  ;;  %v4408_v38 = vpack.c.bf16 %v4400_v25, %v4400_v25 }
 0xa4b   :  { %19392 = vmatpush3.bf16.msra.mxu0 %v23879_v19  ;;  %19393 = vmatprep.mubr.msk.bf16.mxu0 %vm22430_vm0, %v22429_v33 }
 0xa4c   :  { %19388 = vmatmul.mubr.msk.bf16.vlgmr.msra.gmra.mxu1 %vm1955_vm2, %v4408_v38  ;;  %19403 = vmatprep.subr.bf16.mxu0 %v22429_v33 }
 0xa4d   :  { %v22008_v42 = vpop.eup %22007  ;;  %19398 = vmatpush3.bf16.msra.mxu1 %v23888_v23  ;;  %19399 = vmatprep.mubr.msk.bf16.mxu1 %vm22430_vm0, %v22429_v33 }
 0xa4e   :  { %v4401_v20 = vmul.f32 %v22008_v42, %v21992_v51  ;;  %19409 = vmatprep.subr.bf16.mxu1 %v22429_v33 }
 0xa4f   :  { %v22010_v44 = vpop.eup %22009  ;;  %v4387_v34 = vpop.xlane.xlu0 %4386 }
 0xa50   :  { %22015 = vrcp.f32 %v4387_v34  ;;  %v4409_v19 = vpack.c.bf16 %v4401_v20, %v4401_v20  ;;  %v4402_v45 = vmul.f32 %v22010_v44, %v21994_v37 }
 0xa51   :  { %v4390_v26 = vpop.xlane.xlu1 %4389 }
 0xa52   :  { %22017 = vrcp.f32 %v4390_v26  ;;  %19394 = vmatmul.mubr.msk.bf16.vlgmr.msra.gmra.mxu0 %vm1955_vm2, %v4409_v19  ;;  %v4410_v58 = vpack.c.bf16 %v4402_v45, %v4402_v45 }
 0xa53   :  { %19404 = vmatpush3.bf16.msra.mxu0 %v23898_v39  ;;  %19405 = vmatprep.mubr.msk.bf16.mxu0 %vm22430_vm0, %v22429_v33 }
 0xa54   :  { %19400 = vmatmul.mubr.msk.bf16.vlgmr.msra.gmra.mxu1 %vm1955_vm2, %v4410_v58  ;;  %19415 = vmatprep.subr.bf16.mxu0 %v22429_v33 }
 0xa55   :  { %v22012_v23 = vpop.eup %22011  ;;  %19410 = vmatpush3.bf16.msra.mxu1 %v23908_v35  ;;  %19411 = vmatprep.mubr.msk.bf16.mxu1 %vm22430_vm0, %v22429_v33 }
 0xa56   :  { %v4403_v16 = vmul.f32 %v22012_v23, %v21996_v43  ;;  %19421 = vmatprep.subr.bf16.mxu1 %v22429_v33  ;;  %v20549_v43 = vld [vmem:[%s28098_s8 + $0x68] sm:$0xff]  }
 0xa57   :  { %v22014_v4 = vpop.eup %22013 }
 0xa58   :  { %v4411_v11 = vpack.c.bf16 %v4403_v16, %v4403_v16  ;;  %v4404_v51 = vmul.f32 %v22014_v4, %v21998_v40  ;;  %v20551_v40 = vld [vmem:[%s28098_s8 + $0x60] sm:$0xff]  }
 0xa5a   :  { %19406 = vmatmul.mubr.msk.bf16.vlgmr.msra.gmra.mxu0 %vm1955_vm2, %v4411_v11  ;;  %v4412_v39 = vpack.c.bf16 %v4404_v51, %v4404_v51 }
 0xa5b   :  { %19416 = vmatpush3.bf16.msra.mxu0 %v23918_v47  ;;  %19417 = vmatprep.mubr.msk.bf16.mxu0 %vm22430_vm0, %v22429_v33  ;;  %v24004_v47 = vpack.c.bf16 %v23868_v56, %v23868_v56  ;;  %v20547_v56 = vld [vmem:[%s28098_s8 + $0x70] sm:$0xff]  }
 0xa5c   :  { %19412 = vmatmul.mubr.msk.bf16.vlgmr.msra.gmra.mxu1 %vm1955_vm2, %v4412_v39 }
 0xa5d   :  { %v22016_v35 = vpop.eup %22015  ;;  %19422 = vmatpush3.bf16.msra.mxu1 %v23927_v48  ;;  %19423 = vmatprep.mubr.msk.bf16.mxu1 %vm22430_vm0, %v22429_v33  ;;  %v20545_v48 = vld [vmem:[%s28098_s8 + $0x78] sm:$0xff]  }
 0xa5e   :  { %v4405_v15 = vmul.f32 %v22016_v35, %v23963_v41  ;;  %19427 = vmatprep.subr.bf16.mxu1 %v22429_v33  ;;  %18869 = vmatprep.subr.bf16.mxu0 %v20545_v48  ;;  %v20553_v41 = vld [vmem:[%s28098_s8 + $0x58] sm:$0xff]  }
 0xa5f   :  { %v22018_v55 = vpop.eup %22017 }
 0xa60   :  { %v4413_v24 = vpack.c.bf16 %v4405_v15, %v4405_v15  ;;  %v4406_v57 = vmul.f32 %v22018_v55, %v23967_v36  ;;  %v20555_v36 = vld [vmem:[%s28098_s8 + $0x50] sm:$0xff]  }
 0xa62   :  { %19418 = vmatmul.mubr.msk.bf16.vlgmr.msra.gmra.mxu0 %vm1955_vm2, %v4413_v24  ;;  %v4414_v37 = vpack.c.bf16 %v4406_v57, %v4406_v57 }
 0xa63   :  { %4951 = vmatprep.mubr.bf16.mxu0 %v24004_v47  ;;  %18870 = vmatpush3.bf16.msra.mxu0 %v20546_v30 }
 0xa64   :  { %19424 = vmatmul.mubr.msk.bf16.vlgmr.msra.gmra.mxu1 %vm1955_vm2, %v4414_v37  ;;  %18871 = vmatprep.subr.bf16.mxu0 %v20547_v56 }
 0xa65   :  { %19443 = vmatprep.mubr.msk.bf16.mxu1 %vm22430_vm0, %v22429_v33  ;;  %19428 = vmatpush3.bf16.msra.mxu1 %v20588_v17 }
 0xa66   :  { %19429 = vmatprep.subr.bf16.mxu1 %v22429_v33 }
 0xa67   :  { %18872 = vmatpush3.bf16.msra.mxu0 %v20548_v59 }
 0xa68   :  { %18873 = vmatprep.subr.bf16.mxu0 %v20549_v43 }
 0xa69   :  { %19430 = vmatpush3.bf16.msra.mxu1 %v20592_v9 }
 0xa6a   :  { %19431 = vmatprep.subr.bf16.mxu1 %v22429_v33 }
 0xa6b   :  { %18874 = vmatpush3.bf16.msra.mxu0 %v20550_v13 }
 0xa6c   :  { %18875 = vmatprep.subr.bf16.mxu0 %v20551_v40 }
 0xa6d   :  { %19432 = vmatpush3.bf16.msra.mxu1 %v20596_v18  ;;  %v20561_v18 = vld [vmem:[%s28090_s4 + $0xe0] ss:$16 sps:$4 sm:$0xff]  }
 0xa6e   :  { %19433 = vmatprep.subr.bf16.mxu1 %v22429_v33 }
 0xa6f   :  { %18876 = vmatpush3.bf16.msra.mxu0 %v20552_v29 }
 0xa70   :  { %18877 = vmatprep.subr.bf16.mxu0 %v20553_v41 }
 0xa73   :  { %18878 = vmatpush3.bf16.msra.mxu0 %v20554_v31 }
 0xa74   :  { %18879 = vmatprep.subr.bf16.mxu0 %v20555_v36 }
 0xa77   :  { %18880 = vmatpush3.bf16.msra.mxu0 %v20556_v61 }
 0xa78   :  { %18881 = vmatprep.subr.bf16.mxu0 %v20557_v3 }
 0xa7b   :  { %18882 = vmatpush3.bf16.msra.mxu0 %v20558_v7 }
 0xa7c   :  { %18883 = vmatprep.subr.bf16.mxu0 %v20559_v60 }
 0xa7f   :  { %18884 = vmatpush3.bf16.msra.mxu0 %v20560_v8 }
 0xa80   :  { %5685 = vmatprep.subr.bf16.mxu0 %v20563_v12 }
 0xb0a   :  { %v4452_v32 = vpop.f32.mrf.mxu0 }
 0xb0c   :  { %v19383_v25 = vpop.f32.mrf.mxu0  ;;  %v4495_v28 = vpop.f32.mrf.mxu1 }
 0xb0d   :  { %v4767_v16 = vrot.slane %v4495_v28, 7 }
 0xb0e   :  { %v4455_v38 = vpop.f32.mrf.mxu0  ;;  %v19389_v42 = vpop.f32.mrf.mxu1 }
 0xb0f   :  { %v4768_v15 = vsel %vm2309_vm3, %v4767_v16, %v4452_v32  ;;  %v20566_v38 = vld [vmem:[%s28090_s4 + $0xc4] ss:$16 sps:$4 sm:$0xff]   ;;  %v20576_v16 = vld [vmem:[%s28090_s4 + $0x40] ss:$16 sps:$4 sm:$0xff]  }
 0xb10   :  { %v19384_v20 = vpop.f32.mrf.mxu0  ;;  %v4498_v44 = vpop.f32.mrf.mxu1 }
 0xb11   :  { %v20564_v20 = vld [vmem:[%s28090_s4 + $0xc0] ss:$16 sps:$4 sm:$0xff]   ;;  %v20569_v44 = vld [vmem:[%s28090_s4 + $0xa4] ss:$16 sps:$4 sm:$0xff]  }
 0xb12   :  { %v19390_v34 = vpop.f32.mrf.mxu1  ;;  %v4538_v19 = vpop.f32.mrf.mxu0 }
 0xb13   :  { %v4769_v51 = vrot.slane %v4538_v19, 6  ;;  %v20567_v34 = vld [vmem:[%s28090_s4 + $0xa0] ss:$16 sps:$4 sm:$0xff]   ;;  %v20572_v19 = vld [vmem:[%s28090_s4 + $0x84] ss:$16 sps:$4 sm:$0xff]  }
 0xb14   :  { %v19395_v45 = vpop.f32.mrf.mxu0  ;;  %v4581_v26 = vpop.f32.mrf.mxu1 }
 0xb15   :  { %v4771_v55 = vrot.slane %v4581_v26, 5  ;;  %v4770_v37 = vsel %vm2312_vm4, %v4769_v51, %v4768_v15  ;;  %v20570_v45 = vld [vmem:[%s28090_s4 + $0x80] ss:$16 sps:$4 sm:$0xff]   ;;  %v20575_v26 = vld [vmem:[%s28090_s4 + $0x64] ss:$16 sps:$4 sm:$0xff]  }
 0xb16   :  { %v4541_v58 = vpop.f32.mrf.mxu0  ;;  %v19401_v23 = vpop.f32.mrf.mxu1  ;;  %v20584_v51 = vld [vmem:[%s28090_s4 + $0x4] ss:$16 sps:$4 sm:$0xff]   ;;  %v20585_v15 = vld [vmem:[%s28090_s4 + $0x1e0] ss:$16 sps:$4 sm:$0xff]  }
 0xb17   :  { %v4772_v59 = vsel %vm2315_vm5, %v4771_v55, %v4770_v37  ;;  %v20573_v58 = vld [vmem:[%s28090_s4 + $0x60] ss:$16 sps:$4 sm:$0xff]   ;;  %v20578_v23 = vld [vmem:[%s28090_s4 + $0x44] ss:$16 sps:$4 sm:$0xff]  }
 0xb18   :  { %v19396_v4 = vpop.f32.mrf.mxu0  ;;  %v4584_v11 = vpop.f32.mrf.mxu1  ;;  %v20591_v55 = vld [vmem:[%s28090_s4 + $0x1c4] ss:$16 sps:$4 sm:$0xff]   ;;  %v20593_v37 = vld [vmem:[%s28090_s4 + $0x1a0] ss:$16 sps:$4 sm:$0xff]  }
 0xb19   :  { %v20581_v4 = vld [vmem:[%s28090_s4 + $0x24] ss:$16 sps:$4 sm:$0xff]   ;;  %v20579_v11 = vld [vmem:[%s28090_s4 + $0x20] ss:$16 sps:$4 sm:$0xff]  }
 0xb1a   :  { %v19402_v39 = vpop.f32.mrf.mxu1  ;;  %v4624_v35 = vpop.f32.mrf.mxu0 }
 0xb1b   :  { %v4773_v48 = vrot.slane %v4624_v35, 4  ;;  %v20582_v39 = vld [vmem:[%s28090_s4] ss:$16 sps:$4 sm:$0xff]   ;;  %v20587_v35 = vld [vmem:[%s28090_s4 + $0x1e4] ss:$16 sps:$4 sm:$0xff]  }
 0xb1c   :  { %v19407_v24 = vpop.f32.mrf.mxu0  ;;  %v4667_v57 = vpop.f32.mrf.mxu1 }
 0xb1d   :  { %v4775_v43 = vrot.slane %v4667_v57, 3  ;;  %v4774_v29 = vsel %vm2318_vm6, %v4773_v48, %v4772_v59  ;;  %v20589_v24 = vld [vmem:[%s28090_s4 + $0x1c0] ss:$16 sps:$4 sm:$0xff]   ;;  %v20595_v57 = vld [vmem:[%s28090_s4 + $0x1a4] ss:$16 sps:$4 sm:$0xff]  }
 0xb1e   :  { %v4627_v30 = vpop.f32.mrf.mxu0  ;;  %v19413_v56 = vpop.f32.mrf.mxu1  ;;  %v20599_v48 = vld [vmem:[%s28090_s4 + $0x184] ss:$16 sps:$4 sm:$0xff]  }
 0xb1f   :  { %v4776_v61 = vsel %vm2321_vm7, %v4775_v43, %v4774_v29  ;;  %v20597_v30 = vld [vmem:[%s28090_s4 + $0x180] ss:$16 sps:$4 sm:$0xff]   ;;  %v20603_v59 = vld [vmem:[%s28090_s4 + $0x164] ss:$16 sps:$4 sm:$0xff]  }
 0xb20   :  { %v19408_v13 = vpop.f32.mrf.mxu0  ;;  %v4670_v40 = vpop.f32.mrf.mxu1  ;;  %v20600_v56 = vld [vmem:[%s28099_s10 + $0x20] sm:$0xff]  }
 0xb21   :  { %19434 = vmatpush3.bf16.msra.mxu1 %v20600_v56  ;;  %v20601_v43 = vld [vmem:[%s28090_s4 + $0x160] ss:$16 sps:$4 sm:$0xff]   ;;  %v20604_v13 = vld [vmem:[%s28099_s10 + $0x18] sm:$0xff]   ;;  %v20607_v40 = vld [vmem:[%s28090_s4 + $0x144] ss:$16 sps:$4 sm:$0xff]  }
 0xb22   :  { %v19414_v41 = vpop.f32.mrf.mxu1  ;;  %v4710_v31 = vpop.f32.mrf.mxu0  ;;  %19435 = vmatprep.subr.bf16.mxu1 %v22429_v33  ;;  %v20605_v29 = vld [vmem:[%s28090_s4 + $0x140] ss:$16 sps:$4 sm:$0xff]   ;;  %v20649_v56 = vld [vmem:[%s28090_s4 + $0x244] ss:$16 sps:$4 sm:$0xff]  }
 0xb23   :  { %v4777_v36 = vrot.slane %v4710_v31, 2  ;;  %v20608_v41 = vld [vmem:[%s28099_s10 + $0x10] sm:$0xff]  }
 0xb24   :  { %v19419_v3 = vpop.f32.mrf.mxu0  ;;  %v4753_v7 = vpop.f32.mrf.mxu1  ;;  %v20611_v31 = vld [vmem:[%s28090_s4 + $0x124] ss:$16 sps:$4 sm:$0xff]  }
 0xb25   :  { %v4778_v60 = vsel %vm2324_vm8, %v4777_v36, %v4776_v61  ;;  %v4779_v8 = vrot.slane %v4753_v7, 1  ;;  %19436 = vmatpush3.bf16.msra.mxu1 %v20604_v13  ;;  %v20609_v36 = vld [vmem:[%s28090_s4 + $0x120] ss:$16 sps:$4 sm:$0xff]   ;;  %v20612_v61 = vld [vmem:[%s28099_s10 + $0x8] sm:$0xff]   ;;  %v20615_v3 = vld [vmem:[%s28090_s4 + $0x104] ss:$16 sps:$4 sm:$0xff]  }
 0xb26   :  { %v4713_v12 = vpop.f32.mrf.mxu0  ;;  %v19425_v17 = vpop.f32.mrf.mxu1  ;;  %19437 = vmatprep.subr.bf16.mxu1 %v22429_v33  ;;  %v20613_v7 = vld [vmem:[%s28090_s4 + $0x100] ss:$16 sps:$4 sm:$0xff]   ;;  %v20650_v13 = vld [vmem:[%s28090_s4 + $0x248] ss:$16 sps:$4 sm:$0xff]  }
 0xb27   :  { %v4780_v9 = vsel %vm2327_vm9, %v4779_v8, %v4778_v60  ;;  %v20616_v60 = vld [vmem:[%s28099_s10] sm:$0xff]   ;;  %v17764_v8 = vld [vmem:[%s28092_s0 + $0x10] sm:$0xff] }
 0xb28   :  { %v4782_v32 = vpack.c.bf16 %v4780_v9, %v4780_v9  ;;  %v19420_v25 = vpop.f32.mrf.mxu0  ;;  %v4756_v28 = vpop.f32.mrf.mxu1  ;;  %v24196_v12 = vpack.c.bf16 %v17764_v8, %v17764_v8  ;;  %v20619_v17 = vld [vmem:[%s28090_s4 + $0x2e4] ss:$16 sps:$4 sm:$0xff]   ;;  %v20622_v9 = vld [vmem:[%s28090_s4 + $0x2ec] ss:$16 sps:$4 sm:$0xff]   ;;  %v20665_v8 = vld [vmem:[%s28090_s4 + $0xe8] ss:$16 sps:$4 sm:$0xff]  }
 0xb29   :  { %19438 = vmatpush3.bf16.msra.mxu1 %v20608_v41  ;;  %v20653_v41 = vld [vmem:[%s28090_s4 + $0x220] ss:$16 sps:$4 sm:$0xff]  }
 0xb2a   :  { %v19426_v42 = vpop.f32.mrf.mxu1  ;;  %4952 = vmatmul.mubr.bf16.vlgmr.msra.gmra.mxu0 %v4782_v32  ;;  %19439 = vmatprep.subr.bf16.mxu1 %v22429_v33  ;;  %v17737_v32 = vld [vmem:[%s28100_s9] ss:$0 sm:$0xff] }
 0xb2b   :  { %5686 = vmatpush1.bf16.msra.mxu0 %v20561_v18  ;;  %5717 = vmatprep.mubr.bf16.mxu0 %v24196_v12 }
 0xb2c   :  { %5687 = vmatprep.subr.bf16.mxu0 %v20566_v38 }
 0xb2d   :  { %19440 = vmatpush3.bf16.msra.mxu1 %v20612_v61  ;;  %v20664_v61 = vld [vmem:[%s28090_s4 + $0x20c] ss:$16 sps:$4 sm:$0xff]  }
 0xb2e   :  { %19441 = vmatprep.subr.bf16.mxu1 %v22429_v33 }
 0xb2f   :  { %5688 = vmatpush1.bf16.msra.mxu0 %v20564_v20 }
 0xb30   :  { %5689 = vmatprep.subr.bf16.mxu0 %v20569_v44 }
 0xb31   :  { %19442 = vmatpush3.bf16.msra.mxu1 %v20616_v60  ;;  %v20667_v60 = vld [vmem:[%s28090_s4 + $0xec] ss:$16 sps:$4 sm:$0xff]  }
 0xb32   :  { %5726 = vmatprep.subr.bf16.mxu1 %v20619_v17  ;;  %v20670_v17 = vld [vmem:[%s28090_s4 + $0xcc] ss:$16 sps:$4 sm:$0xff]  }
 0xb33   :  { %5690 = vmatpush1.bf16.msra.mxu0 %v20567_v34  ;;  %v20617_v34 = vld [vmem:[%s28090_s4 + $0x2e0] ss:$16 sps:$4 sm:$0xff]  }
 0xb34   :  { %5691 = vmatprep.subr.bf16.mxu0 %v20572_v19  ;;  %v20620_v19 = vld [vmem:[%s28090_s4 + $0x2e8] ss:$16 sps:$4 sm:$0xff]  }
 0xb37   :  { %5692 = vmatpush1.bf16.msra.mxu0 %v20570_v45 }
 0xb38   :  { %5693 = vmatprep.subr.bf16.mxu0 %v20575_v26  ;;  %v20625_v26 = vld [vmem:[%s28090_s4 + $0x2c4] ss:$16 sps:$4 sm:$0xff]  }
 0xb3b   :  { %5694 = vmatpush1.bf16.msra.mxu0 %v20573_v58  ;;  %v20628_v58 = vld [vmem:[%s28090_s4 + $0x2cc] ss:$16 sps:$4 sm:$0xff]  }
 0xb3c   :  { %5695 = vmatprep.subr.bf16.mxu0 %v20578_v23  ;;  %v20623_v23 = vld [vmem:[%s28090_s4 + $0x2c0] ss:$16 sps:$4 sm:$0xff]  }
 0xb3f   :  { %5696 = vmatpush1.bf16.msra.mxu0 %v20576_v16  ;;  %v20626_v16 = vld [vmem:[%s28090_s4 + $0x2c8] ss:$16 sps:$4 sm:$0xff]  }
 0xb40   :  { %5697 = vmatprep.subr.bf16.mxu0 %v20581_v4  ;;  %v20631_v4 = vld [vmem:[%s28090_s4 + $0x2a4] ss:$16 sps:$4 sm:$0xff]  }
 0xb43   :  { %5698 = vmatpush1.bf16.msra.mxu0 %v20579_v11  ;;  %v20634_v11 = vld [vmem:[%s28090_s4 + $0x2ac] ss:$16 sps:$4 sm:$0xff]  }
 0xb44   :  { %5699 = vmatprep.subr.bf16.mxu0 %v20584_v51  ;;  %v20629_v51 = vld [vmem:[%s28090_s4 + $0x2a0] ss:$16 sps:$4 sm:$0xff]  }
 0xb47   :  { %5700 = vmatpush1.bf16.msra.mxu0 %v20582_v39  ;;  %v20632_v39 = vld [vmem:[%s28090_s4 + $0x2a8] ss:$16 sps:$4 sm:$0xff]  }
 0xb48   :  { %5701 = vmatprep.subr.bf16.mxu0 %v20587_v35  ;;  %v20637_v35 = vld [vmem:[%s28090_s4 + $0x284] ss:$16 sps:$4 sm:$0xff]  }
 0xb4b   :  { %5702 = vmatpush2.bf16.msra.mxu0 %v20585_v15  ;;  %v20640_v15 = vld [vmem:[%s28090_s4 + $0x28c] ss:$16 sps:$4 sm:$0xff]  }
 0xb4c   :  { %5703 = vmatprep.subr.bf16.mxu0 %v20591_v55  ;;  %v20635_v55 = vld [vmem:[%s28090_s4 + $0x280] ss:$16 sps:$4 sm:$0xff]  }
 0xb4f   :  { %5704 = vmatpush2.bf16.msra.mxu0 %v20589_v24  ;;  %v20638_v24 = vld [vmem:[%s28090_s4 + $0x288] ss:$16 sps:$4 sm:$0xff]  }
 0xb50   :  { %5705 = vmatprep.subr.bf16.mxu0 %v20595_v57  ;;  %v20643_v57 = vld [vmem:[%s28090_s4 + $0x264] ss:$16 sps:$4 sm:$0xff]  }
 0xb53   :  { %5706 = vmatpush2.bf16.msra.mxu0 %v20593_v37  ;;  %v20646_v37 = vld [vmem:[%s28090_s4 + $0x26c] ss:$16 sps:$4 sm:$0xff]  }
 0xb54   :  { %5707 = vmatprep.subr.bf16.mxu0 %v20599_v48  ;;  %v20641_v48 = vld [vmem:[%s28090_s4 + $0x260] ss:$16 sps:$4 sm:$0xff]  }
 0xb57   :  { %5708 = vmatpush2.bf16.msra.mxu0 %v20597_v30  ;;  %v20644_v30 = vld [vmem:[%s28090_s4 + $0x268] ss:$16 sps:$4 sm:$0xff]  }
 0xb58   :  { %5709 = vmatprep.subr.bf16.mxu0 %v20603_v59  ;;  %v20652_v59 = vld [vmem:[%s28090_s4 + $0x24c] ss:$16 sps:$4 sm:$0xff]  }
 0xb5b   :  { %5710 = vmatpush2.bf16.msra.mxu0 %v20601_v43  ;;  %v20647_v43 = vld [vmem:[%s28090_s4 + $0x240] ss:$16 sps:$4 sm:$0xff]  }
 0xb5c   :  { %5711 = vmatprep.subr.bf16.mxu0 %v20607_v40  ;;  %v20655_v40 = vld [vmem:[%s28090_s4 + $0x224] ss:$16 sps:$4 sm:$0xff]  }
 0xb5f   :  { %5712 = vmatpush2.bf16.msra.mxu0 %v20605_v29  ;;  %v20658_v29 = vld [vmem:[%s28090_s4 + $0x22c] ss:$16 sps:$4 sm:$0xff]  }
 0xb60   :  { %5713 = vmatprep.subr.bf16.mxu0 %v20611_v31  ;;  %v20656_v31 = vld [vmem:[%s28090_s4 + $0x228] ss:$16 sps:$4 sm:$0xff]  }
 0xb63   :  { %5714 = vmatpush2.bf16.msra.mxu0 %v20609_v36  ;;  %v20661_v36 = vld [vmem:[%s28090_s4 + $0x204] ss:$16 sps:$4 sm:$0xff]  }
 0xb64   :  { %5715 = vmatprep.subr.bf16.mxu0 %v20615_v3  ;;  %v20659_v3 = vld [vmem:[%s28090_s4 + $0x200] ss:$16 sps:$4 sm:$0xff]  }
 0xb67   :  { %5716 = vmatpush2.bf16.msra.mxu0 %v20613_v7  ;;  %v20662_v7 = vld [vmem:[%s28090_s4 + $0x208] ss:$16 sps:$4 sm:$0xff]  }
 0xb68   :  { %5808 = vmatprep.subr.bf16.mxu0 %v20622_v9  ;;  %v20668_v9 = vld [vmem:[%s28090_s4 + $0xc8] ss:$16 sps:$4 sm:$0xff]  }
 0xbea   :  { %v18885_v18 = vpop.f32.mrf.mxu0 }
 0xbec   :  { %v18886_v25 = vpop.f32.mrf.mxu0 }
 0xbed   :  { %v18887_v28 = vadd.f32 %v18886_v25, %v18885_v18  ;;  %v20673_v18 = vld [vmem:[%s28090_s4 + $0xac] ss:$16 sps:$4 sm:$0xff]   ;;  %v20674_v25 = vld [vmem:[%s28090_s4 + $0x88] ss:$16 sps:$4 sm:$0xff]  }
 0xbee   :  { %v18888_v38 = vpop.f32.mrf.mxu0 }
 0xbef   :  { %v4954_v42 = vadd.f32 %v18887_v28, %v17737_v32  ;;  %v20671_v32 = vld [vmem:[%s28090_s4 + $0xa8] ss:$16 sps:$4 sm:$0xff]   ;;  %v20682_v38 = vld [vmem:[%s28090_s4 + $0x4c] ss:$16 sps:$4 sm:$0xff]  }
 0xbf0   :  { %v18889_v20 = vpop.f32.mrf.mxu0  ;;  %v20677_v28 = vld [vmem:[%s28090_s4 + $0x68] ss:$16 sps:$4 sm:$0xff]  }
 0xbf1   :  { %22019 = vtanh.f32 %v4954_v42  ;;  %v20680_v42 = vld [vmem:[%s28090_s4 + $0x48] ss:$16 sps:$4 sm:$0xff]   ;;  %v20685_v20 = vld [vmem:[%s28090_s4 + $0x2c] ss:$16 sps:$4 sm:$0xff]  }
 0xbfe   :  { %v22020_v44 = vpop.eup %22019 }
 0xbff   :  { %v24214_v45 = vpack.c.bf16 %v22020_v44, %v22020_v44  ;;  %v20683_v44 = vld [vmem:[%s28090_s4 + $0x28] ss:$16 sps:$4 sm:$0xff]  }
 0xc01   :  { %19444 = vmatmul.mubr.bf16.vlgmr.msra.gmra.mxu1 %v24214_v45  ;;  %5718 = vmatmul.mubr.bf16.vlgmr.msra.gmra.mxu0 %v24214_v45 }
 0xc02   :  { %5727 = vmatpush1.bf16.msra.mxu1 %v20617_v34  ;;  %5809 = vmatpush1.bf16.msra.mxu0 %v20620_v19  ;;  %v20688_v34 = vld [vmem:[%s28090_s4 + $0xc] ss:$16 sps:$4 sm:$0xff]   ;;  %v20686_v19 = vld [vmem:[%s28090_s4 + $0x8] ss:$16 sps:$4 sm:$0xff]  }
 0xc03   :  { %5728 = vmatprep.subr.bf16.mxu1 %v20625_v26  ;;  %5810 = vmatprep.subr.bf16.mxu0 %v20628_v58  ;;  %v20691_v26 = vld [vmem:[%s28090_s4 + $0x1ec] ss:$16 sps:$4 sm:$0xff]   ;;  %v20689_v58 = vld [vmem:[%s28090_s4 + $0x1e8] ss:$16 sps:$4 sm:$0xff]  }
 0xc04   :  { %5758 = vmatprep.mubr.bf16.mxu1 %v22427_v1  ;;  %5840 = vmatprep.mubr.bf16.mxu0 %v22427_v1 }
 0xc06   :  { %5729 = vmatpush1.bf16.msra.mxu1 %v20623_v23  ;;  %5811 = vmatpush1.bf16.msra.mxu0 %v20626_v16  ;;  %v20694_v23 = vld [vmem:[%s28090_s4 + $0x1cc] ss:$16 sps:$4 sm:$0xff]   ;;  %v20692_v16 = vld [vmem:[%s28090_s4 + $0x1c8] ss:$16 sps:$4 sm:$0xff]  }
 0xc07   :  { %5730 = vmatprep.subr.bf16.mxu1 %v20631_v4  ;;  %5812 = vmatprep.subr.bf16.mxu0 %v20634_v11  ;;  %v20697_v4 = vld [vmem:[%s28090_s4 + $0x1ac] ss:$16 sps:$4 sm:$0xff]   ;;  %v20695_v11 = vld [vmem:[%s28090_s4 + $0x1a8] ss:$16 sps:$4 sm:$0xff]  }
 0xc0a   :  { %5731 = vmatpush1.bf16.msra.mxu1 %v20629_v51  ;;  %5813 = vmatpush1.bf16.msra.mxu0 %v20632_v39  ;;  %v20700_v51 = vld [vmem:[%s28090_s4 + $0x18c] ss:$16 sps:$4 sm:$0xff]   ;;  %v20698_v39 = vld [vmem:[%s28090_s4 + $0x188] ss:$16 sps:$4 sm:$0xff]  }
 0xc0b   :  { %5732 = vmatprep.subr.bf16.mxu1 %v20637_v35  ;;  %5814 = vmatprep.subr.bf16.mxu0 %v20640_v15  ;;  %v20703_v35 = vld [vmem:[%s28090_s4 + $0x16c] ss:$16 sps:$4 sm:$0xff]   ;;  %v20701_v15 = vld [vmem:[%s28090_s4 + $0x168] ss:$16 sps:$4 sm:$0xff]  }
 0xc0e   :  { %5733 = vmatpush1.bf16.msra.mxu1 %v20635_v55  ;;  %5815 = vmatpush1.bf16.msra.mxu0 %v20638_v24  ;;  %v20706_v55 = vld [vmem:[%s28090_s4 + $0x14c] ss:$16 sps:$4 sm:$0xff]   ;;  %v20704_v24 = vld [vmem:[%s28090_s4 + $0x148] ss:$16 sps:$4 sm:$0xff]  }
 0xc0f   :  { %5734 = vmatprep.subr.bf16.mxu1 %v20643_v57  ;;  %5816 = vmatprep.subr.bf16.mxu0 %v20646_v37  ;;  %v20709_v57 = vld [vmem:[%s28090_s4 + $0x12c] ss:$16 sps:$4 sm:$0xff]   ;;  %v20707_v37 = vld [vmem:[%s28090_s4 + $0x128] ss:$16 sps:$4 sm:$0xff]  }
 0xc12   :  { %5735 = vmatpush1.bf16.msra.mxu1 %v20641_v48  ;;  %5817 = vmatpush1.bf16.msra.mxu0 %v20644_v30  ;;  %v20712_v48 = vld [vmem:[%s28090_s4 + $0x10c] ss:$16 sps:$4 sm:$0xff]   ;;  %v20710_v30 = vld [vmem:[%s28090_s4 + $0x108] ss:$16 sps:$4 sm:$0xff]  }
 0xc13   :  { %5736 = vmatprep.subr.bf16.mxu1 %v20649_v56  ;;  %5818 = vmatprep.subr.bf16.mxu0 %v20652_v59  ;;  %v20713_v56 = vld [vmem:[%s28093_s6 + $0xe0] ss:$16 sps:$4 sm:$0xff]   ;;  %v20715_v59 = vld [vmem:[%s28093_s6 + $0xe4] ss:$16 sps:$4 sm:$0xff]  }
 0xc16   :  { %5737 = vmatpush1.bf16.msra.mxu1 %v20647_v43  ;;  %5819 = vmatpush1.bf16.msra.mxu0 %v20650_v13  ;;  %v20716_v43 = vld [vmem:[%s28093_s6 + $0xe8] ss:$16 sps:$4 sm:$0xff]   ;;  %v20718_v13 = vld [vmem:[%s28093_s6 + $0xec] ss:$16 sps:$4 sm:$0xff]  }
 0xc17   :  { %5738 = vmatprep.subr.bf16.mxu1 %v20655_v40  ;;  %5820 = vmatprep.subr.bf16.mxu0 %v20658_v29  ;;  %v20719_v40 = vld [vmem:[%s28093_s6 + $0xc0] ss:$16 sps:$4 sm:$0xff]   ;;  %v20722_v29 = vld [vmem:[%s28093_s6 + $0xc8] ss:$16 sps:$4 sm:$0xff]  }
 0xc1a   :  { %5739 = vmatpush1.bf16.msra.mxu1 %v20653_v41  ;;  %5821 = vmatpush1.bf16.msra.mxu0 %v20656_v31  ;;  %v20727_v41 = vld [vmem:[%s28093_s6 + $0xa4] ss:$16 sps:$4 sm:$0xff]   ;;  %v20730_v31 = vld [vmem:[%s28093_s6 + $0xac] ss:$16 sps:$4 sm:$0xff]  }
 0xc1b   :  { %5740 = vmatprep.subr.bf16.mxu1 %v20661_v36  ;;  %5822 = vmatprep.subr.bf16.mxu0 %v20664_v61  ;;  %v20725_v36 = vld [vmem:[%s28093_s6 + $0xa0] ss:$16 sps:$4 sm:$0xff]   ;;  %v20728_v61 = vld [vmem:[%s28093_s6 + $0xa8] ss:$16 sps:$4 sm:$0xff]  }
 0xc1e   :  { %5741 = vmatpush1.bf16.msra.mxu1 %v20659_v3  ;;  %5823 = vmatpush1.bf16.msra.mxu0 %v20662_v7  ;;  %v20733_v3 = vld [vmem:[%s28093_s6 + $0x84] ss:$16 sps:$4 sm:$0xff]   ;;  %v20736_v7 = vld [vmem:[%s28093_s6 + $0x8c] ss:$16 sps:$4 sm:$0xff]  }
 0xc1f   :  { %5767 = vmatprep.subr.bf16.mxu1 %v20667_v60  ;;  %6280 = vmatprep.subr.bf16.mxu0 %v20715_v59  ;;  %v20731_v60 = vld [vmem:[%s28093_s6 + $0x80] ss:$16 sps:$4 sm:$0xff]   ;;  %v20782_v59 = vld [vmem:[%s28093_s6 + $0x188] ss:$16 sps:$4 sm:$0xff]  }
 0xc21   :  { %5759 = vmatmul.mubr.bf16.vlgmr.msra.gmra.mxu1 %v23835_v21  ;;  %5841 = vmatmul.mubr.bf16.vlgmr.msra.gmra.mxu0 %v23835_v21  ;;  %v20676_v21 = vld [vmem:[%s28090_s4 + $0x8c] ss:$16 sps:$4 sm:$0xff]  }
 0xc22   :  { %5768 = vmatpush1.bf16.msra.mxu1 %v20665_v8  ;;  %6312 = vmatprep.mubr.bf16.mxu0 %v24004_v47  ;;  %v20734_v8 = vld [vmem:[%s28093_s6 + $0x88] ss:$16 sps:$4 sm:$0xff]  }
 0xc23   :  { %5769 = vmatprep.subr.bf16.mxu1 %v20670_v17  ;;  %5799 = vmatprep.mubr.bf16.mxu1 %v24196_v12  ;;  %v20679_v12 = vld [vmem:[%s28090_s4 + $0x6c] ss:$16 sps:$4 sm:$0xff]   ;;  %v20739_v17 = vld [vmem:[%s28093_s6 + $0x64] ss:$16 sps:$4 sm:$0xff]  }
 0xc24   :  { %6281 = vmatpush1.bf16.msra.mxu0 %v20713_v56  ;;  %v20779_v56 = vld [vmem:[%s28093_s6 + $0x180] ss:$16 sps:$4 sm:$0xff]  }
 0xc26   :  { %5770 = vmatpush1.bf16.msra.mxu1 %v20668_v9  ;;  %v20742_v9 = vld [vmem:[%s28093_s6 + $0x6c] ss:$16 sps:$4 sm:$0xff]  }
 0xc27   :  { %5771 = vmatprep.subr.bf16.mxu1 %v20673_v18  ;;  %v20737_v18 = vld [vmem:[%s28093_s6 + $0x60] ss:$16 sps:$4 sm:$0xff]  }
 0xc2a   :  { %5772 = vmatpush1.bf16.msra.mxu1 %v20671_v32  ;;  %v20740_v32 = vld [vmem:[%s28093_s6 + $0x68] ss:$16 sps:$4 sm:$0xff]  }
 0xc2b   :  { %5773 = vmatprep.subr.bf16.mxu1 %v20676_v21  ;;  %v20745_v21 = vld [vmem:[%s28093_s6 + $0x44] ss:$16 sps:$4 sm:$0xff]  }
 0xc2e   :  { %5774 = vmatpush1.bf16.msra.mxu1 %v20674_v25  ;;  %v20748_v25 = vld [vmem:[%s28093_s6 + $0x4c] ss:$16 sps:$4 sm:$0xff]  }
 0xc2f   :  { %5775 = vmatprep.subr.bf16.mxu1 %v20679_v12  ;;  %v20743_v12 = vld [vmem:[%s28093_s6 + $0x40] ss:$16 sps:$4 sm:$0xff]  }
 0xc32   :  { %5776 = vmatpush1.bf16.msra.mxu1 %v20677_v28  ;;  %v20746_v28 = vld [vmem:[%s28093_s6 + $0x48] ss:$16 sps:$4 sm:$0xff]  }
 0xc33   :  { %5777 = vmatprep.subr.bf16.mxu1 %v20682_v38  ;;  %v20751_v38 = vld [vmem:[%s28093_s6 + $0x24] ss:$16 sps:$4 sm:$0xff]  }
 0xc36   :  { %5778 = vmatpush1.bf16.msra.mxu1 %v20680_v42  ;;  %v20754_v42 = vld [vmem:[%s28093_s6 + $0x2c] ss:$16 sps:$4 sm:$0xff]  }
 0xc37   :  { %5779 = vmatprep.subr.bf16.mxu1 %v20685_v20  ;;  %v20749_v20 = vld [vmem:[%s28093_s6 + $0x20] ss:$16 sps:$4 sm:$0xff]  }
 0xc3a   :  { %5780 = vmatpush1.bf16.msra.mxu1 %v20683_v44  ;;  %v20752_v44 = vld [vmem:[%s28093_s6 + $0x28] ss:$16 sps:$4 sm:$0xff]  }
 0xc3b   :  { %5781 = vmatprep.subr.bf16.mxu1 %v20688_v34  ;;  %v20757_v34 = vld [vmem:[%s28093_s6 + $0x4] ss:$16 sps:$4 sm:$0xff]  }
 0xc3e   :  { %5782 = vmatpush1.bf16.msra.mxu1 %v20686_v19  ;;  %v20760_v19 = vld [vmem:[%s28093_s6 + $0xc] ss:$16 sps:$4 sm:$0xff]  }
 0xc3f   :  { %5783 = vmatprep.subr.bf16.mxu1 %v20691_v26  ;;  %v20755_v26 = vld [vmem:[%s28093_s6] ss:$16 sps:$4 sm:$0xff]  }
 0xc42   :  { %5784 = vmatpush2.bf16.msra.mxu1 %v20689_v58  ;;  %v20758_v58 = vld [vmem:[%s28093_s6 + $0x8] ss:$16 sps:$4 sm:$0xff]  }
 0xc43   :  { %5785 = vmatprep.subr.bf16.mxu1 %v20694_v23  ;;  %v20763_v23 = vld [vmem:[%s28093_s6 + $0x1e4] ss:$16 sps:$4 sm:$0xff]  }
 0xc46   :  { %5786 = vmatpush2.bf16.msra.mxu1 %v20692_v16  ;;  %v20766_v16 = vld [vmem:[%s28093_s6 + $0x1ec] ss:$16 sps:$4 sm:$0xff]  }
 0xc47   :  { %5787 = vmatprep.subr.bf16.mxu1 %v20697_v4  ;;  %v20761_v4 = vld [vmem:[%s28093_s6 + $0x1e0] ss:$16 sps:$4 sm:$0xff]  }
 0xc4a   :  { %5788 = vmatpush2.bf16.msra.mxu1 %v20695_v11  ;;  %v20764_v11 = vld [vmem:[%s28093_s6 + $0x1e8] ss:$16 sps:$4 sm:$0xff]  }
 0xc4b   :  { %5789 = vmatprep.subr.bf16.mxu1 %v20700_v51  ;;  %v20769_v51 = vld [vmem:[%s28093_s6 + $0x1c4] ss:$16 sps:$4 sm:$0xff]  }
 0xc4e   :  { %5790 = vmatpush2.bf16.msra.mxu1 %v20698_v39  ;;  %v20772_v39 = vld [vmem:[%s28093_s6 + $0x1cc] ss:$16 sps:$4 sm:$0xff]  }
 0xc4f   :  { %5791 = vmatprep.subr.bf16.mxu1 %v20703_v35  ;;  %v20767_v35 = vld [vmem:[%s28093_s6 + $0x1c0] ss:$16 sps:$4 sm:$0xff]  }
 0xc52   :  { %5792 = vmatpush2.bf16.msra.mxu1 %v20701_v15  ;;  %v20770_v15 = vld [vmem:[%s28093_s6 + $0x1c8] ss:$16 sps:$4 sm:$0xff]  }
 0xc53   :  { %5793 = vmatprep.subr.bf16.mxu1 %v20706_v55  ;;  %v20775_v55 = vld [vmem:[%s28093_s6 + $0x1a4] ss:$16 sps:$4 sm:$0xff]  }
 0xc56   :  { %5794 = vmatpush2.bf16.msra.mxu1 %v20704_v24  ;;  %v20778_v24 = vld [vmem:[%s28093_s6 + $0x1ac] ss:$16 sps:$4 sm:$0xff]  }
 0xc57   :  { %5795 = vmatprep.subr.bf16.mxu1 %v20709_v57  ;;  %v20773_v57 = vld [vmem:[%s28093_s6 + $0x1a0] ss:$16 sps:$4 sm:$0xff]  }
 0xc5a   :  { %5796 = vmatpush2.bf16.msra.mxu1 %v20707_v37  ;;  %v20776_v37 = vld [vmem:[%s28093_s6 + $0x1a8] ss:$16 sps:$4 sm:$0xff]  }
 0xc5b   :  { %5797 = vmatprep.subr.bf16.mxu1 %v20712_v48  ;;  %v20781_v48 = vld [vmem:[%s28093_s6 + $0x184] ss:$16 sps:$4 sm:$0xff]  }
 0xc5e   :  { %5798 = vmatpush2.bf16.msra.mxu1 %v20710_v30  ;;  %v20784_v30 = vld [vmem:[%s28093_s6 + $0x18c] ss:$16 sps:$4 sm:$0xff]  }
 0xc5f   :  { %6321 = vmatprep.subr.bf16.mxu1 %v20718_v13  ;;  %v20787_v13 = vld [vmem:[%s28093_s6 + $0x164] ss:$16 sps:$4 sm:$0xff]  }
 0xc61   :  { %5800 = vmatmul.mubr.bf16.vlgmr.msra.gmra.mxu1 %v24214_v45  ;;  %v20724_v45 = vld [vmem:[%s28093_s6 + $0xcc] ss:$16 sps:$4 sm:$0xff]  }
 0xc62   :  { %6353 = vmatprep.mubr.bf16.mxu1 %v24004_v47  ;;  %v20721_v47 = vld [vmem:[%s28093_s6 + $0xc4] ss:$16 sps:$4 sm:$0xff]   ;;  %6322 = vmatpush1.bf16.msra.mxu1 %v20716_v43  ;;  %v20785_v43 = vld [vmem:[%s28093_s6 + $0x160] ss:$16 sps:$4 sm:$0xff]  }
 0xc63   :  { %6282 = vmatprep.subr.bf16.mxu0 %v20721_v47  ;;  %6323 = vmatprep.subr.bf16.mxu1 %v20724_v45  ;;  %v20788_v47 = vld [vmem:[%s28093_s6 + $0x168] ss:$16 sps:$4 sm:$0xff]   ;;  %v20790_v45 = vld [vmem:[%s28093_s6 + $0x16c] ss:$16 sps:$4 sm:$0xff]  }
 0xc64   :  { %6283 = vmatpush1.bf16.msra.mxu0 %v20719_v40  ;;  %v20793_v40 = vld [vmem:[%s28093_s6 + $0x144] ss:$16 sps:$4 sm:$0xff]  }
 0xc65   :  { %6284 = vmatprep.subr.bf16.mxu0 %v20727_v41  ;;  %v20791_v41 = vld [vmem:[%s28093_s6 + $0x140] ss:$16 sps:$4 sm:$0xff]  }
 0xc66   :  { %6324 = vmatpush1.bf16.msra.mxu1 %v20722_v29  ;;  %v20796_v29 = vld [vmem:[%s28093_s6 + $0x14c] ss:$16 sps:$4 sm:$0xff]  }
 0xc67   :  { %6325 = vmatprep.subr.bf16.mxu1 %v20730_v31  ;;  %v20794_v31 = vld [vmem:[%s28093_s6 + $0x148] ss:$16 sps:$4 sm:$0xff]  }
 0xc68   :  { %6285 = vmatpush1.bf16.msra.mxu0 %v20725_v36  ;;  %v20799_v36 = vld [vmem:[%s28093_s6 + $0x124] ss:$16 sps:$4 sm:$0xff]  }
 0xc69   :  { %6286 = vmatprep.subr.bf16.mxu0 %v20733_v3 }
 0xc6a   :  { %6326 = vmatpush1.bf16.msra.mxu1 %v20728_v61  ;;  %v20802_v61 = vld [vmem:[%s28093_s6 + $0x12c] ss:$16 sps:$4 sm:$0xff]  }
 0xc6b   :  { %6327 = vmatprep.subr.bf16.mxu1 %v20736_v7 }
 0xc6c   :  { %6287 = vmatpush1.bf16.msra.mxu0 %v20731_v60  ;;  %v20797_v60 = vld [vmem:[%s28093_s6 + $0x120] ss:$16 sps:$4 sm:$0xff]  }
 0xc6d   :  { %6288 = vmatprep.subr.bf16.mxu0 %v20739_v17  ;;  %v20805_v17 = vld [vmem:[%s28093_s6 + $0x104] ss:$16 sps:$4 sm:$0xff]  }
 0xc6e   :  { %6328 = vmatpush1.bf16.msra.mxu1 %v20734_v8  ;;  %v20800_v8 = vld [vmem:[%s28093_s6 + $0x128] ss:$16 sps:$4 sm:$0xff]  }
 0xc6f   :  { %6329 = vmatprep.subr.bf16.mxu1 %v20742_v9 }
 0xc70   :  { %6289 = vmatpush1.bf16.msra.mxu0 %v20737_v18 }
 0xc71   :  { %6290 = vmatprep.subr.bf16.mxu0 %v20745_v21 }
 0xc72   :  { %6330 = vmatpush1.bf16.msra.mxu1 %v20740_v32  ;;  %v20808_v32 = vld [vmem:[%s28093_s6 + $0x10c] ss:$16 sps:$4 sm:$0xff]  }
 0xc73   :  { %6331 = vmatprep.subr.bf16.mxu1 %v20748_v25 }
 0xc74   :  { %6291 = vmatpush1.bf16.msra.mxu0 %v20743_v12  ;;  %v20803_v12 = vld [vmem:[%s28093_s6 + $0x100] ss:$16 sps:$4 sm:$0xff]  }
 0xc75   :  { %6292 = vmatprep.subr.bf16.mxu0 %v20751_v38 }
 0xc76   :  { %6332 = vmatpush1.bf16.msra.mxu1 %v20746_v28  ;;  %v20806_v28 = vld [vmem:[%s28093_s6 + $0x108] ss:$16 sps:$4 sm:$0xff]  }
 0xc77   :  { %6333 = vmatprep.subr.bf16.mxu1 %v20754_v42 }
 0xc78   :  { %6293 = vmatpush1.bf16.msra.mxu0 %v20749_v20 }
 0xc79   :  { %6294 = vmatprep.subr.bf16.mxu0 %v20757_v34 }
 0xc7a   :  { %6334 = vmatpush1.bf16.msra.mxu1 %v20752_v44 }
 0xc7b   :  { %6335 = vmatprep.subr.bf16.mxu1 %v20760_v19 }
 0xc7c   :  { %6295 = vmatpush1.bf16.msra.mxu0 %v20755_v26 }
 0xc7d   :  { %6296 = vmatprep.subr.bf16.mxu0 %v20763_v23 }
 0xc7e   :  { %6336 = vmatpush1.bf16.msra.mxu1 %v20758_v58 }
 0xc7f   :  { %6337 = vmatprep.subr.bf16.mxu1 %v20766_v16 }
 0xc80   :  { %6297 = vmatpush2.bf16.msra.mxu0 %v20761_v4  ;;  %v5183_v4 = vld [vmem:[%s28094_s5] sm:$0xf] }
 0xc81   :  { %6298 = vmatprep.subr.bf16.mxu0 %v20769_v51  ;;  %v5188_v51 = vrot.slane %v5183_v4, %v23001_v50 }
 0xc82   :  { %6338 = vmatpush2.bf16.msra.mxu1 %v20764_v11  ;;  %v5192_v11 = vrot.slane %v5183_v4, %v22998_v49 }
 0xc83   :  { %6339 = vmatprep.subr.bf16.mxu1 %v20772_v39 }
 0xc84   :  { %6299 = vmatpush2.bf16.msra.mxu0 %v20767_v35 }
 0xc85   :  { %6300 = vmatprep.subr.bf16.mxu0 %v20775_v55 }
 0xc86   :  { %6340 = vmatpush2.bf16.msra.mxu1 %v20770_v15 }
 0xc87   :  { %6341 = vmatprep.subr.bf16.mxu1 %v20778_v24 }
 0xc88   :  { %6301 = vmatpush2.bf16.msra.mxu0 %v20773_v57 }
 0xc89   :  { %6302 = vmatprep.subr.bf16.mxu0 %v20781_v48 }
 0xc8a   :  { %6342 = vmatpush2.bf16.msra.mxu1 %v20776_v37 }
 0xc8b   :  { %6343 = vmatprep.subr.bf16.mxu1 %v20784_v30  ;;  %v5196_v30 = vrot.slane %v5183_v4, %v23006_v63 }
 0xc8c   :  { %6303 = vmatpush2.bf16.msra.mxu0 %v20779_v56 }
 0xc8d   :  { %6304 = vmatprep.subr.bf16.mxu0 %v20787_v13 }
 0xc8e   :  { %6344 = vmatpush2.bf16.msra.mxu1 %v20782_v59  ;;  %v5200_v59 = vrot.slane %v5183_v4, %v23009_v0 }
 0xc8f   :  { %6345 = vmatprep.subr.bf16.mxu1 %v20790_v45 }
 0xc90   :  { %6305 = vmatpush2.bf16.msra.mxu0 %v20785_v43 }
 0xc91   :  { %6306 = vmatprep.subr.bf16.mxu0 %v20793_v40 }
 0xc92   :  { %6346 = vmatpush2.bf16.msra.mxu1 %v20788_v47 }
 0xc93   :  { %6347 = vmatprep.subr.bf16.mxu1 %v20796_v29 }
 0xc94   :  { %6307 = vmatpush2.bf16.msra.mxu0 %v20791_v41 }
 0xc95   :  { %6308 = vmatprep.subr.bf16.mxu0 %v20799_v36 }
 0xc96   :  { %6348 = vmatpush2.bf16.msra.mxu1 %v20794_v31 }
 0xc97   :  { %6349 = vmatprep.subr.bf16.mxu1 %v20802_v61 }
 0xc98   :  { %6309 = vmatpush2.bf16.msra.mxu0 %v20797_v60 }
 0xc99   :  { %6310 = vmatprep.subr.bf16.mxu0 %v20805_v17 }
 0xc9a   :  { %6350 = vmatpush2.bf16.msra.mxu1 %v20800_v8 }
 0xc9b   :  { %6351 = vmatprep.subr.bf16.mxu1 %v20808_v32 }
 0xc9c   :  { %6311 = vmatpush2.bf16.msra.mxu0 %v20803_v12 }
 0xc9d   :  { %19447 = vmatprep.subr.bf16.mxu0 %v22429_v33 }
 0xc9e   :  { %6352 = vmatpush2.bf16.msra.mxu1 %v20806_v28 }
 0xc9f   :  { %19453 = vmatprep.subr.bf16.mxu1 %v22429_v33 }
 0xcc1   :  { %v24580_v3 = vpop.f32.mrf.mxu1  ;;  %v5719_v7 = vpop.f32.mrf.mxu0 }
 0xcc2   :  { %v5720_v35 = vadd.f32 %v5719_v7, %v5188_v51 }
 0xcc3   :  { %v19445_v9 = vpop.f32.mrf.mxu1  ;;  %v5721_v18 = vpop.f32.mrf.mxu0 }
 0xcc4   :  { %v5722_v39 = vadd.f32 %v5721_v18, %v5192_v11 }
 0xcc5   :  { %v5069_v21 = vpop.f32.mrf.mxu1  ;;  %v5723_v25 = vpop.f32.mrf.mxu0 }
 0xcc7   :  { %v19446_v38 = vpop.f32.mrf.mxu1  ;;  %v5724_v42 = vpop.f32.mrf.mxu0 }
 0xcc8   :  { %v24626_v42 = vld [vmem:[%s28095_s1 + $0x8] sm:$0xff]  }
 0xce1   :  { %v5760_v20 = vpop.f32.mrf.mxu1  ;;  %v5842_v44 = vpop.f32.mrf.mxu0 }
 0xce2   :  { %v5761_v55 = vadd.f32 %v5760_v20, %v5720_v35  ;;  %v5938_v20 = vld [vmem:[%s28096_s7] sm:$0xf] }
 0xce3   :  { %v5762_v34 = vpop.f32.mrf.mxu1  ;;  %v5844_v19 = vpop.f32.mrf.mxu0 }
 0xce4   :  { %v5763_v15 = vadd.f32 %v5762_v34, %v5722_v39  ;;  %v17861_v57 = vmul.f32 -1.442695, %v5761_v55  ;;  %v5947_v34 = vrot.slane %v5938_v20, %v22998_v49 }
 0xce5   :  { %v5764_v26 = vpop.f32.mrf.mxu1  ;;  %v5846_v58 = vpop.f32.mrf.mxu0 }
 0xce6   :  { %v17862_v24 = vmul.f32 -1.442695, %v5763_v15 }
 0xce7   :  { %v5765_v23 = vpop.f32.mrf.mxu1  ;;  %v5847_v16 = vpop.f32.mrf.mxu0 }
 0xce8   :  { %22021 = vpow2.f32 %v17862_v24  ;;  %v5955_v24 = vrot.slane %v5938_v20, %v23009_v0 }
 0xce9   :  { %22023 = vpow2.f32 %v17861_v57 }
 0xcf5   :  { %v22022_v37 = vpop.eup %22021 }
 0xcf6   :  { %v22024_v48 = vpop.eup %22023  ;;  %v5858_v56 = vadd.f32 1.0, %v22022_v37  ;;  %v5951_v37 = vrot.slane %v5938_v20, %v23006_v63 }
 0xcf7   :  { %v5852_v43 = vadd.f32 1.0, %v22024_v48 }
 0xcf8   :  { %22025 = vrcp.f32 %v5858_v56 }
 0xcf9   :  { %22027 = vrcp.f32 %v5852_v43 }
 0xd05   :  { %v22026_v7 = vpop.eup %22025 }
 0xd06   :  { %v22028_v60 = vpop.eup %22027  ;;  %v5868_v17 = vmul.f32 %v22026_v7, %v23832_v10  ;;  %v24620_v10 = vld [vmem:[%s28095_s1] sm:$0xff]  }
 0xd21   :  { %v5801_v13 = vpop.f32.mrf.mxu1 }
 0xd22   :  { %v5802_v47 = vadd.f32 %v5801_v13, %v5196_v30 }
 0xd23   :  { %v5803_v45 = vpop.f32.mrf.mxu1 }
 0xd24   :  { %v5843_v40 = vadd.f32 %v5842_v44, %v5802_v47  ;;  %v5804_v29 = vadd.f32 %v5803_v45, %v5200_v59  ;;  %v5943_v44 = vrot.slane %v5938_v20, %v23001_v50 }
 0xd25   :  { %v5805_v41 = vpop.f32.mrf.mxu1 }
 0xd26   :  { %22029 = vtanh.f32 %v5843_v40  ;;  %v5845_v31 = vadd.f32 %v5844_v19, %v5804_v29 }
 0xd27   :  { %v5806_v36 = vpop.f32.mrf.mxu1 }
 0xd28   :  { %v17863_v61 = vmul.f32 -1.442695, %v5845_v31 }
 0xd2a   :  { %22031 = vpow2.f32 %v17863_v61 }
 0xd33   :  { %v22030_v8 = vpop.eup %22029 }
 0xd34   :  { %v5869_v9 = vmul.f32 %v22030_v8, %v22028_v60 }
 0xd36   :  { %v24610_v18 = vadd.f32 %v5869_v9, %v5868_v17 }
 0xd37   :  { %v22032_v32 = vpop.eup %22031 }
 0xd38   :  { %v5865_v21 = vadd.f32 1.0, %v22032_v32  ;;  %22033 = vtanh.f32 %v24610_v18 }
 0xd3a   :  { %22035 = vrcp.f32 %v5865_v21 }
 0xd45   :  { %v22034_v25 = vpop.eup %22033 }
 0xd47   :  { %v22036_v12 = vpop.eup %22035 }
 0xd48   :  { %v5872_v28 = vmul.f32 %v22036_v12, %v22034_v25 }
 0xd4a   :  { %v24613_v38 = vpack.c.bf16 %v5872_v28, %v5872_v28  ;;  %v24657_v28 = vld [vmem:[%s28095_s1 + $0x10] sm:$0xff]  }
 0xd4c   :  { %6313 = vmatmul.mubr.bf16.vlgmr.msra.gmra.mxu0 %v24613_v38  ;;  %6354 = vmatmul.mubr.bf16.vlgmr.msra.gmra.mxu1 %v24613_v38 }
 0xd4d   :  { %19448 = vmatpush3.bf16.xpose.msra.mxu0 %v24620_v10  ;;  %19454 = vmatpush3.bf16.xpose.msra.mxu1 %v24626_v42 }
 0xd4e   :  { %19449 = vmatprep.mubr.msk.bf16.mxu0 %vm22430_vm0, %v22429_v33  ;;  %19459 = vmatprep.subr.bf16.mxu0 %v22429_v33 }
 0xd4f   :  { %19455 = vmatprep.mubr.msk.bf16.mxu1 %vm22430_vm0, %v22429_v33  ;;  %19465 = vmatprep.subr.bf16.mxu1 %v22429_v33 }
 0xe0c   :  { %v6314_v19 = vpop.f32.mrf.mxu0  ;;  %v6355_v26 = vpop.f32.mrf.mxu1 }
 0xe0d   :  { %v6315_v58 = vadd.f32 %v6314_v19, %v5943_v44  ;;  %v6356_v56 = vadd.f32 %v6355_v26, %v5951_v37  ;;  %v24666_v44 = vld [vmem:[%s28095_s1 + $0x18] sm:$0xff]  }
 0xe0e   :  { %v6316_v23 = vpop.f32.mrf.mxu0  ;;  %v6357_v16 = vpop.f32.mrf.mxu1 }
 0xe0f   :  { %v17928_v4 = vmul.f32 -1.442695, %v6315_v58  ;;  %v6317_v11 = vadd.f32 %v6316_v23, %v5947_v34  ;;  %v6358_v57 = vadd.f32 %v6357_v16, %v5955_v24  ;;  %v24676_v16 = vld [vmem:[%s28095_s1 + $0x20] sm:$0xff]   ;;  %v24705_v24 = vld [vmem:[%s28095_s1 + $0x38] sm:$0xff]  }
 0xe10   :  { %v6318_v51 = vpop.f32.mrf.mxu0  ;;  %v6359_v39 = vpop.f32.mrf.mxu1 }
 0xe11   :  { %22037 = vpow2.f32 %v17928_v4  ;;  %v17929_v35 = vmul.f32 -1.442695, %v6317_v11  ;;  %v17930_v48 = vmul.f32 -1.442695, %v6358_v57  ;;  %v24686_v11 = vld [vmem:[%s28095_s1 + $0x28] sm:$0xff]  }
 0xe12   :  { %v6319_v15 = vpop.f32.mrf.mxu0  ;;  %v6360_v55 = vpop.f32.mrf.mxu1 }
 0xe13   :  { %22039 = vpow2.f32 %v17929_v35  ;;  %v24696_v15 = vld [vmem:[%s28095_s1 + $0x30] sm:$0xff]  }
 0xe14   :  { %22041 = vpow2.f32 %v17930_v48 }
 0xe1e   :  { %v22038_v30 = vpop.eup %22037 }
 0xe1f   :  { %v6365_v59 = vadd.f32 1.0, %v22038_v30 }
 0xe20   :  { %v22040_v43 = vpop.eup %22039 }
 0xe21   :  { %22043 = vrcp.f32 %v6365_v59  ;;  %v6371_v13 = vadd.f32 1.0, %v22040_v43  ;;  %v22042_v47 = vpop.eup %22041 }
 0xe22   :  { %22045 = vtanh.f32 %v6356_v56  ;;  %v6378_v41 = vadd.f32 1.0, %v22042_v47 }
 0xe23   :  { %22047 = vrcp.f32 %v6371_v13 }
 0xe24   :  { %22049 = vrcp.f32 %v6378_v41 }
 0xe2e   :  { %v22044_v45 = vpop.eup %22043 }
 0xe2f   :  { %v22046_v40 = vpop.eup %22045 }
 0xe30   :  { %v22048_v29 = vpop.eup %22047  ;;  %v6382_v31 = vmul.f32 %v22046_v40, %v22044_v45 }
 0xe31   :  { %v6381_v36 = vmul.f32 %v22048_v29, %v23865_v62  ;;  %v22050_v7 = vpop.eup %22049 }
 0xe33   :  { %v24643_v61 = vadd.f32 %v6382_v31, %v6381_v36 }
 0xe35   :  { %22051 = vtanh.f32 %v24643_v61 }
 0xe42   :  { %v22052_v60 = vpop.eup %22051 }
 0xe43   :  { %v24646_v8 = vmul.f32 %v22052_v60, %v22050_v7 }
 0xe45   :  { %v6394_v17 = vrot.slane %v24646_v8, %v23051_v14  ;;  %v6387_v12 = vcombine.high %v24646_v8, %v24646_v8 }
 0xe47   :  { %v6410_v9 = vrot.slane %v6394_v17, %v23051_v14  ;;  %v6402_v32 = vcombine.high %v6394_v17, %v6394_v17  ;;  %v6401_v19 = vrot.slane %v6387_v12, %v23051_v14 }
 0xe49   :  { %v6444_v21 = vpack.c.bf16 %v6410_v9, %v6410_v9  ;;  %v6424_v25 = vrot.slane %v6402_v32, %v23051_v14  ;;  %v6432_v20 = vcombine.high %v6410_v9, %v6410_v9  ;;  %v6403_v23 = vcombine.high %v6401_v19, %v6401_v19 }
 0xe4a   :  { %v6417_v4 = vrot.slane %v6401_v19, %v23051_v14 }
 0xe4b   :  { %19450 = vmatmul.mubr.bf16.vlgmr.msra.gmra.mxu0 %v6444_v21  ;;  %v6445_v62 = vpack.c.bf16 %v6424_v25, %v6424_v25  ;;  %v6434_v34 = vcombine.high %v6424_v25, %v6424_v25  ;;  %v6446_v26 = vpack.c.bf16 %v6432_v20, %v6432_v20  ;;  %v6431_v51 = vrot.slane %v6403_v23, %v23051_v14 }
 0xe4c   :  { %19460 = vmatpush3.bf16.xpose.msra.mxu0 %v24657_v28  ;;  %19461 = vmatprep.mubr.msk.bf16.mxu0 %vm22430_vm0, %v22429_v33  ;;  %v6448_v39 = vpack.c.bf16 %v6417_v4, %v6417_v4  ;;  %v6433_v55 = vcombine.high %v6417_v4, %v6417_v4 }
 0xe4d   :  { %19456 = vmatmul.mubr.bf16.vlgmr.msra.gmra.mxu1 %v6445_v62  ;;  %19471 = vmatprep.subr.bf16.mxu0 %v22429_v33  ;;  %v6447_v58 = vpack.c.bf16 %v6434_v34, %v6434_v34  ;;  %v6449_v35 = vpack.c.bf16 %v6431_v51, %v6431_v51  ;;  %v6435_v57 = vcombine.high %v6431_v51, %v6431_v51 }
 0xe4e   :  { %19466 = vmatpush3.bf16.xpose.msra.mxu1 %v24666_v44  ;;  %19467 = vmatprep.mubr.msk.bf16.mxu1 %vm22430_vm0, %v22429_v33  ;;  %v6450_v37 = vpack.c.bf16 %v6433_v55, %v6433_v55 }
 0xe4f   :  { %19477 = vmatprep.subr.bf16.mxu1 %v22429_v33  ;;  %v6451_v48 = vpack.c.bf16 %v6435_v57, %v6435_v57 }
 0xe53   :  { %19462 = vmatmul.mubr.bf16.vlgmr.msra.gmra.mxu0 %v6446_v26 }
 0xe54   :  { %19472 = vmatpush3.bf16.xpose.msra.mxu0 %v24676_v16  ;;  %19473 = vmatprep.mubr.msk.bf16.mxu0 %vm22430_vm0, %v22429_v33 }
 0xe55   :  { %19468 = vmatmul.mubr.bf16.vlgmr.msra.gmra.mxu1 %v6447_v58  ;;  %19483 = vmatprep.subr.bf16.mxu0 %v22429_v33 }
 0xe56   :  { %19478 = vmatpush3.bf16.xpose.msra.mxu1 %v24686_v11  ;;  %19479 = vmatprep.mubr.msk.bf16.mxu1 %vm22430_vm0, %v22429_v33 }
 0xe57   :  { %19489 = vmatprep.subr.bf16.mxu1 %v22429_v33 }
 0xe5b   :  { %19474 = vmatmul.mubr.bf16.vlgmr.msra.gmra.mxu0 %v6448_v39 }
 0xe5c   :  { %19484 = vmatpush3.bf16.xpose.msra.mxu0 %v24696_v15  ;;  %19485 = vmatprep.mubr.msk.bf16.mxu0 %vm22430_vm0, %v22429_v33 }
 0xe5d   :  { %19480 = vmatmul.mubr.bf16.vlgmr.msra.gmra.mxu1 %v6449_v35  ;;  %19495 = vmatprep.subr.bf16.mxu0 %v22429_v33 }
 0xe5e   :  { %19490 = vmatpush3.bf16.xpose.msra.mxu1 %v24705_v24  ;;  %19491 = vmatprep.mubr.msk.bf16.mxu1 %vm22430_vm0, %v22429_v33 }
 0xe5f   :  { %19501 = vmatprep.subr.bf16.mxu1 %v22429_v33 }
 0xe63   :  { %19486 = vmatmul.mubr.bf16.vlgmr.msra.gmra.mxu0 %v6450_v37 }
 0xe64   :  { %19496 = vmatpush3.bf16.msra.mxu0 %v24620_v10  ;;  %19497 = vmatprep.mubr.msk.bf16.mxu0 %vm22430_vm0, %v22429_v33 }
 0xe65   :  { %19492 = vmatmul.mubr.bf16.vlgmr.msra.gmra.mxu1 %v6451_v48  ;;  %19507 = vmatprep.subr.bf16.mxu0 %v22429_v33 }
 0xe66   :  { %19502 = vmatpush3.bf16.msra.mxu1 %v24626_v42  ;;  %19503 = vmatprep.mubr.msk.bf16.mxu1 %vm22430_vm0, %v22429_v33 }
 0xe67   :  { %19513 = vmatprep.subr.bf16.mxu1 %v22429_v33 }
 0xf0b   :  { %v6486_v30 = vpop.f32.mrf.mxu0 }
 0xf0c   :  { %v6487_v56 = vadd.f32 %v6486_v30, %v23131_v53 }
 0xf0d   :  { %v19451_v59 = vpop.f32.mrf.mxu0  ;;  %v6526_v43 = vpop.f32.mrf.mxu1 }
 0xf0e   :  { %v6527_v10 = vadd.f32 %v6526_v43, %v23134_v54  ;;  %v6772_v13 = vsel %vm1858_vm1, %v6487_v56, -inf }
 0xf0f   :  { %6773 = vmax.xlane.f32.xlu0 %v6772_v13  ;;  %v6489_v47 = vpop.f32.mrf.mxu0  ;;  %v19457_v45 = vpop.f32.mrf.mxu1 }
 0xf10   :  { %v6775_v40 = vsel %vm1858_vm1, %v6527_v10, -inf }
 0xf11   :  { %v19452_v42 = vpop.f32.mrf.mxu0  ;;  %6776 = vmax.xlane.f32.xlu1 %v6775_v40  ;;  %v6529_v29 = vpop.f32.mrf.mxu1 }
 0xf13   :  { %v19458_v41 = vpop.f32.mrf.mxu1  ;;  %v6566_v31 = vpop.f32.mrf.mxu0 }
 0xf14   :  { %v6567_v36 = vadd.f32 %v6566_v31, %v23146_v2 }
 0xf15   :  { %v19463_v7 = vpop.f32.mrf.mxu0  ;;  %v6606_v60 = vpop.f32.mrf.mxu1 }
 0xf16   :  { %v6607_v17 = vadd.f32 %v6606_v60, %v23152_v6  ;;  %v6778_v9 = vsel %vm1858_vm1, %v6567_v36, -inf }
 0xf17   :  { %6779 = vmax.xlane.f32.xlu0 %v6778_v9  ;;  %v6569_v32 = vpop.f32.mrf.mxu0  ;;  %v19469_v21 = vpop.f32.mrf.mxu1 }
 0xf18   :  { %v6781_v25 = vsel %vm1858_vm1, %v6607_v17, -inf }
 0xf19   :  { %v19464_v62 = vpop.f32.mrf.mxu0  ;;  %6782 = vmax.xlane.f32.xlu1 %v6781_v25  ;;  %v6609_v12 = vpop.f32.mrf.mxu1 }
 0xf1b   :  { %v19470_v20 = vpop.f32.mrf.mxu1  ;;  %v6646_v34 = vpop.f32.mrf.mxu0 }
 0xf1c   :  { %v6647_v19 = vadd.f32 %v6646_v34, %v23159_v22 }
 0xf1d   :  { %v19475_v26 = vpop.f32.mrf.mxu0  ;;  %v6686_v58 = vpop.f32.mrf.mxu1 }
 0xf1e   :  { %v6687_v23 = vadd.f32 %v6686_v58, %v23163_v27  ;;  %v6784_v4 = vsel %vm1858_vm1, %v6647_v19, -inf }
 0xf1f   :  { %6785 = vmax.xlane.f32.xlu0 %v6784_v4  ;;  %v6649_v51 = vpop.f32.mrf.mxu0  ;;  %v19481_v39 = vpop.f32.mrf.mxu1 }
 0xf20   :  { %v6787_v35 = vsel %vm1858_vm1, %v6687_v23, -inf }
 0xf21   :  { %v19476_v55 = vpop.f32.mrf.mxu0  ;;  %6788 = vmax.xlane.f32.xlu1 %v6787_v35  ;;  %v6689_v57 = vpop.f32.mrf.mxu1 }
 0xf23   :  { %v19482_v37 = vpop.f32.mrf.mxu1  ;;  %v6726_v48 = vpop.f32.mrf.mxu0 }
 0xf24   :  { %v6727_v30 = vadd.f32 %v6726_v48, %v23171_v46 }
 0xf25   :  { %v19487_v59 = vpop.f32.mrf.mxu0  ;;  %v6766_v43 = vpop.f32.mrf.mxu1 }
 0xf26   :  { %v6767_v13 = vadd.f32 %v6766_v43, %v23175_v52  ;;  %v6790_v47 = vsel %vm1858_vm1, %v6727_v30, -inf }
 0xf27   :  { %6791 = vmax.xlane.f32.xlu0 %v6790_v47  ;;  %v6729_v45 = vpop.f32.mrf.mxu0  ;;  %v19493_v40 = vpop.f32.mrf.mxu1 }
 0xf28   :  { %v6793_v42 = vsel %vm1858_vm1, %v6767_v13, -inf }
 0xf29   :  { %v19488_v29 = vpop.f32.mrf.mxu0  ;;  %6794 = vmax.xlane.f32.xlu1 %v6793_v42  ;;  %v6769_v41 = vpop.f32.mrf.mxu1 }
 0xf2b   :  { %v19494_v31 = vpop.f32.mrf.mxu1 }
 0xf98   :  { %v6774_v7 = vpop.xlane.xlu0 %6773 }
 0xf99   :  { %v6796_v60 = vsub.f32 %v6487_v56, %v6774_v7 }
 0xf9a   :  { %v6777_v9 = vpop.xlane.xlu1 %6776 }
 0xf9b   :  { %v6804_v32 = vmul.f32 1.442695, %v6796_v60  ;;  %v6797_v21 = vsub.f32 %v6527_v10, %v6777_v9 }
 0xf9d   :  { %22053 = vpow2.f32 %v6804_v32  ;;  %v6806_v25 = vmul.f32 1.442695, %v6797_v21 }
 0xf9f   :  { %22055 = vpow2.f32 %v6806_v25 }
 0xfa0   :  { %v6780_v62 = vpop.xlane.xlu0 %6779 }
 0xfa1   :  { %v6798_v12 = vsub.f32 %v6567_v36, %v6780_v62 }
 0xfa2   :  { %v6783_v20 = vpop.xlane.xlu1 %6782 }
 0xfa3   :  { %v6808_v34 = vmul.f32 1.442695, %v6798_v12  ;;  %v6799_v26 = vsub.f32 %v6607_v17, %v6783_v20 }
 0xfa5   :  { %22057 = vpow2.f32 %v6808_v34  ;;  %v6810_v58 = vmul.f32 1.442695, %v6799_v26 }
 0xfa7   :  { %22059 = vpow2.f32 %v6810_v58 }
 0xfa8   :  { %v6786_v4 = vpop.xlane.xlu0 %6785 }
 0xfa9   :  { %v6800_v51 = vsub.f32 %v6647_v19, %v6786_v4 }
 0xfaa   :  { %v22054_v39 = vpop.eup %22053  ;;  %v6789_v35 = vpop.xlane.xlu1 %6788 }
 0xfab   :  { %v6812_v55 = vmul.f32 1.442695, %v6800_v51  ;;  %v6801_v56 = vsub.f32 %v6687_v23, %v6789_v35  ;;  %v6820_v57 = vsel %vm1858_vm1, %v22054_v39, 0.0 }
 0xfac   :  { %v22056_v10 = vpop.eup %22055  ;;  %6821 = vadd.xlane.f32.xlu0 %v6820_v57 }
 0xfad   :  { %22061 = vpow2.f32 %v6812_v55  ;;  %v6814_v37 = vmul.f32 1.442695, %v6801_v56  ;;  %v6823_v36 = vsel %vm1858_vm1, %v22056_v10, 0.0 }
 0xfae   :  { %6824 = vadd.xlane.f32.xlu1 %v6823_v36 }
 0xfaf   :  { %22063 = vpow2.f32 %v6814_v37 }
 0xfb0   :  { %v6792_v17 = vpop.xlane.xlu0 %6791 }
 0xfb1   :  { %v6802_v48 = vsub.f32 %v6727_v30, %v6792_v17 }
 0xfb2   :  { %v22058_v59 = vpop.eup %22057  ;;  %v6795_v43 = vpop.xlane.xlu1 %6794 }
 0xfb3   :  { %v6816_v47 = vmul.f32 1.442695, %v6802_v48  ;;  %v6803_v19 = vsub.f32 %v6767_v13, %v6795_v43  ;;  %v6826_v45 = vsel %vm1858_vm1, %v22058_v59, 0.0 }
 0xfb4   :  { %v22060_v40 = vpop.eup %22059  ;;  %6827 = vadd.xlane.f32.xlu0 %v6826_v45 }
 0xfb5   :  { %22065 = vpow2.f32 %v6816_v47  ;;  %v6818_v23 = vmul.f32 1.442695, %v6803_v19  ;;  %v6829_v42 = vsel %vm1858_vm1, %v22060_v40, 0.0 }
 0xfb6   :  { %6830 = vadd.xlane.f32.xlu1 %v6829_v42  ;;  %v20810_v42 = vld [vmem:[%s28098_s8 + $0x38] sm:$0xff]  }
 0xfb7   :  { %22067 = vpow2.f32 %v6818_v23 }
 0xfba   :  { %v22062_v29 = vpop.eup %22061 }
 0xfbb   :  { %v6832_v41 = vsel %vm1858_vm1, %v22062_v29, 0.0 }
 0xfbc   :  { %v22064_v31 = vpop.eup %22063  ;;  %6833 = vadd.xlane.f32.xlu0 %v6832_v41  ;;  %v20813_v41 = vld [vmem:[%s28098_s8 + $0x68] sm:$0xff]  }
 0xfbd   :  { %v6835_v30 = vsel %vm1858_vm1, %v22064_v31, 0.0 }
 0xfbe   :  { %6836 = vadd.xlane.f32.xlu1 %v6835_v30  ;;  %v20815_v30 = vld [vmem:[%s28098_s8 + $0x60] sm:$0xff]  }
 0xfc2   :  { %v24741_v7 = vpop.eup %22065 }
 0xfc3   :  { %v6838_v13 = vsel %vm1858_vm1, %v24741_v7, 0.0 }
 0xfc4   :  { %v24745_v60 = vpop.eup %22067  ;;  %6839 = vadd.xlane.f32.xlu0 %v6838_v13  ;;  %v20817_v13 = vld [vmem:[%s28098_s8 + $0x58] sm:$0xff]  }
 0xfc5   :  { %v6841_v9 = vsel %vm1858_vm1, %v24745_v60, 0.0 }
 0xfc6   :  { %6842 = vadd.xlane.f32.xlu1 %v6841_v9  ;;  %v20819_v9 = vld [vmem:[%s28098_s8 + $0x50] sm:$0xff]  }
0x1035   :  { %v6822_v32 = vpop.xlane.xlu0 %6821 }
0x1036   :  { %22069 = vrcp.f32 %v6822_v32  ;;  %v20820_v32 = vld [vmem:[%s28098_s8 + $0x10] sm:$0xff]  }
0x1037   :  { %v6825_v21 = vpop.xlane.xlu1 %6824 }
0x1038   :  { %22071 = vrcp.f32 %v6825_v21  ;;  %v20821_v21 = vld [vmem:[%s28098_s8 + $0x48] sm:$0xff]  }
0x103d   :  { %v6828_v25 = vpop.xlane.xlu0 %6827 }
0x103e   :  { %22073 = vrcp.f32 %v6828_v25  ;;  %v20822_v25 = vld [vmem:[%s28098_s8 + $0x8] sm:$0xff]  }
0x103f   :  { %v6831_v62 = vpop.xlane.xlu1 %6830 }
0x1040   :  { %22075 = vrcp.f32 %v6831_v62  ;;  %v20823_v62 = vld [vmem:[%s28098_s8 + $0x40] sm:$0xff]  }
0x1043   :  { %v22070_v12 = vpop.eup %22069 }
0x1044   :  { %v6852_v20 = vmul.f32 %v22070_v12, %v22054_v39  ;;  %v20824_v12 = vld [vmem:[%s28098_s8] sm:$0xff]  }
0x1045   :  { %v22072_v34 = vpop.eup %22071  ;;  %v6834_v26 = vpop.xlane.xlu0 %6833 }
0x1046   :  { %v6860_v58 = vpack.c.bf16 %v6852_v20, %v6852_v20  ;;  %v6853_v4 = vmul.f32 %v22072_v34, %v22056_v10  ;;  %22077 = vrcp.f32 %v6834_v26  ;;  %v20827_v20 = vld [vmem:[%s28090_s4 + $0xe4] ss:$16 sps:$4 sm:$0xff]   ;;  %v20852_v34 = vld [vmem:[%s28099_s10 + $0x38] sm:$0xff]  }
0x1047   :  { %v6837_v51 = vpop.xlane.xlu1 %6836  ;;  %v20856_v26 = vld [vmem:[%s28099_s10 + $0x30] sm:$0xff]  }
0x1048   :  { %v6861_v35 = vpack.c.bf16 %v6853_v4, %v6853_v4  ;;  %22079 = vrcp.f32 %v6837_v51  ;;  %19498 = vmatmul.mubr.msk.bf16.vlgmr.msra.gmra.mxu0 %vm1955_vm2, %v6860_v58  ;;  %v20860_v58 = vld [vmem:[%s28099_s10 + $0x28] sm:$0xff]  }
0x1049   :  { %19508 = vmatpush3.bf16.msra.mxu0 %v24657_v28  ;;  %19509 = vmatprep.mubr.msk.bf16.mxu0 %vm22430_vm0, %v22429_v33 }
0x104a   :  { %19504 = vmatmul.mubr.msk.bf16.vlgmr.msra.gmra.mxu1 %vm1955_vm2, %v6861_v35  ;;  %19519 = vmatprep.subr.bf16.mxu0 %v22429_v33 }
0x104b   :  { %v22074_v39 = vpop.eup %22073  ;;  %19514 = vmatpush3.bf16.msra.mxu1 %v24666_v44  ;;  %19515 = vmatprep.mubr.msk.bf16.mxu1 %vm22430_vm0, %v22429_v33 }
0x104c   :  { %v6854_v55 = vmul.f32 %v22074_v39, %v22058_v59  ;;  %19525 = vmatprep.subr.bf16.mxu1 %v22429_v33 }
0x104d   :  { %v22076_v56 = vpop.eup %22075  ;;  %v6840_v57 = vpop.xlane.xlu0 %6839 }
0x104e   :  { %v6862_v10 = vpack.c.bf16 %v6854_v55, %v6854_v55  ;;  %v6855_v28 = vmul.f32 %v22076_v56, %v22060_v40  ;;  %22081 = vrcp.f32 %v6840_v57 }
0x104f   :  { %v6843_v37 = vpop.xlane.xlu1 %6842 }
0x1050   :  { %v6863_v36 = vpack.c.bf16 %v6855_v28, %v6855_v28  ;;  %22083 = vrcp.f32 %v6843_v37  ;;  %19510 = vmatmul.mubr.msk.bf16.vlgmr.msra.gmra.mxu0 %vm1955_vm2, %v6862_v10 }
0x1051   :  { %19520 = vmatpush3.bf16.msra.mxu0 %v24676_v16  ;;  %19521 = vmatprep.mubr.msk.bf16.mxu0 %vm22430_vm0, %v22429_v33 }
0x1052   :  { %19516 = vmatmul.mubr.msk.bf16.vlgmr.msra.gmra.mxu1 %vm1955_vm2, %v6863_v36  ;;  %19531 = vmatprep.subr.bf16.mxu0 %v22429_v33 }
0x1053   :  { %v22078_v44 = vpop.eup %22077  ;;  %19526 = vmatpush3.bf16.msra.mxu1 %v24686_v11  ;;  %19527 = vmatprep.mubr.msk.bf16.mxu1 %vm22430_vm0, %v22429_v33 }
0x1054   :  { %v6856_v17 = vmul.f32 %v22078_v44, %v22062_v29  ;;  %19537 = vmatprep.subr.bf16.mxu1 %v22429_v33  ;;  %v20812_v29 = vld [vmem:[%s28098_s8 + $0x30] sm:$0xff]  }
0x1055   :  { %v22080_v48 = vpop.eup %22079 }
0x1056   :  { %v6864_v59 = vpack.c.bf16 %v6856_v17, %v6856_v17  ;;  %v6857_v43 = vmul.f32 %v22080_v48, %v22064_v31  ;;  %v20814_v31 = vld [vmem:[%s28098_s8 + $0x28] sm:$0xff]  }
0x1058   :  { %v6865_v16 = vpack.c.bf16 %v6857_v43, %v6857_v43  ;;  %19522 = vmatmul.mubr.msk.bf16.vlgmr.msra.gmra.mxu0 %vm1955_vm2, %v6864_v59 }
0x1059   :  { %19532 = vmatpush3.bf16.msra.mxu0 %v24696_v15  ;;  %19533 = vmatprep.mubr.msk.bf16.mxu0 %vm22430_vm0, %v22429_v33  ;;  %v24782_v15 = vpack.c.bf16 %v24646_v8, %v24646_v8  ;;  %v20811_v8 = vld [vmem:[%s28098_s8 + $0x70] sm:$0xff]  }
0x105a   :  { %19528 = vmatmul.mubr.msk.bf16.vlgmr.msra.gmra.mxu1 %vm1955_vm2, %v6865_v16 }
0x105b   :  { %v22082_v11 = vpop.eup %22081  ;;  %19538 = vmatpush3.bf16.msra.mxu1 %v24705_v24  ;;  %19539 = vmatprep.mubr.msk.bf16.mxu1 %vm22430_vm0, %v22429_v33  ;;  %v20809_v24 = vld [vmem:[%s28098_s8 + $0x78] sm:$0xff]  }
0x105c   :  { %v6858_v47 = vmul.f32 %v22082_v11, %v24741_v7  ;;  %19543 = vmatprep.subr.bf16.mxu1 %v22429_v33  ;;  %18932 = vmatprep.subr.bf16.mxu0 %v20809_v24  ;;  %v20816_v7 = vld [vmem:[%s28098_s8 + $0x20] sm:$0xff]  }
0x105d   :  { %v22084_v19 = vpop.eup %22083 }
0x105e   :  { %v6866_v45 = vpack.c.bf16 %v6858_v47, %v6858_v47  ;;  %v6859_v40 = vmul.f32 %v22084_v19, %v24745_v60  ;;  %v20818_v60 = vld [vmem:[%s28098_s8 + $0x18] sm:$0xff]  }
0x1060   :  { %v6867_v23 = vpack.c.bf16 %v6859_v40, %v6859_v40  ;;  %19534 = vmatmul.mubr.msk.bf16.vlgmr.msra.gmra.mxu0 %vm1955_vm2, %v6866_v45 }
0x1061   :  { %7404 = vmatprep.mubr.bf16.mxu0 %v24782_v15  ;;  %18933 = vmatpush3.bf16.msra.mxu0 %v20810_v42 }
0x1062   :  { %19540 = vmatmul.mubr.msk.bf16.vlgmr.msra.gmra.mxu1 %vm1955_vm2, %v6867_v23  ;;  %18934 = vmatprep.subr.bf16.mxu0 %v20811_v8 }
0x1063   :  { %19559 = vmatprep.mubr.msk.bf16.mxu1 %vm22430_vm0, %v22429_v33  ;;  %19544 = vmatpush3.bf16.msra.mxu1 %v20852_v34 }
0x1064   :  { %19545 = vmatprep.subr.bf16.mxu1 %v22429_v33 }
0x1065   :  { %18935 = vmatpush3.bf16.msra.mxu0 %v20812_v29 }
0x1066   :  { %18936 = vmatprep.subr.bf16.mxu0 %v20813_v41 }
0x1067   :  { %19546 = vmatpush3.bf16.msra.mxu1 %v20856_v26 }
0x1068   :  { %19547 = vmatprep.subr.bf16.mxu1 %v22429_v33 }
0x1069   :  { %18937 = vmatpush3.bf16.msra.mxu0 %v20814_v31 }
0x106a   :  { %18938 = vmatprep.subr.bf16.mxu0 %v20815_v30 }
0x106b   :  { %19548 = vmatpush3.bf16.msra.mxu1 %v20860_v58 }
0x106c   :  { %19549 = vmatprep.subr.bf16.mxu1 %v22429_v33 }
0x106d   :  { %18939 = vmatpush3.bf16.msra.mxu0 %v20816_v7 }
0x106e   :  { %18940 = vmatprep.subr.bf16.mxu0 %v20817_v13 }
0x1071   :  { %18941 = vmatpush3.bf16.msra.mxu0 %v20818_v60 }
0x1072   :  { %18942 = vmatprep.subr.bf16.mxu0 %v20819_v9 }
0x1075   :  { %18943 = vmatpush3.bf16.msra.mxu0 %v20820_v32 }
0x1076   :  { %18944 = vmatprep.subr.bf16.mxu0 %v20821_v21 }
0x1079   :  { %18945 = vmatpush3.bf16.msra.mxu0 %v20822_v25 }
0x107a   :  { %18946 = vmatprep.subr.bf16.mxu0 %v20823_v62 }
0x107d   :  { %18947 = vmatpush3.bf16.msra.mxu0 %v20824_v12 }
0x107e   :  { %8138 = vmatprep.subr.bf16.mxu0 %v20827_v20 }
0x1108   :  { %v6905_v4 = vpop.f32.mrf.mxu0 }
0x110a   :  { %v19499_v51 = vpop.f32.mrf.mxu0  ;;  %v6948_v35 = vpop.f32.mrf.mxu1 }
0x110b   :  { %v7220_v48 = vrot.slane %v6948_v35, 7 }
0x110c   :  { %v6908_v39 = vpop.f32.mrf.mxu0  ;;  %v19505_v55 = vpop.f32.mrf.mxu1 }
0x110d   :  { %v7221_v19 = vsel %vm2309_vm3, %v7220_v48, %v6905_v4  ;;  %v20825_v4 = vld [vmem:[%s28090_s4 + $0xe0] ss:$16 sps:$4 sm:$0xff]   ;;  %v20830_v55 = vld [vmem:[%s28090_s4 + $0xc4] ss:$16 sps:$4 sm:$0xff]  }
0x110e   :  { %v19500_v56 = vpop.f32.mrf.mxu0  ;;  %v6951_v57 = vpop.f32.mrf.mxu1  ;;  %v20842_v48 = vld [vmem:[%s28090_s4 + $0x44] ss:$16 sps:$4 sm:$0xff]  }
0x110f   :  { %v20828_v57 = vld [vmem:[%s28090_s4 + $0xc0] ss:$16 sps:$4 sm:$0xff]  }
0x1110   :  { %v19506_v10 = vpop.f32.mrf.mxu1  ;;  %v6991_v28 = vpop.f32.mrf.mxu0 }
0x1111   :  { %v7222_v16 = vrot.slane %v6991_v28, 6  ;;  %v20833_v10 = vld [vmem:[%s28090_s4 + $0xa4] ss:$16 sps:$4 sm:$0xff]   ;;  %v20831_v28 = vld [vmem:[%s28090_s4 + $0xa0] ss:$16 sps:$4 sm:$0xff]  }
0x1112   :  { %v19511_v37 = vpop.f32.mrf.mxu0  ;;  %v7034_v36 = vpop.f32.mrf.mxu1 }
0x1113   :  { %v7224_v45 = vrot.slane %v7034_v36, 5  ;;  %v7223_v24 = vsel %vm2312_vm4, %v7222_v16, %v7221_v19  ;;  %v20836_v37 = vld [vmem:[%s28090_s4 + $0x84] ss:$16 sps:$4 sm:$0xff]   ;;  %v20834_v36 = vld [vmem:[%s28090_s4 + $0x80] ss:$16 sps:$4 sm:$0xff]  }
0x1114   :  { %v6994_v44 = vpop.f32.mrf.mxu0  ;;  %v19517_v17 = vpop.f32.mrf.mxu1  ;;  %v20843_v16 = vld [vmem:[%s28090_s4 + $0x20] ss:$16 sps:$4 sm:$0xff]   ;;  %v20851_v19 = vld [vmem:[%s28090_s4 + $0x1e4] ss:$16 sps:$4 sm:$0xff]  }
0x1115   :  { %v7225_v41 = vsel %vm2315_vm5, %v7224_v45, %v7223_v24  ;;  %v20839_v44 = vld [vmem:[%s28090_s4 + $0x64] ss:$16 sps:$4 sm:$0xff]   ;;  %v20837_v17 = vld [vmem:[%s28090_s4 + $0x60] ss:$16 sps:$4 sm:$0xff]  }
0x1116   :  { %v19512_v59 = vpop.f32.mrf.mxu0  ;;  %v7037_v43 = vpop.f32.mrf.mxu1  ;;  %v20849_v45 = vld [vmem:[%s28090_s4 + $0x1e0] ss:$16 sps:$4 sm:$0xff]   ;;  %v20859_v24 = vld [vmem:[%s28090_s4 + $0x1a4] ss:$16 sps:$4 sm:$0xff]  }
0x1117   :  { %v20840_v59 = vld [vmem:[%s28090_s4 + $0x40] ss:$16 sps:$4 sm:$0xff]   ;;  %v20845_v43 = vld [vmem:[%s28090_s4 + $0x24] ss:$16 sps:$4 sm:$0xff]  }
0x1118   :  { %v19518_v11 = vpop.f32.mrf.mxu1  ;;  %v7077_v47 = vpop.f32.mrf.mxu0 }
0x1119   :  { %v7226_v42 = vrot.slane %v7077_v47, 4  ;;  %v20848_v11 = vld [vmem:[%s28090_s4 + $0x4] ss:$16 sps:$4 sm:$0xff]   ;;  %v20846_v47 = vld [vmem:[%s28090_s4] ss:$16 sps:$4 sm:$0xff]  }
0x111a   :  { %v19523_v40 = vpop.f32.mrf.mxu0  ;;  %v7120_v23 = vpop.f32.mrf.mxu1 }
0x111b   :  { %v7228_v31 = vrot.slane %v7120_v23, 3  ;;  %v7227_v13 = vsel %vm2318_vm6, %v7226_v42, %v7225_v41  ;;  %v20855_v40 = vld [vmem:[%s28090_s4 + $0x1c4] ss:$16 sps:$4 sm:$0xff]   ;;  %v20853_v23 = vld [vmem:[%s28090_s4 + $0x1c0] ss:$16 sps:$4 sm:$0xff]  }
0x111c   :  { %v7080_v8 = vpop.f32.mrf.mxu0  ;;  %v19529_v29 = vpop.f32.mrf.mxu1  ;;  %v20857_v42 = vld [vmem:[%s28090_s4 + $0x1a0] ss:$16 sps:$4 sm:$0xff]  }
0x111d   :  { %v7229_v21 = vsel %vm2321_vm7, %v7228_v31, %v7227_v13  ;;  %v20863_v8 = vld [vmem:[%s28090_s4 + $0x184] ss:$16 sps:$4 sm:$0xff]   ;;  %v20861_v29 = vld [vmem:[%s28090_s4 + $0x180] ss:$16 sps:$4 sm:$0xff]  }
0x111e   :  { %v19524_v30 = vpop.f32.mrf.mxu0  ;;  %v7123_v7 = vpop.f32.mrf.mxu1  ;;  %v20864_v41 = vld [vmem:[%s28099_s10 + $0x20] sm:$0xff]  }
0x111f   :  { %19550 = vmatpush3.bf16.msra.mxu1 %v20864_v41  ;;  %v20867_v31 = vld [vmem:[%s28090_s4 + $0x164] ss:$16 sps:$4 sm:$0xff]   ;;  %v20865_v30 = vld [vmem:[%s28090_s4 + $0x160] ss:$16 sps:$4 sm:$0xff]   ;;  %v20868_v7 = vld [vmem:[%s28099_s10 + $0x18] sm:$0xff]  }
0x1120   :  { %v19530_v60 = vpop.f32.mrf.mxu1  ;;  %v7163_v9 = vpop.f32.mrf.mxu0  ;;  %19551 = vmatprep.subr.bf16.mxu1 %v22429_v33  ;;  %v20871_v13 = vld [vmem:[%s28090_s4 + $0x144] ss:$16 sps:$4 sm:$0xff]   ;;  %v20908_v41 = vld [vmem:[%s28090_s4 + $0x268] ss:$16 sps:$4 sm:$0xff]  }
0x1121   :  { %v7230_v32 = vrot.slane %v7163_v9, 2  ;;  %v20869_v60 = vld [vmem:[%s28090_s4 + $0x140] ss:$16 sps:$4 sm:$0xff]  }
0x1122   :  { %v19535_v25 = vpop.f32.mrf.mxu0  ;;  %v7206_v62 = vpop.f32.mrf.mxu1  ;;  %v20872_v9 = vld [vmem:[%s28099_s10 + $0x10] sm:$0xff]  }
0x1123   :  { %v7231_v12 = vsel %vm2324_vm8, %v7230_v32, %v7229_v21  ;;  %v7232_v20 = vrot.slane %v7206_v62, 1  ;;  %19552 = vmatpush3.bf16.msra.mxu1 %v20868_v7  ;;  %v20875_v32 = vld [vmem:[%s28090_s4 + $0x124] ss:$16 sps:$4 sm:$0xff]   ;;  %v20873_v21 = vld [vmem:[%s28090_s4 + $0x120] ss:$16 sps:$4 sm:$0xff]   ;;  %v20876_v25 = vld [vmem:[%s28099_s10 + $0x8] sm:$0xff]  }
0x1124   :  { %v7166_v34 = vpop.f32.mrf.mxu0  ;;  %v19541_v26 = vpop.f32.mrf.mxu1  ;;  %19553 = vmatprep.subr.bf16.mxu1 %v22429_v33  ;;  %v20879_v62 = vld [vmem:[%s28090_s4 + $0x104] ss:$16 sps:$4 sm:$0xff]   ;;  %v20911_v7 = vld [vmem:[%s28090_s4 + $0x240] ss:$16 sps:$4 sm:$0xff]  }
0x1125   :  { %v7233_v58 = vsel %vm2327_vm9, %v7232_v20, %v7231_v12  ;;  %v20877_v12 = vld [vmem:[%s28090_s4 + $0x100] ss:$16 sps:$4 sm:$0xff]   ;;  %v17966_v34 = vld [vmem:[%s28092_s0 + $0x18] sm:$0xff] }
0x1126   :  { %v7235_v51 = vpack.c.bf16 %v7233_v58, %v7233_v58  ;;  %v19536_v35 = vpop.f32.mrf.mxu0  ;;  %v7209_v39 = vpop.f32.mrf.mxu1  ;;  %v20880_v20 = vld [vmem:[%s28099_s10] sm:$0xff]   ;;  %v24974_v26 = vpack.c.bf16 %v17966_v34, %v17966_v34  ;;  %v20931_v34 = vld [vmem:[%s28090_s4 + $0xec] ss:$16 sps:$4 sm:$0xff]  }
0x1127   :  { %19554 = vmatpush3.bf16.msra.mxu1 %v20872_v9  ;;  %v20883_v58 = vld [vmem:[%s28090_s4 + $0x2e4] ss:$16 sps:$4 sm:$0xff]   ;;  %v17939_v35 = vld [vmem:[%s28100_s9] ss:$0 sm:$0xff]  ;;  %v20922_v9 = vld [vmem:[%s28090_s4 + $0x22c] ss:$16 sps:$4 sm:$0xff]  }
0x1128   :  { %v19542_v56 = vpop.f32.mrf.mxu1  ;;  %7405 = vmatmul.mubr.bf16.vlgmr.msra.gmra.mxu0 %v7235_v51  ;;  %19555 = vmatprep.subr.bf16.mxu1 %v22429_v33 }
0x1129   :  { %8139 = vmatpush1.bf16.msra.mxu0 %v20825_v4  ;;  %v20886_v4 = vld [vmem:[%s28090_s4 + $0x2ec] ss:$16 sps:$4 sm:$0xff]   ;;  %8170 = vmatprep.mubr.bf16.mxu0 %v24974_v26 }
0x112a   :  { %8140 = vmatprep.subr.bf16.mxu0 %v20830_v55 }
0x112b   :  { %19556 = vmatpush3.bf16.msra.mxu1 %v20876_v25  ;;  %v20925_v25 = vld [vmem:[%s28090_s4 + $0x204] ss:$16 sps:$4 sm:$0xff]  }
0x112c   :  { %19557 = vmatprep.subr.bf16.mxu1 %v22429_v33 }
0x112d   :  { %8141 = vmatpush1.bf16.msra.mxu0 %v20828_v57 }
0x112e   :  { %8142 = vmatprep.subr.bf16.mxu0 %v20833_v10 }
0x112f   :  { %19558 = vmatpush3.bf16.msra.mxu1 %v20880_v20  ;;  %v20926_v20 = vld [vmem:[%s28090_s4 + $0x208] ss:$16 sps:$4 sm:$0xff]  }
0x1130   :  { %8179 = vmatprep.subr.bf16.mxu1 %v20883_v58  ;;  %v20929_v58 = vld [vmem:[%s28090_s4 + $0xe8] ss:$16 sps:$4 sm:$0xff]  }
0x1131   :  { %8143 = vmatpush1.bf16.msra.mxu0 %v20831_v28 }
0x1132   :  { %8144 = vmatprep.subr.bf16.mxu0 %v20836_v37  ;;  %v20881_v37 = vld [vmem:[%s28090_s4 + $0x2e0] ss:$16 sps:$4 sm:$0xff]  }
0x1135   :  { %8145 = vmatpush1.bf16.msra.mxu0 %v20834_v36  ;;  %v20884_v36 = vld [vmem:[%s28090_s4 + $0x2e8] ss:$16 sps:$4 sm:$0xff]  }
0x1136   :  { %8146 = vmatprep.subr.bf16.mxu0 %v20839_v44 }
0x1139   :  { %8147 = vmatpush1.bf16.msra.mxu0 %v20837_v17  ;;  %v20889_v17 = vld [vmem:[%s28090_s4 + $0x2c4] ss:$16 sps:$4 sm:$0xff]  }
0x113a   :  { %8148 = vmatprep.subr.bf16.mxu0 %v20842_v48  ;;  %v20892_v48 = vld [vmem:[%s28090_s4 + $0x2cc] ss:$16 sps:$4 sm:$0xff]  }
0x113d   :  { %8149 = vmatpush1.bf16.msra.mxu0 %v20840_v59  ;;  %v20887_v59 = vld [vmem:[%s28090_s4 + $0x2c0] ss:$16 sps:$4 sm:$0xff]  }
0x113e   :  { %8150 = vmatprep.subr.bf16.mxu0 %v20845_v43  ;;  %v20890_v43 = vld [vmem:[%s28090_s4 + $0x2c8] ss:$16 sps:$4 sm:$0xff]  }
0x1141   :  { %8151 = vmatpush1.bf16.msra.mxu0 %v20843_v16  ;;  %v20895_v16 = vld [vmem:[%s28090_s4 + $0x2a4] ss:$16 sps:$4 sm:$0xff]  }
0x1142   :  { %8152 = vmatprep.subr.bf16.mxu0 %v20848_v11  ;;  %v20898_v11 = vld [vmem:[%s28090_s4 + $0x2ac] ss:$16 sps:$4 sm:$0xff]  }
0x1145   :  { %8153 = vmatpush1.bf16.msra.mxu0 %v20846_v47  ;;  %v20893_v47 = vld [vmem:[%s28090_s4 + $0x2a0] ss:$16 sps:$4 sm:$0xff]  }
0x1146   :  { %8154 = vmatprep.subr.bf16.mxu0 %v20851_v19  ;;  %v20896_v19 = vld [vmem:[%s28090_s4 + $0x2a8] ss:$16 sps:$4 sm:$0xff]  }
0x1149   :  { %8155 = vmatpush2.bf16.msra.mxu0 %v20849_v45  ;;  %v20901_v45 = vld [vmem:[%s28090_s4 + $0x284] ss:$16 sps:$4 sm:$0xff]  }
0x114a   :  { %8156 = vmatprep.subr.bf16.mxu0 %v20855_v40  ;;  %v20904_v40 = vld [vmem:[%s28090_s4 + $0x28c] ss:$16 sps:$4 sm:$0xff]  }
0x114d   :  { %8157 = vmatpush2.bf16.msra.mxu0 %v20853_v23  ;;  %v20899_v23 = vld [vmem:[%s28090_s4 + $0x280] ss:$16 sps:$4 sm:$0xff]  }
0x114e   :  { %8158 = vmatprep.subr.bf16.mxu0 %v20859_v24  ;;  %v20902_v24 = vld [vmem:[%s28090_s4 + $0x288] ss:$16 sps:$4 sm:$0xff]  }
0x1151   :  { %8159 = vmatpush2.bf16.msra.mxu0 %v20857_v42  ;;  %v20907_v42 = vld [vmem:[%s28090_s4 + $0x264] ss:$16 sps:$4 sm:$0xff]  }
0x1152   :  { %8160 = vmatprep.subr.bf16.mxu0 %v20863_v8  ;;  %v20910_v8 = vld [vmem:[%s28090_s4 + $0x26c] ss:$16 sps:$4 sm:$0xff]  }
0x1155   :  { %8161 = vmatpush2.bf16.msra.mxu0 %v20861_v29  ;;  %v20905_v29 = vld [vmem:[%s28090_s4 + $0x260] ss:$16 sps:$4 sm:$0xff]  }
0x1156   :  { %8162 = vmatprep.subr.bf16.mxu0 %v20867_v31  ;;  %v20913_v31 = vld [vmem:[%s28090_s4 + $0x244] ss:$16 sps:$4 sm:$0xff]  }
0x1159   :  { %8163 = vmatpush2.bf16.msra.mxu0 %v20865_v30  ;;  %v20916_v30 = vld [vmem:[%s28090_s4 + $0x24c] ss:$16 sps:$4 sm:$0xff]  }
0x115a   :  { %8164 = vmatprep.subr.bf16.mxu0 %v20871_v13  ;;  %v20914_v13 = vld [vmem:[%s28090_s4 + $0x248] ss:$16 sps:$4 sm:$0xff]  }
0x115d   :  { %8165 = vmatpush2.bf16.msra.mxu0 %v20869_v60  ;;  %v20919_v60 = vld [vmem:[%s28090_s4 + $0x224] ss:$16 sps:$4 sm:$0xff]  }
0x115e   :  { %8166 = vmatprep.subr.bf16.mxu0 %v20875_v32  ;;  %v20917_v32 = vld [vmem:[%s28090_s4 + $0x220] ss:$16 sps:$4 sm:$0xff]  }
0x1161   :  { %8167 = vmatpush2.bf16.msra.mxu0 %v20873_v21  ;;  %v20920_v21 = vld [vmem:[%s28090_s4 + $0x228] ss:$16 sps:$4 sm:$0xff]  }
0x1162   :  { %8168 = vmatprep.subr.bf16.mxu0 %v20879_v62  ;;  %v20928_v62 = vld [vmem:[%s28090_s4 + $0x20c] ss:$16 sps:$4 sm:$0xff]  }
0x1165   :  { %8169 = vmatpush2.bf16.msra.mxu0 %v20877_v12  ;;  %v20923_v12 = vld [vmem:[%s28090_s4 + $0x200] ss:$16 sps:$4 sm:$0xff]  }
0x1166   :  { %8261 = vmatprep.subr.bf16.mxu0 %v20886_v4  ;;  %v20934_v4 = vld [vmem:[%s28090_s4 + $0xcc] ss:$16 sps:$4 sm:$0xff]  }
0x11e8   :  { %v18948_v51 = vpop.f32.mrf.mxu0 }
0x11ea   :  { %v18949_v39 = vpop.f32.mrf.mxu0 }
0x11eb   :  { %v18950_v55 = vadd.f32 %v18949_v39, %v18948_v51  ;;  %v20932_v51 = vld [vmem:[%s28090_s4 + $0xc8] ss:$16 sps:$4 sm:$0xff]  }
0x11ec   :  { %v18951_v56 = vpop.f32.mrf.mxu0  ;;  %v20935_v39 = vld [vmem:[%s28090_s4 + $0xa8] ss:$16 sps:$4 sm:$0xff]  }
0x11ed   :  { %v7407_v57 = vadd.f32 %v18950_v55, %v17939_v35  ;;  %v20937_v35 = vld [vmem:[%s28090_s4 + $0xac] ss:$16 sps:$4 sm:$0xff]   ;;  %v20938_v55 = vld [vmem:[%s28090_s4 + $0x88] ss:$16 sps:$4 sm:$0xff]  }
0x11ee   :  { %v18952_v10 = vpop.f32.mrf.mxu0  ;;  %v20941_v56 = vld [vmem:[%s28090_s4 + $0x68] ss:$16 sps:$4 sm:$0xff]  }
0x11ef   :  { %22085 = vtanh.f32 %v7407_v57  ;;  %v20946_v57 = vld [vmem:[%s28090_s4 + $0x4c] ss:$16 sps:$4 sm:$0xff]   ;;  %v20944_v10 = vld [vmem:[%s28090_s4 + $0x48] ss:$16 sps:$4 sm:$0xff]  }
0x11fc   :  { %v22086_v28 = vpop.eup %22085 }
0x11fd   :  { %v24992_v44 = vpack.c.bf16 %v22086_v28, %v22086_v28  ;;  %v20949_v28 = vld [vmem:[%s28090_s4 + $0x2c] ss:$16 sps:$4 sm:$0xff]  }
0x11ff   :  { %19560 = vmatmul.mubr.bf16.vlgmr.msra.gmra.mxu1 %v24992_v44  ;;  %8171 = vmatmul.mubr.bf16.vlgmr.msra.gmra.mxu0 %v24992_v44 }
0x1200   :  { %8180 = vmatpush1.bf16.msra.mxu1 %v20881_v37  ;;  %8262 = vmatpush1.bf16.msra.mxu0 %v20884_v36  ;;  %v20947_v37 = vld [vmem:[%s28090_s4 + $0x28] ss:$16 sps:$4 sm:$0xff]   ;;  %v20952_v36 = vld [vmem:[%s28090_s4 + $0xc] ss:$16 sps:$4 sm:$0xff]  }
0x1201   :  { %8181 = vmatprep.subr.bf16.mxu1 %v20889_v17  ;;  %8263 = vmatprep.subr.bf16.mxu0 %v20892_v48  ;;  %v20950_v17 = vld [vmem:[%s28090_s4 + $0x8] ss:$16 sps:$4 sm:$0xff]   ;;  %v20955_v48 = vld [vmem:[%s28090_s4 + $0x1ec] ss:$16 sps:$4 sm:$0xff]  }
0x1202   :  { %8211 = vmatprep.mubr.bf16.mxu1 %v22427_v1  ;;  %8293 = vmatprep.mubr.bf16.mxu0 %v22427_v1 }
0x1204   :  { %8182 = vmatpush1.bf16.msra.mxu1 %v20887_v59  ;;  %8264 = vmatpush1.bf16.msra.mxu0 %v20890_v43  ;;  %v20953_v59 = vld [vmem:[%s28090_s4 + $0x1e8] ss:$16 sps:$4 sm:$0xff]   ;;  %v20958_v43 = vld [vmem:[%s28090_s4 + $0x1cc] ss:$16 sps:$4 sm:$0xff]  }
0x1205   :  { %8183 = vmatprep.subr.bf16.mxu1 %v20895_v16  ;;  %8265 = vmatprep.subr.bf16.mxu0 %v20898_v11  ;;  %v20956_v16 = vld [vmem:[%s28090_s4 + $0x1c8] ss:$16 sps:$4 sm:$0xff]   ;;  %v20961_v11 = vld [vmem:[%s28090_s4 + $0x1ac] ss:$16 sps:$4 sm:$0xff]  }
0x1208   :  { %8184 = vmatpush1.bf16.msra.mxu1 %v20893_v47  ;;  %8266 = vmatpush1.bf16.msra.mxu0 %v20896_v19  ;;  %v20959_v47 = vld [vmem:[%s28090_s4 + $0x1a8] ss:$16 sps:$4 sm:$0xff]   ;;  %v20964_v19 = vld [vmem:[%s28090_s4 + $0x18c] ss:$16 sps:$4 sm:$0xff]  }
0x1209   :  { %8185 = vmatprep.subr.bf16.mxu1 %v20901_v45  ;;  %8267 = vmatprep.subr.bf16.mxu0 %v20904_v40  ;;  %v20962_v45 = vld [vmem:[%s28090_s4 + $0x188] ss:$16 sps:$4 sm:$0xff]   ;;  %v20967_v40 = vld [vmem:[%s28090_s4 + $0x16c] ss:$16 sps:$4 sm:$0xff]  }
0x120c   :  { %8186 = vmatpush1.bf16.msra.mxu1 %v20899_v23  ;;  %8268 = vmatpush1.bf16.msra.mxu0 %v20902_v24  ;;  %v20965_v23 = vld [vmem:[%s28090_s4 + $0x168] ss:$16 sps:$4 sm:$0xff]   ;;  %v20970_v24 = vld [vmem:[%s28090_s4 + $0x14c] ss:$16 sps:$4 sm:$0xff]  }
0x120d   :  { %8187 = vmatprep.subr.bf16.mxu1 %v20907_v42  ;;  %8269 = vmatprep.subr.bf16.mxu0 %v20910_v8  ;;  %v20968_v42 = vld [vmem:[%s28090_s4 + $0x148] ss:$16 sps:$4 sm:$0xff]   ;;  %v20973_v8 = vld [vmem:[%s28090_s4 + $0x12c] ss:$16 sps:$4 sm:$0xff]  }
0x1210   :  { %8188 = vmatpush1.bf16.msra.mxu1 %v20905_v29  ;;  %8270 = vmatpush1.bf16.msra.mxu0 %v20908_v41  ;;  %v20971_v29 = vld [vmem:[%s28090_s4 + $0x128] ss:$16 sps:$4 sm:$0xff]   ;;  %v20976_v41 = vld [vmem:[%s28090_s4 + $0x10c] ss:$16 sps:$4 sm:$0xff]  }
0x1211   :  { %8189 = vmatprep.subr.bf16.mxu1 %v20913_v31  ;;  %8271 = vmatprep.subr.bf16.mxu0 %v20916_v30  ;;  %v20974_v31 = vld [vmem:[%s28090_s4 + $0x108] ss:$16 sps:$4 sm:$0xff]   ;;  %v20977_v30 = vld [vmem:[%s28093_s6 + $0xe0] ss:$16 sps:$4 sm:$0xff]  }
0x1214   :  { %8190 = vmatpush1.bf16.msra.mxu1 %v20911_v7  ;;  %8272 = vmatpush1.bf16.msra.mxu0 %v20914_v13  ;;  %v20979_v7 = vld [vmem:[%s28093_s6 + $0xe4] ss:$16 sps:$4 sm:$0xff]   ;;  %v20980_v13 = vld [vmem:[%s28093_s6 + $0xe8] ss:$16 sps:$4 sm:$0xff]  }
0x1215   :  { %8191 = vmatprep.subr.bf16.mxu1 %v20919_v60  ;;  %8273 = vmatprep.subr.bf16.mxu0 %v20922_v9  ;;  %v20982_v60 = vld [vmem:[%s28093_s6 + $0xec] ss:$16 sps:$4 sm:$0xff]   ;;  %v20983_v9 = vld [vmem:[%s28093_s6 + $0xc0] ss:$16 sps:$4 sm:$0xff]  }
0x1218   :  { %8192 = vmatpush1.bf16.msra.mxu1 %v20917_v32  ;;  %8274 = vmatpush1.bf16.msra.mxu0 %v20920_v21  ;;  %v20986_v32 = vld [vmem:[%s28093_s6 + $0xc8] ss:$16 sps:$4 sm:$0xff]   ;;  %v20991_v21 = vld [vmem:[%s28093_s6 + $0xa4] ss:$16 sps:$4 sm:$0xff]  }
0x1219   :  { %8193 = vmatprep.subr.bf16.mxu1 %v20925_v25  ;;  %8275 = vmatprep.subr.bf16.mxu0 %v20928_v62  ;;  %v20994_v25 = vld [vmem:[%s28093_s6 + $0xac] ss:$16 sps:$4 sm:$0xff]   ;;  %v20989_v62 = vld [vmem:[%s28093_s6 + $0xa0] ss:$16 sps:$4 sm:$0xff]  }
0x121c   :  { %8194 = vmatpush1.bf16.msra.mxu1 %v20923_v12  ;;  %8276 = vmatpush1.bf16.msra.mxu0 %v20926_v20  ;;  %v20992_v12 = vld [vmem:[%s28093_s6 + $0xa8] ss:$16 sps:$4 sm:$0xff]   ;;  %v20997_v20 = vld [vmem:[%s28093_s6 + $0x84] ss:$16 sps:$4 sm:$0xff]  }
0x121d   :  { %8220 = vmatprep.subr.bf16.mxu1 %v20931_v34  ;;  %8733 = vmatprep.subr.bf16.mxu0 %v20979_v7  ;;  %v21000_v34 = vld [vmem:[%s28093_s6 + $0x8c] ss:$16 sps:$4 sm:$0xff]   ;;  %v21043_v7 = vld [vmem:[%s28093_s6 + $0x180] ss:$16 sps:$4 sm:$0xff]  }
0x121f   :  { %8212 = vmatmul.mubr.bf16.vlgmr.msra.gmra.mxu1 %v24613_v38  ;;  %8294 = vmatmul.mubr.bf16.vlgmr.msra.gmra.mxu0 %v24613_v38  ;;  %v20940_v38 = vld [vmem:[%s28090_s4 + $0x8c] ss:$16 sps:$4 sm:$0xff]  }
0x1220   :  { %8221 = vmatpush1.bf16.msra.mxu1 %v20929_v58  ;;  %8765 = vmatprep.mubr.bf16.mxu0 %v24782_v15  ;;  %v20995_v58 = vld [vmem:[%s28093_s6 + $0x80] ss:$16 sps:$4 sm:$0xff]  }
0x1221   :  { %8222 = vmatprep.subr.bf16.mxu1 %v20934_v4  ;;  %8252 = vmatprep.mubr.bf16.mxu1 %v24974_v26  ;;  %v20943_v26 = vld [vmem:[%s28090_s4 + $0x6c] ss:$16 sps:$4 sm:$0xff]   ;;  %v20998_v4 = vld [vmem:[%s28093_s6 + $0x88] ss:$16 sps:$4 sm:$0xff]  }
0x1222   :  { %8734 = vmatpush1.bf16.msra.mxu0 %v20977_v30  ;;  %v21048_v30 = vld [vmem:[%s28093_s6 + $0x18c] ss:$16 sps:$4 sm:$0xff]  }
0x1224   :  { %8223 = vmatpush1.bf16.msra.mxu1 %v20932_v51  ;;  %v21003_v51 = vld [vmem:[%s28093_s6 + $0x64] ss:$16 sps:$4 sm:$0xff]  }
0x1225   :  { %8224 = vmatprep.subr.bf16.mxu1 %v20937_v35  ;;  %v21006_v35 = vld [vmem:[%s28093_s6 + $0x6c] ss:$16 sps:$4 sm:$0xff]  }
0x1228   :  { %8225 = vmatpush1.bf16.msra.mxu1 %v20935_v39  ;;  %v21001_v39 = vld [vmem:[%s28093_s6 + $0x60] ss:$16 sps:$4 sm:$0xff]  }
0x1229   :  { %8226 = vmatprep.subr.bf16.mxu1 %v20940_v38  ;;  %v21004_v38 = vld [vmem:[%s28093_s6 + $0x68] ss:$16 sps:$4 sm:$0xff]  }
0x122c   :  { %8227 = vmatpush1.bf16.msra.mxu1 %v20938_v55  ;;  %v21009_v55 = vld [vmem:[%s28093_s6 + $0x44] ss:$16 sps:$4 sm:$0xff]  }
0x122d   :  { %8228 = vmatprep.subr.bf16.mxu1 %v20943_v26  ;;  %v21012_v26 = vld [vmem:[%s28093_s6 + $0x4c] ss:$16 sps:$4 sm:$0xff]  }
0x1230   :  { %8229 = vmatpush1.bf16.msra.mxu1 %v20941_v56  ;;  %v21007_v56 = vld [vmem:[%s28093_s6 + $0x40] ss:$16 sps:$4 sm:$0xff]  }
0x1231   :  { %8230 = vmatprep.subr.bf16.mxu1 %v20946_v57  ;;  %v21010_v57 = vld [vmem:[%s28093_s6 + $0x48] ss:$16 sps:$4 sm:$0xff]  }
0x1234   :  { %8231 = vmatpush1.bf16.msra.mxu1 %v20944_v10  ;;  %v21015_v10 = vld [vmem:[%s28093_s6 + $0x24] ss:$16 sps:$4 sm:$0xff]  }
0x1235   :  { %8232 = vmatprep.subr.bf16.mxu1 %v20949_v28  ;;  %v21018_v28 = vld [vmem:[%s28093_s6 + $0x2c] ss:$16 sps:$4 sm:$0xff]  }
0x1238   :  { %8233 = vmatpush1.bf16.msra.mxu1 %v20947_v37  ;;  %v21013_v37 = vld [vmem:[%s28093_s6 + $0x20] ss:$16 sps:$4 sm:$0xff]  }
0x1239   :  { %8234 = vmatprep.subr.bf16.mxu1 %v20952_v36  ;;  %v21016_v36 = vld [vmem:[%s28093_s6 + $0x28] ss:$16 sps:$4 sm:$0xff]  }
0x123c   :  { %8235 = vmatpush1.bf16.msra.mxu1 %v20950_v17  ;;  %v21021_v17 = vld [vmem:[%s28093_s6 + $0x4] ss:$16 sps:$4 sm:$0xff]  }
0x123d   :  { %8236 = vmatprep.subr.bf16.mxu1 %v20955_v48  ;;  %v21024_v48 = vld [vmem:[%s28093_s6 + $0xc] ss:$16 sps:$4 sm:$0xff]  }
0x1240   :  { %8237 = vmatpush2.bf16.msra.mxu1 %v20953_v59  ;;  %v21019_v59 = vld [vmem:[%s28093_s6] ss:$16 sps:$4 sm:$0xff]  }
0x1241   :  { %8238 = vmatprep.subr.bf16.mxu1 %v20958_v43  ;;  %v21022_v43 = vld [vmem:[%s28093_s6 + $0x8] ss:$16 sps:$4 sm:$0xff]  }
0x1244   :  { %8239 = vmatpush2.bf16.msra.mxu1 %v20956_v16  ;;  %v21027_v16 = vld [vmem:[%s28093_s6 + $0x1e4] ss:$16 sps:$4 sm:$0xff]  }
0x1245   :  { %8240 = vmatprep.subr.bf16.mxu1 %v20961_v11  ;;  %v21030_v11 = vld [vmem:[%s28093_s6 + $0x1ec] ss:$16 sps:$4 sm:$0xff]  }
0x1248   :  { %8241 = vmatpush2.bf16.msra.mxu1 %v20959_v47  ;;  %v21025_v47 = vld [vmem:[%s28093_s6 + $0x1e0] ss:$16 sps:$4 sm:$0xff]  }
0x1249   :  { %8242 = vmatprep.subr.bf16.mxu1 %v20964_v19  ;;  %v21028_v19 = vld [vmem:[%s28093_s6 + $0x1e8] ss:$16 sps:$4 sm:$0xff]  }
0x124c   :  { %8243 = vmatpush2.bf16.msra.mxu1 %v20962_v45  ;;  %v21033_v45 = vld [vmem:[%s28093_s6 + $0x1c4] ss:$16 sps:$4 sm:$0xff]  }
0x124d   :  { %8244 = vmatprep.subr.bf16.mxu1 %v20967_v40  ;;  %v21036_v40 = vld [vmem:[%s28093_s6 + $0x1cc] ss:$16 sps:$4 sm:$0xff]  }
0x1250   :  { %8245 = vmatpush2.bf16.msra.mxu1 %v20965_v23  ;;  %v21031_v23 = vld [vmem:[%s28093_s6 + $0x1c0] ss:$16 sps:$4 sm:$0xff]  }
0x1251   :  { %8246 = vmatprep.subr.bf16.mxu1 %v20970_v24  ;;  %v21034_v24 = vld [vmem:[%s28093_s6 + $0x1c8] ss:$16 sps:$4 sm:$0xff]  }
0x1254   :  { %8247 = vmatpush2.bf16.msra.mxu1 %v20968_v42  ;;  %v21039_v42 = vld [vmem:[%s28093_s6 + $0x1a4] ss:$16 sps:$4 sm:$0xff]  }
0x1255   :  { %8248 = vmatprep.subr.bf16.mxu1 %v20973_v8  ;;  %v21042_v8 = vld [vmem:[%s28093_s6 + $0x1ac] ss:$16 sps:$4 sm:$0xff]  }
0x1258   :  { %8249 = vmatpush2.bf16.msra.mxu1 %v20971_v29  ;;  %v21037_v29 = vld [vmem:[%s28093_s6 + $0x1a0] ss:$16 sps:$4 sm:$0xff]  }
0x1259   :  { %8250 = vmatprep.subr.bf16.mxu1 %v20976_v41  ;;  %v21040_v41 = vld [vmem:[%s28093_s6 + $0x1a8] ss:$16 sps:$4 sm:$0xff]  }
0x125c   :  { %8251 = vmatpush2.bf16.msra.mxu1 %v20974_v31  ;;  %v21045_v31 = vld [vmem:[%s28093_s6 + $0x184] ss:$16 sps:$4 sm:$0xff]  }
0x125d   :  { %8774 = vmatprep.subr.bf16.mxu1 %v20982_v60  ;;  %v21049_v60 = vld [vmem:[%s28093_s6 + $0x160] ss:$16 sps:$4 sm:$0xff]  }
0x125f   :  { %8253 = vmatmul.mubr.bf16.vlgmr.msra.gmra.mxu1 %v24992_v44  ;;  %v20988_v44 = vld [vmem:[%s28093_s6 + $0xcc] ss:$16 sps:$4 sm:$0xff]  }
0x1260   :  { %8806 = vmatprep.mubr.bf16.mxu1 %v24782_v15  ;;  %v20985_v15 = vld [vmem:[%s28093_s6 + $0xc4] ss:$16 sps:$4 sm:$0xff]   ;;  %8775 = vmatpush1.bf16.msra.mxu1 %v20980_v13  ;;  %v21046_v13 = vld [vmem:[%s28093_s6 + $0x188] ss:$16 sps:$4 sm:$0xff]  }
0x1261   :  { %8735 = vmatprep.subr.bf16.mxu0 %v20985_v15  ;;  %8776 = vmatprep.subr.bf16.mxu1 %v20988_v44  ;;  %v21051_v15 = vld [vmem:[%s28093_s6 + $0x164] ss:$16 sps:$4 sm:$0xff]   ;;  %v21052_v44 = vld [vmem:[%s28093_s6 + $0x168] ss:$16 sps:$4 sm:$0xff]  }
0x1262   :  { %8736 = vmatpush1.bf16.msra.mxu0 %v20983_v9  ;;  %v21054_v9 = vld [vmem:[%s28093_s6 + $0x16c] ss:$16 sps:$4 sm:$0xff]  }
0x1263   :  { %8737 = vmatprep.subr.bf16.mxu0 %v20991_v21  ;;  %v21060_v21 = vld [vmem:[%s28093_s6 + $0x14c] ss:$16 sps:$4 sm:$0xff]  }
0x1264   :  { %8777 = vmatpush1.bf16.msra.mxu1 %v20986_v32  ;;  %v21057_v32 = vld [vmem:[%s28093_s6 + $0x144] ss:$16 sps:$4 sm:$0xff]  }
0x1265   :  { %8778 = vmatprep.subr.bf16.mxu1 %v20994_v25  ;;  %v21055_v25 = vld [vmem:[%s28093_s6 + $0x140] ss:$16 sps:$4 sm:$0xff]  }
0x1266   :  { %8738 = vmatpush1.bf16.msra.mxu0 %v20989_v62  ;;  %v21058_v62 = vld [vmem:[%s28093_s6 + $0x148] ss:$16 sps:$4 sm:$0xff]  }
0x1267   :  { %8739 = vmatprep.subr.bf16.mxu0 %v20997_v20  ;;  %v21066_v20 = vld [vmem:[%s28093_s6 + $0x12c] ss:$16 sps:$4 sm:$0xff]  }
0x1268   :  { %8779 = vmatpush1.bf16.msra.mxu1 %v20992_v12  ;;  %v21063_v12 = vld [vmem:[%s28093_s6 + $0x124] ss:$16 sps:$4 sm:$0xff]  }
0x1269   :  { %8780 = vmatprep.subr.bf16.mxu1 %v21000_v34 }
0x126a   :  { %8740 = vmatpush1.bf16.msra.mxu0 %v20995_v58 }
0x126b   :  { %8741 = vmatprep.subr.bf16.mxu0 %v21003_v51  ;;  %v21064_v51 = vld [vmem:[%s28093_s6 + $0x128] ss:$16 sps:$4 sm:$0xff]  }
0x126c   :  { %8781 = vmatpush1.bf16.msra.mxu1 %v20998_v4  ;;  %v21061_v4 = vld [vmem:[%s28093_s6 + $0x120] ss:$16 sps:$4 sm:$0xff]  }
0x126d   :  { %8782 = vmatprep.subr.bf16.mxu1 %v21006_v35  ;;  %v21069_v35 = vld [vmem:[%s28093_s6 + $0x104] ss:$16 sps:$4 sm:$0xff]  }
0x126e   :  { %8742 = vmatpush1.bf16.msra.mxu0 %v21001_v39 }
0x126f   :  { %8743 = vmatprep.subr.bf16.mxu0 %v21009_v55  ;;  %v21072_v55 = vld [vmem:[%s28093_s6 + $0x10c] ss:$16 sps:$4 sm:$0xff]  }
0x1270   :  { %8783 = vmatpush1.bf16.msra.mxu1 %v21004_v38 }
0x1271   :  { %8784 = vmatprep.subr.bf16.mxu1 %v21012_v26 }
0x1272   :  { %8744 = vmatpush1.bf16.msra.mxu0 %v21007_v56 }
0x1273   :  { %8745 = vmatprep.subr.bf16.mxu0 %v21015_v10  ;;  %v21070_v10 = vld [vmem:[%s28093_s6 + $0x108] ss:$16 sps:$4 sm:$0xff]  }
0x1274   :  { %8785 = vmatpush1.bf16.msra.mxu1 %v21010_v57  ;;  %v21067_v57 = vld [vmem:[%s28093_s6 + $0x100] ss:$16 sps:$4 sm:$0xff]  }
0x1275   :  { %8786 = vmatprep.subr.bf16.mxu1 %v21018_v28 }
0x1276   :  { %8746 = vmatpush1.bf16.msra.mxu0 %v21013_v37 }
0x1277   :  { %8747 = vmatprep.subr.bf16.mxu0 %v21021_v17 }
0x1278   :  { %8787 = vmatpush1.bf16.msra.mxu1 %v21016_v36 }
0x1279   :  { %8788 = vmatprep.subr.bf16.mxu1 %v21024_v48 }
0x127a   :  { %8748 = vmatpush1.bf16.msra.mxu0 %v21019_v59 }
0x127b   :  { %8749 = vmatprep.subr.bf16.mxu0 %v21027_v16 }
0x127c   :  { %8789 = vmatpush1.bf16.msra.mxu1 %v21022_v43 }
0x127d   :  { %8790 = vmatprep.subr.bf16.mxu1 %v21030_v11 }
0x127e   :  { %8750 = vmatpush2.bf16.msra.mxu0 %v21025_v47 }
0x127f   :  { %8751 = vmatprep.subr.bf16.mxu0 %v21033_v45 }
0x1280   :  { %8791 = vmatpush2.bf16.msra.mxu1 %v21028_v19  ;;  %v7636_v19 = vld [vmem:[%s28094_s5] sm:$0xf] }
0x1281   :  { %8792 = vmatprep.subr.bf16.mxu1 %v21036_v40  ;;  %v7645_v45 = vrot.slane %v7636_v19, %v22998_v49  ;;  %v7641_v40 = vrot.slane %v7636_v19, %v23001_v50 }
0x1282   :  { %8752 = vmatpush2.bf16.msra.mxu0 %v21031_v23 }
0x1283   :  { %8753 = vmatprep.subr.bf16.mxu0 %v21039_v42 }
0x1284   :  { %8793 = vmatpush2.bf16.msra.mxu1 %v21034_v24 }
0x1285   :  { %8794 = vmatprep.subr.bf16.mxu1 %v21042_v8 }
0x1286   :  { %8754 = vmatpush2.bf16.msra.mxu0 %v21037_v29 }
0x1287   :  { %8755 = vmatprep.subr.bf16.mxu0 %v21045_v31 }
0x1288   :  { %8795 = vmatpush2.bf16.msra.mxu1 %v21040_v41 }
0x1289   :  { %8796 = vmatprep.subr.bf16.mxu1 %v21048_v30 }
0x128a   :  { %8756 = vmatpush2.bf16.msra.mxu0 %v21043_v7  ;;  %v7649_v7 = vrot.slane %v7636_v19, %v23006_v63 }
0x128b   :  { %8757 = vmatprep.subr.bf16.mxu0 %v21051_v15 }
0x128c   :  { %8797 = vmatpush2.bf16.msra.mxu1 %v21046_v13 }
0x128d   :  { %8798 = vmatprep.subr.bf16.mxu1 %v21054_v9 }
0x128e   :  { %8758 = vmatpush2.bf16.msra.mxu0 %v21049_v60  ;;  %v7653_v60 = vrot.slane %v7636_v19, %v23009_v0 }
0x128f   :  { %8759 = vmatprep.subr.bf16.mxu0 %v21057_v32 }
0x1290   :  { %8799 = vmatpush2.bf16.msra.mxu1 %v21052_v44 }
0x1291   :  { %8800 = vmatprep.subr.bf16.mxu1 %v21060_v21 }
0x1292   :  { %8760 = vmatpush2.bf16.msra.mxu0 %v21055_v25 }
0x1293   :  { %8761 = vmatprep.subr.bf16.mxu0 %v21063_v12 }
0x1294   :  { %8801 = vmatpush2.bf16.msra.mxu1 %v21058_v62 }
0x1295   :  { %8802 = vmatprep.subr.bf16.mxu1 %v21066_v20 }
0x1296   :  { %8762 = vmatpush2.bf16.msra.mxu0 %v21061_v4 }
0x1297   :  { %8763 = vmatprep.subr.bf16.mxu0 %v21069_v35 }
0x1298   :  { %8803 = vmatpush2.bf16.msra.mxu1 %v21064_v51 }
0x1299   :  { %8804 = vmatprep.subr.bf16.mxu1 %v21072_v55 }
0x129a   :  { %8764 = vmatpush2.bf16.msra.mxu0 %v21067_v57 }
0x129b   :  { %19563 = vmatprep.subr.bf16.mxu0 %v22429_v33 }
0x129c   :  { %8805 = vmatpush2.bf16.msra.mxu1 %v21070_v10 }
0x129d   :  { %19569 = vmatprep.subr.bf16.mxu1 %v22429_v33 }
0x12bf   :  { %v25358_v34 = vpop.f32.mrf.mxu1  ;;  %v8172_v58 = vpop.f32.mrf.mxu0 }
0x12c0   :  { %v8173_v24 = vadd.f32 %v8172_v58, %v7641_v40 }
0x12c1   :  { %v19561_v39 = vpop.f32.mrf.mxu1  ;;  %v8174_v38 = vpop.f32.mrf.mxu0 }
0x12c2   :  { %v8175_v23 = vadd.f32 %v8174_v38, %v7645_v45 }
0x12c3   :  { %v7522_v26 = vpop.f32.mrf.mxu1  ;;  %v8176_v56 = vpop.f32.mrf.mxu0 }
0x12c5   :  { %v19562_v28 = vpop.f32.mrf.mxu1  ;;  %v8177_v37 = vpop.f32.mrf.mxu0 }
0x12df   :  { %v8213_v36 = vpop.f32.mrf.mxu1  ;;  %v8295_v17 = vpop.f32.mrf.mxu0 }
0x12e0   :  { %v8214_v8 = vadd.f32 %v8213_v36, %v8173_v24  ;;  %v25404_v36 = vld [vmem:[%s28095_s1 + $0x8] sm:$0xff]  }
0x12e1   :  { %v8215_v48 = vpop.f32.mrf.mxu1  ;;  %v8297_v59 = vpop.f32.mrf.mxu0 }
0x12e2   :  { %v8216_v42 = vadd.f32 %v8215_v48, %v8175_v23  ;;  %v18063_v41 = vmul.f32 -1.442695, %v8214_v8 }
0x12e3   :  { %v8217_v43 = vpop.f32.mrf.mxu1  ;;  %v8299_v16 = vpop.f32.mrf.mxu0 }
0x12e4   :  { %v18064_v29 = vmul.f32 -1.442695, %v8216_v42 }
0x12e5   :  { %v8218_v11 = vpop.f32.mrf.mxu1  ;;  %v8300_v47 = vpop.f32.mrf.mxu0 }
0x12e6   :  { %22087 = vpow2.f32 %v18064_v29 }
0x12e7   :  { %22089 = vpow2.f32 %v18063_v41 }
0x12f3   :  { %v22088_v31 = vpop.eup %22087 }
0x12f4   :  { %v22090_v30 = vpop.eup %22089  ;;  %v8311_v13 = vadd.f32 1.0, %v22088_v31 }
0x12f5   :  { %v8305_v15 = vadd.f32 1.0, %v22090_v30 }
0x12f6   :  { %22091 = vrcp.f32 %v8311_v13 }
0x12f7   :  { %22093 = vrcp.f32 %v8305_v15 }
0x1303   :  { %v22092_v4 = vpop.eup %22091 }
0x1304   :  { %v22094_v51 = vpop.eup %22093  ;;  %v8321_v39 = vmul.f32 %v22092_v4, %v24610_v18  ;;  %v25398_v18 = vld [vmem:[%s28095_s1] sm:$0xff]  }
0x131f   :  { %v8254_v44 = vpop.f32.mrf.mxu1 }
0x1320   :  { %v8255_v9 = vadd.f32 %v8254_v44, %v7649_v7 }
0x1321   :  { %v8256_v32 = vpop.f32.mrf.mxu1 }
0x1322   :  { %v8296_v21 = vadd.f32 %v8295_v17, %v8255_v9  ;;  %v8257_v25 = vadd.f32 %v8256_v32, %v7653_v60  ;;  %v8391_v17 = vld [vmem:[%s28096_s7] sm:$0xf] }
0x1323   :  { %v8258_v62 = vpop.f32.mrf.mxu1  ;;  %v8396_v48 = vrot.slane %v8391_v17, %v23001_v50  ;;  %v8408_v41 = vrot.slane %v8391_v17, %v23009_v0  ;;  %v8404_v30 = vrot.slane %v8391_v17, %v23006_v63 }
0x1324   :  { %22095 = vtanh.f32 %v8296_v21  ;;  %v8298_v12 = vadd.f32 %v8297_v59, %v8257_v25  ;;  %v8400_v59 = vrot.slane %v8391_v17, %v22998_v49  ;;  %v25435_v17 = vld [vmem:[%s28095_s1 + $0x10] sm:$0xff]  }
0x1325   :  { %v8259_v20 = vpop.f32.mrf.mxu1 }
0x1326   :  { %v18065_v58 = vmul.f32 -1.442695, %v8298_v12 }
0x1328   :  { %22097 = vpow2.f32 %v18065_v58 }
0x1331   :  { %v22096_v35 = vpop.eup %22095 }
0x1332   :  { %v8322_v38 = vmul.f32 %v22096_v35, %v22094_v51 }
0x1334   :  { %v25388_v55 = vadd.f32 %v8322_v38, %v8321_v39 }
0x1335   :  { %v22098_v26 = vpop.eup %22097 }
0x1336   :  { %v8318_v56 = vadd.f32 1.0, %v22098_v26  ;;  %22099 = vtanh.f32 %v25388_v55 }
0x1338   :  { %22101 = vrcp.f32 %v8318_v56 }
0x1343   :  { %v22100_v57 = vpop.eup %22099 }
0x1345   :  { %v22102_v10 = vpop.eup %22101 }
0x1346   :  { %v8325_v28 = vmul.f32 %v22102_v10, %v22100_v57 }
0x1348   :  { %v25391_v37 = vpack.c.bf16 %v8325_v28, %v8325_v28 }
0x134a   :  { %8766 = vmatmul.mubr.bf16.vlgmr.msra.gmra.mxu0 %v25391_v37  ;;  %8807 = vmatmul.mubr.bf16.vlgmr.msra.gmra.mxu1 %v25391_v37 }
0x134b   :  { %19564 = vmatpush3.bf16.xpose.msra.mxu0 %v25398_v18  ;;  %19570 = vmatpush3.bf16.xpose.msra.mxu1 %v25404_v36 }
0x134c   :  { %19565 = vmatprep.mubr.msk.bf16.mxu0 %vm22430_vm0, %v22429_v33  ;;  %19575 = vmatprep.subr.bf16.mxu0 %v22429_v33 }
0x134d   :  { %19571 = vmatprep.mubr.msk.bf16.mxu1 %vm22430_vm0, %v22429_v33  ;;  %19581 = vmatprep.subr.bf16.mxu1 %v22429_v33 }
0x140a   :  { %v8767_v43 = vpop.f32.mrf.mxu0  ;;  %v8808_v16 = vpop.f32.mrf.mxu1 }
0x140b   :  { %v8768_v11 = vadd.f32 %v8767_v43, %v8396_v48  ;;  %v8809_v60 = vadd.f32 %v8808_v16, %v8404_v30 }
0x140c   :  { %v8769_v47 = vpop.f32.mrf.mxu0  ;;  %v8810_v19 = vpop.f32.mrf.mxu1 }
0x140d   :  { %v18130_v45 = vmul.f32 -1.442695, %v8768_v11  ;;  %v8770_v40 = vadd.f32 %v8769_v47, %v8400_v59  ;;  %v8811_v31 = vadd.f32 %v8810_v19, %v8408_v41  ;;  %v25444_v59 = vld [vmem:[%s28095_s1 + $0x18] sm:$0xff]  }
0x140e   :  { %v8771_v23 = vpop.f32.mrf.mxu0  ;;  %v8812_v24 = vpop.f32.mrf.mxu1 }
0x140f   :  { %22103 = vpow2.f32 %v18130_v45  ;;  %v18131_v42 = vmul.f32 -1.442695, %v8770_v40  ;;  %v18132_v7 = vmul.f32 -1.442695, %v8811_v31  ;;  %v25454_v45 = vld [vmem:[%s28095_s1 + $0x20] sm:$0xff]   ;;  %v25464_v23 = vld [vmem:[%s28095_s1 + $0x28] sm:$0xff]  }
0x1410   :  { %v8772_v8 = vpop.f32.mrf.mxu0  ;;  %v8813_v29 = vpop.f32.mrf.mxu1  ;;  %v25483_v31 = vld [vmem:[%s28095_s1 + $0x38] sm:$0xff]  }
0x1411   :  { %22105 = vpow2.f32 %v18131_v42  ;;  %v25474_v29 = vld [vmem:[%s28095_s1 + $0x30] sm:$0xff]  }
0x1412   :  { %22107 = vpow2.f32 %v18132_v7 }
0x141c   :  { %v22104_v13 = vpop.eup %22103 }
0x141d   :  { %v8818_v15 = vadd.f32 1.0, %v22104_v13 }
0x141e   :  { %v22106_v44 = vpop.eup %22105 }
0x141f   :  { %22109 = vrcp.f32 %v8818_v15  ;;  %v8824_v9 = vadd.f32 1.0, %v22106_v44  ;;  %v22108_v32 = vpop.eup %22107 }
0x1420   :  { %22111 = vtanh.f32 %v8809_v60  ;;  %v8831_v12 = vadd.f32 1.0, %v22108_v32 }
0x1421   :  { %22113 = vrcp.f32 %v8824_v9 }
0x1422   :  { %22115 = vrcp.f32 %v8831_v12 }
0x142c   :  { %v22110_v21 = vpop.eup %22109 }
0x142d   :  { %v22112_v25 = vpop.eup %22111 }
0x142e   :  { %v22114_v62 = vpop.eup %22113  ;;  %v8835_v20 = vmul.f32 %v22112_v25, %v22110_v21 }
0x142f   :  { %v8834_v58 = vmul.f32 %v22114_v62, %v24643_v61  ;;  %v22116_v51 = vpop.eup %22115 }
0x1431   :  { %v25421_v4 = vadd.f32 %v8835_v20, %v8834_v58 }
0x1433   :  { %22117 = vtanh.f32 %v25421_v4 }
0x1440   :  { %v22118_v35 = vpop.eup %22117 }
0x1441   :  { %v25424_v39 = vmul.f32 %v22118_v35, %v22116_v51 }
0x1443   :  { %v8847_v38 = vrot.slane %v25424_v39, %v23051_v14  ;;  %v8840_v28 = vcombine.high %v25424_v39, %v25424_v39 }
0x1445   :  { %v8863_v26 = vrot.slane %v8847_v38, %v23051_v14  ;;  %v8855_v56 = vcombine.high %v8847_v38, %v8847_v38  ;;  %v8854_v16 = vrot.slane %v8840_v28, %v23051_v14 }
0x1447   :  { %v8897_v57 = vpack.c.bf16 %v8863_v26, %v8863_v26  ;;  %v8877_v10 = vrot.slane %v8855_v56, %v23051_v14  ;;  %v8885_v48 = vcombine.high %v8863_v26, %v8863_v26  ;;  %v8856_v19 = vcombine.high %v8854_v16, %v8854_v16 }
0x1448   :  { %v8870_v40 = vrot.slane %v8854_v16, %v23051_v14 }
0x1449   :  { %19566 = vmatmul.mubr.bf16.vlgmr.msra.gmra.mxu0 %v8897_v57  ;;  %v8898_v61 = vpack.c.bf16 %v8877_v10, %v8877_v10  ;;  %v8887_v43 = vcombine.high %v8877_v10, %v8877_v10  ;;  %v8899_v11 = vpack.c.bf16 %v8885_v48, %v8885_v48  ;;  %v8884_v24 = vrot.slane %v8856_v19, %v23051_v14 }
0x144a   :  { %19576 = vmatpush3.bf16.xpose.msra.mxu0 %v25435_v17  ;;  %19577 = vmatprep.mubr.msk.bf16.mxu0 %vm22430_vm0, %v22429_v33  ;;  %v8901_v42 = vpack.c.bf16 %v8870_v40, %v8870_v40  ;;  %v8886_v41 = vcombine.high %v8870_v40, %v8870_v40 }
0x144b   :  { %19572 = vmatmul.mubr.bf16.vlgmr.msra.gmra.mxu1 %v8898_v61  ;;  %19587 = vmatprep.subr.bf16.mxu0 %v22429_v33  ;;  %v8900_v47 = vpack.c.bf16 %v8887_v43, %v8887_v43  ;;  %v8902_v8 = vpack.c.bf16 %v8884_v24, %v8884_v24  ;;  %v8888_v30 = vcombine.high %v8884_v24, %v8884_v24 }
0x144c   :  { %19582 = vmatpush3.bf16.xpose.msra.mxu1 %v25444_v59  ;;  %19583 = vmatprep.mubr.msk.bf16.mxu1 %vm22430_vm0, %v22429_v33  ;;  %v8903_v7 = vpack.c.bf16 %v8886_v41, %v8886_v41 }
0x144d   :  { %19593 = vmatprep.subr.bf16.mxu1 %v22429_v33  ;;  %v8904_v13 = vpack.c.bf16 %v8888_v30, %v8888_v30 }
0x1451   :  { %19578 = vmatmul.mubr.bf16.vlgmr.msra.gmra.mxu0 %v8899_v11 }
0x1452   :  { %19588 = vmatpush3.bf16.xpose.msra.mxu0 %v25454_v45  ;;  %19589 = vmatprep.mubr.msk.bf16.mxu0 %vm22430_vm0, %v22429_v33 }
0x1453   :  { %19584 = vmatmul.mubr.bf16.vlgmr.msra.gmra.mxu1 %v8900_v47  ;;  %19599 = vmatprep.subr.bf16.mxu0 %v22429_v33 }
0x1454   :  { %19594 = vmatpush3.bf16.xpose.msra.mxu1 %v25464_v23  ;;  %19595 = vmatprep.mubr.msk.bf16.mxu1 %vm22430_vm0, %v22429_v33 }
0x1455   :  { %19605 = vmatprep.subr.bf16.mxu1 %v22429_v33 }
0x1459   :  { %19590 = vmatmul.mubr.bf16.vlgmr.msra.gmra.mxu0 %v8901_v42 }
0x145a   :  { %19600 = vmatpush3.bf16.xpose.msra.mxu0 %v25474_v29  ;;  %19601 = vmatprep.mubr.msk.bf16.mxu0 %vm22430_vm0, %v22429_v33 }
0x145b   :  { %19596 = vmatmul.mubr.bf16.vlgmr.msra.gmra.mxu1 %v8902_v8  ;;  %19611 = vmatprep.subr.bf16.mxu0 %v22429_v33 }
0x145c   :  { %19606 = vmatpush3.bf16.xpose.msra.mxu1 %v25483_v31  ;;  %19607 = vmatprep.mubr.msk.bf16.mxu1 %vm22430_vm0, %v22429_v33 }
0x145d   :  { %19617 = vmatprep.subr.bf16.mxu1 %v22429_v33 }
0x1461   :  { %19602 = vmatmul.mubr.bf16.vlgmr.msra.gmra.mxu0 %v8903_v7 }
0x1462   :  { %19612 = vmatpush3.bf16.msra.mxu0 %v25398_v18  ;;  %19613 = vmatprep.mubr.msk.bf16.mxu0 %vm22430_vm0, %v22429_v33 }
0x1463   :  { %19608 = vmatmul.mubr.bf16.vlgmr.msra.gmra.mxu1 %v8904_v13  ;;  %19623 = vmatprep.subr.bf16.mxu0 %v22429_v33 }
0x1464   :  { %19618 = vmatpush3.bf16.msra.mxu1 %v25404_v36  ;;  %19619 = vmatprep.mubr.msk.bf16.mxu1 %vm22430_vm0, %v22429_v33 }
0x1465   :  { %19629 = vmatprep.subr.bf16.mxu1 %v22429_v33 }
0x1509   :  { %v8939_v60 = vpop.f32.mrf.mxu0 }
0x150a   :  { %v8940_v15 = vadd.f32 %v8939_v60, %v23131_v53 }
0x150b   :  { %v19567_v44 = vpop.f32.mrf.mxu0  ;;  %v8979_v9 = vpop.f32.mrf.mxu1 }
0x150c   :  { %v8980_v18 = vadd.f32 %v8979_v9, %v23134_v54  ;;  %v9225_v32 = vsel %vm1858_vm1, %v8940_v15, -inf }
0x150d   :  { %9226 = vmax.xlane.f32.xlu0 %v9225_v32  ;;  %v8942_v21 = vpop.f32.mrf.mxu0  ;;  %v19573_v25 = vpop.f32.mrf.mxu1 }
0x150e   :  { %v9228_v62 = vsel %vm1858_vm1, %v8980_v18, -inf }
0x150f   :  { %v19568_v36 = vpop.f32.mrf.mxu0  ;;  %9229 = vmax.xlane.f32.xlu1 %v9228_v62  ;;  %v8982_v12 = vpop.f32.mrf.mxu1 }
0x1511   :  { %v19574_v20 = vpop.f32.mrf.mxu1  ;;  %v9019_v58 = vpop.f32.mrf.mxu0 }
0x1512   :  { %v9020_v51 = vadd.f32 %v9019_v58, %v23146_v2 }
0x1513   :  { %v19579_v35 = vpop.f32.mrf.mxu0  ;;  %v9059_v38 = vpop.f32.mrf.mxu1 }
0x1514   :  { %v9060_v26 = vadd.f32 %v9059_v38, %v23152_v6  ;;  %v9231_v56 = vsel %vm1858_vm1, %v9020_v51, -inf }
0x1515   :  { %9232 = vmax.xlane.f32.xlu0 %v9231_v56  ;;  %v9022_v57 = vpop.f32.mrf.mxu0  ;;  %v19585_v10 = vpop.f32.mrf.mxu1 }
0x1516   :  { %v9234_v61 = vsel %vm1858_vm1, %v9060_v26, -inf }
0x1517   :  { %v19580_v28 = vpop.f32.mrf.mxu0  ;;  %9235 = vmax.xlane.f32.xlu1 %v9234_v61  ;;  %v9062_v48 = vpop.f32.mrf.mxu1 }
0x1519   :  { %v19586_v43 = vpop.f32.mrf.mxu1  ;;  %v9099_v16 = vpop.f32.mrf.mxu0 }
0x151a   :  { %v9100_v11 = vadd.f32 %v9099_v16, %v23159_v22 }
0x151b   :  { %v19591_v47 = vpop.f32.mrf.mxu0  ;;  %v9139_v19 = vpop.f32.mrf.mxu1 }
0x151c   :  { %v9140_v40 = vadd.f32 %v9139_v19, %v23163_v27  ;;  %v9237_v24 = vsel %vm1858_vm1, %v9100_v11, -inf }
0x151d   :  { %9238 = vmax.xlane.f32.xlu0 %v9237_v24  ;;  %v9102_v42 = vpop.f32.mrf.mxu0  ;;  %v19597_v8 = vpop.f32.mrf.mxu1 }
0x151e   :  { %v9240_v41 = vsel %vm1858_vm1, %v9140_v40, -inf }
0x151f   :  { %v19592_v30 = vpop.f32.mrf.mxu0  ;;  %9241 = vmax.xlane.f32.xlu1 %v9240_v41  ;;  %v9142_v7 = vpop.f32.mrf.mxu1 }
0x1521   :  { %v19598_v13 = vpop.f32.mrf.mxu1  ;;  %v9179_v60 = vpop.f32.mrf.mxu0 }
0x1522   :  { %v9180_v44 = vadd.f32 %v9179_v60, %v23171_v46 }
0x1523   :  { %v19603_v9 = vpop.f32.mrf.mxu0  ;;  %v9219_v32 = vpop.f32.mrf.mxu1 }
0x1524   :  { %v9220_v21 = vadd.f32 %v9219_v32, %v23175_v52  ;;  %v9243_v25 = vsel %vm1858_vm1, %v9180_v44, -inf }
0x1525   :  { %9244 = vmax.xlane.f32.xlu0 %v9243_v25  ;;  %v9182_v62 = vpop.f32.mrf.mxu0  ;;  %v19609_v36 = vpop.f32.mrf.mxu1 }
0x1526   :  { %v9246_v12 = vsel %vm1858_vm1, %v9220_v21, -inf }
0x1527   :  { %v19604_v20 = vpop.f32.mrf.mxu0  ;;  %9247 = vmax.xlane.f32.xlu1 %v9246_v12  ;;  %v9222_v58 = vpop.f32.mrf.mxu1 }
0x1529   :  { %v19610_v35 = vpop.f32.mrf.mxu1 }
0x1596   :  { %v9227_v38 = vpop.xlane.xlu0 %9226 }
0x1597   :  { %v9249_v56 = vsub.f32 %v8940_v15, %v9227_v38 }
0x1598   :  { %v9230_v57 = vpop.xlane.xlu1 %9229 }
0x1599   :  { %v9257_v10 = vmul.f32 1.442695, %v9249_v56  ;;  %v9250_v61 = vsub.f32 %v8980_v18, %v9230_v57 }
0x159b   :  { %22119 = vpow2.f32 %v9257_v10  ;;  %v9259_v28 = vmul.f32 1.442695, %v9250_v61 }
0x159d   :  { %22121 = vpow2.f32 %v9259_v28 }
0x159e   :  { %v9233_v48 = vpop.xlane.xlu0 %9232 }
0x159f   :  { %v9251_v43 = vsub.f32 %v9020_v51, %v9233_v48 }
0x15a0   :  { %v9236_v16 = vpop.xlane.xlu1 %9235 }
0x15a1   :  { %v9261_v47 = vmul.f32 1.442695, %v9251_v43  ;;  %v9252_v19 = vsub.f32 %v9060_v26, %v9236_v16 }
0x15a3   :  { %22123 = vpow2.f32 %v9261_v47  ;;  %v9263_v24 = vmul.f32 1.442695, %v9252_v19 }
0x15a5   :  { %22125 = vpow2.f32 %v9263_v24 }
0x15a6   :  { %v9239_v42 = vpop.xlane.xlu0 %9238 }
0x15a7   :  { %v9253_v8 = vsub.f32 %v9100_v11, %v9239_v42 }
0x15a8   :  { %v22120_v41 = vpop.eup %22119  ;;  %v9242_v30 = vpop.xlane.xlu1 %9241 }
0x15a9   :  { %v9265_v7 = vmul.f32 1.442695, %v9253_v8  ;;  %v9254_v15 = vsub.f32 %v9140_v40, %v9242_v30  ;;  %v9273_v13 = vsel %vm1858_vm1, %v22120_v41, 0.0 }
0x15aa   :  { %v22122_v18 = vpop.eup %22121  ;;  %9274 = vadd.xlane.f32.xlu0 %v9273_v13 }
0x15ab   :  { %22127 = vpow2.f32 %v9265_v7  ;;  %v9267_v60 = vmul.f32 1.442695, %v9254_v15  ;;  %v9276_v51 = vsel %vm1858_vm1, %v22122_v18, 0.0 }
0x15ac   :  { %9277 = vadd.xlane.f32.xlu1 %v9276_v51 }
0x15ad   :  { %22129 = vpow2.f32 %v9267_v60 }
0x15ae   :  { %v9245_v26 = vpop.xlane.xlu0 %9244 }
0x15af   :  { %v9255_v9 = vsub.f32 %v9180_v44, %v9245_v26 }
0x15b0   :  { %v22124_v32 = vpop.eup %22123  ;;  %v9248_v25 = vpop.xlane.xlu1 %9247 }
0x15b1   :  { %v9269_v62 = vmul.f32 1.442695, %v9255_v9  ;;  %v9256_v11 = vsub.f32 %v9220_v21, %v9248_v25  ;;  %v9279_v36 = vsel %vm1858_vm1, %v22124_v32, 0.0 }
0x15b2   :  { %v22126_v12 = vpop.eup %22125  ;;  %9280 = vadd.xlane.f32.xlu0 %v9279_v36 }
0x15b3   :  { %22131 = vpow2.f32 %v9269_v62  ;;  %v9271_v40 = vmul.f32 1.442695, %v9256_v11  ;;  %v9282_v20 = vsel %vm1858_vm1, %v22126_v12, 0.0 }
0x15b4   :  { %9283 = vadd.xlane.f32.xlu1 %v9282_v20 }
0x15b5   :  { %22133 = vpow2.f32 %v9271_v40 }
0x15b8   :  { %v22128_v58 = vpop.eup %22127 }
0x15b9   :  { %v9285_v35 = vsel %vm1858_vm1, %v22128_v58, 0.0 }
0x15ba   :  { %v22130_v38 = vpop.eup %22129  ;;  %9286 = vadd.xlane.f32.xlu0 %v9285_v35  ;;  %v21076_v35 = vld [vmem:[%s28098_s8 + $0x30] sm:$0xff]  }
0x15bb   :  { %v9288_v44 = vsel %vm1858_vm1, %v22130_v38, 0.0 }
0x15bc   :  { %9289 = vadd.xlane.f32.xlu1 %v9288_v44  ;;  %v21078_v44 = vld [vmem:[%s28098_s8 + $0x28] sm:$0xff]  }
0x15c0   :  { %v25519_v56 = vpop.eup %22131 }
0x15c1   :  { %v9291_v21 = vsel %vm1858_vm1, %v25519_v56, 0.0 }
0x15c2   :  { %v25523_v57 = vpop.eup %22133  ;;  %9292 = vadd.xlane.f32.xlu0 %v9291_v21  ;;  %v21080_v21 = vld [vmem:[%s28098_s8 + $0x20] sm:$0xff]  }
0x15c3   :  { %v9294_v10 = vsel %vm1858_vm1, %v25523_v57, 0.0 }
0x15c4   :  { %9295 = vadd.xlane.f32.xlu1 %v9294_v10  ;;  %v21082_v10 = vld [vmem:[%s28098_s8 + $0x18] sm:$0xff]  }
0x1633   :  { %v9275_v61 = vpop.xlane.xlu0 %9274 }
0x1634   :  { %22135 = vrcp.f32 %v9275_v61  ;;  %v21083_v61 = vld [vmem:[%s28098_s8 + $0x50] sm:$0xff]  }
0x1635   :  { %v9278_v28 = vpop.xlane.xlu1 %9277 }
0x1636   :  { %22137 = vrcp.f32 %v9278_v28  ;;  %v21084_v28 = vld [vmem:[%s28098_s8 + $0x10] sm:$0xff]  }
0x163b   :  { %v9281_v48 = vpop.xlane.xlu0 %9280 }
0x163c   :  { %22139 = vrcp.f32 %v9281_v48  ;;  %v21085_v48 = vld [vmem:[%s28098_s8 + $0x48] sm:$0xff]  }
0x163d   :  { %v9284_v43 = vpop.xlane.xlu1 %9283 }
0x163e   :  { %22141 = vrcp.f32 %v9284_v43  ;;  %v21086_v43 = vld [vmem:[%s28098_s8 + $0x8] sm:$0xff]  }
0x1641   :  { %v22136_v16 = vpop.eup %22135 }
0x1642   :  { %v9305_v47 = vmul.f32 %v22136_v16, %v22120_v41  ;;  %v21087_v16 = vld [vmem:[%s28098_s8 + $0x40] sm:$0xff]  }
0x1643   :  { %v22138_v19 = vpop.eup %22137  ;;  %v9287_v24 = vpop.xlane.xlu0 %9286 }
0x1644   :  { %v9313_v42 = vpack.c.bf16 %v9305_v47, %v9305_v47  ;;  %v9306_v8 = vmul.f32 %v22138_v19, %v22122_v18  ;;  %22143 = vrcp.f32 %v9287_v24  ;;  %v21088_v47 = vld [vmem:[%s28098_s8] sm:$0xff]   ;;  %v21116_v24 = vld [vmem:[%s28099_s10 + $0x38] sm:$0xff]  }
0x1645   :  { %v9290_v30 = vpop.xlane.xlu1 %9289  ;;  %v21091_v19 = vld [vmem:[%s28090_s4 + $0xe4] ss:$16 sps:$4 sm:$0xff]  }
0x1646   :  { %v9314_v7 = vpack.c.bf16 %v9306_v8, %v9306_v8  ;;  %22145 = vrcp.f32 %v9290_v30  ;;  %19614 = vmatmul.mubr.msk.bf16.vlgmr.msra.gmra.mxu0 %vm1955_vm2, %v9313_v42  ;;  %v21120_v42 = vld [vmem:[%s28099_s10 + $0x30] sm:$0xff]   ;;  %v21124_v8 = vld [vmem:[%s28099_s10 + $0x28] sm:$0xff]  }
0x1647   :  { %19624 = vmatpush3.bf16.msra.mxu0 %v25435_v17  ;;  %19625 = vmatprep.mubr.msk.bf16.mxu0 %vm22430_vm0, %v22429_v33 }
0x1648   :  { %19620 = vmatmul.mubr.msk.bf16.vlgmr.msra.gmra.mxu1 %vm1955_vm2, %v9314_v7  ;;  %19635 = vmatprep.subr.bf16.mxu0 %v22429_v33 }
0x1649   :  { %v22140_v41 = vpop.eup %22139  ;;  %19630 = vmatpush3.bf16.msra.mxu1 %v25444_v59  ;;  %19631 = vmatprep.mubr.msk.bf16.mxu1 %vm22430_vm0, %v22429_v33 }
0x164a   :  { %v9307_v15 = vmul.f32 %v22140_v41, %v22124_v32  ;;  %19641 = vmatprep.subr.bf16.mxu1 %v22429_v33 }
0x164b   :  { %v22142_v13 = vpop.eup %22141  ;;  %v9293_v18 = vpop.xlane.xlu0 %9292 }
0x164c   :  { %v9315_v60 = vpack.c.bf16 %v9307_v15, %v9307_v15  ;;  %v9308_v17 = vmul.f32 %v22142_v13, %v22126_v12  ;;  %22147 = vrcp.f32 %v9293_v18 }
0x164d   :  { %v9296_v51 = vpop.xlane.xlu1 %9295 }
0x164e   :  { %v9316_v26 = vpack.c.bf16 %v9308_v17, %v9308_v17  ;;  %22149 = vrcp.f32 %v9296_v51  ;;  %19626 = vmatmul.mubr.msk.bf16.vlgmr.msra.gmra.mxu0 %vm1955_vm2, %v9315_v60 }
0x164f   :  { %19636 = vmatpush3.bf16.msra.mxu0 %v25454_v45  ;;  %19637 = vmatprep.mubr.msk.bf16.mxu0 %vm22430_vm0, %v22429_v33 }
0x1650   :  { %19632 = vmatmul.mubr.msk.bf16.vlgmr.msra.gmra.mxu1 %vm1955_vm2, %v9316_v26  ;;  %19647 = vmatprep.subr.bf16.mxu0 %v22429_v33 }
0x1651   :  { %v22144_v59 = vpop.eup %22143  ;;  %19642 = vmatpush3.bf16.msra.mxu1 %v25464_v23  ;;  %19643 = vmatprep.mubr.msk.bf16.mxu1 %vm22430_vm0, %v22429_v33 }
0x1652   :  { %v9309_v9 = vmul.f32 %v22144_v59, %v22128_v58  ;;  %19653 = vmatprep.subr.bf16.mxu1 %v22429_v33  ;;  %v21074_v58 = vld [vmem:[%s28098_s8 + $0x38] sm:$0xff]  }
0x1653   :  { %v22146_v32 = vpop.eup %22145 }
0x1654   :  { %v9317_v25 = vpack.c.bf16 %v9309_v9, %v9309_v9  ;;  %v9310_v62 = vmul.f32 %v22146_v32, %v22130_v38  ;;  %v21077_v38 = vld [vmem:[%s28098_s8 + $0x68] sm:$0xff]  }
0x1656   :  { %v9318_v45 = vpack.c.bf16 %v9310_v62, %v9310_v62  ;;  %19638 = vmatmul.mubr.msk.bf16.vlgmr.msra.gmra.mxu0 %vm1955_vm2, %v9317_v25 }
0x1657   :  { %19648 = vmatpush3.bf16.msra.mxu0 %v25474_v29  ;;  %19649 = vmatprep.mubr.msk.bf16.mxu0 %vm22430_vm0, %v22429_v33  ;;  %v25560_v29 = vpack.c.bf16 %v25424_v39, %v25424_v39  ;;  %v21075_v39 = vld [vmem:[%s28098_s8 + $0x70] sm:$0xff]  }
0x1658   :  { %19644 = vmatmul.mubr.msk.bf16.vlgmr.msra.gmra.mxu1 %vm1955_vm2, %v9318_v45 }
0x1659   :  { %v22148_v23 = vpop.eup %22147  ;;  %19654 = vmatpush3.bf16.msra.mxu1 %v25483_v31  ;;  %19655 = vmatprep.mubr.msk.bf16.mxu1 %vm22430_vm0, %v22429_v33  ;;  %v21073_v31 = vld [vmem:[%s28098_s8 + $0x78] sm:$0xff]  }
0x165a   :  { %v9311_v11 = vmul.f32 %v22148_v23, %v25519_v56  ;;  %19659 = vmatprep.subr.bf16.mxu1 %v22429_v33  ;;  %18995 = vmatprep.subr.bf16.mxu0 %v21073_v31  ;;  %v21079_v56 = vld [vmem:[%s28098_s8 + $0x60] sm:$0xff]  }
0x165b   :  { %v22150_v36 = vpop.eup %22149 }
0x165c   :  { %v9319_v12 = vpack.c.bf16 %v9311_v11, %v9311_v11  ;;  %v9312_v40 = vmul.f32 %v22150_v36, %v25523_v57  ;;  %v21081_v57 = vld [vmem:[%s28098_s8 + $0x58] sm:$0xff]  }
0x165e   :  { %v9320_v20 = vpack.c.bf16 %v9312_v40, %v9312_v40  ;;  %19650 = vmatmul.mubr.msk.bf16.vlgmr.msra.gmra.mxu0 %vm1955_vm2, %v9319_v12 }
0x165f   :  { %9857 = vmatprep.mubr.bf16.mxu0 %v25560_v29  ;;  %18996 = vmatpush3.bf16.msra.mxu0 %v21074_v58 }
0x1660   :  { %19656 = vmatmul.mubr.msk.bf16.vlgmr.msra.gmra.mxu1 %vm1955_vm2, %v9320_v20  ;;  %18997 = vmatprep.subr.bf16.mxu0 %v21075_v39 }
0x1661   :  { %19675 = vmatprep.mubr.msk.bf16.mxu1 %vm22430_vm0, %v22429_v33  ;;  %19660 = vmatpush3.bf16.msra.mxu1 %v21116_v24 }
0x1662   :  { %19661 = vmatprep.subr.bf16.mxu1 %v22429_v33 }
0x1663   :  { %18998 = vmatpush3.bf16.msra.mxu0 %v21076_v35 }
0x1664   :  { %18999 = vmatprep.subr.bf16.mxu0 %v21077_v38 }
0x1665   :  { %19662 = vmatpush3.bf16.msra.mxu1 %v21120_v42 }
0x1666   :  { %19663 = vmatprep.subr.bf16.mxu1 %v22429_v33 }
0x1667   :  { %19000 = vmatpush3.bf16.msra.mxu0 %v21078_v44 }
0x1668   :  { %19001 = vmatprep.subr.bf16.mxu0 %v21079_v56 }
0x1669   :  { %19664 = vmatpush3.bf16.msra.mxu1 %v21124_v8 }
0x166a   :  { %19665 = vmatprep.subr.bf16.mxu1 %v22429_v33 }
0x166b   :  { %19002 = vmatpush3.bf16.msra.mxu0 %v21080_v21 }
0x166c   :  { %19003 = vmatprep.subr.bf16.mxu0 %v21081_v57 }
0x166f   :  { %19004 = vmatpush3.bf16.msra.mxu0 %v21082_v10 }
0x1670   :  { %19005 = vmatprep.subr.bf16.mxu0 %v21083_v61 }
0x1673   :  { %19006 = vmatpush3.bf16.msra.mxu0 %v21084_v28 }
0x1674   :  { %19007 = vmatprep.subr.bf16.mxu0 %v21085_v48 }
0x1677   :  { %19008 = vmatpush3.bf16.msra.mxu0 %v21086_v43 }
0x1678   :  { %19009 = vmatprep.subr.bf16.mxu0 %v21087_v16 }
0x167b   :  { %19010 = vmatpush3.bf16.msra.mxu0 %v21088_v47 }
0x167c   :  { %10591 = vmatprep.subr.bf16.mxu0 %v21091_v19 }
0x1706   :  { %v9358_v30 = vpop.f32.mrf.mxu0 }
0x1708   :  { %v19615_v7 = vpop.f32.mrf.mxu0  ;;  %v9401_v41 = vpop.f32.mrf.mxu1 }
0x1709   :  { %v9673_v25 = vrot.slane %v9401_v41, 7  ;;  %v21089_v7 = vld [vmem:[%s28090_s4 + $0xe0] ss:$16 sps:$4 sm:$0xff]  }
0x170a   :  { %v9361_v15 = vpop.f32.mrf.mxu0  ;;  %v19621_v13 = vpop.f32.mrf.mxu1 }
0x170b   :  { %v9674_v12 = vsel %vm2309_vm3, %v9673_v25, %v9358_v30  ;;  %v21101_v25 = vld [vmem:[%s28090_s4 + $0x60] ss:$16 sps:$4 sm:$0xff]  }
0x170c   :  { %v19616_v18 = vpop.f32.mrf.mxu0  ;;  %v9404_v60 = vpop.f32.mrf.mxu1 }
0x170d   :  { %v21094_v18 = vld [vmem:[%s28090_s4 + $0xc4] ss:$16 sps:$4 sm:$0xff]  }
0x170e   :  { %v19622_v17 = vpop.f32.mrf.mxu1  ;;  %v9444_v51 = vpop.f32.mrf.mxu0 }
0x170f   :  { %v9675_v23 = vrot.slane %v9444_v51, 6  ;;  %v21092_v17 = vld [vmem:[%s28090_s4 + $0xc0] ss:$16 sps:$4 sm:$0xff]   ;;  %v21097_v51 = vld [vmem:[%s28090_s4 + $0xa4] ss:$16 sps:$4 sm:$0xff]  }
0x1710   :  { %v19627_v26 = vpop.f32.mrf.mxu0  ;;  %v9487_v59 = vpop.f32.mrf.mxu1 }
0x1711   :  { %v9677_v40 = vrot.slane %v9487_v59, 5  ;;  %v9676_v58 = vsel %vm2312_vm4, %v9675_v23, %v9674_v12  ;;  %v21095_v26 = vld [vmem:[%s28090_s4 + $0xa0] ss:$16 sps:$4 sm:$0xff]   ;;  %v21100_v59 = vld [vmem:[%s28090_s4 + $0x84] ss:$16 sps:$4 sm:$0xff]  }
0x1712   :  { %v9447_v9 = vpop.f32.mrf.mxu0  ;;  %v19633_v32 = vpop.f32.mrf.mxu1  ;;  %v21109_v23 = vld [vmem:[%s28090_s4 + $0x24] ss:$16 sps:$4 sm:$0xff]   ;;  %v21110_v12 = vld [vmem:[%s28090_s4] ss:$16 sps:$4 sm:$0xff]  }
0x1713   :  { %v9678_v44 = vsel %vm2315_vm5, %v9677_v40, %v9676_v58  ;;  %v21098_v9 = vld [vmem:[%s28090_s4 + $0x80] ss:$16 sps:$4 sm:$0xff]   ;;  %v21103_v32 = vld [vmem:[%s28090_s4 + $0x64] ss:$16 sps:$4 sm:$0xff]  }
0x1714   :  { %v19628_v62 = vpop.f32.mrf.mxu0  ;;  %v9490_v45 = vpop.f32.mrf.mxu1  ;;  %v21115_v40 = vld [vmem:[%s28090_s4 + $0x1e4] ss:$16 sps:$4 sm:$0xff]   ;;  %v21117_v58 = vld [vmem:[%s28090_s4 + $0x1c0] ss:$16 sps:$4 sm:$0xff]  }
0x1715   :  { %v21106_v62 = vld [vmem:[%s28090_s4 + $0x44] ss:$16 sps:$4 sm:$0xff]   ;;  %v21104_v45 = vld [vmem:[%s28090_s4 + $0x40] ss:$16 sps:$4 sm:$0xff]  }
0x1716   :  { %v19634_v11 = vpop.f32.mrf.mxu1  ;;  %v9530_v36 = vpop.f32.mrf.mxu0 }
0x1717   :  { %v9679_v39 = vrot.slane %v9530_v36, 4  ;;  %v21107_v11 = vld [vmem:[%s28090_s4 + $0x20] ss:$16 sps:$4 sm:$0xff]   ;;  %v21112_v36 = vld [vmem:[%s28090_s4 + $0x4] ss:$16 sps:$4 sm:$0xff]  }
0x1718   :  { %v19639_v20 = vpop.f32.mrf.mxu0  ;;  %v9573_v31 = vpop.f32.mrf.mxu1 }
0x1719   :  { %v9681_v56 = vrot.slane %v9573_v31, 3  ;;  %v9680_v10 = vsel %vm2318_vm6, %v9679_v39, %v9678_v44  ;;  %v21113_v20 = vld [vmem:[%s28090_s4 + $0x1e0] ss:$16 sps:$4 sm:$0xff]   ;;  %v21119_v31 = vld [vmem:[%s28090_s4 + $0x1c4] ss:$16 sps:$4 sm:$0xff]  }
0x171a   :  { %v9533_v35 = vpop.f32.mrf.mxu0  ;;  %v19645_v38 = vpop.f32.mrf.mxu1  ;;  %v21123_v39 = vld [vmem:[%s28090_s4 + $0x1a4] ss:$16 sps:$4 sm:$0xff]   ;;  %v21125_v44 = vld [vmem:[%s28090_s4 + $0x180] ss:$16 sps:$4 sm:$0xff]  }
0x171b   :  { %v9682_v43 = vsel %vm2321_vm7, %v9681_v56, %v9680_v10  ;;  %v21121_v35 = vld [vmem:[%s28090_s4 + $0x1a0] ss:$16 sps:$4 sm:$0xff]   ;;  %v21127_v38 = vld [vmem:[%s28090_s4 + $0x184] ss:$16 sps:$4 sm:$0xff]   ;;  %v21132_v10 = vld [vmem:[%s28099_s10 + $0x18] sm:$0xff]  }
0x171c   :  { %v19640_v21 = vpop.f32.mrf.mxu0  ;;  %v9576_v57 = vpop.f32.mrf.mxu1  ;;  %v21128_v56 = vld [vmem:[%s28099_s10 + $0x20] sm:$0xff]  }
0x171d   :  { %19666 = vmatpush3.bf16.msra.mxu1 %v21128_v56  ;;  %v21131_v21 = vld [vmem:[%s28090_s4 + $0x164] ss:$16 sps:$4 sm:$0xff]   ;;  %v21129_v57 = vld [vmem:[%s28090_s4 + $0x160] ss:$16 sps:$4 sm:$0xff]  }
0x171e   :  { %v19646_v61 = vpop.f32.mrf.mxu1  ;;  %v9616_v28 = vpop.f32.mrf.mxu0  ;;  %19667 = vmatprep.subr.bf16.mxu1 %v22429_v33  ;;  %v21169_v56 = vld [vmem:[%s28090_s4 + $0x260] ss:$16 sps:$4 sm:$0xff]  }
0x171f   :  { %v9683_v48 = vrot.slane %v9616_v28, 2  ;;  %v21135_v61 = vld [vmem:[%s28090_s4 + $0x144] ss:$16 sps:$4 sm:$0xff]   ;;  %v21133_v28 = vld [vmem:[%s28090_s4 + $0x140] ss:$16 sps:$4 sm:$0xff]  }
0x1720   :  { %v19651_v16 = vpop.f32.mrf.mxu0  ;;  %v9659_v47 = vpop.f32.mrf.mxu1 }
0x1721   :  { %v9684_v19 = vsel %vm2324_vm8, %v9683_v48, %v9682_v43  ;;  %v9685_v24 = vrot.slane %v9659_v47, 1  ;;  %19668 = vmatpush3.bf16.msra.mxu1 %v21132_v10  ;;  %v21136_v48 = vld [vmem:[%s28099_s10 + $0x10] sm:$0xff]   ;;  %v21140_v47 = vld [vmem:[%s28099_s10 + $0x8] sm:$0xff]  }
0x1722   :  { %v9619_v42 = vpop.f32.mrf.mxu0  ;;  %v19657_v8 = vpop.f32.mrf.mxu1  ;;  %19669 = vmatprep.subr.bf16.mxu1 %v22429_v33  ;;  %v21139_v43 = vld [vmem:[%s28090_s4 + $0x124] ss:$16 sps:$4 sm:$0xff]   ;;  %v21137_v16 = vld [vmem:[%s28090_s4 + $0x120] ss:$16 sps:$4 sm:$0xff]   ;;  %v21180_v10 = vld [vmem:[%s28090_s4 + $0x24c] ss:$16 sps:$4 sm:$0xff]  }
0x1723   :  { %v9686_v30 = vsel %vm2327_vm9, %v9685_v24, %v9684_v19  ;;  %v21143_v19 = vld [vmem:[%s28090_s4 + $0x104] ss:$16 sps:$4 sm:$0xff]   ;;  %v21141_v24 = vld [vmem:[%s28090_s4 + $0x100] ss:$16 sps:$4 sm:$0xff]  }
0x1724   :  { %v9688_v41 = vpack.c.bf16 %v9686_v30, %v9686_v30  ;;  %v19652_v15 = vpop.f32.mrf.mxu0  ;;  %v9662_v13 = vpop.f32.mrf.mxu1  ;;  %v21144_v42 = vld [vmem:[%s28099_s10] sm:$0xff]  }
0x1725   :  { %19670 = vmatpush3.bf16.msra.mxu1 %v21136_v48  ;;  %v18168_v8 = vld [vmem:[%s28092_s0 + $0x20] sm:$0xff] }
0x1726   :  { %v19658_v60 = vpop.f32.mrf.mxu1  ;;  %9858 = vmatmul.mubr.bf16.vlgmr.msra.gmra.mxu0 %v9688_v41  ;;  %19671 = vmatprep.subr.bf16.mxu1 %v22429_v33  ;;  %v25752_v30 = vpack.c.bf16 %v18168_v8, %v18168_v8  ;;  %v21150_v41 = vld [vmem:[%s28090_s4 + $0x2ec] ss:$16 sps:$4 sm:$0xff]   ;;  %v18141_v13 = vld [vmem:[%s28100_s9] ss:$0 sm:$0xff]  ;;  %v21183_v48 = vld [vmem:[%s28090_s4 + $0x224] ss:$16 sps:$4 sm:$0xff]  }
0x1727   :  { %10592 = vmatpush1.bf16.msra.mxu0 %v21089_v7  ;;  %v21147_v7 = vld [vmem:[%s28090_s4 + $0x2e4] ss:$16 sps:$4 sm:$0xff]   ;;  %v21190_v8 = vld [vmem:[%s28090_s4 + $0x208] ss:$16 sps:$4 sm:$0xff]  }
0x1728   :  { %10593 = vmatprep.subr.bf16.mxu0 %v21094_v18  ;;  %10623 = vmatprep.mubr.bf16.mxu0 %v25752_v30 }
0x1729   :  { %19672 = vmatpush3.bf16.msra.mxu1 %v21140_v47  ;;  %v21184_v47 = vld [vmem:[%s28090_s4 + $0x228] ss:$16 sps:$4 sm:$0xff]  }
0x172a   :  { %19673 = vmatprep.subr.bf16.mxu1 %v22429_v33 }
0x172b   :  { %10594 = vmatpush1.bf16.msra.mxu0 %v21092_v17 }
0x172c   :  { %10595 = vmatprep.subr.bf16.mxu0 %v21097_v51 }
0x172d   :  { %19674 = vmatpush3.bf16.msra.mxu1 %v21144_v42  ;;  %v21187_v42 = vld [vmem:[%s28090_s4 + $0x200] ss:$16 sps:$4 sm:$0xff]  }
0x172e   :  { %10632 = vmatprep.subr.bf16.mxu1 %v21147_v7  ;;  %v21195_v7 = vld [vmem:[%s28090_s4 + $0xec] ss:$16 sps:$4 sm:$0xff]  }
0x172f   :  { %10596 = vmatpush1.bf16.msra.mxu0 %v21095_v26 }
0x1730   :  { %10597 = vmatprep.subr.bf16.mxu0 %v21100_v59 }
0x1733   :  { %10598 = vmatpush1.bf16.msra.mxu0 %v21098_v9  ;;  %v21145_v9 = vld [vmem:[%s28090_s4 + $0x2e0] ss:$16 sps:$4 sm:$0xff]  }
0x1734   :  { %10599 = vmatprep.subr.bf16.mxu0 %v21103_v32  ;;  %v21148_v32 = vld [vmem:[%s28090_s4 + $0x2e8] ss:$16 sps:$4 sm:$0xff]  }
0x1737   :  { %10600 = vmatpush1.bf16.msra.mxu0 %v21101_v25 }
0x1738   :  { %10601 = vmatprep.subr.bf16.mxu0 %v21106_v62  ;;  %v21153_v62 = vld [vmem:[%s28090_s4 + $0x2c4] ss:$16 sps:$4 sm:$0xff]  }
0x173b   :  { %10602 = vmatpush1.bf16.msra.mxu0 %v21104_v45  ;;  %v21156_v45 = vld [vmem:[%s28090_s4 + $0x2cc] ss:$16 sps:$4 sm:$0xff]  }
0x173c   :  { %10603 = vmatprep.subr.bf16.mxu0 %v21109_v23  ;;  %v21151_v23 = vld [vmem:[%s28090_s4 + $0x2c0] ss:$16 sps:$4 sm:$0xff]  }
0x173f   :  { %10604 = vmatpush1.bf16.msra.mxu0 %v21107_v11  ;;  %v21154_v11 = vld [vmem:[%s28090_s4 + $0x2c8] ss:$16 sps:$4 sm:$0xff]  }
0x1740   :  { %10605 = vmatprep.subr.bf16.mxu0 %v21112_v36  ;;  %v21159_v36 = vld [vmem:[%s28090_s4 + $0x2a4] ss:$16 sps:$4 sm:$0xff]  }
0x1743   :  { %10606 = vmatpush1.bf16.msra.mxu0 %v21110_v12  ;;  %v21162_v12 = vld [vmem:[%s28090_s4 + $0x2ac] ss:$16 sps:$4 sm:$0xff]  }
0x1744   :  { %10607 = vmatprep.subr.bf16.mxu0 %v21115_v40  ;;  %v21157_v40 = vld [vmem:[%s28090_s4 + $0x2a0] ss:$16 sps:$4 sm:$0xff]  }
0x1747   :  { %10608 = vmatpush2.bf16.msra.mxu0 %v21113_v20  ;;  %v21160_v20 = vld [vmem:[%s28090_s4 + $0x2a8] ss:$16 sps:$4 sm:$0xff]  }
0x1748   :  { %10609 = vmatprep.subr.bf16.mxu0 %v21119_v31  ;;  %v21165_v31 = vld [vmem:[%s28090_s4 + $0x284] ss:$16 sps:$4 sm:$0xff]  }
0x174b   :  { %10610 = vmatpush2.bf16.msra.mxu0 %v21117_v58  ;;  %v21168_v58 = vld [vmem:[%s28090_s4 + $0x28c] ss:$16 sps:$4 sm:$0xff]  }
0x174c   :  { %10611 = vmatprep.subr.bf16.mxu0 %v21123_v39  ;;  %v21163_v39 = vld [vmem:[%s28090_s4 + $0x280] ss:$16 sps:$4 sm:$0xff]  }
0x174f   :  { %10612 = vmatpush2.bf16.msra.mxu0 %v21121_v35  ;;  %v21166_v35 = vld [vmem:[%s28090_s4 + $0x288] ss:$16 sps:$4 sm:$0xff]  }
0x1750   :  { %10613 = vmatprep.subr.bf16.mxu0 %v21127_v38  ;;  %v21171_v38 = vld [vmem:[%s28090_s4 + $0x264] ss:$16 sps:$4 sm:$0xff]  }
0x1753   :  { %10614 = vmatpush2.bf16.msra.mxu0 %v21125_v44  ;;  %v21174_v44 = vld [vmem:[%s28090_s4 + $0x26c] ss:$16 sps:$4 sm:$0xff]  }
0x1754   :  { %10615 = vmatprep.subr.bf16.mxu0 %v21131_v21  ;;  %v21172_v21 = vld [vmem:[%s28090_s4 + $0x268] ss:$16 sps:$4 sm:$0xff]  }
0x1757   :  { %10616 = vmatpush2.bf16.msra.mxu0 %v21129_v57  ;;  %v21177_v57 = vld [vmem:[%s28090_s4 + $0x244] ss:$16 sps:$4 sm:$0xff]  }
0x1758   :  { %10617 = vmatprep.subr.bf16.mxu0 %v21135_v61  ;;  %v21175_v61 = vld [vmem:[%s28090_s4 + $0x240] ss:$16 sps:$4 sm:$0xff]  }
0x175b   :  { %10618 = vmatpush2.bf16.msra.mxu0 %v21133_v28  ;;  %v21178_v28 = vld [vmem:[%s28090_s4 + $0x248] ss:$16 sps:$4 sm:$0xff]  }
0x175c   :  { %10619 = vmatprep.subr.bf16.mxu0 %v21139_v43  ;;  %v21186_v43 = vld [vmem:[%s28090_s4 + $0x22c] ss:$16 sps:$4 sm:$0xff]  }
0x175f   :  { %10620 = vmatpush2.bf16.msra.mxu0 %v21137_v16  ;;  %v21181_v16 = vld [vmem:[%s28090_s4 + $0x220] ss:$16 sps:$4 sm:$0xff]  }
0x1760   :  { %10621 = vmatprep.subr.bf16.mxu0 %v21143_v19  ;;  %v21189_v19 = vld [vmem:[%s28090_s4 + $0x204] ss:$16 sps:$4 sm:$0xff]  }
0x1763   :  { %10622 = vmatpush2.bf16.msra.mxu0 %v21141_v24  ;;  %v21192_v24 = vld [vmem:[%s28090_s4 + $0x20c] ss:$16 sps:$4 sm:$0xff]  }
0x1764   :  { %10714 = vmatprep.subr.bf16.mxu0 %v21150_v41  ;;  %v21193_v41 = vld [vmem:[%s28090_s4 + $0xe8] ss:$16 sps:$4 sm:$0xff]  }
0x17e6   :  { %v19011_v15 = vpop.f32.mrf.mxu0 }
0x17e8   :  { %v19012_v18 = vpop.f32.mrf.mxu0 }
0x17e9   :  { %v19013_v60 = vadd.f32 %v19012_v18, %v19011_v15  ;;  %v21198_v15 = vld [vmem:[%s28090_s4 + $0xcc] ss:$16 sps:$4 sm:$0xff]  }
0x17ea   :  { %v19014_v17 = vpop.f32.mrf.mxu0  ;;  %v21201_v18 = vld [vmem:[%s28090_s4 + $0xac] ss:$16 sps:$4 sm:$0xff]  }
0x17eb   :  { %v9860_v51 = vadd.f32 %v19013_v60, %v18141_v13  ;;  %v21196_v13 = vld [vmem:[%s28090_s4 + $0xc8] ss:$16 sps:$4 sm:$0xff]  }
0x17ec   :  { %v19015_v26 = vpop.f32.mrf.mxu0  ;;  %v21199_v60 = vld [vmem:[%s28090_s4 + $0xa8] ss:$16 sps:$4 sm:$0xff]  }
0x17ed   :  { %22151 = vtanh.f32 %v9860_v51  ;;  %v21202_v17 = vld [vmem:[%s28090_s4 + $0x88] ss:$16 sps:$4 sm:$0xff]   ;;  %v21210_v26 = vld [vmem:[%s28090_s4 + $0x4c] ss:$16 sps:$4 sm:$0xff]  }
0x17ee   :  { %v21205_v51 = vld [vmem:[%s28090_s4 + $0x68] ss:$16 sps:$4 sm:$0xff]  }
0x17fa   :  { %v22152_v59 = vpop.eup %22151 }
0x17fb   :  { %v25770_v25 = vpack.c.bf16 %v22152_v59, %v22152_v59  ;;  %v21208_v59 = vld [vmem:[%s28090_s4 + $0x48] ss:$16 sps:$4 sm:$0xff]  }
0x17fd   :  { %19676 = vmatmul.mubr.bf16.vlgmr.msra.gmra.mxu1 %v25770_v25  ;;  %10624 = vmatmul.mubr.bf16.vlgmr.msra.gmra.mxu0 %v25770_v25 }
0x17fe   :  { %10633 = vmatpush1.bf16.msra.mxu1 %v21145_v9  ;;  %10715 = vmatpush1.bf16.msra.mxu0 %v21148_v32  ;;  %v21213_v9 = vld [vmem:[%s28090_s4 + $0x2c] ss:$16 sps:$4 sm:$0xff]   ;;  %v21211_v32 = vld [vmem:[%s28090_s4 + $0x28] ss:$16 sps:$4 sm:$0xff]  }
0x17ff   :  { %10634 = vmatprep.subr.bf16.mxu1 %v21153_v62  ;;  %10716 = vmatprep.subr.bf16.mxu0 %v21156_v45  ;;  %v21216_v62 = vld [vmem:[%s28090_s4 + $0xc] ss:$16 sps:$4 sm:$0xff]   ;;  %v21214_v45 = vld [vmem:[%s28090_s4 + $0x8] ss:$16 sps:$4 sm:$0xff]  }
0x1800   :  { %10664 = vmatprep.mubr.bf16.mxu1 %v22427_v1  ;;  %10746 = vmatprep.mubr.bf16.mxu0 %v22427_v1 }
0x1802   :  { %10635 = vmatpush1.bf16.msra.mxu1 %v21151_v23  ;;  %10717 = vmatpush1.bf16.msra.mxu0 %v21154_v11  ;;  %v21219_v23 = vld [vmem:[%s28090_s4 + $0x1ec] ss:$16 sps:$4 sm:$0xff]   ;;  %v21217_v11 = vld [vmem:[%s28090_s4 + $0x1e8] ss:$16 sps:$4 sm:$0xff]  }
0x1803   :  { %10636 = vmatprep.subr.bf16.mxu1 %v21159_v36  ;;  %10718 = vmatprep.subr.bf16.mxu0 %v21162_v12  ;;  %v21222_v36 = vld [vmem:[%s28090_s4 + $0x1cc] ss:$16 sps:$4 sm:$0xff]   ;;  %v21220_v12 = vld [vmem:[%s28090_s4 + $0x1c8] ss:$16 sps:$4 sm:$0xff]  }
0x1806   :  { %10637 = vmatpush1.bf16.msra.mxu1 %v21157_v40  ;;  %10719 = vmatpush1.bf16.msra.mxu0 %v21160_v20  ;;  %v21225_v40 = vld [vmem:[%s28090_s4 + $0x1ac] ss:$16 sps:$4 sm:$0xff]   ;;  %v21223_v20 = vld [vmem:[%s28090_s4 + $0x1a8] ss:$16 sps:$4 sm:$0xff]  }
0x1807   :  { %10638 = vmatprep.subr.bf16.mxu1 %v21165_v31  ;;  %10720 = vmatprep.subr.bf16.mxu0 %v21168_v58  ;;  %v21228_v31 = vld [vmem:[%s28090_s4 + $0x18c] ss:$16 sps:$4 sm:$0xff]   ;;  %v21226_v58 = vld [vmem:[%s28090_s4 + $0x188] ss:$16 sps:$4 sm:$0xff]  }
0x180a   :  { %10639 = vmatpush1.bf16.msra.mxu1 %v21163_v39  ;;  %10721 = vmatpush1.bf16.msra.mxu0 %v21166_v35  ;;  %v21231_v39 = vld [vmem:[%s28090_s4 + $0x16c] ss:$16 sps:$4 sm:$0xff]   ;;  %v21229_v35 = vld [vmem:[%s28090_s4 + $0x168] ss:$16 sps:$4 sm:$0xff]  }
0x180b   :  { %10640 = vmatprep.subr.bf16.mxu1 %v21171_v38  ;;  %10722 = vmatprep.subr.bf16.mxu0 %v21174_v44  ;;  %v21234_v38 = vld [vmem:[%s28090_s4 + $0x14c] ss:$16 sps:$4 sm:$0xff]   ;;  %v21232_v44 = vld [vmem:[%s28090_s4 + $0x148] ss:$16 sps:$4 sm:$0xff]  }
0x180e   :  { %10641 = vmatpush1.bf16.msra.mxu1 %v21169_v56  ;;  %10723 = vmatpush1.bf16.msra.mxu0 %v21172_v21  ;;  %v21237_v56 = vld [vmem:[%s28090_s4 + $0x12c] ss:$16 sps:$4 sm:$0xff]   ;;  %v21235_v21 = vld [vmem:[%s28090_s4 + $0x128] ss:$16 sps:$4 sm:$0xff]  }
0x180f   :  { %10642 = vmatprep.subr.bf16.mxu1 %v21177_v57  ;;  %10724 = vmatprep.subr.bf16.mxu0 %v21180_v10  ;;  %v21240_v57 = vld [vmem:[%s28090_s4 + $0x10c] ss:$16 sps:$4 sm:$0xff]   ;;  %v21238_v10 = vld [vmem:[%s28090_s4 + $0x108] ss:$16 sps:$4 sm:$0xff]  }
0x1812   :  { %10643 = vmatpush1.bf16.msra.mxu1 %v21175_v61  ;;  %10725 = vmatpush1.bf16.msra.mxu0 %v21178_v28  ;;  %v21241_v61 = vld [vmem:[%s28093_s6 + $0xe0] ss:$16 sps:$4 sm:$0xff]   ;;  %v21243_v28 = vld [vmem:[%s28093_s6 + $0xe4] ss:$16 sps:$4 sm:$0xff]  }
0x1813   :  { %10644 = vmatprep.subr.bf16.mxu1 %v21183_v48  ;;  %10726 = vmatprep.subr.bf16.mxu0 %v21186_v43  ;;  %v21244_v48 = vld [vmem:[%s28093_s6 + $0xe8] ss:$16 sps:$4 sm:$0xff]   ;;  %v21246_v43 = vld [vmem:[%s28093_s6 + $0xec] ss:$16 sps:$4 sm:$0xff]  }
0x1816   :  { %10645 = vmatpush1.bf16.msra.mxu1 %v21181_v16  ;;  %10727 = vmatpush1.bf16.msra.mxu0 %v21184_v47  ;;  %v21247_v16 = vld [vmem:[%s28093_s6 + $0xc0] ss:$16 sps:$4 sm:$0xff]   ;;  %v21250_v47 = vld [vmem:[%s28093_s6 + $0xc8] ss:$16 sps:$4 sm:$0xff]  }
0x1817   :  { %10646 = vmatprep.subr.bf16.mxu1 %v21189_v19  ;;  %10728 = vmatprep.subr.bf16.mxu0 %v21192_v24  ;;  %v21255_v19 = vld [vmem:[%s28093_s6 + $0xa4] ss:$16 sps:$4 sm:$0xff]   ;;  %v21258_v24 = vld [vmem:[%s28093_s6 + $0xac] ss:$16 sps:$4 sm:$0xff]  }
0x181a   :  { %10647 = vmatpush1.bf16.msra.mxu1 %v21187_v42  ;;  %10729 = vmatpush1.bf16.msra.mxu0 %v21190_v8  ;;  %v21253_v42 = vld [vmem:[%s28093_s6 + $0xa0] ss:$16 sps:$4 sm:$0xff]   ;;  %v21256_v8 = vld [vmem:[%s28093_s6 + $0xa8] ss:$16 sps:$4 sm:$0xff]  }
0x181b   :  { %10673 = vmatprep.subr.bf16.mxu1 %v21195_v7  ;;  %11186 = vmatprep.subr.bf16.mxu0 %v21243_v28  ;;  %v21261_v7 = vld [vmem:[%s28093_s6 + $0x84] ss:$16 sps:$4 sm:$0xff]   ;;  %v21312_v28 = vld [vmem:[%s28093_s6 + $0x18c] ss:$16 sps:$4 sm:$0xff]  }
0x181d   :  { %10665 = vmatmul.mubr.bf16.vlgmr.msra.gmra.mxu1 %v25391_v37  ;;  %10747 = vmatmul.mubr.bf16.vlgmr.msra.gmra.mxu0 %v25391_v37  ;;  %v21204_v37 = vld [vmem:[%s28090_s4 + $0x8c] ss:$16 sps:$4 sm:$0xff]  }
0x181e   :  { %10674 = vmatpush1.bf16.msra.mxu1 %v21193_v41  ;;  %11218 = vmatprep.mubr.bf16.mxu0 %v25560_v29  ;;  %v21264_v41 = vld [vmem:[%s28093_s6 + $0x8c] ss:$16 sps:$4 sm:$0xff]  }
0x181f   :  { %10675 = vmatprep.subr.bf16.mxu1 %v21198_v15  ;;  %10705 = vmatprep.mubr.bf16.mxu1 %v25752_v30  ;;  %v21207_v30 = vld [vmem:[%s28090_s4 + $0x6c] ss:$16 sps:$4 sm:$0xff]   ;;  %v21259_v15 = vld [vmem:[%s28093_s6 + $0x80] ss:$16 sps:$4 sm:$0xff]  }
0x1820   :  { %11187 = vmatpush1.bf16.msra.mxu0 %v21241_v61  ;;  %v21309_v61 = vld [vmem:[%s28093_s6 + $0x184] ss:$16 sps:$4 sm:$0xff]  }
0x1822   :  { %10676 = vmatpush1.bf16.msra.mxu1 %v21196_v13  ;;  %v21262_v13 = vld [vmem:[%s28093_s6 + $0x88] ss:$16 sps:$4 sm:$0xff]  }
0x1823   :  { %10677 = vmatprep.subr.bf16.mxu1 %v21201_v18  ;;  %v21267_v18 = vld [vmem:[%s28093_s6 + $0x64] ss:$16 sps:$4 sm:$0xff]  }
0x1826   :  { %10678 = vmatpush1.bf16.msra.mxu1 %v21199_v60  ;;  %v21270_v60 = vld [vmem:[%s28093_s6 + $0x6c] ss:$16 sps:$4 sm:$0xff]  }
0x1827   :  { %10679 = vmatprep.subr.bf16.mxu1 %v21204_v37  ;;  %v21265_v37 = vld [vmem:[%s28093_s6 + $0x60] ss:$16 sps:$4 sm:$0xff]  }
0x182a   :  { %10680 = vmatpush1.bf16.msra.mxu1 %v21202_v17  ;;  %v21268_v17 = vld [vmem:[%s28093_s6 + $0x68] ss:$16 sps:$4 sm:$0xff]  }
0x182b   :  { %10681 = vmatprep.subr.bf16.mxu1 %v21207_v30  ;;  %v21273_v30 = vld [vmem:[%s28093_s6 + $0x44] ss:$16 sps:$4 sm:$0xff]  }
0x182e   :  { %10682 = vmatpush1.bf16.msra.mxu1 %v21205_v51  ;;  %v21276_v51 = vld [vmem:[%s28093_s6 + $0x4c] ss:$16 sps:$4 sm:$0xff]  }
0x182f   :  { %10683 = vmatprep.subr.bf16.mxu1 %v21210_v26  ;;  %v21271_v26 = vld [vmem:[%s28093_s6 + $0x40] ss:$16 sps:$4 sm:$0xff]  }
0x1832   :  { %10684 = vmatpush1.bf16.msra.mxu1 %v21208_v59  ;;  %v21274_v59 = vld [vmem:[%s28093_s6 + $0x48] ss:$16 sps:$4 sm:$0xff]  }
0x1833   :  { %10685 = vmatprep.subr.bf16.mxu1 %v21213_v9  ;;  %v21279_v9 = vld [vmem:[%s28093_s6 + $0x24] ss:$16 sps:$4 sm:$0xff]  }
0x1836   :  { %10686 = vmatpush1.bf16.msra.mxu1 %v21211_v32  ;;  %v21282_v32 = vld [vmem:[%s28093_s6 + $0x2c] ss:$16 sps:$4 sm:$0xff]  }
0x1837   :  { %10687 = vmatprep.subr.bf16.mxu1 %v21216_v62  ;;  %v21277_v62 = vld [vmem:[%s28093_s6 + $0x20] ss:$16 sps:$4 sm:$0xff]  }
0x183a   :  { %10688 = vmatpush1.bf16.msra.mxu1 %v21214_v45  ;;  %v21280_v45 = vld [vmem:[%s28093_s6 + $0x28] ss:$16 sps:$4 sm:$0xff]  }
0x183b   :  { %10689 = vmatprep.subr.bf16.mxu1 %v21219_v23  ;;  %v21285_v23 = vld [vmem:[%s28093_s6 + $0x4] ss:$16 sps:$4 sm:$0xff]  }
0x183e   :  { %10690 = vmatpush2.bf16.msra.mxu1 %v21217_v11  ;;  %v21288_v11 = vld [vmem:[%s28093_s6 + $0xc] ss:$16 sps:$4 sm:$0xff]  }
0x183f   :  { %10691 = vmatprep.subr.bf16.mxu1 %v21222_v36  ;;  %v21283_v36 = vld [vmem:[%s28093_s6] ss:$16 sps:$4 sm:$0xff]  }
0x1842   :  { %10692 = vmatpush2.bf16.msra.mxu1 %v21220_v12  ;;  %v21286_v12 = vld [vmem:[%s28093_s6 + $0x8] ss:$16 sps:$4 sm:$0xff]  }
0x1843   :  { %10693 = vmatprep.subr.bf16.mxu1 %v21225_v40  ;;  %v21291_v40 = vld [vmem:[%s28093_s6 + $0x1e4] ss:$16 sps:$4 sm:$0xff]  }
0x1846   :  { %10694 = vmatpush2.bf16.msra.mxu1 %v21223_v20  ;;  %v21294_v20 = vld [vmem:[%s28093_s6 + $0x1ec] ss:$16 sps:$4 sm:$0xff]  }
0x1847   :  { %10695 = vmatprep.subr.bf16.mxu1 %v21228_v31  ;;  %v21289_v31 = vld [vmem:[%s28093_s6 + $0x1e0] ss:$16 sps:$4 sm:$0xff]  }
0x184a   :  { %10696 = vmatpush2.bf16.msra.mxu1 %v21226_v58  ;;  %v21292_v58 = vld [vmem:[%s28093_s6 + $0x1e8] ss:$16 sps:$4 sm:$0xff]  }
0x184b   :  { %10697 = vmatprep.subr.bf16.mxu1 %v21231_v39  ;;  %v21297_v39 = vld [vmem:[%s28093_s6 + $0x1c4] ss:$16 sps:$4 sm:$0xff]  }
0x184e   :  { %10698 = vmatpush2.bf16.msra.mxu1 %v21229_v35  ;;  %v21300_v35 = vld [vmem:[%s28093_s6 + $0x1cc] ss:$16 sps:$4 sm:$0xff]  }
0x184f   :  { %10699 = vmatprep.subr.bf16.mxu1 %v21234_v38  ;;  %v21295_v38 = vld [vmem:[%s28093_s6 + $0x1c0] ss:$16 sps:$4 sm:$0xff]  }
0x1852   :  { %10700 = vmatpush2.bf16.msra.mxu1 %v21232_v44  ;;  %v21298_v44 = vld [vmem:[%s28093_s6 + $0x1c8] ss:$16 sps:$4 sm:$0xff]  }
0x1853   :  { %10701 = vmatprep.subr.bf16.mxu1 %v21237_v56  ;;  %v21303_v56 = vld [vmem:[%s28093_s6 + $0x1a4] ss:$16 sps:$4 sm:$0xff]  }
0x1856   :  { %10702 = vmatpush2.bf16.msra.mxu1 %v21235_v21  ;;  %v21306_v21 = vld [vmem:[%s28093_s6 + $0x1ac] ss:$16 sps:$4 sm:$0xff]  }
0x1857   :  { %10703 = vmatprep.subr.bf16.mxu1 %v21240_v57  ;;  %v21301_v57 = vld [vmem:[%s28093_s6 + $0x1a0] ss:$16 sps:$4 sm:$0xff]  }
0x185a   :  { %10704 = vmatpush2.bf16.msra.mxu1 %v21238_v10  ;;  %v21304_v10 = vld [vmem:[%s28093_s6 + $0x1a8] ss:$16 sps:$4 sm:$0xff]  }
0x185b   :  { %11227 = vmatprep.subr.bf16.mxu1 %v21246_v43  ;;  %v21310_v43 = vld [vmem:[%s28093_s6 + $0x188] ss:$16 sps:$4 sm:$0xff]  }
0x185d   :  { %10706 = vmatmul.mubr.bf16.vlgmr.msra.gmra.mxu1 %v25770_v25  ;;  %v21252_v25 = vld [vmem:[%s28093_s6 + $0xcc] ss:$16 sps:$4 sm:$0xff]  }
0x185e   :  { %11259 = vmatprep.mubr.bf16.mxu1 %v25560_v29  ;;  %v21249_v29 = vld [vmem:[%s28093_s6 + $0xc4] ss:$16 sps:$4 sm:$0xff]   ;;  %11228 = vmatpush1.bf16.msra.mxu1 %v21244_v48  ;;  %v21307_v48 = vld [vmem:[%s28093_s6 + $0x180] ss:$16 sps:$4 sm:$0xff]  }
0x185f   :  { %11188 = vmatprep.subr.bf16.mxu0 %v21249_v29  ;;  %11229 = vmatprep.subr.bf16.mxu1 %v21252_v25  ;;  %v21313_v29 = vld [vmem:[%s28093_s6 + $0x160] ss:$16 sps:$4 sm:$0xff]   ;;  %v21315_v25 = vld [vmem:[%s28093_s6 + $0x164] ss:$16 sps:$4 sm:$0xff]  }
0x1860   :  { %11189 = vmatpush1.bf16.msra.mxu0 %v21247_v16  ;;  %v21316_v16 = vld [vmem:[%s28093_s6 + $0x168] ss:$16 sps:$4 sm:$0xff]  }
0x1861   :  { %11190 = vmatprep.subr.bf16.mxu0 %v21255_v19  ;;  %v21321_v19 = vld [vmem:[%s28093_s6 + $0x144] ss:$16 sps:$4 sm:$0xff]  }
0x1862   :  { %11230 = vmatpush1.bf16.msra.mxu1 %v21250_v47  ;;  %v21318_v47 = vld [vmem:[%s28093_s6 + $0x16c] ss:$16 sps:$4 sm:$0xff]  }
0x1863   :  { %11231 = vmatprep.subr.bf16.mxu1 %v21258_v24  ;;  %v21324_v24 = vld [vmem:[%s28093_s6 + $0x14c] ss:$16 sps:$4 sm:$0xff]  }
0x1864   :  { %11191 = vmatpush1.bf16.msra.mxu0 %v21253_v42  ;;  %v21319_v42 = vld [vmem:[%s28093_s6 + $0x140] ss:$16 sps:$4 sm:$0xff]  }
0x1865   :  { %11192 = vmatprep.subr.bf16.mxu0 %v21261_v7  ;;  %v21327_v7 = vld [vmem:[%s28093_s6 + $0x124] ss:$16 sps:$4 sm:$0xff]  }
0x1866   :  { %11232 = vmatpush1.bf16.msra.mxu1 %v21256_v8  ;;  %v21322_v8 = vld [vmem:[%s28093_s6 + $0x148] ss:$16 sps:$4 sm:$0xff]  }
0x1867   :  { %11233 = vmatprep.subr.bf16.mxu1 %v21264_v41  ;;  %v21330_v41 = vld [vmem:[%s28093_s6 + $0x12c] ss:$16 sps:$4 sm:$0xff]  }
0x1868   :  { %11193 = vmatpush1.bf16.msra.mxu0 %v21259_v15 }
0x1869   :  { %11194 = vmatprep.subr.bf16.mxu0 %v21267_v18  ;;  %v21325_v18 = vld [vmem:[%s28093_s6 + $0x120] ss:$16 sps:$4 sm:$0xff]  }
0x186a   :  { %11234 = vmatpush1.bf16.msra.mxu1 %v21262_v13 }
0x186b   :  { %11235 = vmatprep.subr.bf16.mxu1 %v21270_v60  ;;  %v21328_v60 = vld [vmem:[%s28093_s6 + $0x128] ss:$16 sps:$4 sm:$0xff]  }
0x186c   :  { %11195 = vmatpush1.bf16.msra.mxu0 %v21265_v37  ;;  %v21333_v37 = vld [vmem:[%s28093_s6 + $0x104] ss:$16 sps:$4 sm:$0xff]  }
0x186d   :  { %11196 = vmatprep.subr.bf16.mxu0 %v21273_v30 }
0x186e   :  { %11236 = vmatpush1.bf16.msra.mxu1 %v21268_v17 }
0x186f   :  { %11237 = vmatprep.subr.bf16.mxu1 %v21276_v51  ;;  %v21336_v51 = vld [vmem:[%s28093_s6 + $0x10c] ss:$16 sps:$4 sm:$0xff]  }
0x1870   :  { %11197 = vmatpush1.bf16.msra.mxu0 %v21271_v26 }
0x1871   :  { %11198 = vmatprep.subr.bf16.mxu0 %v21279_v9  ;;  %v21331_v9 = vld [vmem:[%s28093_s6 + $0x100] ss:$16 sps:$4 sm:$0xff]  }
0x1872   :  { %11238 = vmatpush1.bf16.msra.mxu1 %v21274_v59 }
0x1873   :  { %11239 = vmatprep.subr.bf16.mxu1 %v21282_v32  ;;  %v21334_v32 = vld [vmem:[%s28093_s6 + $0x108] ss:$16 sps:$4 sm:$0xff]  }
0x1874   :  { %11199 = vmatpush1.bf16.msra.mxu0 %v21277_v62 }
0x1875   :  { %11200 = vmatprep.subr.bf16.mxu0 %v21285_v23 }
0x1876   :  { %11240 = vmatpush1.bf16.msra.mxu1 %v21280_v45 }
0x1877   :  { %11241 = vmatprep.subr.bf16.mxu1 %v21288_v11 }
0x1878   :  { %11201 = vmatpush1.bf16.msra.mxu0 %v21283_v36 }
0x1879   :  { %11202 = vmatprep.subr.bf16.mxu0 %v21291_v40 }
0x187a   :  { %11242 = vmatpush1.bf16.msra.mxu1 %v21286_v12 }
0x187b   :  { %11243 = vmatprep.subr.bf16.mxu1 %v21294_v20 }
0x187c   :  { %11203 = vmatpush2.bf16.msra.mxu0 %v21289_v31 }
0x187d   :  { %11204 = vmatprep.subr.bf16.mxu0 %v21297_v39  ;;  %v10089_v39 = vld [vmem:[%s28094_s5] sm:$0xf] }
0x187e   :  { %11244 = vmatpush2.bf16.msra.mxu1 %v21292_v58 }
0x187f   :  { %11245 = vmatprep.subr.bf16.mxu1 %v21300_v35  ;;  %v10098_v35 = vrot.slane %v10089_v39, %v22998_v49 }
0x1880   :  { %11205 = vmatpush2.bf16.msra.mxu0 %v21295_v38  ;;  %v10094_v38 = vrot.slane %v10089_v39, %v23001_v50 }
0x1881   :  { %11206 = vmatprep.subr.bf16.mxu0 %v21303_v56 }
0x1882   :  { %11246 = vmatpush2.bf16.msra.mxu1 %v21298_v44 }
0x1883   :  { %11247 = vmatprep.subr.bf16.mxu1 %v21306_v21 }
0x1884   :  { %11207 = vmatpush2.bf16.msra.mxu0 %v21301_v57 }
0x1885   :  { %11208 = vmatprep.subr.bf16.mxu0 %v21309_v61 }
0x1886   :  { %11248 = vmatpush2.bf16.msra.mxu1 %v21304_v10 }
0x1887   :  { %11249 = vmatprep.subr.bf16.mxu1 %v21312_v28 }
0x1888   :  { %11209 = vmatpush2.bf16.msra.mxu0 %v21307_v48 }
0x1889   :  { %11210 = vmatprep.subr.bf16.mxu0 %v21315_v25  ;;  %v10106_v25 = vrot.slane %v10089_v39, %v23009_v0 }
0x188a   :  { %11250 = vmatpush2.bf16.msra.mxu1 %v21310_v43  ;;  %v10102_v43 = vrot.slane %v10089_v39, %v23006_v63 }
0x188b   :  { %11251 = vmatprep.subr.bf16.mxu1 %v21318_v47 }
0x188c   :  { %11211 = vmatpush2.bf16.msra.mxu0 %v21313_v29 }
0x188d   :  { %11212 = vmatprep.subr.bf16.mxu0 %v21321_v19 }
0x188e   :  { %11252 = vmatpush2.bf16.msra.mxu1 %v21316_v16 }
0x188f   :  { %11253 = vmatprep.subr.bf16.mxu1 %v21324_v24 }
0x1890   :  { %11213 = vmatpush2.bf16.msra.mxu0 %v21319_v42 }
0x1891   :  { %11214 = vmatprep.subr.bf16.mxu0 %v21327_v7 }
0x1892   :  { %11254 = vmatpush2.bf16.msra.mxu1 %v21322_v8 }
0x1893   :  { %11255 = vmatprep.subr.bf16.mxu1 %v21330_v41 }
0x1894   :  { %11215 = vmatpush2.bf16.msra.mxu0 %v21325_v18 }
0x1895   :  { %11216 = vmatprep.subr.bf16.mxu0 %v21333_v37 }
0x1896   :  { %11256 = vmatpush2.bf16.msra.mxu1 %v21328_v60 }
0x1897   :  { %11257 = vmatprep.subr.bf16.mxu1 %v21336_v51 }
0x1898   :  { %11217 = vmatpush2.bf16.msra.mxu0 %v21331_v9 }
0x1899   :  { %19679 = vmatprep.subr.bf16.mxu0 %v22429_v33 }
0x189a   :  { %11258 = vmatpush2.bf16.msra.mxu1 %v21334_v32 }
0x189b   :  { %19685 = vmatprep.subr.bf16.mxu1 %v22429_v33 }
0x18bd   :  { %v26136_v15 = vpop.f32.mrf.mxu1  ;;  %v10625_v13 = vpop.f32.mrf.mxu0 }
0x18be   :  { %v10626_v56 = vadd.f32 %v10625_v13, %v10094_v38 }
0x18bf   :  { %v19677_v17 = vpop.f32.mrf.mxu1  ;;  %v10627_v30 = vpop.f32.mrf.mxu0 }
0x18c0   :  { %v10628_v44 = vadd.f32 %v10627_v30, %v10098_v35 }
0x18c1   :  { %v9975_v26 = vpop.f32.mrf.mxu1  ;;  %v10629_v59 = vpop.f32.mrf.mxu0 }
0x18c3   :  { %v19678_v62 = vpop.f32.mrf.mxu1  ;;  %v10630_v45 = vpop.f32.mrf.mxu0 }
0x18dd   :  { %v10666_v23 = vpop.f32.mrf.mxu1  ;;  %v10748_v11 = vpop.f32.mrf.mxu0 }
0x18de   :  { %v10667_v57 = vadd.f32 %v10666_v23, %v10626_v56 }
0x18df   :  { %v10668_v36 = vpop.f32.mrf.mxu1  ;;  %v10750_v12 = vpop.f32.mrf.mxu0 }
0x18e0   :  { %v10669_v21 = vadd.f32 %v10668_v36, %v10628_v44  ;;  %v18265_v61 = vmul.f32 -1.442695, %v10667_v57  ;;  %v10844_v36 = vld [vmem:[%s28096_s7] sm:$0xf] }
0x18e1   :  { %v10670_v40 = vpop.f32.mrf.mxu1  ;;  %v10752_v20 = vpop.f32.mrf.mxu0 }
0x18e2   :  { %v18266_v10 = vmul.f32 -1.442695, %v10669_v21  ;;  %v10853_v40 = vrot.slane %v10844_v36, %v22998_v49 }
0x18e3   :  { %v10671_v31 = vpop.f32.mrf.mxu1  ;;  %v10753_v58 = vpop.f32.mrf.mxu0 }
0x18e4   :  { %22153 = vpow2.f32 %v18266_v10 }
0x18e5   :  { %22155 = vpow2.f32 %v18265_v61 }
0x18f1   :  { %v22154_v28 = vpop.eup %22153 }
0x18f2   :  { %v22156_v48 = vpop.eup %22155  ;;  %v10764_v29 = vadd.f32 1.0, %v22154_v28  ;;  %v10861_v28 = vrot.slane %v10844_v36, %v23009_v0 }
0x18f3   :  { %v10758_v16 = vadd.f32 1.0, %v22156_v48 }
0x18f4   :  { %22157 = vrcp.f32 %v10764_v29 }
0x18f5   :  { %22159 = vrcp.f32 %v10758_v16 }
0x1901   :  { %v22158_v60 = vpop.eup %22157 }
0x1902   :  { %v22160_v37 = vpop.eup %22159  ;;  %v10774_v30 = vmul.f32 %v22158_v60, %v25388_v55  ;;  %v26176_v55 = vld [vmem:[%s28095_s1] sm:$0xff]  }
0x191d   :  { %v10707_v47 = vpop.f32.mrf.mxu1 }
0x191e   :  { %v10708_v19 = vadd.f32 %v10707_v47, %v10102_v43  ;;  %v10857_v43 = vrot.slane %v10844_v36, %v23006_v63 }
0x191f   :  { %v10709_v24 = vpop.f32.mrf.mxu1 }
0x1920   :  { %v10749_v42 = vadd.f32 %v10748_v11, %v10708_v19  ;;  %v10710_v8 = vadd.f32 %v10709_v24, %v10106_v25  ;;  %v26182_v11 = vld [vmem:[%s28095_s1 + $0x8] sm:$0xff]  }
0x1921   :  { %v10711_v7 = vpop.f32.mrf.mxu1 }
0x1922   :  { %22161 = vtanh.f32 %v10749_v42  ;;  %v10751_v41 = vadd.f32 %v10750_v12, %v10710_v8  ;;  %v10849_v12 = vrot.slane %v10844_v36, %v23001_v50 }
0x1923   :  { %v10712_v13 = vpop.f32.mrf.mxu1 }
0x1924   :  { %v18267_v18 = vmul.f32 -1.442695, %v10751_v41 }
0x1926   :  { %22163 = vpow2.f32 %v18267_v18 }
0x192f   :  { %v22162_v17 = vpop.eup %22161 }
0x1930   :  { %v10775_v51 = vmul.f32 %v22162_v17, %v22160_v37 }
0x1932   :  { %v26166_v26 = vadd.f32 %v10775_v51, %v10774_v30 }
0x1933   :  { %v22164_v59 = vpop.eup %22163 }
0x1934   :  { %v10771_v9 = vadd.f32 1.0, %v22164_v59  ;;  %22165 = vtanh.f32 %v26166_v26 }
0x1936   :  { %22167 = vrcp.f32 %v10771_v9 }
0x1941   :  { %v22166_v32 = vpop.eup %22165 }
0x1943   :  { %v22168_v62 = vpop.eup %22167 }
0x1944   :  { %v10778_v45 = vmul.f32 %v22168_v62, %v22166_v32 }
0x1946   :  { %v26169_v23 = vpack.c.bf16 %v10778_v45, %v10778_v45 }
0x1948   :  { %11219 = vmatmul.mubr.bf16.vlgmr.msra.gmra.mxu0 %v26169_v23  ;;  %11260 = vmatmul.mubr.bf16.vlgmr.msra.gmra.mxu1 %v26169_v23 }
0x1949   :  { %19680 = vmatpush3.bf16.xpose.msra.mxu0 %v26176_v55  ;;  %19686 = vmatpush3.bf16.xpose.msra.mxu1 %v26182_v11 }
0x194a   :  { %19681 = vmatprep.mubr.msk.bf16.mxu0 %vm22430_vm0, %v22429_v33  ;;  %19691 = vmatprep.subr.bf16.mxu0 %v22429_v33 }
0x194b   :  { %19687 = vmatprep.mubr.msk.bf16.mxu1 %vm22430_vm0, %v22429_v33  ;;  %19697 = vmatprep.subr.bf16.mxu1 %v22429_v33 }
0x1a08   :  { %v11220_v20 = vpop.f32.mrf.mxu0  ;;  %v11261_v31 = vpop.f32.mrf.mxu1 }
0x1a09   :  { %v11221_v58 = vadd.f32 %v11220_v20, %v10849_v12  ;;  %v11262_v16 = vadd.f32 %v11261_v31, %v10857_v43  ;;  %v26213_v12 = vld [vmem:[%s28095_s1 + $0x10] sm:$0xff]   ;;  %v26222_v20 = vld [vmem:[%s28095_s1 + $0x18] sm:$0xff]  }
0x1a0a   :  { %v11222_v39 = vpop.f32.mrf.mxu0  ;;  %v11263_v35 = vpop.f32.mrf.mxu1  ;;  %v26261_v43 = vld [vmem:[%s28095_s1 + $0x38] sm:$0xff]  }
0x1a0b   :  { %v18332_v38 = vmul.f32 -1.442695, %v11221_v58  ;;  %v11223_v44 = vadd.f32 %v11222_v39, %v10853_v40  ;;  %v11264_v48 = vadd.f32 %v11263_v35, %v10861_v28  ;;  %v26252_v28 = vld [vmem:[%s28095_s1 + $0x30] sm:$0xff]  }
0x1a0c   :  { %v11224_v56 = vpop.f32.mrf.mxu0  ;;  %v11265_v21 = vpop.f32.mrf.mxu1 }
0x1a0d   :  { %22169 = vpow2.f32 %v18332_v38  ;;  %v18333_v57 = vmul.f32 -1.442695, %v11223_v44  ;;  %v18334_v29 = vmul.f32 -1.442695, %v11264_v48  ;;  %v26232_v44 = vld [vmem:[%s28095_s1 + $0x20] sm:$0xff]   ;;  %v26242_v21 = vld [vmem:[%s28095_s1 + $0x28] sm:$0xff]  }
0x1a0e   :  { %v11225_v10 = vpop.f32.mrf.mxu0  ;;  %v11266_v61 = vpop.f32.mrf.mxu1 }
0x1a0f   :  { %22171 = vpow2.f32 %v18333_v57 }
0x1a10   :  { %22173 = vpow2.f32 %v18334_v29 }
0x1a1a   :  { %v22170_v25 = vpop.eup %22169 }
0x1a1b   :  { %v11271_v47 = vadd.f32 1.0, %v22170_v25 }
0x1a1c   :  { %v22172_v19 = vpop.eup %22171 }
0x1a1d   :  { %22175 = vrcp.f32 %v11271_v47  ;;  %v11277_v24 = vadd.f32 1.0, %v22172_v19  ;;  %v22174_v42 = vpop.eup %22173 }
0x1a1e   :  { %22177 = vtanh.f32 %v11262_v16  ;;  %v11284_v13 = vadd.f32 1.0, %v22174_v42 }
0x1a1f   :  { %22179 = vrcp.f32 %v11277_v24 }
0x1a20   :  { %22181 = vrcp.f32 %v11284_v13 }
0x1a2a   :  { %v22176_v8 = vpop.eup %22175 }
0x1a2b   :  { %v22178_v7 = vpop.eup %22177 }
0x1a2c   :  { %v22180_v41 = vpop.eup %22179  ;;  %v11288_v18 = vmul.f32 %v22178_v7, %v22176_v8 }
0x1a2d   :  { %v11287_v60 = vmul.f32 %v22180_v41, %v25421_v4  ;;  %v22182_v17 = vpop.eup %22181 }
0x1a2f   :  { %v26199_v37 = vadd.f32 %v11288_v18, %v11287_v60 }
0x1a31   :  { %22183 = vtanh.f32 %v26199_v37 }
0x1a3e   :  { %v22184_v30 = vpop.eup %22183 }
0x1a3f   :  { %v26202_v51 = vmul.f32 %v22184_v30, %v22182_v17 }
0x1a41   :  { %v11300_v59 = vrot.slane %v26202_v51, %v23051_v14  ;;  %v11293_v36 = vcombine.high %v26202_v51, %v26202_v51 }
0x1a43   :  { %v11316_v9 = vrot.slane %v11300_v59, %v23051_v14  ;;  %v11308_v32 = vcombine.high %v11300_v59, %v11300_v59  ;;  %v11307_v58 = vrot.slane %v11293_v36, %v23051_v14 }
0x1a45   :  { %v11350_v62 = vpack.c.bf16 %v11316_v9, %v11316_v9  ;;  %v11330_v45 = vrot.slane %v11308_v32, %v23051_v14  ;;  %v11338_v40 = vcombine.high %v11316_v9, %v11316_v9  ;;  %v11309_v38 = vcombine.high %v11307_v58, %v11307_v58 }
0x1a46   :  { %v11323_v56 = vrot.slane %v11307_v58, %v23051_v14 }
0x1a47   :  { %19682 = vmatmul.mubr.bf16.vlgmr.msra.gmra.mxu0 %v11350_v62  ;;  %v11351_v4 = vpack.c.bf16 %v11330_v45, %v11330_v45  ;;  %v11340_v31 = vcombine.high %v11330_v45, %v11330_v45  ;;  %v11352_v39 = vpack.c.bf16 %v11338_v40, %v11338_v40  ;;  %v11337_v57 = vrot.slane %v11309_v38, %v23051_v14 }
0x1a48   :  { %19692 = vmatpush3.bf16.xpose.msra.mxu0 %v26213_v12  ;;  %19693 = vmatprep.mubr.msk.bf16.mxu0 %vm22430_vm0, %v22429_v33  ;;  %v11354_v10 = vpack.c.bf16 %v11323_v56, %v11323_v56  ;;  %v11339_v48 = vcombine.high %v11323_v56, %v11323_v56 }
0x1a49   :  { %19688 = vmatmul.mubr.bf16.vlgmr.msra.gmra.mxu1 %v11351_v4  ;;  %19703 = vmatprep.subr.bf16.mxu0 %v22429_v33  ;;  %v11353_v35 = vpack.c.bf16 %v11340_v31, %v11340_v31  ;;  %v11355_v61 = vpack.c.bf16 %v11337_v57, %v11337_v57  ;;  %v11341_v29 = vcombine.high %v11337_v57, %v11337_v57 }
0x1a4a   :  { %19698 = vmatpush3.bf16.xpose.msra.mxu1 %v26222_v20  ;;  %19699 = vmatprep.mubr.msk.bf16.mxu1 %vm22430_vm0, %v22429_v33  ;;  %v11356_v25 = vpack.c.bf16 %v11339_v48, %v11339_v48 }
0x1a4b   :  { %19709 = vmatprep.subr.bf16.mxu1 %v22429_v33  ;;  %v11357_v16 = vpack.c.bf16 %v11341_v29, %v11341_v29 }
0x1a4f   :  { %19694 = vmatmul.mubr.bf16.vlgmr.msra.gmra.mxu0 %v11352_v39 }
0x1a50   :  { %19704 = vmatpush3.bf16.xpose.msra.mxu0 %v26232_v44  ;;  %19705 = vmatprep.mubr.msk.bf16.mxu0 %vm22430_vm0, %v22429_v33 }
0x1a51   :  { %19700 = vmatmul.mubr.bf16.vlgmr.msra.gmra.mxu1 %v11353_v35  ;;  %19715 = vmatprep.subr.bf16.mxu0 %v22429_v33 }
0x1a52   :  { %19710 = vmatpush3.bf16.xpose.msra.mxu1 %v26242_v21  ;;  %19711 = vmatprep.mubr.msk.bf16.mxu1 %vm22430_vm0, %v22429_v33 }
0x1a53   :  { %19721 = vmatprep.subr.bf16.mxu1 %v22429_v33 }
0x1a57   :  { %19706 = vmatmul.mubr.bf16.vlgmr.msra.gmra.mxu0 %v11354_v10 }
0x1a58   :  { %19716 = vmatpush3.bf16.xpose.msra.mxu0 %v26252_v28  ;;  %19717 = vmatprep.mubr.msk.bf16.mxu0 %vm22430_vm0, %v22429_v33 }
0x1a59   :  { %19712 = vmatmul.mubr.bf16.vlgmr.msra.gmra.mxu1 %v11355_v61  ;;  %19727 = vmatprep.subr.bf16.mxu0 %v22429_v33 }
0x1a5a   :  { %19722 = vmatpush3.bf16.xpose.msra.mxu1 %v26261_v43  ;;  %19723 = vmatprep.mubr.msk.bf16.mxu1 %vm22430_vm0, %v22429_v33 }
0x1a5b   :  { %19733 = vmatprep.subr.bf16.mxu1 %v22429_v33 }
0x1a5f   :  { %19718 = vmatmul.mubr.bf16.vlgmr.msra.gmra.mxu0 %v11356_v25 }
0x1a60   :  { %19728 = vmatpush3.bf16.msra.mxu0 %v26176_v55  ;;  %19729 = vmatprep.mubr.msk.bf16.mxu0 %vm22430_vm0, %v22429_v33 }
0x1a61   :  { %19724 = vmatmul.mubr.bf16.vlgmr.msra.gmra.mxu1 %v11357_v16  ;;  %19739 = vmatprep.subr.bf16.mxu0 %v22429_v33 }
0x1a62   :  { %19734 = vmatpush3.bf16.msra.mxu1 %v26182_v11  ;;  %19735 = vmatprep.mubr.msk.bf16.mxu1 %vm22430_vm0, %v22429_v33 }
0x1a63   :  { %19745 = vmatprep.subr.bf16.mxu1 %v22429_v33 }
0x1b07   :  { %v11392_v47 = vpop.f32.mrf.mxu0 }
0x1b08   :  { %v11393_v19 = vadd.f32 %v11392_v47, %v23131_v53 }
0x1b09   :  { %v19683_v24 = vpop.f32.mrf.mxu0  ;;  %v11432_v42 = vpop.f32.mrf.mxu1 }
0x1b0a   :  { %v11433_v55 = vadd.f32 %v11432_v42, %v23134_v54  ;;  %v11678_v8 = vsel %vm1858_vm1, %v11393_v19, -inf }
0x1b0b   :  { %11679 = vmax.xlane.f32.xlu0 %v11678_v8  ;;  %v11395_v7 = vpop.f32.mrf.mxu0  ;;  %v19689_v41 = vpop.f32.mrf.mxu1 }
0x1b0c   :  { %v11681_v13 = vsel %vm1858_vm1, %v11433_v55, -inf }
0x1b0d   :  { %v19684_v11 = vpop.f32.mrf.mxu0  ;;  %11682 = vmax.xlane.f32.xlu1 %v11681_v13  ;;  %v11435_v18 = vpop.f32.mrf.mxu1 }
0x1b0f   :  { %v19690_v60 = vpop.f32.mrf.mxu1  ;;  %v11472_v17 = vpop.f32.mrf.mxu0 }
0x1b10   :  { %v11473_v30 = vadd.f32 %v11472_v17, %v23146_v2 }
0x1b11   :  { %v19695_v59 = vpop.f32.mrf.mxu0  ;;  %v11512_v9 = vpop.f32.mrf.mxu1 }
0x1b12   :  { %v11513_v32 = vadd.f32 %v11512_v9, %v23152_v6  ;;  %v11684_v62 = vsel %vm1858_vm1, %v11473_v30, -inf }
0x1b13   :  { %11685 = vmax.xlane.f32.xlu0 %v11684_v62  ;;  %v11475_v45 = vpop.f32.mrf.mxu0  ;;  %v19701_v4 = vpop.f32.mrf.mxu1 }
0x1b14   :  { %v11687_v36 = vsel %vm1858_vm1, %v11513_v32, -inf }
0x1b15   :  { %v19696_v40 = vpop.f32.mrf.mxu0  ;;  %11688 = vmax.xlane.f32.xlu1 %v11687_v36  ;;  %v11515_v31 = vpop.f32.mrf.mxu1 }
0x1b17   :  { %v19702_v58 = vpop.f32.mrf.mxu1  ;;  %v11552_v39 = vpop.f32.mrf.mxu0 }
0x1b18   :  { %v11553_v35 = vadd.f32 %v11552_v39, %v23159_v22 }
0x1b19   :  { %v19707_v38 = vpop.f32.mrf.mxu0  ;;  %v11592_v56 = vpop.f32.mrf.mxu1 }
0x1b1a   :  { %v11593_v57 = vadd.f32 %v11592_v56, %v23163_v27  ;;  %v11690_v10 = vsel %vm1858_vm1, %v11553_v35, -inf }
0x1b1b   :  { %11691 = vmax.xlane.f32.xlu0 %v11690_v10  ;;  %v11555_v61 = vpop.f32.mrf.mxu0  ;;  %v19713_v48 = vpop.f32.mrf.mxu1 }
0x1b1c   :  { %v11693_v29 = vsel %vm1858_vm1, %v11593_v57, -inf }
0x1b1d   :  { %v19708_v25 = vpop.f32.mrf.mxu0  ;;  %11694 = vmax.xlane.f32.xlu1 %v11693_v29  ;;  %v11595_v16 = vpop.f32.mrf.mxu1 }
0x1b1f   :  { %v19714_v47 = vpop.f32.mrf.mxu1  ;;  %v11632_v24 = vpop.f32.mrf.mxu0 }
0x1b20   :  { %v11633_v42 = vadd.f32 %v11632_v24, %v23171_v46 }
0x1b21   :  { %v19719_v8 = vpop.f32.mrf.mxu0  ;;  %v11672_v7 = vpop.f32.mrf.mxu1 }
0x1b22   :  { %v11673_v41 = vadd.f32 %v11672_v7, %v23175_v52  ;;  %v11696_v13 = vsel %vm1858_vm1, %v11633_v42, -inf }
0x1b23   :  { %11697 = vmax.xlane.f32.xlu0 %v11696_v13  ;;  %v11635_v11 = vpop.f32.mrf.mxu0  ;;  %v19725_v18 = vpop.f32.mrf.mxu1 }
0x1b24   :  { %v11699_v60 = vsel %vm1858_vm1, %v11673_v41, -inf }
0x1b25   :  { %v19720_v17 = vpop.f32.mrf.mxu0  ;;  %11700 = vmax.xlane.f32.xlu1 %v11699_v60  ;;  %v11675_v59 = vpop.f32.mrf.mxu1 }
0x1b27   :  { %v19726_v9 = vpop.f32.mrf.mxu1 }
0x1b94   :  { %v11680_v62 = vpop.xlane.xlu0 %11679 }
0x1b95   :  { %v11702_v45 = vsub.f32 %v11393_v19, %v11680_v62 }
0x1b96   :  { %v11683_v4 = vpop.xlane.xlu1 %11682 }
0x1b97   :  { %v11710_v36 = vmul.f32 1.442695, %v11702_v45  ;;  %v11703_v40 = vsub.f32 %v11433_v55, %v11683_v4 }
0x1b99   :  { %22185 = vpow2.f32 %v11710_v36  ;;  %v11712_v31 = vmul.f32 1.442695, %v11703_v40 }
0x1b9b   :  { %22187 = vpow2.f32 %v11712_v31 }
0x1b9c   :  { %v11686_v58 = vpop.xlane.xlu0 %11685 }
0x1b9d   :  { %v11704_v39 = vsub.f32 %v11473_v30, %v11686_v58 }
0x1b9e   :  { %v11689_v38 = vpop.xlane.xlu1 %11688 }
0x1b9f   :  { %v11714_v56 = vmul.f32 1.442695, %v11704_v39  ;;  %v11705_v10 = vsub.f32 %v11513_v32, %v11689_v38 }
0x1ba1   :  { %22189 = vpow2.f32 %v11714_v56  ;;  %v11716_v61 = vmul.f32 1.442695, %v11705_v10 }
0x1ba3   :  { %22191 = vpow2.f32 %v11716_v61 }
0x1ba4   :  { %v11692_v48 = vpop.xlane.xlu0 %11691 }
0x1ba5   :  { %v11706_v29 = vsub.f32 %v11553_v35, %v11692_v48 }
0x1ba6   :  { %v22186_v25 = vpop.eup %22185  ;;  %v11695_v16 = vpop.xlane.xlu1 %11694 }
0x1ba7   :  { %v11718_v47 = vmul.f32 1.442695, %v11706_v29  ;;  %v11707_v19 = vsub.f32 %v11593_v57, %v11695_v16  ;;  %v11726_v24 = vsel %vm1858_vm1, %v22186_v25, 0.0 }
0x1ba8   :  { %v22188_v55 = vpop.eup %22187  ;;  %11727 = vadd.xlane.f32.xlu0 %v11726_v24 }
0x1ba9   :  { %22193 = vpow2.f32 %v11718_v47  ;;  %v11720_v8 = vmul.f32 1.442695, %v11707_v19  ;;  %v11729_v30 = vsel %vm1858_vm1, %v22188_v55, 0.0 }
0x1baa   :  { %11730 = vadd.xlane.f32.xlu1 %v11729_v30 }
0x1bab   :  { %22195 = vpow2.f32 %v11720_v8 }
0x1bac   :  { %v11698_v32 = vpop.xlane.xlu0 %11697 }
0x1bad   :  { %v11708_v7 = vsub.f32 %v11633_v42, %v11698_v32 }
0x1bae   :  { %v22190_v13 = vpop.eup %22189  ;;  %v11701_v11 = vpop.xlane.xlu1 %11700 }
0x1baf   :  { %v11722_v18 = vmul.f32 1.442695, %v11708_v7  ;;  %v11709_v35 = vsub.f32 %v11673_v41, %v11701_v11  ;;  %v11732_v60 = vsel %vm1858_vm1, %v22190_v13, 0.0 }
0x1bb0   :  { %v22192_v17 = vpop.eup %22191  ;;  %11733 = vadd.xlane.f32.xlu0 %v11732_v60 }
0x1bb1   :  { %22197 = vpow2.f32 %v11722_v18  ;;  %v11724_v57 = vmul.f32 1.442695, %v11709_v35  ;;  %v11735_v59 = vsel %vm1858_vm1, %v22192_v17, 0.0 }
0x1bb2   :  { %11736 = vadd.xlane.f32.xlu1 %v11735_v59 }
0x1bb3   :  { %22199 = vpow2.f32 %v11724_v57 }
0x1bb6   :  { %v22194_v9 = vpop.eup %22193 }
0x1bb7   :  { %v11738_v62 = vsel %vm1858_vm1, %v22194_v9, 0.0 }
0x1bb8   :  { %v22196_v45 = vpop.eup %22195  ;;  %11739 = vadd.xlane.f32.xlu0 %v11738_v62  ;;  %v21338_v62 = vld [vmem:[%s28098_s8 + $0x38] sm:$0xff]  }
0x1bb9   :  { %v11741_v42 = vsel %vm1858_vm1, %v22196_v45, 0.0 }
0x1bba   :  { %11742 = vadd.xlane.f32.xlu1 %v11741_v42  ;;  %v21341_v42 = vld [vmem:[%s28098_s8 + $0x68] sm:$0xff]  }
0x1bbe   :  { %v26297_v4 = vpop.eup %22197 }
0x1bbf   :  { %v11744_v41 = vsel %vm1858_vm1, %v26297_v4, 0.0 }
0x1bc0   :  { %v26301_v36 = vpop.eup %22199  ;;  %11745 = vadd.xlane.f32.xlu0 %v11744_v41  ;;  %v21343_v41 = vld [vmem:[%s28098_s8 + $0x60] sm:$0xff]  }
0x1bc1   :  { %v11747_v40 = vsel %vm1858_vm1, %v26301_v36, 0.0 }
0x1bc2   :  { %11748 = vadd.xlane.f32.xlu1 %v11747_v40  ;;  %v21345_v40 = vld [vmem:[%s28098_s8 + $0x58] sm:$0xff]  }
0x1c31   :  { %v11728_v31 = vpop.xlane.xlu0 %11727 }
0x1c32   :  { %22201 = vrcp.f32 %v11728_v31  ;;  %v21346_v31 = vld [vmem:[%s28098_s8 + $0x18] sm:$0xff]  }
0x1c33   :  { %v11731_v58 = vpop.xlane.xlu1 %11730 }
0x1c34   :  { %22203 = vrcp.f32 %v11731_v58  ;;  %v21347_v58 = vld [vmem:[%s28098_s8 + $0x50] sm:$0xff]  }
0x1c39   :  { %v11734_v39 = vpop.xlane.xlu0 %11733 }
0x1c3a   :  { %22205 = vrcp.f32 %v11734_v39  ;;  %v21348_v39 = vld [vmem:[%s28098_s8 + $0x10] sm:$0xff]  }
0x1c3b   :  { %v11737_v38 = vpop.xlane.xlu1 %11736 }
0x1c3c   :  { %22207 = vrcp.f32 %v11737_v38  ;;  %v21349_v38 = vld [vmem:[%s28098_s8 + $0x48] sm:$0xff]  }
0x1c3f   :  { %v22202_v56 = vpop.eup %22201 }
0x1c40   :  { %v11758_v10 = vmul.f32 %v22202_v56, %v22186_v25  ;;  %v21350_v56 = vld [vmem:[%s28098_s8 + $0x8] sm:$0xff]  }
0x1c41   :  { %v22204_v61 = vpop.eup %22203  ;;  %v11740_v48 = vpop.xlane.xlu0 %11739 }
0x1c42   :  { %v11766_v29 = vpack.c.bf16 %v11758_v10, %v11758_v10  ;;  %v11759_v16 = vmul.f32 %v22204_v61, %v22188_v55  ;;  %22209 = vrcp.f32 %v11740_v48  ;;  %v21351_v10 = vld [vmem:[%s28098_s8 + $0x40] sm:$0xff]  }
0x1c43   :  { %v11743_v47 = vpop.xlane.xlu1 %11742  ;;  %v21352_v61 = vld [vmem:[%s28098_s8] sm:$0xff]  }
0x1c44   :  { %v11767_v19 = vpack.c.bf16 %v11759_v16, %v11759_v16  ;;  %22211 = vrcp.f32 %v11743_v47  ;;  %19730 = vmatmul.mubr.msk.bf16.vlgmr.msra.gmra.mxu0 %vm1955_vm2, %v11766_v29  ;;  %v21355_v48 = vld [vmem:[%s28090_s4 + $0xe4] ss:$16 sps:$4 sm:$0xff]   ;;  %v21380_v29 = vld [vmem:[%s28099_s10 + $0x38] sm:$0xff]   ;;  %v21388_v47 = vld [vmem:[%s28099_s10 + $0x28] sm:$0xff]  }
0x1c45   :  { %19740 = vmatpush3.bf16.msra.mxu0 %v26213_v12  ;;  %19741 = vmatprep.mubr.msk.bf16.mxu0 %vm22430_vm0, %v22429_v33  ;;  %v21384_v16 = vld [vmem:[%s28099_s10 + $0x30] sm:$0xff]  }
0x1c46   :  { %19736 = vmatmul.mubr.msk.bf16.vlgmr.msra.gmra.mxu1 %vm1955_vm2, %v11767_v19  ;;  %19751 = vmatprep.subr.bf16.mxu0 %v22429_v33 }
0x1c47   :  { %v22206_v25 = vpop.eup %22205  ;;  %19746 = vmatpush3.bf16.msra.mxu1 %v26222_v20  ;;  %19747 = vmatprep.mubr.msk.bf16.mxu1 %vm22430_vm0, %v22429_v33 }
0x1c48   :  { %v11760_v24 = vmul.f32 %v22206_v25, %v22190_v13  ;;  %19757 = vmatprep.subr.bf16.mxu1 %v22429_v33 }
0x1c49   :  { %v22208_v55 = vpop.eup %22207  ;;  %v11746_v8 = vpop.xlane.xlu0 %11745 }
0x1c4a   :  { %v11768_v30 = vpack.c.bf16 %v11760_v24, %v11760_v24  ;;  %v11761_v12 = vmul.f32 %v22208_v55, %v22192_v17  ;;  %22213 = vrcp.f32 %v11746_v8 }
0x1c4b   :  { %v11749_v32 = vpop.xlane.xlu1 %11748 }
0x1c4c   :  { %v11769_v7 = vpack.c.bf16 %v11761_v12, %v11761_v12  ;;  %22215 = vrcp.f32 %v11749_v32  ;;  %19742 = vmatmul.mubr.msk.bf16.vlgmr.msra.gmra.mxu0 %vm1955_vm2, %v11768_v30 }
0x1c4d   :  { %19752 = vmatpush3.bf16.msra.mxu0 %v26232_v44  ;;  %19753 = vmatprep.mubr.msk.bf16.mxu0 %vm22430_vm0, %v22429_v33 }
0x1c4e   :  { %19748 = vmatmul.mubr.msk.bf16.vlgmr.msra.gmra.mxu1 %vm1955_vm2, %v11769_v7  ;;  %19763 = vmatprep.subr.bf16.mxu0 %v22429_v33 }
0x1c4f   :  { %v22210_v20 = vpop.eup %22209  ;;  %19758 = vmatpush3.bf16.msra.mxu1 %v26242_v21  ;;  %19759 = vmatprep.mubr.msk.bf16.mxu1 %vm22430_vm0, %v22429_v33 }
0x1c50   :  { %v11762_v13 = vmul.f32 %v22210_v20, %v22194_v9  ;;  %19769 = vmatprep.subr.bf16.mxu1 %v22429_v33 }
0x1c51   :  { %v22212_v11 = vpop.eup %22211 }
0x1c52   :  { %v11770_v18 = vpack.c.bf16 %v11762_v13, %v11762_v13  ;;  %v11763_v35 = vmul.f32 %v22212_v11, %v22196_v45  ;;  %v21340_v45 = vld [vmem:[%s28098_s8 + $0x30] sm:$0xff]  }
0x1c54   :  { %v11771_v44 = vpack.c.bf16 %v11763_v35, %v11763_v35  ;;  %19754 = vmatmul.mubr.msk.bf16.vlgmr.msra.gmra.mxu0 %vm1955_vm2, %v11770_v18 }
0x1c55   :  { %19764 = vmatpush3.bf16.msra.mxu0 %v26252_v28  ;;  %19765 = vmatprep.mubr.msk.bf16.mxu0 %vm22430_vm0, %v22429_v33  ;;  %v26338_v28 = vpack.c.bf16 %v26202_v51, %v26202_v51  ;;  %v21339_v51 = vld [vmem:[%s28098_s8 + $0x70] sm:$0xff]  }
0x1c56   :  { %19760 = vmatmul.mubr.msk.bf16.vlgmr.msra.gmra.mxu1 %vm1955_vm2, %v11771_v44 }
0x1c57   :  { %v22214_v21 = vpop.eup %22213  ;;  %19770 = vmatpush3.bf16.msra.mxu1 %v26261_v43  ;;  %19771 = vmatprep.mubr.msk.bf16.mxu1 %vm22430_vm0, %v22429_v33  ;;  %v21337_v43 = vld [vmem:[%s28098_s8 + $0x78] sm:$0xff]  }
0x1c58   :  { %v11764_v60 = vmul.f32 %v22214_v21, %v26297_v4  ;;  %19775 = vmatprep.subr.bf16.mxu1 %v22429_v33  ;;  %19058 = vmatprep.subr.bf16.mxu0 %v21337_v43  ;;  %v21342_v4 = vld [vmem:[%s28098_s8 + $0x28] sm:$0xff]  }
0x1c59   :  { %v22216_v17 = vpop.eup %22215 }
0x1c5a   :  { %v11772_v57 = vpack.c.bf16 %v11764_v60, %v11764_v60  ;;  %v11765_v59 = vmul.f32 %v22216_v17, %v26301_v36  ;;  %v21344_v36 = vld [vmem:[%s28098_s8 + $0x20] sm:$0xff]  }
0x1c5c   :  { %v11773_v9 = vpack.c.bf16 %v11765_v59, %v11765_v59  ;;  %19766 = vmatmul.mubr.msk.bf16.vlgmr.msra.gmra.mxu0 %vm1955_vm2, %v11772_v57 }
0x1c5d   :  { %12310 = vmatprep.mubr.bf16.mxu0 %v26338_v28  ;;  %19059 = vmatpush3.bf16.msra.mxu0 %v21338_v62 }
0x1c5e   :  { %19772 = vmatmul.mubr.msk.bf16.vlgmr.msra.gmra.mxu1 %vm1955_vm2, %v11773_v9  ;;  %19060 = vmatprep.subr.bf16.mxu0 %v21339_v51 }
0x1c5f   :  { %19791 = vmatprep.mubr.msk.bf16.mxu1 %vm22430_vm0, %v22429_v33  ;;  %19776 = vmatpush3.bf16.msra.mxu1 %v21380_v29 }
0x1c60   :  { %19777 = vmatprep.subr.bf16.mxu1 %v22429_v33 }
0x1c61   :  { %19061 = vmatpush3.bf16.msra.mxu0 %v21340_v45 }
0x1c62   :  { %19062 = vmatprep.subr.bf16.mxu0 %v21341_v42 }
0x1c63   :  { %19778 = vmatpush3.bf16.msra.mxu1 %v21384_v16 }
0x1c64   :  { %19779 = vmatprep.subr.bf16.mxu1 %v22429_v33 }
0x1c65   :  { %19063 = vmatpush3.bf16.msra.mxu0 %v21342_v4 }
0x1c66   :  { %19064 = vmatprep.subr.bf16.mxu0 %v21343_v41 }
0x1c67   :  { %19780 = vmatpush3.bf16.msra.mxu1 %v21388_v47 }
0x1c68   :  { %19781 = vmatprep.subr.bf16.mxu1 %v22429_v33 }
0x1c69   :  { %19065 = vmatpush3.bf16.msra.mxu0 %v21344_v36 }
0x1c6a   :  { %19066 = vmatprep.subr.bf16.mxu0 %v21345_v40 }
0x1c6d   :  { %19067 = vmatpush3.bf16.msra.mxu0 %v21346_v31 }
0x1c6e   :  { %19068 = vmatprep.subr.bf16.mxu0 %v21347_v58 }
0x1c71   :  { %19069 = vmatpush3.bf16.msra.mxu0 %v21348_v39 }
0x1c72   :  { %19070 = vmatprep.subr.bf16.mxu0 %v21349_v38 }
0x1c75   :  { %19071 = vmatpush3.bf16.msra.mxu0 %v21350_v56 }
0x1c76   :  { %19072 = vmatprep.subr.bf16.mxu0 %v21351_v10 }
0x1c79   :  { %19073 = vmatpush3.bf16.msra.mxu0 %v21352_v61 }
0x1c7a   :  { %13044 = vmatprep.subr.bf16.mxu0 %v21355_v48 }
0x1d04   :  { %v11811_v19 = vpop.f32.mrf.mxu0 }
0x1d06   :  { %v19731_v25 = vpop.f32.mrf.mxu0  ;;  %v11854_v24 = vpop.f32.mrf.mxu1 }
0x1d07   :  { %v12126_v35 = vrot.slane %v11854_v24, 7  ;;  %v21353_v24 = vld [vmem:[%s28090_s4 + $0xe0] ss:$16 sps:$4 sm:$0xff]  }
0x1d08   :  { %v11814_v55 = vpop.f32.mrf.mxu0  ;;  %v19737_v8 = vpop.f32.mrf.mxu1 }
0x1d09   :  { %v12127_v59 = vsel %vm2309_vm3, %v12126_v35, %v11811_v19  ;;  %v21367_v35 = vld [vmem:[%s28090_s4 + $0x64] ss:$16 sps:$4 sm:$0xff]  }
0x1d0a   :  { %v19732_v30 = vpop.f32.mrf.mxu0  ;;  %v11857_v12 = vpop.f32.mrf.mxu1 }
0x1d0b   :  { %v21358_v12 = vld [vmem:[%s28090_s4 + $0xc4] ss:$16 sps:$4 sm:$0xff]  }
0x1d0c   :  { %v19738_v32 = vpop.f32.mrf.mxu1  ;;  %v11897_v7 = vpop.f32.mrf.mxu0 }
0x1d0d   :  { %v12128_v60 = vrot.slane %v11897_v7, 6  ;;  %v21356_v7 = vld [vmem:[%s28090_s4 + $0xc0] ss:$16 sps:$4 sm:$0xff]  }
0x1d0e   :  { %v19743_v20 = vpop.f32.mrf.mxu0  ;;  %v11940_v13 = vpop.f32.mrf.mxu1 }
0x1d0f   :  { %v12130_v9 = vrot.slane %v11940_v13, 5  ;;  %v12129_v51 = vsel %vm2312_vm4, %v12128_v60, %v12127_v59  ;;  %v21361_v20 = vld [vmem:[%s28090_s4 + $0xa4] ss:$16 sps:$4 sm:$0xff]   ;;  %v21359_v13 = vld [vmem:[%s28090_s4 + $0xa0] ss:$16 sps:$4 sm:$0xff]  }
0x1d10   :  { %v11900_v11 = vpop.f32.mrf.mxu0  ;;  %v19749_v18 = vpop.f32.mrf.mxu1  ;;  %v21368_v60 = vld [vmem:[%s28090_s4 + $0x40] ss:$16 sps:$4 sm:$0xff]   ;;  %v21376_v59 = vld [vmem:[%s28090_s4 + $0x4] ss:$16 sps:$4 sm:$0xff]  }
0x1d11   :  { %v12131_v41 = vsel %vm2315_vm5, %v12130_v9, %v12129_v51  ;;  %v21364_v11 = vld [vmem:[%s28090_s4 + $0x84] ss:$16 sps:$4 sm:$0xff]   ;;  %v21362_v18 = vld [vmem:[%s28090_s4 + $0x80] ss:$16 sps:$4 sm:$0xff]  }
0x1d12   :  { %v19744_v44 = vpop.f32.mrf.mxu0  ;;  %v11943_v21 = vpop.f32.mrf.mxu1  ;;  %v21374_v9 = vld [vmem:[%s28090_s4] ss:$16 sps:$4 sm:$0xff]   ;;  %v21383_v51 = vld [vmem:[%s28090_s4 + $0x1c4] ss:$16 sps:$4 sm:$0xff]  }
0x1d13   :  { %v21365_v44 = vld [vmem:[%s28090_s4 + $0x60] ss:$16 sps:$4 sm:$0xff]   ;;  %v21370_v21 = vld [vmem:[%s28090_s4 + $0x44] ss:$16 sps:$4 sm:$0xff]  }
0x1d14   :  { %v19750_v17 = vpop.f32.mrf.mxu1  ;;  %v11983_v57 = vpop.f32.mrf.mxu0 }
0x1d15   :  { %v12132_v45 = vrot.slane %v11983_v57, 4  ;;  %v21373_v17 = vld [vmem:[%s28090_s4 + $0x24] ss:$16 sps:$4 sm:$0xff]   ;;  %v21371_v57 = vld [vmem:[%s28090_s4 + $0x20] ss:$16 sps:$4 sm:$0xff]  }
0x1d16   :  { %v19755_v43 = vpop.f32.mrf.mxu0  ;;  %v12026_v62 = vpop.f32.mrf.mxu1 }
0x1d17   :  { %v12134_v36 = vrot.slane %v12026_v62, 3  ;;  %v12133_v58 = vsel %vm2318_vm6, %v12132_v45, %v12131_v41  ;;  %v21379_v43 = vld [vmem:[%s28090_s4 + $0x1e4] ss:$16 sps:$4 sm:$0xff]   ;;  %v21377_v62 = vld [vmem:[%s28090_s4 + $0x1e0] ss:$16 sps:$4 sm:$0xff]  }
0x1d18   :  { %v11986_v42 = vpop.f32.mrf.mxu0  ;;  %v19761_v4 = vpop.f32.mrf.mxu1  ;;  %v21381_v45 = vld [vmem:[%s28090_s4 + $0x1c0] ss:$16 sps:$4 sm:$0xff]   ;;  %v21391_v41 = vld [vmem:[%s28090_s4 + $0x184] ss:$16 sps:$4 sm:$0xff]  }
0x1d19   :  { %v12135_v10 = vsel %vm2321_vm7, %v12134_v36, %v12133_v58  ;;  %v21387_v42 = vld [vmem:[%s28090_s4 + $0x1a4] ss:$16 sps:$4 sm:$0xff]   ;;  %v21385_v4 = vld [vmem:[%s28090_s4 + $0x1a0] ss:$16 sps:$4 sm:$0xff]  }
0x1d1a   :  { %v19756_v40 = vpop.f32.mrf.mxu0  ;;  %v12029_v31 = vpop.f32.mrf.mxu1  ;;  %v21389_v36 = vld [vmem:[%s28090_s4 + $0x180] ss:$16 sps:$4 sm:$0xff]  }
0x1d1b   :  { %v21392_v40 = vld [vmem:[%s28099_s10 + $0x20] sm:$0xff]  }
0x1d1c   :  { %v19762_v39 = vpop.f32.mrf.mxu1  ;;  %v12069_v38 = vpop.f32.mrf.mxu0  ;;  %19782 = vmatpush3.bf16.msra.mxu1 %v21392_v40  ;;  %v21395_v31 = vld [vmem:[%s28090_s4 + $0x164] ss:$16 sps:$4 sm:$0xff]   ;;  %v21393_v58 = vld [vmem:[%s28090_s4 + $0x160] ss:$16 sps:$4 sm:$0xff]   ;;  %v21438_v40 = vld [vmem:[%s28090_s4 + $0x26c] ss:$16 sps:$4 sm:$0xff]  }
0x1d1d   :  { %v12136_v56 = vrot.slane %v12069_v38, 2  ;;  %19783 = vmatprep.subr.bf16.mxu1 %v22429_v33  ;;  %v21396_v39 = vld [vmem:[%s28099_s10 + $0x18] sm:$0xff]   ;;  %v21399_v38 = vld [vmem:[%s28090_s4 + $0x144] ss:$16 sps:$4 sm:$0xff]  }
0x1d1e   :  { %v19767_v61 = vpop.f32.mrf.mxu0  ;;  %v12112_v48 = vpop.f32.mrf.mxu1 }
0x1d1f   :  { %v12137_v29 = vsel %vm2324_vm8, %v12136_v56, %v12135_v10  ;;  %v12138_v16 = vrot.slane %v12112_v48, 1  ;;  %v21397_v56 = vld [vmem:[%s28090_s4 + $0x140] ss:$16 sps:$4 sm:$0xff]   ;;  %v21403_v61 = vld [vmem:[%s28090_s4 + $0x124] ss:$16 sps:$4 sm:$0xff]  }
0x1d20   :  { %v12072_v47 = vpop.f32.mrf.mxu0  ;;  %v19773_v19 = vpop.f32.mrf.mxu1  ;;  %19784 = vmatpush3.bf16.msra.mxu1 %v21396_v39  ;;  %v21400_v10 = vld [vmem:[%s28099_s10 + $0x10] sm:$0xff]  }
0x1d21   :  { %v12139_v25 = vsel %vm2327_vm9, %v12138_v16, %v12137_v29  ;;  %19785 = vmatprep.subr.bf16.mxu1 %v22429_v33  ;;  %v21401_v48 = vld [vmem:[%s28090_s4 + $0x120] ss:$16 sps:$4 sm:$0xff]   ;;  %v21404_v29 = vld [vmem:[%s28099_s10 + $0x8] sm:$0xff]   ;;  %v21407_v16 = vld [vmem:[%s28090_s4 + $0x104] ss:$16 sps:$4 sm:$0xff]  }
0x1d22   :  { %v12141_v55 = vpack.c.bf16 %v12139_v25, %v12139_v25  ;;  %v19768_v8 = vpop.f32.mrf.mxu0  ;;  %v12115_v30 = vpop.f32.mrf.mxu1  ;;  %v21405_v47 = vld [vmem:[%s28090_s4 + $0x100] ss:$16 sps:$4 sm:$0xff]   ;;  %v18370_v25 = vld [vmem:[%s28092_s0 + $0x28] sm:$0xff]  ;;  %v21441_v39 = vld [vmem:[%s28090_s4 + $0x244] ss:$16 sps:$4 sm:$0xff]  }
0x1d23   :  { %v21408_v19 = vld [vmem:[%s28099_s10] sm:$0xff]   ;;  %v21414_v8 = vld [vmem:[%s28090_s4 + $0x2ec] ss:$16 sps:$4 sm:$0xff]  }
0x1d24   :  { %v19774_v32 = vpop.f32.mrf.mxu1  ;;  %12311 = vmatmul.mubr.bf16.vlgmr.msra.gmra.mxu0 %v12141_v55  ;;  %19786 = vmatpush3.bf16.msra.mxu1 %v21400_v10  ;;  %v21411_v55 = vld [vmem:[%s28090_s4 + $0x2e4] ss:$16 sps:$4 sm:$0xff]   ;;  %v21442_v10 = vld [vmem:[%s28090_s4 + $0x248] ss:$16 sps:$4 sm:$0xff]  }
0x1d25   :  { %13045 = vmatpush1.bf16.msra.mxu0 %v21353_v24  ;;  %19787 = vmatprep.subr.bf16.mxu1 %v22429_v33  ;;  %v26530_v24 = vpack.c.bf16 %v18370_v25, %v18370_v25  ;;  %v21451_v25 = vld [vmem:[%s28090_s4 + $0x200] ss:$16 sps:$4 sm:$0xff]  }
0x1d26   :  { %13046 = vmatprep.subr.bf16.mxu0 %v21358_v12  ;;  %v18343_v12 = vld [vmem:[%s28100_s9] ss:$0 sm:$0xff] }
0x1d27   :  { %13076 = vmatprep.mubr.bf16.mxu0 %v26530_v24 }
0x1d28   :  { %19788 = vmatpush3.bf16.msra.mxu1 %v21404_v29  ;;  %v21445_v29 = vld [vmem:[%s28090_s4 + $0x220] ss:$16 sps:$4 sm:$0xff]  }
0x1d29   :  { %13047 = vmatpush1.bf16.msra.mxu0 %v21356_v7  ;;  %19789 = vmatprep.subr.bf16.mxu1 %v22429_v33 }
0x1d2a   :  { %13048 = vmatprep.subr.bf16.mxu0 %v21361_v20 }
0x1d2c   :  { %19790 = vmatpush3.bf16.msra.mxu1 %v21408_v19  ;;  %v21456_v19 = vld [vmem:[%s28090_s4 + $0x20c] ss:$16 sps:$4 sm:$0xff]  }
0x1d2d   :  { %13049 = vmatpush1.bf16.msra.mxu0 %v21359_v13  ;;  %13085 = vmatprep.subr.bf16.mxu1 %v21411_v55  ;;  %v21454_v55 = vld [vmem:[%s28090_s4 + $0x208] ss:$16 sps:$4 sm:$0xff]  }
0x1d2e   :  { %13050 = vmatprep.subr.bf16.mxu0 %v21364_v11 }
0x1d31   :  { %13051 = vmatpush1.bf16.msra.mxu0 %v21362_v18 }
0x1d32   :  { %13052 = vmatprep.subr.bf16.mxu0 %v21367_v35  ;;  %v21409_v35 = vld [vmem:[%s28090_s4 + $0x2e0] ss:$16 sps:$4 sm:$0xff]  }
0x1d35   :  { %13053 = vmatpush1.bf16.msra.mxu0 %v21365_v44  ;;  %v21412_v44 = vld [vmem:[%s28090_s4 + $0x2e8] ss:$16 sps:$4 sm:$0xff]  }
0x1d36   :  { %13054 = vmatprep.subr.bf16.mxu0 %v21370_v21 }
0x1d39   :  { %13055 = vmatpush1.bf16.msra.mxu0 %v21368_v60  ;;  %v21417_v60 = vld [vmem:[%s28090_s4 + $0x2c4] ss:$16 sps:$4 sm:$0xff]  }
0x1d3a   :  { %13056 = vmatprep.subr.bf16.mxu0 %v21373_v17  ;;  %v21420_v17 = vld [vmem:[%s28090_s4 + $0x2cc] ss:$16 sps:$4 sm:$0xff]  }
0x1d3d   :  { %13057 = vmatpush1.bf16.msra.mxu0 %v21371_v57  ;;  %v21415_v57 = vld [vmem:[%s28090_s4 + $0x2c0] ss:$16 sps:$4 sm:$0xff]  }
0x1d3e   :  { %13058 = vmatprep.subr.bf16.mxu0 %v21376_v59  ;;  %v21418_v59 = vld [vmem:[%s28090_s4 + $0x2c8] ss:$16 sps:$4 sm:$0xff]  }
0x1d41   :  { %13059 = vmatpush1.bf16.msra.mxu0 %v21374_v9  ;;  %v21423_v9 = vld [vmem:[%s28090_s4 + $0x2a4] ss:$16 sps:$4 sm:$0xff]  }
0x1d42   :  { %13060 = vmatprep.subr.bf16.mxu0 %v21379_v43  ;;  %v21426_v43 = vld [vmem:[%s28090_s4 + $0x2ac] ss:$16 sps:$4 sm:$0xff]  }
0x1d45   :  { %13061 = vmatpush2.bf16.msra.mxu0 %v21377_v62  ;;  %v21421_v62 = vld [vmem:[%s28090_s4 + $0x2a0] ss:$16 sps:$4 sm:$0xff]  }
0x1d46   :  { %13062 = vmatprep.subr.bf16.mxu0 %v21383_v51  ;;  %v21424_v51 = vld [vmem:[%s28090_s4 + $0x2a8] ss:$16 sps:$4 sm:$0xff]  }
0x1d49   :  { %13063 = vmatpush2.bf16.msra.mxu0 %v21381_v45  ;;  %v21429_v45 = vld [vmem:[%s28090_s4 + $0x284] ss:$16 sps:$4 sm:$0xff]  }
0x1d4a   :  { %13064 = vmatprep.subr.bf16.mxu0 %v21387_v42  ;;  %v21432_v42 = vld [vmem:[%s28090_s4 + $0x28c] ss:$16 sps:$4 sm:$0xff]  }
0x1d4d   :  { %13065 = vmatpush2.bf16.msra.mxu0 %v21385_v4  ;;  %v21427_v4 = vld [vmem:[%s28090_s4 + $0x280] ss:$16 sps:$4 sm:$0xff]  }
0x1d4e   :  { %13066 = vmatprep.subr.bf16.mxu0 %v21391_v41  ;;  %v21430_v41 = vld [vmem:[%s28090_s4 + $0x288] ss:$16 sps:$4 sm:$0xff]  }
0x1d51   :  { %13067 = vmatpush2.bf16.msra.mxu0 %v21389_v36  ;;  %v21435_v36 = vld [vmem:[%s28090_s4 + $0x264] ss:$16 sps:$4 sm:$0xff]  }
0x1d52   :  { %13068 = vmatprep.subr.bf16.mxu0 %v21395_v31  ;;  %v21433_v31 = vld [vmem:[%s28090_s4 + $0x260] ss:$16 sps:$4 sm:$0xff]  }
0x1d55   :  { %13069 = vmatpush2.bf16.msra.mxu0 %v21393_v58  ;;  %v21436_v58 = vld [vmem:[%s28090_s4 + $0x268] ss:$16 sps:$4 sm:$0xff]  }
0x1d56   :  { %13070 = vmatprep.subr.bf16.mxu0 %v21399_v38  ;;  %v21444_v38 = vld [vmem:[%s28090_s4 + $0x24c] ss:$16 sps:$4 sm:$0xff]  }
0x1d59   :  { %13071 = vmatpush2.bf16.msra.mxu0 %v21397_v56  ;;  %v21439_v56 = vld [vmem:[%s28090_s4 + $0x240] ss:$16 sps:$4 sm:$0xff]  }
0x1d5a   :  { %13072 = vmatprep.subr.bf16.mxu0 %v21403_v61  ;;  %v21447_v61 = vld [vmem:[%s28090_s4 + $0x224] ss:$16 sps:$4 sm:$0xff]  }
0x1d5d   :  { %13073 = vmatpush2.bf16.msra.mxu0 %v21401_v48  ;;  %v21450_v48 = vld [vmem:[%s28090_s4 + $0x22c] ss:$16 sps:$4 sm:$0xff]  }
0x1d5e   :  { %13074 = vmatprep.subr.bf16.mxu0 %v21407_v16  ;;  %v21448_v16 = vld [vmem:[%s28090_s4 + $0x228] ss:$16 sps:$4 sm:$0xff]  }
0x1d61   :  { %13075 = vmatpush2.bf16.msra.mxu0 %v21405_v47  ;;  %v21453_v47 = vld [vmem:[%s28090_s4 + $0x204] ss:$16 sps:$4 sm:$0xff]  }
0x1d62   :  { %13167 = vmatprep.subr.bf16.mxu0 %v21414_v8  ;;  %v21459_v8 = vld [vmem:[%s28090_s4 + $0xec] ss:$16 sps:$4 sm:$0xff]  }
0x1de4   :  { %v19074_v30 = vpop.f32.mrf.mxu0 }
0x1de6   :  { %v19075_v32 = vpop.f32.mrf.mxu0 }
0x1de7   :  { %v19076_v7 = vadd.f32 %v19075_v32, %v19074_v30  ;;  %v21457_v30 = vld [vmem:[%s28090_s4 + $0xe8] ss:$16 sps:$4 sm:$0xff]  }
0x1de8   :  { %v19077_v20 = vpop.f32.mrf.mxu0  ;;  %v21460_v32 = vld [vmem:[%s28090_s4 + $0xc8] ss:$16 sps:$4 sm:$0xff]  }
0x1de9   :  { %v12313_v13 = vadd.f32 %v19076_v7, %v18343_v12  ;;  %v21462_v12 = vld [vmem:[%s28090_s4 + $0xcc] ss:$16 sps:$4 sm:$0xff]   ;;  %v21463_v20 = vld [vmem:[%s28090_s4 + $0xa8] ss:$16 sps:$4 sm:$0xff]  }
0x1dea   :  { %v19078_v11 = vpop.f32.mrf.mxu0  ;;  %v21465_v7 = vld [vmem:[%s28090_s4 + $0xac] ss:$16 sps:$4 sm:$0xff]  }
0x1deb   :  { %22217 = vtanh.f32 %v12313_v13  ;;  %v21466_v13 = vld [vmem:[%s28090_s4 + $0x88] ss:$16 sps:$4 sm:$0xff]  }
0x1dec   :  { %v21469_v11 = vld [vmem:[%s28090_s4 + $0x68] ss:$16 sps:$4 sm:$0xff]  }
0x1df8   :  { %v22218_v18 = vpop.eup %22217 }
0x1df9   :  { %v26548_v21 = vpack.c.bf16 %v22218_v18, %v22218_v18  ;;  %v21474_v18 = vld [vmem:[%s28090_s4 + $0x4c] ss:$16 sps:$4 sm:$0xff]  }
0x1dfb   :  { %19792 = vmatmul.mubr.bf16.vlgmr.msra.gmra.mxu1 %v26548_v21  ;;  %13077 = vmatmul.mubr.bf16.vlgmr.msra.gmra.mxu0 %v26548_v21 }
0x1dfc   :  { %13086 = vmatpush1.bf16.msra.mxu1 %v21409_v35  ;;  %13168 = vmatpush1.bf16.msra.mxu0 %v21412_v44  ;;  %v21472_v35 = vld [vmem:[%s28090_s4 + $0x48] ss:$16 sps:$4 sm:$0xff]   ;;  %v21477_v44 = vld [vmem:[%s28090_s4 + $0x2c] ss:$16 sps:$4 sm:$0xff]  }
0x1dfd   :  { %13087 = vmatprep.subr.bf16.mxu1 %v21417_v60  ;;  %13169 = vmatprep.subr.bf16.mxu0 %v21420_v17  ;;  %v21475_v60 = vld [vmem:[%s28090_s4 + $0x28] ss:$16 sps:$4 sm:$0xff]   ;;  %v21480_v17 = vld [vmem:[%s28090_s4 + $0xc] ss:$16 sps:$4 sm:$0xff]  }
0x1dfe   :  { %13117 = vmatprep.mubr.bf16.mxu1 %v22427_v1  ;;  %13199 = vmatprep.mubr.bf16.mxu0 %v22427_v1 }
0x1e00   :  { %13088 = vmatpush1.bf16.msra.mxu1 %v21415_v57  ;;  %13170 = vmatpush1.bf16.msra.mxu0 %v21418_v59  ;;  %v21478_v57 = vld [vmem:[%s28090_s4 + $0x8] ss:$16 sps:$4 sm:$0xff]   ;;  %v21483_v59 = vld [vmem:[%s28090_s4 + $0x1ec] ss:$16 sps:$4 sm:$0xff]  }
0x1e01   :  { %13089 = vmatprep.subr.bf16.mxu1 %v21423_v9  ;;  %13171 = vmatprep.subr.bf16.mxu0 %v21426_v43  ;;  %v21481_v9 = vld [vmem:[%s28090_s4 + $0x1e8] ss:$16 sps:$4 sm:$0xff]   ;;  %v21486_v43 = vld [vmem:[%s28090_s4 + $0x1cc] ss:$16 sps:$4 sm:$0xff]  }
0x1e04   :  { %13090 = vmatpush1.bf16.msra.mxu1 %v21421_v62  ;;  %13172 = vmatpush1.bf16.msra.mxu0 %v21424_v51  ;;  %v21484_v62 = vld [vmem:[%s28090_s4 + $0x1c8] ss:$16 sps:$4 sm:$0xff]   ;;  %v21489_v51 = vld [vmem:[%s28090_s4 + $0x1ac] ss:$16 sps:$4 sm:$0xff]  }
0x1e05   :  { %13091 = vmatprep.subr.bf16.mxu1 %v21429_v45  ;;  %13173 = vmatprep.subr.bf16.mxu0 %v21432_v42  ;;  %v21487_v45 = vld [vmem:[%s28090_s4 + $0x1a8] ss:$16 sps:$4 sm:$0xff]   ;;  %v21492_v42 = vld [vmem:[%s28090_s4 + $0x18c] ss:$16 sps:$4 sm:$0xff]  }
0x1e08   :  { %13092 = vmatpush1.bf16.msra.mxu1 %v21427_v4  ;;  %13174 = vmatpush1.bf16.msra.mxu0 %v21430_v41  ;;  %v21490_v4 = vld [vmem:[%s28090_s4 + $0x188] ss:$16 sps:$4 sm:$0xff]   ;;  %v21495_v41 = vld [vmem:[%s28090_s4 + $0x16c] ss:$16 sps:$4 sm:$0xff]  }
0x1e09   :  { %13093 = vmatprep.subr.bf16.mxu1 %v21435_v36  ;;  %13175 = vmatprep.subr.bf16.mxu0 %v21438_v40  ;;  %v21493_v36 = vld [vmem:[%s28090_s4 + $0x168] ss:$16 sps:$4 sm:$0xff]   ;;  %v21498_v40 = vld [vmem:[%s28090_s4 + $0x14c] ss:$16 sps:$4 sm:$0xff]  }
0x1e0c   :  { %13094 = vmatpush1.bf16.msra.mxu1 %v21433_v31  ;;  %13176 = vmatpush1.bf16.msra.mxu0 %v21436_v58  ;;  %v21496_v31 = vld [vmem:[%s28090_s4 + $0x148] ss:$16 sps:$4 sm:$0xff]   ;;  %v21501_v58 = vld [vmem:[%s28090_s4 + $0x12c] ss:$16 sps:$4 sm:$0xff]  }
0x1e0d   :  { %13095 = vmatprep.subr.bf16.mxu1 %v21441_v39  ;;  %13177 = vmatprep.subr.bf16.mxu0 %v21444_v38  ;;  %v21499_v39 = vld [vmem:[%s28090_s4 + $0x128] ss:$16 sps:$4 sm:$0xff]   ;;  %v21504_v38 = vld [vmem:[%s28090_s4 + $0x10c] ss:$16 sps:$4 sm:$0xff]  }
0x1e10   :  { %13096 = vmatpush1.bf16.msra.mxu1 %v21439_v56  ;;  %13178 = vmatpush1.bf16.msra.mxu0 %v21442_v10  ;;  %v21502_v56 = vld [vmem:[%s28090_s4 + $0x108] ss:$16 sps:$4 sm:$0xff]   ;;  %v21505_v10 = vld [vmem:[%s28093_s6 + $0xe0] ss:$16 sps:$4 sm:$0xff]  }
0x1e11   :  { %13097 = vmatprep.subr.bf16.mxu1 %v21447_v61  ;;  %13179 = vmatprep.subr.bf16.mxu0 %v21450_v48  ;;  %v21507_v61 = vld [vmem:[%s28093_s6 + $0xe4] ss:$16 sps:$4 sm:$0xff]   ;;  %v21508_v48 = vld [vmem:[%s28093_s6 + $0xe8] ss:$16 sps:$4 sm:$0xff]  }
0x1e14   :  { %13098 = vmatpush1.bf16.msra.mxu1 %v21445_v29  ;;  %13180 = vmatpush1.bf16.msra.mxu0 %v21448_v16  ;;  %v21510_v29 = vld [vmem:[%s28093_s6 + $0xec] ss:$16 sps:$4 sm:$0xff]   ;;  %v21511_v16 = vld [vmem:[%s28093_s6 + $0xc0] ss:$16 sps:$4 sm:$0xff]  }
0x1e15   :  { %13099 = vmatprep.subr.bf16.mxu1 %v21453_v47  ;;  %13181 = vmatprep.subr.bf16.mxu0 %v21456_v19  ;;  %v21514_v47 = vld [vmem:[%s28093_s6 + $0xc8] ss:$16 sps:$4 sm:$0xff]   ;;  %v21519_v19 = vld [vmem:[%s28093_s6 + $0xa4] ss:$16 sps:$4 sm:$0xff]  }
0x1e18   :  { %13100 = vmatpush1.bf16.msra.mxu1 %v21451_v25  ;;  %13182 = vmatpush1.bf16.msra.mxu0 %v21454_v55  ;;  %v21522_v25 = vld [vmem:[%s28093_s6 + $0xac] ss:$16 sps:$4 sm:$0xff]   ;;  %v21517_v55 = vld [vmem:[%s28093_s6 + $0xa0] ss:$16 sps:$4 sm:$0xff]  }
0x1e19   :  { %13126 = vmatprep.subr.bf16.mxu1 %v21459_v8  ;;  %13639 = vmatprep.subr.bf16.mxu0 %v21507_v61  ;;  %v21520_v8 = vld [vmem:[%s28093_s6 + $0xa8] ss:$16 sps:$4 sm:$0xff]   ;;  %v21573_v61 = vld [vmem:[%s28093_s6 + $0x184] ss:$16 sps:$4 sm:$0xff]  }
0x1e1b   :  { %13118 = vmatmul.mubr.bf16.vlgmr.msra.gmra.mxu1 %v26169_v23  ;;  %13200 = vmatmul.mubr.bf16.vlgmr.msra.gmra.mxu0 %v26169_v23  ;;  %v21468_v23 = vld [vmem:[%s28090_s4 + $0x8c] ss:$16 sps:$4 sm:$0xff]  }
0x1e1c   :  { %13127 = vmatpush1.bf16.msra.mxu1 %v21457_v30  ;;  %13671 = vmatprep.mubr.bf16.mxu0 %v26338_v28  ;;  %v21525_v30 = vld [vmem:[%s28093_s6 + $0x84] ss:$16 sps:$4 sm:$0xff]  }
0x1e1d   :  { %13128 = vmatprep.subr.bf16.mxu1 %v21462_v12  ;;  %13158 = vmatprep.mubr.bf16.mxu1 %v26530_v24  ;;  %v21471_v24 = vld [vmem:[%s28090_s4 + $0x6c] ss:$16 sps:$4 sm:$0xff]  }
0x1e1e   :  { %13640 = vmatpush1.bf16.msra.mxu0 %v21505_v10  ;;  %v21528_v12 = vld [vmem:[%s28093_s6 + $0x8c] ss:$16 sps:$4 sm:$0xff]   ;;  %v21568_v10 = vld [vmem:[%s28093_s6 + $0x1a8] ss:$16 sps:$4 sm:$0xff]  }
0x1e20   :  { %13129 = vmatpush1.bf16.msra.mxu1 %v21460_v32  ;;  %v21523_v32 = vld [vmem:[%s28093_s6 + $0x80] ss:$16 sps:$4 sm:$0xff]  }
0x1e21   :  { %13130 = vmatprep.subr.bf16.mxu1 %v21465_v7  ;;  %v21526_v7 = vld [vmem:[%s28093_s6 + $0x88] ss:$16 sps:$4 sm:$0xff]  }
0x1e24   :  { %13131 = vmatpush1.bf16.msra.mxu1 %v21463_v20  ;;  %v21531_v20 = vld [vmem:[%s28093_s6 + $0x64] ss:$16 sps:$4 sm:$0xff]  }
0x1e25   :  { %13132 = vmatprep.subr.bf16.mxu1 %v21468_v23  ;;  %v21534_v23 = vld [vmem:[%s28093_s6 + $0x6c] ss:$16 sps:$4 sm:$0xff]  }
0x1e28   :  { %13133 = vmatpush1.bf16.msra.mxu1 %v21466_v13  ;;  %v21529_v13 = vld [vmem:[%s28093_s6 + $0x60] ss:$16 sps:$4 sm:$0xff]  }
0x1e29   :  { %13134 = vmatprep.subr.bf16.mxu1 %v21471_v24  ;;  %v21532_v24 = vld [vmem:[%s28093_s6 + $0x68] ss:$16 sps:$4 sm:$0xff]  }
0x1e2c   :  { %13135 = vmatpush1.bf16.msra.mxu1 %v21469_v11  ;;  %v21537_v11 = vld [vmem:[%s28093_s6 + $0x44] ss:$16 sps:$4 sm:$0xff]  }
0x1e2d   :  { %13136 = vmatprep.subr.bf16.mxu1 %v21474_v18  ;;  %v21540_v18 = vld [vmem:[%s28093_s6 + $0x4c] ss:$16 sps:$4 sm:$0xff]  }
0x1e30   :  { %13137 = vmatpush1.bf16.msra.mxu1 %v21472_v35  ;;  %v21535_v35 = vld [vmem:[%s28093_s6 + $0x40] ss:$16 sps:$4 sm:$0xff]  }
0x1e31   :  { %13138 = vmatprep.subr.bf16.mxu1 %v21477_v44  ;;  %v21538_v44 = vld [vmem:[%s28093_s6 + $0x48] ss:$16 sps:$4 sm:$0xff]  }
0x1e34   :  { %13139 = vmatpush1.bf16.msra.mxu1 %v21475_v60  ;;  %v21543_v60 = vld [vmem:[%s28093_s6 + $0x24] ss:$16 sps:$4 sm:$0xff]  }
0x1e35   :  { %13140 = vmatprep.subr.bf16.mxu1 %v21480_v17  ;;  %v21546_v17 = vld [vmem:[%s28093_s6 + $0x2c] ss:$16 sps:$4 sm:$0xff]  }
0x1e38   :  { %13141 = vmatpush1.bf16.msra.mxu1 %v21478_v57  ;;  %v21541_v57 = vld [vmem:[%s28093_s6 + $0x20] ss:$16 sps:$4 sm:$0xff]  }
0x1e39   :  { %13142 = vmatprep.subr.bf16.mxu1 %v21483_v59  ;;  %v21544_v59 = vld [vmem:[%s28093_s6 + $0x28] ss:$16 sps:$4 sm:$0xff]  }
0x1e3c   :  { %13143 = vmatpush2.bf16.msra.mxu1 %v21481_v9  ;;  %v21549_v9 = vld [vmem:[%s28093_s6 + $0x4] ss:$16 sps:$4 sm:$0xff]  }
0x1e3d   :  { %13144 = vmatprep.subr.bf16.mxu1 %v21486_v43  ;;  %v21552_v43 = vld [vmem:[%s28093_s6 + $0xc] ss:$16 sps:$4 sm:$0xff]  }
0x1e40   :  { %13145 = vmatpush2.bf16.msra.mxu1 %v21484_v62  ;;  %v21547_v62 = vld [vmem:[%s28093_s6] ss:$16 sps:$4 sm:$0xff]  }
0x1e41   :  { %13146 = vmatprep.subr.bf16.mxu1 %v21489_v51  ;;  %v21550_v51 = vld [vmem:[%s28093_s6 + $0x8] ss:$16 sps:$4 sm:$0xff]  }
0x1e44   :  { %13147 = vmatpush2.bf16.msra.mxu1 %v21487_v45  ;;  %v21555_v45 = vld [vmem:[%s28093_s6 + $0x1e4] ss:$16 sps:$4 sm:$0xff]  }
0x1e45   :  { %13148 = vmatprep.subr.bf16.mxu1 %v21492_v42  ;;  %v21558_v42 = vld [vmem:[%s28093_s6 + $0x1ec] ss:$16 sps:$4 sm:$0xff]  }
0x1e48   :  { %13149 = vmatpush2.bf16.msra.mxu1 %v21490_v4  ;;  %v21553_v4 = vld [vmem:[%s28093_s6 + $0x1e0] ss:$16 sps:$4 sm:$0xff]  }
0x1e49   :  { %13150 = vmatprep.subr.bf16.mxu1 %v21495_v41  ;;  %v21556_v41 = vld [vmem:[%s28093_s6 + $0x1e8] ss:$16 sps:$4 sm:$0xff]  }
0x1e4c   :  { %13151 = vmatpush2.bf16.msra.mxu1 %v21493_v36  ;;  %v21561_v36 = vld [vmem:[%s28093_s6 + $0x1c4] ss:$16 sps:$4 sm:$0xff]  }
0x1e4d   :  { %13152 = vmatprep.subr.bf16.mxu1 %v21498_v40  ;;  %v21564_v40 = vld [vmem:[%s28093_s6 + $0x1cc] ss:$16 sps:$4 sm:$0xff]  }
0x1e50   :  { %13153 = vmatpush2.bf16.msra.mxu1 %v21496_v31  ;;  %v21559_v31 = vld [vmem:[%s28093_s6 + $0x1c0] ss:$16 sps:$4 sm:$0xff]  }
0x1e51   :  { %13154 = vmatprep.subr.bf16.mxu1 %v21501_v58  ;;  %v21562_v58 = vld [vmem:[%s28093_s6 + $0x1c8] ss:$16 sps:$4 sm:$0xff]  }
0x1e54   :  { %13155 = vmatpush2.bf16.msra.mxu1 %v21499_v39  ;;  %v21567_v39 = vld [vmem:[%s28093_s6 + $0x1a4] ss:$16 sps:$4 sm:$0xff]  }
0x1e55   :  { %13156 = vmatprep.subr.bf16.mxu1 %v21504_v38  ;;  %v21570_v38 = vld [vmem:[%s28093_s6 + $0x1ac] ss:$16 sps:$4 sm:$0xff]  }
0x1e58   :  { %13157 = vmatpush2.bf16.msra.mxu1 %v21502_v56  ;;  %v21565_v56 = vld [vmem:[%s28093_s6 + $0x1a0] ss:$16 sps:$4 sm:$0xff]  }
0x1e59   :  { %13680 = vmatprep.subr.bf16.mxu1 %v21510_v29  ;;  %v21571_v29 = vld [vmem:[%s28093_s6 + $0x180] ss:$16 sps:$4 sm:$0xff]  }
0x1e5b   :  { %13159 = vmatmul.mubr.bf16.vlgmr.msra.gmra.mxu1 %v26548_v21  ;;  %v21516_v21 = vld [vmem:[%s28093_s6 + $0xcc] ss:$16 sps:$4 sm:$0xff]  }
0x1e5c   :  { %13712 = vmatprep.mubr.bf16.mxu1 %v26338_v28  ;;  %v21513_v28 = vld [vmem:[%s28093_s6 + $0xc4] ss:$16 sps:$4 sm:$0xff]   ;;  %13681 = vmatpush1.bf16.msra.mxu1 %v21508_v48  ;;  %v21576_v48 = vld [vmem:[%s28093_s6 + $0x18c] ss:$16 sps:$4 sm:$0xff]  }
0x1e5d   :  { %13641 = vmatprep.subr.bf16.mxu0 %v21513_v28  ;;  %13682 = vmatprep.subr.bf16.mxu1 %v21516_v21  ;;  %v21574_v28 = vld [vmem:[%s28093_s6 + $0x188] ss:$16 sps:$4 sm:$0xff]   ;;  %v21577_v21 = vld [vmem:[%s28093_s6 + $0x160] ss:$16 sps:$4 sm:$0xff]  }
0x1e5e   :  { %13642 = vmatpush1.bf16.msra.mxu0 %v21511_v16  ;;  %v21579_v16 = vld [vmem:[%s28093_s6 + $0x164] ss:$16 sps:$4 sm:$0xff]  }
0x1e5f   :  { %13643 = vmatprep.subr.bf16.mxu0 %v21519_v19  ;;  %v21582_v19 = vld [vmem:[%s28093_s6 + $0x16c] ss:$16 sps:$4 sm:$0xff]  }
0x1e60   :  { %13683 = vmatpush1.bf16.msra.mxu1 %v21514_v47  ;;  %v21580_v47 = vld [vmem:[%s28093_s6 + $0x168] ss:$16 sps:$4 sm:$0xff]  }
0x1e61   :  { %13684 = vmatprep.subr.bf16.mxu1 %v21522_v25  ;;  %v21585_v25 = vld [vmem:[%s28093_s6 + $0x144] ss:$16 sps:$4 sm:$0xff]  }
0x1e62   :  { %13644 = vmatpush1.bf16.msra.mxu0 %v21517_v55  ;;  %v21588_v55 = vld [vmem:[%s28093_s6 + $0x14c] ss:$16 sps:$4 sm:$0xff]  }
0x1e63   :  { %13645 = vmatprep.subr.bf16.mxu0 %v21525_v30  ;;  %v21586_v30 = vld [vmem:[%s28093_s6 + $0x148] ss:$16 sps:$4 sm:$0xff]  }
0x1e64   :  { %13685 = vmatpush1.bf16.msra.mxu1 %v21520_v8  ;;  %v21583_v8 = vld [vmem:[%s28093_s6 + $0x140] ss:$16 sps:$4 sm:$0xff]  }
0x1e65   :  { %13686 = vmatprep.subr.bf16.mxu1 %v21528_v12  ;;  %v21591_v12 = vld [vmem:[%s28093_s6 + $0x124] ss:$16 sps:$4 sm:$0xff]  }
0x1e66   :  { %13646 = vmatpush1.bf16.msra.mxu0 %v21523_v32  ;;  %v21594_v32 = vld [vmem:[%s28093_s6 + $0x12c] ss:$16 sps:$4 sm:$0xff]  }
0x1e67   :  { %13647 = vmatprep.subr.bf16.mxu0 %v21531_v20 }
0x1e68   :  { %13687 = vmatpush1.bf16.msra.mxu1 %v21526_v7 }
0x1e69   :  { %13688 = vmatprep.subr.bf16.mxu1 %v21534_v23  ;;  %v21589_v23 = vld [vmem:[%s28093_s6 + $0x120] ss:$16 sps:$4 sm:$0xff]  }
0x1e6a   :  { %13648 = vmatpush1.bf16.msra.mxu0 %v21529_v13  ;;  %v21592_v13 = vld [vmem:[%s28093_s6 + $0x128] ss:$16 sps:$4 sm:$0xff]  }
0x1e6b   :  { %13649 = vmatprep.subr.bf16.mxu0 %v21537_v11 }
0x1e6c   :  { %13689 = vmatpush1.bf16.msra.mxu1 %v21532_v24  ;;  %v21597_v24 = vld [vmem:[%s28093_s6 + $0x104] ss:$16 sps:$4 sm:$0xff]  }
0x1e6d   :  { %13690 = vmatprep.subr.bf16.mxu1 %v21540_v18 }
0x1e6e   :  { %13650 = vmatpush1.bf16.msra.mxu0 %v21535_v35  ;;  %v21600_v35 = vld [vmem:[%s28093_s6 + $0x10c] ss:$16 sps:$4 sm:$0xff]  }
0x1e6f   :  { %13651 = vmatprep.subr.bf16.mxu0 %v21543_v60 }
0x1e70   :  { %13691 = vmatpush1.bf16.msra.mxu1 %v21538_v44 }
0x1e71   :  { %13692 = vmatprep.subr.bf16.mxu1 %v21546_v17  ;;  %v21595_v17 = vld [vmem:[%s28093_s6 + $0x100] ss:$16 sps:$4 sm:$0xff]  }
0x1e72   :  { %13652 = vmatpush1.bf16.msra.mxu0 %v21541_v57  ;;  %v21598_v57 = vld [vmem:[%s28093_s6 + $0x108] ss:$16 sps:$4 sm:$0xff]  }
0x1e73   :  { %13653 = vmatprep.subr.bf16.mxu0 %v21549_v9 }
0x1e74   :  { %13693 = vmatpush1.bf16.msra.mxu1 %v21544_v59 }
0x1e75   :  { %13694 = vmatprep.subr.bf16.mxu1 %v21552_v43 }
0x1e76   :  { %13654 = vmatpush1.bf16.msra.mxu0 %v21547_v62 }
0x1e77   :  { %13655 = vmatprep.subr.bf16.mxu0 %v21555_v45 }
0x1e78   :  { %13695 = vmatpush1.bf16.msra.mxu1 %v21550_v51 }
0x1e79   :  { %13696 = vmatprep.subr.bf16.mxu1 %v21558_v42 }
0x1e7a   :  { %13656 = vmatpush2.bf16.msra.mxu0 %v21553_v4 }
0x1e7b   :  { %13657 = vmatprep.subr.bf16.mxu0 %v21561_v36 }
0x1e7c   :  { %13697 = vmatpush2.bf16.msra.mxu1 %v21556_v41 }
0x1e7d   :  { %13698 = vmatprep.subr.bf16.mxu1 %v21564_v40  ;;  %v12542_v40 = vld [vmem:[%s28094_s5] sm:$0xf] }
0x1e7e   :  { %13658 = vmatpush2.bf16.msra.mxu0 %v21559_v31  ;;  %v12551_v31 = vrot.slane %v12542_v40, %v22998_v49 }
0x1e7f   :  { %13659 = vmatprep.subr.bf16.mxu0 %v21567_v39 }
0x1e80   :  { %13699 = vmatpush2.bf16.msra.mxu1 %v21562_v58  ;;  %v12547_v58 = vrot.slane %v12542_v40, %v23001_v50 }
0x1e81   :  { %13700 = vmatprep.subr.bf16.mxu1 %v21570_v38 }
0x1e82   :  { %13660 = vmatpush2.bf16.msra.mxu0 %v21565_v56 }
0x1e83   :  { %13661 = vmatprep.subr.bf16.mxu0 %v21573_v61 }
0x1e84   :  { %13701 = vmatpush2.bf16.msra.mxu1 %v21568_v10 }
0x1e85   :  { %13702 = vmatprep.subr.bf16.mxu1 %v21576_v48 }
0x1e86   :  { %13662 = vmatpush2.bf16.msra.mxu0 %v21571_v29 }
0x1e87   :  { %13663 = vmatprep.subr.bf16.mxu0 %v21579_v16 }
0x1e88   :  { %13703 = vmatpush2.bf16.msra.mxu1 %v21574_v28 }
0x1e89   :  { %13704 = vmatprep.subr.bf16.mxu1 %v21582_v19 }
0x1e8a   :  { %13664 = vmatpush2.bf16.msra.mxu0 %v21577_v21  ;;  %v12555_v21 = vrot.slane %v12542_v40, %v23006_v63 }
0x1e8b   :  { %13665 = vmatprep.subr.bf16.mxu0 %v21585_v25 }
0x1e8c   :  { %13705 = vmatpush2.bf16.msra.mxu1 %v21580_v47  ;;  %v12559_v47 = vrot.slane %v12542_v40, %v23009_v0 }
0x1e8d   :  { %13706 = vmatprep.subr.bf16.mxu1 %v21588_v55 }
0x1e8e   :  { %13666 = vmatpush2.bf16.msra.mxu0 %v21583_v8 }
0x1e8f   :  { %13667 = vmatprep.subr.bf16.mxu0 %v21591_v12 }
0x1e90   :  { %13707 = vmatpush2.bf16.msra.mxu1 %v21586_v30 }
0x1e91   :  { %13708 = vmatprep.subr.bf16.mxu1 %v21594_v32 }
0x1e92   :  { %13668 = vmatpush2.bf16.msra.mxu0 %v21589_v23 }
0x1e93   :  { %13669 = vmatprep.subr.bf16.mxu0 %v21597_v24 }
0x1e94   :  { %13709 = vmatpush2.bf16.msra.mxu1 %v21592_v13 }
0x1e95   :  { %13710 = vmatprep.subr.bf16.mxu1 %v21600_v35 }
0x1e96   :  { %13670 = vmatpush2.bf16.msra.mxu0 %v21595_v17 }
0x1e97   :  { %19795 = vmatprep.subr.bf16.mxu0 %v22429_v33 }
0x1e98   :  { %13711 = vmatpush2.bf16.msra.mxu1 %v21598_v57 }
0x1e99   :  { %19801 = vmatprep.subr.bf16.mxu1 %v22429_v33 }
0x1ebb   :  { %v26914_v7 = vpop.f32.mrf.mxu1  ;;  %v13078_v20 = vpop.f32.mrf.mxu0 }
0x1ebc   :  { %v13079_v38 = vadd.f32 %v13078_v20, %v12547_v58 }
0x1ebd   :  { %v19793_v11 = vpop.f32.mrf.mxu1  ;;  %v13080_v18 = vpop.f32.mrf.mxu0 }
0x1ebe   :  { %v13081_v39 = vadd.f32 %v13080_v18, %v12551_v31 }
0x1ebf   :  { %v12428_v44 = vpop.f32.mrf.mxu1  ;;  %v13082_v60 = vpop.f32.mrf.mxu0 }
0x1ec1   :  { %v19794_v59 = vpop.f32.mrf.mxu1  ;;  %v13083_v9 = vpop.f32.mrf.mxu0 }
0x1edb   :  { %v13119_v43 = vpop.f32.mrf.mxu1  ;;  %v13201_v62 = vpop.f32.mrf.mxu0 }
0x1edc   :  { %v13120_v10 = vadd.f32 %v13119_v43, %v13079_v38 }
0x1edd   :  { %v13121_v51 = vpop.f32.mrf.mxu1  ;;  %v13203_v45 = vpop.f32.mrf.mxu0 }
0x1ede   :  { %v13122_v56 = vadd.f32 %v13121_v51, %v13081_v39  ;;  %v18467_v48 = vmul.f32 -1.442695, %v13120_v10  ;;  %v26960_v51 = vld [vmem:[%s28095_s1 + $0x8] sm:$0xff]  }
0x1edf   :  { %v13123_v42 = vpop.f32.mrf.mxu1  ;;  %v13205_v4 = vpop.f32.mrf.mxu0 }
0x1ee0   :  { %v18468_v61 = vmul.f32 -1.442695, %v13122_v56 }
0x1ee1   :  { %v13124_v41 = vpop.f32.mrf.mxu1  ;;  %v13206_v36 = vpop.f32.mrf.mxu0 }
0x1ee2   :  { %22219 = vpow2.f32 %v18468_v61 }
0x1ee3   :  { %22221 = vpow2.f32 %v18467_v48 }
0x1eef   :  { %v22220_v29 = vpop.eup %22219 }
0x1ef0   :  { %v22222_v28 = vpop.eup %22221  ;;  %v13217_v16 = vadd.f32 1.0, %v22220_v29 }
0x1ef1   :  { %v13211_v19 = vadd.f32 1.0, %v22222_v28 }
0x1ef2   :  { %22223 = vrcp.f32 %v13217_v16 }
0x1ef3   :  { %22225 = vrcp.f32 %v13211_v19 }
0x1eff   :  { %v22224_v24 = vpop.eup %22223 }
0x1f00   :  { %v22226_v11 = vpop.eup %22225  ;;  %v13227_v35 = vmul.f32 %v22224_v24, %v26166_v26  ;;  %v26954_v26 = vld [vmem:[%s28095_s1] sm:$0xff]  }
0x1f1b   :  { %v13160_v25 = vpop.f32.mrf.mxu1 }
0x1f1c   :  { %v13161_v55 = vadd.f32 %v13160_v25, %v12555_v21 }
0x1f1d   :  { %v13162_v8 = vpop.f32.mrf.mxu1 }
0x1f1e   :  { %v13202_v30 = vadd.f32 %v13201_v62, %v13161_v55  ;;  %v13163_v12 = vadd.f32 %v13162_v8, %v12559_v47 }
0x1f1f   :  { %v13164_v32 = vpop.f32.mrf.mxu1 }
0x1f20   :  { %22227 = vtanh.f32 %v13202_v30  ;;  %v13204_v20 = vadd.f32 %v13203_v45, %v13163_v12  ;;  %v13297_v45 = vld [vmem:[%s28096_s7] sm:$0xf] }
0x1f21   :  { %v13165_v23 = vpop.f32.mrf.mxu1  ;;  %v13302_v42 = vrot.slane %v13297_v45, %v23001_v50  ;;  %v13306_v4 = vrot.slane %v13297_v45, %v22998_v49  ;;  %v13314_v28 = vrot.slane %v13297_v45, %v23009_v0  ;;  %v13310_v16 = vrot.slane %v13297_v45, %v23006_v63 }
0x1f22   :  { %v18469_v13 = vmul.f32 -1.442695, %v13204_v20 }
0x1f24   :  { %22229 = vpow2.f32 %v18469_v13 }
0x1f2d   :  { %v22228_v18 = vpop.eup %22227 }
0x1f2e   :  { %v13228_v44 = vmul.f32 %v22228_v18, %v22226_v11 }
0x1f30   :  { %v26944_v60 = vadd.f32 %v13228_v44, %v13227_v35 }
0x1f31   :  { %v22230_v17 = vpop.eup %22229 }
0x1f32   :  { %v13224_v57 = vadd.f32 1.0, %v22230_v17  ;;  %22231 = vtanh.f32 %v26944_v60 }
0x1f34   :  { %22233 = vrcp.f32 %v13224_v57 }
0x1f3f   :  { %v22232_v59 = vpop.eup %22231 }
0x1f41   :  { %v22234_v9 = vpop.eup %22233 }
0x1f42   :  { %v13231_v43 = vmul.f32 %v22234_v9, %v22232_v59 }
0x1f44   :  { %v26947_v62 = vpack.c.bf16 %v13231_v43, %v13231_v43 }
0x1f46   :  { %13672 = vmatmul.mubr.bf16.vlgmr.msra.gmra.mxu0 %v26947_v62  ;;  %13713 = vmatmul.mubr.bf16.vlgmr.msra.gmra.mxu1 %v26947_v62 }
0x1f47   :  { %19796 = vmatpush3.bf16.xpose.msra.mxu0 %v26954_v26  ;;  %19802 = vmatpush3.bf16.xpose.msra.mxu1 %v26960_v51 }
0x1f48   :  { %19797 = vmatprep.mubr.msk.bf16.mxu0 %vm22430_vm0, %v22429_v33  ;;  %19807 = vmatprep.subr.bf16.mxu0 %v22429_v33 }
0x1f49   :  { %19803 = vmatprep.mubr.msk.bf16.mxu1 %vm22430_vm0, %v22429_v33  ;;  %19813 = vmatprep.subr.bf16.mxu1 %v22429_v33 }
0x2006   :  { %v13673_v41 = vpop.f32.mrf.mxu0  ;;  %v13714_v36 = vpop.f32.mrf.mxu1 }
0x2007   :  { %v13674_v40 = vadd.f32 %v13673_v41, %v13302_v42  ;;  %v13715_v25 = vadd.f32 %v13714_v36, %v13310_v16  ;;  %v27000_v36 = vld [vmem:[%s28095_s1 + $0x18] sm:$0xff]  }
0x2008   :  { %v13675_v31 = vpop.f32.mrf.mxu0  ;;  %v13716_v58 = vpop.f32.mrf.mxu1 }
0x2009   :  { %v18534_v39 = vmul.f32 -1.442695, %v13674_v40  ;;  %v13676_v38 = vadd.f32 %v13675_v31, %v13306_v4  ;;  %v13717_v21 = vadd.f32 %v13716_v58, %v13314_v28  ;;  %v26991_v4 = vld [vmem:[%s28095_s1 + $0x10] sm:$0xff]  }
0x200a   :  { %v13677_v56 = vpop.f32.mrf.mxu0  ;;  %v13718_v10 = vpop.f32.mrf.mxu1 }
0x200b   :  { %22235 = vpow2.f32 %v18534_v39  ;;  %v18535_v61 = vmul.f32 -1.442695, %v13676_v38  ;;  %v18536_v47 = vmul.f32 -1.442695, %v13717_v21  ;;  %v27010_v56 = vld [vmem:[%s28095_s1 + $0x20] sm:$0xff]   ;;  %v27030_v21 = vld [vmem:[%s28095_s1 + $0x30] sm:$0xff]  }
0x200c   :  { %v13678_v48 = vpop.f32.mrf.mxu0  ;;  %v13719_v29 = vpop.f32.mrf.mxu1 }
0x200d   :  { %22237 = vpow2.f32 %v18535_v61  ;;  %v27020_v61 = vld [vmem:[%s28095_s1 + $0x28] sm:$0xff]  }
0x200e   :  { %22239 = vpow2.f32 %v18536_v47  ;;  %v27039_v47 = vld [vmem:[%s28095_s1 + $0x38] sm:$0xff]  }
0x2018   :  { %v22236_v19 = vpop.eup %22235 }
0x2019   :  { %v13724_v55 = vadd.f32 1.0, %v22236_v19 }
0x201a   :  { %v22238_v8 = vpop.eup %22237 }
0x201b   :  { %22241 = vrcp.f32 %v13724_v55  ;;  %v13730_v30 = vadd.f32 1.0, %v22238_v8  ;;  %v22240_v12 = vpop.eup %22239 }
0x201c   :  { %22243 = vtanh.f32 %v13715_v25  ;;  %v13737_v13 = vadd.f32 1.0, %v22240_v12 }
0x201d   :  { %22245 = vrcp.f32 %v13730_v30 }
0x201e   :  { %22247 = vrcp.f32 %v13737_v13 }
0x2028   :  { %v22242_v32 = vpop.eup %22241 }
0x2029   :  { %v22244_v20 = vpop.eup %22243 }
0x202a   :  { %v22246_v23 = vpop.eup %22245  ;;  %v13741_v24 = vmul.f32 %v22244_v20, %v22242_v32 }
0x202b   :  { %v13740_v11 = vmul.f32 %v22246_v23, %v26199_v37  ;;  %v22248_v35 = vpop.eup %22247 }
0x202d   :  { %v26977_v18 = vadd.f32 %v13741_v24, %v13740_v11 }
0x202f   :  { %22249 = vtanh.f32 %v26977_v18 }
0x203c   :  { %v22250_v44 = vpop.eup %22249 }
0x203d   :  { %v26980_v17 = vmul.f32 %v22250_v44, %v22248_v35 }
0x203f   :  { %v13753_v57 = vrot.slane %v26980_v17, %v23051_v14  ;;  %v13746_v42 = vcombine.high %v26980_v17, %v26980_v17 }
0x2041   :  { %v13769_v59 = vrot.slane %v13753_v57, %v23051_v14  ;;  %v13761_v9 = vcombine.high %v13753_v57, %v13753_v57  ;;  %v13760_v31 = vrot.slane %v13746_v42, %v23051_v14 }
0x2043   :  { %v13803_v43 = vpack.c.bf16 %v13769_v59, %v13769_v59  ;;  %v13783_v45 = vrot.slane %v13761_v9, %v23051_v14  ;;  %v13791_v41 = vcombine.high %v13769_v59, %v13769_v59  ;;  %v13762_v38 = vcombine.high %v13760_v31, %v13760_v31 }
0x2044   :  { %v13776_v10 = vrot.slane %v13760_v31, %v23051_v14 }
0x2045   :  { %19798 = vmatmul.mubr.bf16.vlgmr.msra.gmra.mxu0 %v13803_v43  ;;  %v13804_v37 = vpack.c.bf16 %v13783_v45, %v13783_v45  ;;  %v13793_v40 = vcombine.high %v13783_v45, %v13783_v45  ;;  %v13805_v58 = vpack.c.bf16 %v13791_v41, %v13791_v41  ;;  %v13790_v48 = vrot.slane %v13762_v38, %v23051_v14 }
0x2046   :  { %19808 = vmatpush3.bf16.xpose.msra.mxu0 %v26991_v4  ;;  %19809 = vmatprep.mubr.msk.bf16.mxu0 %vm22430_vm0, %v22429_v33  ;;  %v13807_v29 = vpack.c.bf16 %v13776_v10, %v13776_v10  ;;  %v13792_v16 = vcombine.high %v13776_v10, %v13776_v10 }
0x2047   :  { %19804 = vmatmul.mubr.bf16.vlgmr.msra.gmra.mxu1 %v13804_v37  ;;  %19819 = vmatprep.subr.bf16.mxu0 %v22429_v33  ;;  %v13806_v39 = vpack.c.bf16 %v13793_v40, %v13793_v40  ;;  %v13808_v28 = vpack.c.bf16 %v13790_v48, %v13790_v48  ;;  %v13794_v19 = vcombine.high %v13790_v48, %v13790_v48 }
0x2048   :  { %19814 = vmatpush3.bf16.xpose.msra.mxu1 %v27000_v36  ;;  %19815 = vmatprep.mubr.msk.bf16.mxu1 %vm22430_vm0, %v22429_v33  ;;  %v13809_v25 = vpack.c.bf16 %v13792_v16, %v13792_v16 }
0x2049   :  { %19825 = vmatprep.subr.bf16.mxu1 %v22429_v33  ;;  %v13810_v55 = vpack.c.bf16 %v13794_v19, %v13794_v19 }
0x204d   :  { %19810 = vmatmul.mubr.bf16.vlgmr.msra.gmra.mxu0 %v13805_v58 }
0x204e   :  { %19820 = vmatpush3.bf16.xpose.msra.mxu0 %v27010_v56  ;;  %19821 = vmatprep.mubr.msk.bf16.mxu0 %vm22430_vm0, %v22429_v33 }
0x204f   :  { %19816 = vmatmul.mubr.bf16.vlgmr.msra.gmra.mxu1 %v13806_v39  ;;  %19831 = vmatprep.subr.bf16.mxu0 %v22429_v33 }
0x2050   :  { %19826 = vmatpush3.bf16.xpose.msra.mxu1 %v27020_v61  ;;  %19827 = vmatprep.mubr.msk.bf16.mxu1 %vm22430_vm0, %v22429_v33 }
0x2051   :  { %19837 = vmatprep.subr.bf16.mxu1 %v22429_v33 }
0x2055   :  { %19822 = vmatmul.mubr.bf16.vlgmr.msra.gmra.mxu0 %v13807_v29 }
0x2056   :  { %19832 = vmatpush3.bf16.xpose.msra.mxu0 %v27030_v21  ;;  %19833 = vmatprep.mubr.msk.bf16.mxu0 %vm22430_vm0, %v22429_v33 }
0x2057   :  { %19828 = vmatmul.mubr.bf16.vlgmr.msra.gmra.mxu1 %v13808_v28  ;;  %19843 = vmatprep.subr.bf16.mxu0 %v22429_v33 }
0x2058   :  { %19838 = vmatpush3.bf16.xpose.msra.mxu1 %v27039_v47  ;;  %19839 = vmatprep.mubr.msk.bf16.mxu1 %vm22430_vm0, %v22429_v33 }
0x2059   :  { %19849 = vmatprep.subr.bf16.mxu1 %v22429_v33 }
0x205d   :  { %19834 = vmatmul.mubr.bf16.vlgmr.msra.gmra.mxu0 %v13809_v25 }
0x205e   :  { %19844 = vmatpush3.bf16.msra.mxu0 %v26954_v26  ;;  %19845 = vmatprep.mubr.msk.bf16.mxu0 %vm22430_vm0, %v22429_v33 }
0x205f   :  { %19840 = vmatmul.mubr.bf16.vlgmr.msra.gmra.mxu1 %v13810_v55  ;;  %19855 = vmatprep.subr.bf16.mxu0 %v22429_v33 }
0x2060   :  { %19850 = vmatpush3.bf16.msra.mxu1 %v26960_v51  ;;  %19851 = vmatprep.mubr.msk.bf16.mxu1 %vm22430_vm0, %v22429_v33 }
0x2061   :  { %19861 = vmatprep.subr.bf16.mxu1 %v22429_v33 }
0x2105   :  { %v13845_v8 = vpop.f32.mrf.mxu0 }
0x2106   :  { %v13846_v30 = vadd.f32 %v13845_v8, %v23131_v53 }
0x2107   :  { %v19799_v12 = vpop.f32.mrf.mxu0  ;;  %v13885_v32 = vpop.f32.mrf.mxu1 }
0x2108   :  { %v13886_v26 = vadd.f32 %v13885_v32, %v23134_v54  ;;  %v14131_v20 = vsel %vm1858_vm1, %v13846_v30, -inf }
0x2109   :  { %14132 = vmax.xlane.f32.xlu0 %v14131_v20  ;;  %v13848_v23 = vpop.f32.mrf.mxu0  ;;  %v19805_v13 = vpop.f32.mrf.mxu1 }
0x210a   :  { %v14134_v24 = vsel %vm1858_vm1, %v13886_v26, -inf }
0x210b   :  { %v19800_v51 = vpop.f32.mrf.mxu0  ;;  %14135 = vmax.xlane.f32.xlu1 %v14134_v24  ;;  %v13888_v11 = vpop.f32.mrf.mxu1 }
0x210d   :  { %v19806_v35 = vpop.f32.mrf.mxu1  ;;  %v13925_v44 = vpop.f32.mrf.mxu0 }
0x210e   :  { %v13926_v57 = vadd.f32 %v13925_v44, %v23146_v2 }
0x210f   :  { %v19811_v59 = vpop.f32.mrf.mxu0  ;;  %v13965_v9 = vpop.f32.mrf.mxu1 }
0x2110   :  { %v13966_v43 = vadd.f32 %v13965_v9, %v23152_v6  ;;  %v14137_v45 = vsel %vm1858_vm1, %v13926_v57, -inf }
0x2111   :  { %14138 = vmax.xlane.f32.xlu0 %v14137_v45  ;;  %v13928_v37 = vpop.f32.mrf.mxu0  ;;  %v19817_v42 = vpop.f32.mrf.mxu1 }
0x2112   :  { %v14140_v41 = vsel %vm1858_vm1, %v13966_v43, -inf }
0x2113   :  { %v19812_v40 = vpop.f32.mrf.mxu0  ;;  %14141 = vmax.xlane.f32.xlu1 %v14140_v41  ;;  %v13968_v31 = vpop.f32.mrf.mxu1 }
0x2115   :  { %v19818_v58 = vpop.f32.mrf.mxu1  ;;  %v14005_v39 = vpop.f32.mrf.mxu0 }
0x2116   :  { %v14006_v38 = vadd.f32 %v14005_v39, %v23159_v22 }
0x2117   :  { %v19823_v10 = vpop.f32.mrf.mxu0  ;;  %v14045_v48 = vpop.f32.mrf.mxu1 }
0x2118   :  { %v14046_v29 = vadd.f32 %v14045_v48, %v23163_v27  ;;  %v14143_v28 = vsel %vm1858_vm1, %v14006_v38, -inf }
0x2119   :  { %14144 = vmax.xlane.f32.xlu0 %v14143_v28  ;;  %v14008_v16 = vpop.f32.mrf.mxu0  ;;  %v19829_v19 = vpop.f32.mrf.mxu1 }
0x211a   :  { %v14146_v25 = vsel %vm1858_vm1, %v14046_v29, -inf }
0x211b   :  { %v19824_v55 = vpop.f32.mrf.mxu0  ;;  %14147 = vmax.xlane.f32.xlu1 %v14146_v25  ;;  %v14048_v8 = vpop.f32.mrf.mxu1 }
0x211d   :  { %v19830_v12 = vpop.f32.mrf.mxu1  ;;  %v14085_v32 = vpop.f32.mrf.mxu0 }
0x211e   :  { %v14086_v20 = vadd.f32 %v14085_v32, %v23171_v46 }
0x211f   :  { %v19835_v23 = vpop.f32.mrf.mxu0  ;;  %v14125_v13 = vpop.f32.mrf.mxu1 }
0x2120   :  { %v14126_v24 = vadd.f32 %v14125_v13, %v23175_v52  ;;  %v14149_v51 = vsel %vm1858_vm1, %v14086_v20, -inf }
0x2121   :  { %14150 = vmax.xlane.f32.xlu0 %v14149_v51  ;;  %v14088_v11 = vpop.f32.mrf.mxu0  ;;  %v19841_v35 = vpop.f32.mrf.mxu1 }
0x2122   :  { %v14152_v44 = vsel %vm1858_vm1, %v14126_v24, -inf }
0x2123   :  { %v19836_v59 = vpop.f32.mrf.mxu0  ;;  %14153 = vmax.xlane.f32.xlu1 %v14152_v44  ;;  %v14128_v9 = vpop.f32.mrf.mxu1 }
0x2125   :  { %v19842_v45 = vpop.f32.mrf.mxu1 }
0x2192   :  { %v14133_v37 = vpop.xlane.xlu0 %14132 }
0x2193   :  { %v14155_v42 = vsub.f32 %v13846_v30, %v14133_v37 }
0x2194   :  { %v14136_v41 = vpop.xlane.xlu1 %14135 }
0x2195   :  { %v14163_v40 = vmul.f32 1.442695, %v14155_v42  ;;  %v14156_v31 = vsub.f32 %v13886_v26, %v14136_v41 }
0x2197   :  { %22251 = vpow2.f32 %v14163_v40  ;;  %v14165_v58 = vmul.f32 1.442695, %v14156_v31 }
0x2199   :  { %22253 = vpow2.f32 %v14165_v58 }
0x219a   :  { %v14139_v39 = vpop.xlane.xlu0 %14138 }
0x219b   :  { %v14157_v10 = vsub.f32 %v13926_v57, %v14139_v39 }
0x219c   :  { %v14142_v48 = vpop.xlane.xlu1 %14141 }
0x219d   :  { %v14167_v28 = vmul.f32 1.442695, %v14157_v10  ;;  %v14158_v16 = vsub.f32 %v13966_v43, %v14142_v48 }
0x219f   :  { %22255 = vpow2.f32 %v14167_v28  ;;  %v14169_v19 = vmul.f32 1.442695, %v14158_v16 }
0x21a1   :  { %22257 = vpow2.f32 %v14169_v19 }
0x21a2   :  { %v14145_v25 = vpop.xlane.xlu0 %14144 }
0x21a3   :  { %v14159_v55 = vsub.f32 %v14006_v38, %v14145_v25 }
0x21a4   :  { %v22252_v8 = vpop.eup %22251  ;;  %v14148_v12 = vpop.xlane.xlu1 %14147 }
0x21a5   :  { %v14171_v32 = vmul.f32 1.442695, %v14159_v55  ;;  %v14160_v30 = vsub.f32 %v14046_v29, %v14148_v12  ;;  %v14179_v23 = vsel %vm1858_vm1, %v22252_v8, 0.0 }
0x21a6   :  { %v22254_v26 = vpop.eup %22253  ;;  %14180 = vadd.xlane.f32.xlu0 %v14179_v23 }
0x21a7   :  { %22259 = vpow2.f32 %v14171_v32  ;;  %v14173_v13 = vmul.f32 1.442695, %v14160_v30  ;;  %v14182_v57 = vsel %vm1858_vm1, %v22254_v26, 0.0 }
0x21a8   :  { %14183 = vadd.xlane.f32.xlu1 %v14182_v57 }
0x21a9   :  { %22261 = vpow2.f32 %v14173_v13 }
0x21aa   :  { %v14151_v43 = vpop.xlane.xlu0 %14150 }
0x21ab   :  { %v14161_v51 = vsub.f32 %v14086_v20, %v14151_v43 }
0x21ac   :  { %v22256_v11 = vpop.eup %22255  ;;  %v14154_v35 = vpop.xlane.xlu1 %14153 }
0x21ad   :  { %v14175_v44 = vmul.f32 1.442695, %v14161_v51  ;;  %v14162_v38 = vsub.f32 %v14126_v24, %v14154_v35  ;;  %v14185_v59 = vsel %vm1858_vm1, %v22256_v11, 0.0 }
0x21ae   :  { %v22258_v9 = vpop.eup %22257  ;;  %14186 = vadd.xlane.f32.xlu0 %v14185_v59 }
0x21af   :  { %22263 = vpow2.f32 %v14175_v44  ;;  %v14177_v29 = vmul.f32 1.442695, %v14162_v38  ;;  %v14188_v45 = vsel %vm1858_vm1, %v22258_v9, 0.0 }
0x21b0   :  { %14189 = vadd.xlane.f32.xlu1 %v14188_v45 }
0x21b1   :  { %22265 = vpow2.f32 %v14177_v29 }
0x21b4   :  { %v22260_v37 = vpop.eup %22259 }
0x21b5   :  { %v14191_v42 = vsel %vm1858_vm1, %v22260_v37, 0.0 }
0x21b6   :  { %v22262_v41 = vpop.eup %22261  ;;  %14192 = vadd.xlane.f32.xlu0 %v14191_v42 }
0x21b7   :  { %v14194_v20 = vsel %vm1858_vm1, %v22262_v41, 0.0 }
0x21b8   :  { %14195 = vadd.xlane.f32.xlu1 %v14194_v20  ;;  %v21604_v20 = vld [vmem:[%s28098_s8 + $0x30] sm:$0xff]  }
0x21bc   :  { %v27075_v40 = vpop.eup %22263 }
0x21bd   :  { %v14197_v24 = vsel %vm1858_vm1, %v27075_v40, 0.0 }
0x21be   :  { %v27079_v31 = vpop.eup %22265  ;;  %14198 = vadd.xlane.f32.xlu0 %v14197_v24  ;;  %v21606_v24 = vld [vmem:[%s28098_s8 + $0x28] sm:$0xff]  }
0x21bf   :  { %v14200_v58 = vsel %vm1858_vm1, %v27079_v31, 0.0 }
0x21c0   :  { %14201 = vadd.xlane.f32.xlu1 %v14200_v58  ;;  %v21608_v58 = vld [vmem:[%s28098_s8 + $0x20] sm:$0xff]  }
0x222f   :  { %v14181_v39 = vpop.xlane.xlu0 %14180 }
0x2230   :  { %22267 = vrcp.f32 %v14181_v39  ;;  %v21609_v39 = vld [vmem:[%s28098_s8 + $0x58] sm:$0xff]  }
0x2231   :  { %v14184_v10 = vpop.xlane.xlu1 %14183 }
0x2232   :  { %22269 = vrcp.f32 %v14184_v10  ;;  %v21610_v10 = vld [vmem:[%s28098_s8 + $0x18] sm:$0xff]  }
0x2237   :  { %v14187_v48 = vpop.xlane.xlu0 %14186 }
0x2238   :  { %22271 = vrcp.f32 %v14187_v48  ;;  %v21611_v48 = vld [vmem:[%s28098_s8 + $0x50] sm:$0xff]  }
0x2239   :  { %v14190_v28 = vpop.xlane.xlu1 %14189 }
0x223a   :  { %22273 = vrcp.f32 %v14190_v28  ;;  %v21612_v28 = vld [vmem:[%s28098_s8 + $0x10] sm:$0xff]  }
0x223d   :  { %v22268_v16 = vpop.eup %22267 }
0x223e   :  { %v14211_v19 = vmul.f32 %v22268_v16, %v22252_v8  ;;  %v21613_v16 = vld [vmem:[%s28098_s8 + $0x48] sm:$0xff]  }
0x223f   :  { %v22270_v25 = vpop.eup %22269  ;;  %v14193_v55 = vpop.xlane.xlu0 %14192 }
0x2240   :  { %v14219_v12 = vpack.c.bf16 %v14211_v19, %v14211_v19  ;;  %v14212_v32 = vmul.f32 %v22270_v25, %v22254_v26  ;;  %22275 = vrcp.f32 %v14193_v55  ;;  %v21614_v19 = vld [vmem:[%s28098_s8 + $0x8] sm:$0xff]   ;;  %v21615_v25 = vld [vmem:[%s28098_s8 + $0x40] sm:$0xff]  }
0x2241   :  { %v14196_v30 = vpop.xlane.xlu1 %14195  ;;  %v21616_v55 = vld [vmem:[%s28098_s8] sm:$0xff]  }
0x2242   :  { %v14220_v23 = vpack.c.bf16 %v14212_v32, %v14212_v32  ;;  %22277 = vrcp.f32 %v14196_v30  ;;  %19846 = vmatmul.mubr.msk.bf16.vlgmr.msra.gmra.mxu0 %vm1955_vm2, %v14219_v12  ;;  %v21619_v12 = vld [vmem:[%s28090_s4 + $0xe4] ss:$16 sps:$4 sm:$0xff]   ;;  %v21644_v32 = vld [vmem:[%s28099_s10 + $0x38] sm:$0xff]  }
0x2243   :  { %19856 = vmatpush3.bf16.msra.mxu0 %v26991_v4  ;;  %19857 = vmatprep.mubr.msk.bf16.mxu0 %vm22430_vm0, %v22429_v33  ;;  %v21648_v30 = vld [vmem:[%s28099_s10 + $0x30] sm:$0xff]  }
0x2244   :  { %19852 = vmatmul.mubr.msk.bf16.vlgmr.msra.gmra.mxu1 %vm1955_vm2, %v14220_v23  ;;  %19867 = vmatprep.subr.bf16.mxu0 %v22429_v33  ;;  %v21652_v23 = vld [vmem:[%s28099_s10 + $0x28] sm:$0xff]  }
0x2245   :  { %v22272_v8 = vpop.eup %22271  ;;  %19862 = vmatpush3.bf16.msra.mxu1 %v27000_v36  ;;  %19863 = vmatprep.mubr.msk.bf16.mxu1 %vm22430_vm0, %v22429_v33 }
0x2246   :  { %v14213_v26 = vmul.f32 %v22272_v8, %v22256_v11  ;;  %19873 = vmatprep.subr.bf16.mxu1 %v22429_v33 }
0x2247   :  { %v22274_v13 = vpop.eup %22273  ;;  %v14199_v57 = vpop.xlane.xlu0 %14198 }
0x2248   :  { %v14221_v43 = vpack.c.bf16 %v14213_v26, %v14213_v26  ;;  %v14214_v4 = vmul.f32 %v22274_v13, %v22258_v9  ;;  %22279 = vrcp.f32 %v14199_v57 }
0x2249   :  { %v14202_v51 = vpop.xlane.xlu1 %14201 }
0x224a   :  { %v14222_v35 = vpack.c.bf16 %v14214_v4, %v14214_v4  ;;  %22281 = vrcp.f32 %v14202_v51  ;;  %19858 = vmatmul.mubr.msk.bf16.vlgmr.msra.gmra.mxu0 %vm1955_vm2, %v14221_v43 }
0x224b   :  { %19868 = vmatpush3.bf16.msra.mxu0 %v27010_v56  ;;  %19869 = vmatprep.mubr.msk.bf16.mxu0 %vm22430_vm0, %v22429_v33 }
0x224c   :  { %19864 = vmatmul.mubr.msk.bf16.vlgmr.msra.gmra.mxu1 %vm1955_vm2, %v14222_v35  ;;  %19879 = vmatprep.subr.bf16.mxu0 %v22429_v33 }
0x224d   :  { %v22276_v36 = vpop.eup %22275  ;;  %19874 = vmatpush3.bf16.msra.mxu1 %v27020_v61  ;;  %19875 = vmatprep.mubr.msk.bf16.mxu1 %vm22430_vm0, %v22429_v33 }
0x224e   :  { %v14215_v11 = vmul.f32 %v22276_v36, %v22260_v37  ;;  %19885 = vmatprep.subr.bf16.mxu1 %v22429_v33 }
0x224f   :  { %v22278_v44 = vpop.eup %22277 }
0x2250   :  { %v14223_v38 = vpack.c.bf16 %v14215_v11, %v14215_v11  ;;  %v14216_v59 = vmul.f32 %v22278_v44, %v22262_v41  ;;  %v21602_v41 = vld [vmem:[%s28098_s8 + $0x38] sm:$0xff]  }
0x2252   :  { %v14224_v56 = vpack.c.bf16 %v14216_v59, %v14216_v59  ;;  %19870 = vmatmul.mubr.msk.bf16.vlgmr.msra.gmra.mxu0 %vm1955_vm2, %v14223_v38 }
0x2253   :  { %19880 = vmatpush3.bf16.msra.mxu0 %v27030_v21  ;;  %19881 = vmatprep.mubr.msk.bf16.mxu0 %vm22430_vm0, %v22429_v33  ;;  %v27116_v21 = vpack.c.bf16 %v26980_v17, %v26980_v17  ;;  %v21603_v17 = vld [vmem:[%s28098_s8 + $0x70] sm:$0xff]  }
0x2254   :  { %19876 = vmatmul.mubr.msk.bf16.vlgmr.msra.gmra.mxu1 %vm1955_vm2, %v14224_v56 }
0x2255   :  { %v22280_v61 = vpop.eup %22279  ;;  %19886 = vmatpush3.bf16.msra.mxu1 %v27039_v47  ;;  %19887 = vmatprep.mubr.msk.bf16.mxu1 %vm22430_vm0, %v22429_v33  ;;  %v21601_v47 = vld [vmem:[%s28098_s8 + $0x78] sm:$0xff]  }
0x2256   :  { %v14217_v9 = vmul.f32 %v22280_v61, %v27075_v40  ;;  %19891 = vmatprep.subr.bf16.mxu1 %v22429_v33  ;;  %19121 = vmatprep.subr.bf16.mxu0 %v21601_v47  ;;  %v21605_v40 = vld [vmem:[%s28098_s8 + $0x68] sm:$0xff]  }
0x2257   :  { %v22282_v29 = vpop.eup %22281 }
0x2258   :  { %v14225_v45 = vpack.c.bf16 %v14217_v9, %v14217_v9  ;;  %v14218_v37 = vmul.f32 %v22282_v29, %v27079_v31  ;;  %v21607_v31 = vld [vmem:[%s28098_s8 + $0x60] sm:$0xff]  }
0x225a   :  { %v14226_v42 = vpack.c.bf16 %v14218_v37, %v14218_v37  ;;  %19882 = vmatmul.mubr.msk.bf16.vlgmr.msra.gmra.mxu0 %vm1955_vm2, %v14225_v45 }
0x225b   :  { %14763 = vmatprep.mubr.bf16.mxu0 %v27116_v21  ;;  %19122 = vmatpush3.bf16.msra.mxu0 %v21602_v41 }
0x225c   :  { %19888 = vmatmul.mubr.msk.bf16.vlgmr.msra.gmra.mxu1 %vm1955_vm2, %v14226_v42  ;;  %19123 = vmatprep.subr.bf16.mxu0 %v21603_v17 }
0x225d   :  { %19907 = vmatprep.mubr.msk.bf16.mxu1 %vm22430_vm0, %v22429_v33  ;;  %19892 = vmatpush3.bf16.msra.mxu1 %v21644_v32 }
0x225e   :  { %19893 = vmatprep.subr.bf16.mxu1 %v22429_v33 }
0x225f   :  { %19124 = vmatpush3.bf16.msra.mxu0 %v21604_v20 }
0x2260   :  { %19125 = vmatprep.subr.bf16.mxu0 %v21605_v40 }
0x2261   :  { %19894 = vmatpush3.bf16.msra.mxu1 %v21648_v30 }
0x2262   :  { %19895 = vmatprep.subr.bf16.mxu1 %v22429_v33 }
0x2263   :  { %19126 = vmatpush3.bf16.msra.mxu0 %v21606_v24 }
0x2264   :  { %19127 = vmatprep.subr.bf16.mxu0 %v21607_v31 }
0x2265   :  { %19896 = vmatpush3.bf16.msra.mxu1 %v21652_v23 }
0x2266   :  { %19897 = vmatprep.subr.bf16.mxu1 %v22429_v33 }
0x2267   :  { %19128 = vmatpush3.bf16.msra.mxu0 %v21608_v58 }
0x2268   :  { %19129 = vmatprep.subr.bf16.mxu0 %v21609_v39 }
0x226b   :  { %19130 = vmatpush3.bf16.msra.mxu0 %v21610_v10 }
0x226c   :  { %19131 = vmatprep.subr.bf16.mxu0 %v21611_v48 }
0x226f   :  { %19132 = vmatpush3.bf16.msra.mxu0 %v21612_v28 }
0x2270   :  { %19133 = vmatprep.subr.bf16.mxu0 %v21613_v16 }
0x2273   :  { %19134 = vmatpush3.bf16.msra.mxu0 %v21614_v19 }
0x2274   :  { %19135 = vmatprep.subr.bf16.mxu0 %v21615_v25 }
0x2277   :  { %19136 = vmatpush3.bf16.msra.mxu0 %v21616_v55 }
0x2278   :  { %15497 = vmatprep.subr.bf16.mxu0 %v21619_v12 }
0x2302   :  { %v14264_v8 = vpop.f32.mrf.mxu0 }
0x2304   :  { %v19847_v26 = vpop.f32.mrf.mxu0  ;;  %v14307_v13 = vpop.f32.mrf.mxu1 }
0x2305   :  { %v14579_v56 = vrot.slane %v14307_v13, 7 }
0x2306   :  { %v14267_v57 = vpop.f32.mrf.mxu0  ;;  %v19853_v43 = vpop.f32.mrf.mxu1 }
0x2307   :  { %v14580_v42 = vsel %vm2309_vm3, %v14579_v56, %v14264_v8  ;;  %v21617_v57 = vld [vmem:[%s28090_s4 + $0xe0] ss:$16 sps:$4 sm:$0xff]  }
0x2308   :  { %v19848_v4 = vpop.f32.mrf.mxu0  ;;  %v14310_v51 = vpop.f32.mrf.mxu1  ;;  %v21626_v56 = vld [vmem:[%s28090_s4 + $0x80] ss:$16 sps:$4 sm:$0xff]  }
0x230a   :  { %v19854_v35 = vpop.f32.mrf.mxu1  ;;  %v14350_v36 = vpop.f32.mrf.mxu0 }
0x230b   :  { %v14581_v29 = vrot.slane %v14350_v36, 6  ;;  %v21622_v35 = vld [vmem:[%s28090_s4 + $0xc4] ss:$16 sps:$4 sm:$0xff]  }
0x230c   :  { %v19859_v11 = vpop.f32.mrf.mxu0  ;;  %v14393_v44 = vpop.f32.mrf.mxu1 }
0x230d   :  { %v14583_v47 = vrot.slane %v14393_v44, 5  ;;  %v14582_v20 = vsel %vm2312_vm4, %v14581_v29, %v14580_v42  ;;  %v21620_v11 = vld [vmem:[%s28090_s4 + $0xc0] ss:$16 sps:$4 sm:$0xff]   ;;  %v21625_v44 = vld [vmem:[%s28090_s4 + $0xa4] ss:$16 sps:$4 sm:$0xff]  }
0x230e   :  { %v14353_v38 = vpop.f32.mrf.mxu0  ;;  %v19865_v59 = vpop.f32.mrf.mxu1  ;;  %v21634_v29 = vld [vmem:[%s28090_s4 + $0x44] ss:$16 sps:$4 sm:$0xff]   ;;  %v21635_v42 = vld [vmem:[%s28090_s4 + $0x20] ss:$16 sps:$4 sm:$0xff]  }
0x230f   :  { %v14584_v58 = vsel %vm2315_vm5, %v14583_v47, %v14582_v20  ;;  %v21623_v38 = vld [vmem:[%s28090_s4 + $0xa0] ss:$16 sps:$4 sm:$0xff]   ;;  %v21628_v59 = vld [vmem:[%s28090_s4 + $0x84] ss:$16 sps:$4 sm:$0xff]  }
0x2310   :  { %v19860_v61 = vpop.f32.mrf.mxu0  ;;  %v14396_v9 = vpop.f32.mrf.mxu1  ;;  %v21640_v47 = vld [vmem:[%s28090_s4 + $0x4] ss:$16 sps:$4 sm:$0xff]   ;;  %v21641_v20 = vld [vmem:[%s28090_s4 + $0x1e0] ss:$16 sps:$4 sm:$0xff]  }
0x2311   :  { %v21631_v61 = vld [vmem:[%s28090_s4 + $0x64] ss:$16 sps:$4 sm:$0xff]   ;;  %v21629_v9 = vld [vmem:[%s28090_s4 + $0x60] ss:$16 sps:$4 sm:$0xff]  }
0x2312   :  { %v19866_v45 = vpop.f32.mrf.mxu1  ;;  %v14436_v37 = vpop.f32.mrf.mxu0 }
0x2313   :  { %v14585_v40 = vrot.slane %v14436_v37, 4  ;;  %v21632_v45 = vld [vmem:[%s28090_s4 + $0x40] ss:$16 sps:$4 sm:$0xff]   ;;  %v21637_v37 = vld [vmem:[%s28090_s4 + $0x24] ss:$16 sps:$4 sm:$0xff]  }
0x2314   :  { %v19871_v41 = vpop.f32.mrf.mxu0  ;;  %v14479_v17 = vpop.f32.mrf.mxu1 }
0x2315   :  { %v14587_v39 = vrot.slane %v14479_v17, 3  ;;  %v14586_v28 = vsel %vm2318_vm6, %v14585_v40, %v14584_v58  ;;  %v21638_v41 = vld [vmem:[%s28090_s4] ss:$16 sps:$4 sm:$0xff]   ;;  %v21643_v17 = vld [vmem:[%s28090_s4 + $0x1e4] ss:$16 sps:$4 sm:$0xff]  }
0x2316   :  { %v14439_v24 = vpop.f32.mrf.mxu0  ;;  %v19877_v31 = vpop.f32.mrf.mxu1  ;;  %v21647_v40 = vld [vmem:[%s28090_s4 + $0x1c4] ss:$16 sps:$4 sm:$0xff]   ;;  %v21649_v58 = vld [vmem:[%s28090_s4 + $0x1a0] ss:$16 sps:$4 sm:$0xff]  }
0x2317   :  { %v14588_v55 = vsel %vm2321_vm7, %v14587_v39, %v14586_v28  ;;  %v21645_v24 = vld [vmem:[%s28090_s4 + $0x1c0] ss:$16 sps:$4 sm:$0xff]   ;;  %v21651_v31 = vld [vmem:[%s28090_s4 + $0x1a4] ss:$16 sps:$4 sm:$0xff]  }
0x2318   :  { %v19872_v10 = vpop.f32.mrf.mxu0  ;;  %v14482_v48 = vpop.f32.mrf.mxu1  ;;  %v21655_v39 = vld [vmem:[%s28090_s4 + $0x184] ss:$16 sps:$4 sm:$0xff]  }
0x2319   :  { %v21653_v10 = vld [vmem:[%s28090_s4 + $0x180] ss:$16 sps:$4 sm:$0xff]   ;;  %v21659_v28 = vld [vmem:[%s28090_s4 + $0x164] ss:$16 sps:$4 sm:$0xff]  }
0x231a   :  { %v19878_v16 = vpop.f32.mrf.mxu1  ;;  %v14522_v19 = vpop.f32.mrf.mxu0  ;;  %v21656_v48 = vld [vmem:[%s28099_s10 + $0x20] sm:$0xff]  }
0x231b   :  { %v14589_v25 = vrot.slane %v14522_v19, 2  ;;  %19898 = vmatpush3.bf16.msra.mxu1 %v21656_v48  ;;  %v21657_v16 = vld [vmem:[%s28090_s4 + $0x160] ss:$16 sps:$4 sm:$0xff]   ;;  %v21660_v19 = vld [vmem:[%s28099_s10 + $0x18] sm:$0xff]  }
0x231c   :  { %v19883_v12 = vpop.f32.mrf.mxu0  ;;  %v14565_v32 = vpop.f32.mrf.mxu1  ;;  %19899 = vmatprep.subr.bf16.mxu1 %v22429_v33  ;;  %v21702_v48 = vld [vmem:[%s28090_s4 + $0x26c] ss:$16 sps:$4 sm:$0xff]  }
0x231d   :  { %v14590_v30 = vsel %vm2324_vm8, %v14589_v25, %v14588_v55  ;;  %v14591_v23 = vrot.slane %v14565_v32, 1  ;;  %v21663_v25 = vld [vmem:[%s28090_s4 + $0x144] ss:$16 sps:$4 sm:$0xff]   ;;  %v21661_v55 = vld [vmem:[%s28090_s4 + $0x140] ss:$16 sps:$4 sm:$0xff]  }
0x231e   :  { %v14525_v8 = vpop.f32.mrf.mxu0  ;;  %v19889_v26 = vpop.f32.mrf.mxu1  ;;  %v21664_v12 = vld [vmem:[%s28099_s10 + $0x10] sm:$0xff]  }
0x231f   :  { %v14592_v13 = vsel %vm2327_vm9, %v14591_v23, %v14590_v30  ;;  %19900 = vmatpush3.bf16.msra.mxu1 %v21660_v19  ;;  %v21667_v32 = vld [vmem:[%s28090_s4 + $0x124] ss:$16 sps:$4 sm:$0xff]   ;;  %v21665_v30 = vld [vmem:[%s28090_s4 + $0x120] ss:$16 sps:$4 sm:$0xff]   ;;  %v21668_v23 = vld [vmem:[%s28099_s10 + $0x8] sm:$0xff]  }
0x2320   :  { %v14594_v43 = vpack.c.bf16 %v14592_v13, %v14592_v13  ;;  %v19884_v4 = vpop.f32.mrf.mxu0  ;;  %v14568_v51 = vpop.f32.mrf.mxu1  ;;  %19901 = vmatprep.subr.bf16.mxu1 %v22429_v33  ;;  %v21671_v8 = vld [vmem:[%s28090_s4 + $0x104] ss:$16 sps:$4 sm:$0xff]   ;;  %v21669_v26 = vld [vmem:[%s28090_s4 + $0x100] ss:$16 sps:$4 sm:$0xff]  }
0x2321   :  { %v21672_v13 = vld [vmem:[%s28099_s10] sm:$0xff]   ;;  %v21678_v51 = vld [vmem:[%s28090_s4 + $0x2ec] ss:$16 sps:$4 sm:$0xff]  }
0x2322   :  { %v19890_v36 = vpop.f32.mrf.mxu1  ;;  %14764 = vmatmul.mubr.bf16.vlgmr.msra.gmra.mxu0 %v14594_v43  ;;  %v21675_v4 = vld [vmem:[%s28090_s4 + $0x2e4] ss:$16 sps:$4 sm:$0xff]  }
0x2323   :  { %15498 = vmatpush1.bf16.msra.mxu0 %v21617_v57  ;;  %19902 = vmatpush3.bf16.msra.mxu1 %v21664_v12  ;;  %v18572_v57 = vld [vmem:[%s28092_s0 + $0x30] sm:$0xff]  ;;  %v18545_v36 = vld [vmem:[%s28100_s9] ss:$0 sm:$0xff]  ;;  %v21706_v12 = vld [vmem:[%s28090_s4 + $0x248] ss:$16 sps:$4 sm:$0xff]  }
0x2324   :  { %15499 = vmatprep.subr.bf16.mxu0 %v21622_v35  ;;  %19903 = vmatprep.subr.bf16.mxu1 %v22429_v33  ;;  %v27308_v43 = vpack.c.bf16 %v18572_v57, %v18572_v57  ;;  %v21705_v19 = vld [vmem:[%s28090_s4 + $0x244] ss:$16 sps:$4 sm:$0xff]   ;;  %v21715_v57 = vld [vmem:[%s28090_s4 + $0x200] ss:$16 sps:$4 sm:$0xff]  }
0x2326   :  { %15529 = vmatprep.mubr.bf16.mxu0 %v27308_v43 }
0x2327   :  { %15500 = vmatpush1.bf16.msra.mxu0 %v21620_v11  ;;  %19904 = vmatpush3.bf16.msra.mxu1 %v21668_v23  ;;  %v21709_v23 = vld [vmem:[%s28090_s4 + $0x220] ss:$16 sps:$4 sm:$0xff]  }
0x2328   :  { %15501 = vmatprep.subr.bf16.mxu0 %v21625_v44  ;;  %19905 = vmatprep.subr.bf16.mxu1 %v22429_v33 }
0x232b   :  { %15502 = vmatpush1.bf16.msra.mxu0 %v21623_v38  ;;  %19906 = vmatpush3.bf16.msra.mxu1 %v21672_v13  ;;  %v21720_v13 = vld [vmem:[%s28090_s4 + $0x20c] ss:$16 sps:$4 sm:$0xff]  }
0x232c   :  { %15503 = vmatprep.subr.bf16.mxu0 %v21628_v59  ;;  %15538 = vmatprep.subr.bf16.mxu1 %v21675_v4  ;;  %v21718_v4 = vld [vmem:[%s28090_s4 + $0x208] ss:$16 sps:$4 sm:$0xff]  }
0x232f   :  { %15504 = vmatpush1.bf16.msra.mxu0 %v21626_v56 }
0x2330   :  { %15505 = vmatprep.subr.bf16.mxu0 %v21631_v61 }
0x2333   :  { %15506 = vmatpush1.bf16.msra.mxu0 %v21629_v9  ;;  %v21673_v9 = vld [vmem:[%s28090_s4 + $0x2e0] ss:$16 sps:$4 sm:$0xff]  }
0x2334   :  { %15507 = vmatprep.subr.bf16.mxu0 %v21634_v29  ;;  %v21676_v29 = vld [vmem:[%s28090_s4 + $0x2e8] ss:$16 sps:$4 sm:$0xff]  }
0x2337   :  { %15508 = vmatpush1.bf16.msra.mxu0 %v21632_v45 }
0x2338   :  { %15509 = vmatprep.subr.bf16.mxu0 %v21637_v37  ;;  %v21681_v37 = vld [vmem:[%s28090_s4 + $0x2c4] ss:$16 sps:$4 sm:$0xff]  }
0x233b   :  { %15510 = vmatpush1.bf16.msra.mxu0 %v21635_v42  ;;  %v21684_v42 = vld [vmem:[%s28090_s4 + $0x2cc] ss:$16 sps:$4 sm:$0xff]  }
0x233c   :  { %15511 = vmatprep.subr.bf16.mxu0 %v21640_v47  ;;  %v21679_v47 = vld [vmem:[%s28090_s4 + $0x2c0] ss:$16 sps:$4 sm:$0xff]  }
0x233f   :  { %15512 = vmatpush1.bf16.msra.mxu0 %v21638_v41  ;;  %v21682_v41 = vld [vmem:[%s28090_s4 + $0x2c8] ss:$16 sps:$4 sm:$0xff]  }
0x2340   :  { %15513 = vmatprep.subr.bf16.mxu0 %v21643_v17  ;;  %v21687_v17 = vld [vmem:[%s28090_s4 + $0x2a4] ss:$16 sps:$4 sm:$0xff]  }
0x2343   :  { %15514 = vmatpush2.bf16.msra.mxu0 %v21641_v20  ;;  %v21690_v20 = vld [vmem:[%s28090_s4 + $0x2ac] ss:$16 sps:$4 sm:$0xff]  }
0x2344   :  { %15515 = vmatprep.subr.bf16.mxu0 %v21647_v40  ;;  %v21685_v40 = vld [vmem:[%s28090_s4 + $0x2a0] ss:$16 sps:$4 sm:$0xff]  }
0x2347   :  { %15516 = vmatpush2.bf16.msra.mxu0 %v21645_v24  ;;  %v21688_v24 = vld [vmem:[%s28090_s4 + $0x2a8] ss:$16 sps:$4 sm:$0xff]  }
0x2348   :  { %15517 = vmatprep.subr.bf16.mxu0 %v21651_v31  ;;  %v21693_v31 = vld [vmem:[%s28090_s4 + $0x284] ss:$16 sps:$4 sm:$0xff]  }
0x234b   :  { %15518 = vmatpush2.bf16.msra.mxu0 %v21649_v58  ;;  %v21691_v58 = vld [vmem:[%s28090_s4 + $0x280] ss:$16 sps:$4 sm:$0xff]  }
0x234c   :  { %15519 = vmatprep.subr.bf16.mxu0 %v21655_v39  ;;  %v21694_v39 = vld [vmem:[%s28090_s4 + $0x288] ss:$16 sps:$4 sm:$0xff]  }
0x234f   :  { %15520 = vmatpush2.bf16.msra.mxu0 %v21653_v10  ;;  %v21699_v10 = vld [vmem:[%s28090_s4 + $0x264] ss:$16 sps:$4 sm:$0xff]  }
0x2350   :  { %15521 = vmatprep.subr.bf16.mxu0 %v21659_v28  ;;  %v21697_v28 = vld [vmem:[%s28090_s4 + $0x260] ss:$16 sps:$4 sm:$0xff]  }
0x2353   :  { %15522 = vmatpush2.bf16.msra.mxu0 %v21657_v16  ;;  %v21700_v16 = vld [vmem:[%s28090_s4 + $0x268] ss:$16 sps:$4 sm:$0xff]  }
0x2354   :  { %15523 = vmatprep.subr.bf16.mxu0 %v21663_v25  ;;  %v21708_v25 = vld [vmem:[%s28090_s4 + $0x24c] ss:$16 sps:$4 sm:$0xff]  }
0x2357   :  { %15524 = vmatpush2.bf16.msra.mxu0 %v21661_v55  ;;  %v21703_v55 = vld [vmem:[%s28090_s4 + $0x240] ss:$16 sps:$4 sm:$0xff]  }
0x2358   :  { %15525 = vmatprep.subr.bf16.mxu0 %v21667_v32  ;;  %v21711_v32 = vld [vmem:[%s28090_s4 + $0x224] ss:$16 sps:$4 sm:$0xff]  }
0x235b   :  { %15526 = vmatpush2.bf16.msra.mxu0 %v21665_v30  ;;  %v21714_v30 = vld [vmem:[%s28090_s4 + $0x22c] ss:$16 sps:$4 sm:$0xff]  }
0x235c   :  { %15527 = vmatprep.subr.bf16.mxu0 %v21671_v8  ;;  %v21712_v8 = vld [vmem:[%s28090_s4 + $0x228] ss:$16 sps:$4 sm:$0xff]  }
0x235f   :  { %15528 = vmatpush2.bf16.msra.mxu0 %v21669_v26  ;;  %v21717_v26 = vld [vmem:[%s28090_s4 + $0x204] ss:$16 sps:$4 sm:$0xff]  }
0x2360   :  { %15620 = vmatprep.subr.bf16.mxu0 %v21678_v51  ;;  %v21723_v51 = vld [vmem:[%s28090_s4 + $0xec] ss:$16 sps:$4 sm:$0xff]  }
0x23e2   :  { %v19137_v35 = vpop.f32.mrf.mxu0 }
0x23e4   :  { %v19138_v11 = vpop.f32.mrf.mxu0 }
0x23e5   :  { %v19139_v44 = vadd.f32 %v19138_v11, %v19137_v35  ;;  %v21721_v35 = vld [vmem:[%s28090_s4 + $0xe8] ss:$16 sps:$4 sm:$0xff]  }
0x23e6   :  { %v19140_v38 = vpop.f32.mrf.mxu0  ;;  %v21724_v11 = vld [vmem:[%s28090_s4 + $0xc8] ss:$16 sps:$4 sm:$0xff]  }
0x23e7   :  { %v14766_v59 = vadd.f32 %v19139_v44, %v18545_v36  ;;  %v21726_v36 = vld [vmem:[%s28090_s4 + $0xcc] ss:$16 sps:$4 sm:$0xff]   ;;  %v21727_v38 = vld [vmem:[%s28090_s4 + $0xa8] ss:$16 sps:$4 sm:$0xff]  }
0x23e8   :  { %v19141_v56 = vpop.f32.mrf.mxu0  ;;  %v21729_v44 = vld [vmem:[%s28090_s4 + $0xac] ss:$16 sps:$4 sm:$0xff]  }
0x23e9   :  { %22283 = vtanh.f32 %v14766_v59  ;;  %v21730_v59 = vld [vmem:[%s28090_s4 + $0x88] ss:$16 sps:$4 sm:$0xff]  }
0x23ea   :  { %v21733_v56 = vld [vmem:[%s28090_s4 + $0x68] ss:$16 sps:$4 sm:$0xff]  }
0x23f6   :  { %v22284_v61 = vpop.eup %22283 }
0x23f7   :  { %v27326_v45 = vpack.c.bf16 %v22284_v61, %v22284_v61  ;;  %v21738_v61 = vld [vmem:[%s28090_s4 + $0x4c] ss:$16 sps:$4 sm:$0xff]  }
0x23f9   :  { %19908 = vmatmul.mubr.bf16.vlgmr.msra.gmra.mxu1 %v27326_v45  ;;  %15530 = vmatmul.mubr.bf16.vlgmr.msra.gmra.mxu0 %v27326_v45 }
0x23fa   :  { %15539 = vmatpush1.bf16.msra.mxu1 %v21673_v9  ;;  %15621 = vmatpush1.bf16.msra.mxu0 %v21676_v29  ;;  %v21736_v9 = vld [vmem:[%s28090_s4 + $0x48] ss:$16 sps:$4 sm:$0xff]   ;;  %v21741_v29 = vld [vmem:[%s28090_s4 + $0x2c] ss:$16 sps:$4 sm:$0xff]  }
0x23fb   :  { %15540 = vmatprep.subr.bf16.mxu1 %v21681_v37  ;;  %15622 = vmatprep.subr.bf16.mxu0 %v21684_v42  ;;  %v21739_v37 = vld [vmem:[%s28090_s4 + $0x28] ss:$16 sps:$4 sm:$0xff]   ;;  %v21744_v42 = vld [vmem:[%s28090_s4 + $0xc] ss:$16 sps:$4 sm:$0xff]  }
0x23fc   :  { %15570 = vmatprep.mubr.bf16.mxu1 %v22427_v1  ;;  %15652 = vmatprep.mubr.bf16.mxu0 %v22427_v1  ;;  %v21696_v1 = vld [vmem:[%s28090_s4 + $0x28c] ss:$16 sps:$4 sm:$0xff]  }
0x23fe   :  { %15541 = vmatpush1.bf16.msra.mxu1 %v21679_v47  ;;  %15623 = vmatpush1.bf16.msra.mxu0 %v21682_v41  ;;  %v21742_v47 = vld [vmem:[%s28090_s4 + $0x8] ss:$16 sps:$4 sm:$0xff]   ;;  %v21747_v41 = vld [vmem:[%s28090_s4 + $0x1ec] ss:$16 sps:$4 sm:$0xff]  }
0x23ff   :  { %15542 = vmatprep.subr.bf16.mxu1 %v21687_v17  ;;  %15624 = vmatprep.subr.bf16.mxu0 %v21690_v20  ;;  %v21745_v17 = vld [vmem:[%s28090_s4 + $0x1e8] ss:$16 sps:$4 sm:$0xff]   ;;  %v21750_v20 = vld [vmem:[%s28090_s4 + $0x1cc] ss:$16 sps:$4 sm:$0xff]  }
0x2402   :  { %15543 = vmatpush1.bf16.msra.mxu1 %v21685_v40  ;;  %15625 = vmatpush1.bf16.msra.mxu0 %v21688_v24  ;;  %v21748_v40 = vld [vmem:[%s28090_s4 + $0x1c8] ss:$16 sps:$4 sm:$0xff]   ;;  %v21753_v24 = vld [vmem:[%s28090_s4 + $0x1ac] ss:$16 sps:$4 sm:$0xff]  }
0x2403   :  { %15544 = vmatprep.subr.bf16.mxu1 %v21693_v31  ;;  %15626 = vmatprep.subr.bf16.mxu0 %v21696_v1  ;;  %v21751_v31 = vld [vmem:[%s28090_s4 + $0x1a8] ss:$16 sps:$4 sm:$0xff]   ;;  %v21756_v1 = vld [vmem:[%s28090_s4 + $0x18c] ss:$16 sps:$4 sm:$0xff]  }
0x2406   :  { %15545 = vmatpush1.bf16.msra.mxu1 %v21691_v58  ;;  %15627 = vmatpush1.bf16.msra.mxu0 %v21694_v39  ;;  %v21754_v58 = vld [vmem:[%s28090_s4 + $0x188] ss:$16 sps:$4 sm:$0xff]   ;;  %v21759_v39 = vld [vmem:[%s28090_s4 + $0x16c] ss:$16 sps:$4 sm:$0xff]  }
0x2407   :  { %15546 = vmatprep.subr.bf16.mxu1 %v21699_v10  ;;  %15628 = vmatprep.subr.bf16.mxu0 %v21702_v48  ;;  %v21757_v10 = vld [vmem:[%s28090_s4 + $0x168] ss:$16 sps:$4 sm:$0xff]   ;;  %v21762_v48 = vld [vmem:[%s28090_s4 + $0x14c] ss:$16 sps:$4 sm:$0xff]  }
0x240a   :  { %15547 = vmatpush1.bf16.msra.mxu1 %v21697_v28  ;;  %15629 = vmatpush1.bf16.msra.mxu0 %v21700_v16  ;;  %v21760_v28 = vld [vmem:[%s28090_s4 + $0x148] ss:$16 sps:$4 sm:$0xff]   ;;  %v21765_v16 = vld [vmem:[%s28090_s4 + $0x12c] ss:$16 sps:$4 sm:$0xff]  }
0x240b   :  { %15548 = vmatprep.subr.bf16.mxu1 %v21705_v19  ;;  %15630 = vmatprep.subr.bf16.mxu0 %v21708_v25  ;;  %v21763_v19 = vld [vmem:[%s28090_s4 + $0x128] ss:$16 sps:$4 sm:$0xff]   ;;  %v21768_v25 = vld [vmem:[%s28090_s4 + $0x10c] ss:$16 sps:$4 sm:$0xff]  }
0x240e   :  { %15549 = vmatpush1.bf16.msra.mxu1 %v21703_v55  ;;  %15631 = vmatpush1.bf16.msra.mxu0 %v21706_v12  ;;  %v21766_v55 = vld [vmem:[%s28090_s4 + $0x108] ss:$16 sps:$4 sm:$0xff]   ;;  %v21769_v12 = vld [vmem:[%s28093_s6 + $0xe0] ss:$16 sps:$4 sm:$0xff]  }
0x240f   :  { %15550 = vmatprep.subr.bf16.mxu1 %v21711_v32  ;;  %15632 = vmatprep.subr.bf16.mxu0 %v21714_v30  ;;  %v21771_v32 = vld [vmem:[%s28093_s6 + $0xe4] ss:$16 sps:$4 sm:$0xff]   ;;  %v21772_v30 = vld [vmem:[%s28093_s6 + $0xe8] ss:$16 sps:$4 sm:$0xff]  }
0x2412   :  { %15551 = vmatpush1.bf16.msra.mxu1 %v21709_v23  ;;  %15633 = vmatpush1.bf16.msra.mxu0 %v21712_v8  ;;  %v21774_v23 = vld [vmem:[%s28093_s6 + $0xec] ss:$16 sps:$4 sm:$0xff]   ;;  %v21775_v8 = vld [vmem:[%s28093_s6 + $0xc0] ss:$16 sps:$4 sm:$0xff]  }
0x2413   :  { %15552 = vmatprep.subr.bf16.mxu1 %v21717_v26  ;;  %15634 = vmatprep.subr.bf16.mxu0 %v21720_v13  ;;  %v21778_v26 = vld [vmem:[%s28093_s6 + $0xc8] ss:$16 sps:$4 sm:$0xff]   ;;  %v21783_v13 = vld [vmem:[%s28093_s6 + $0xa4] ss:$16 sps:$4 sm:$0xff]  }
0x2416   :  { %15553 = vmatpush1.bf16.msra.mxu1 %v21715_v57  ;;  %15635 = vmatpush1.bf16.msra.mxu0 %v21718_v4  ;;  %v21786_v57 = vld [vmem:[%s28093_s6 + $0xac] ss:$16 sps:$4 sm:$0xff]   ;;  %v21781_v4 = vld [vmem:[%s28093_s6 + $0xa0] ss:$16 sps:$4 sm:$0xff]  }
0x2417   :  { %15579 = vmatprep.subr.bf16.mxu1 %v21723_v51  ;;  %16092 = vmatprep.subr.bf16.mxu0 %v21771_v32  ;;  %v21784_v51 = vld [vmem:[%s28093_s6 + $0xa8] ss:$16 sps:$4 sm:$0xff]   ;;  %v21837_v32 = vld [vmem:[%s28093_s6 + $0x184] ss:$16 sps:$4 sm:$0xff]  }
0x2419   :  { %15571 = vmatmul.mubr.bf16.vlgmr.msra.gmra.mxu1 %v26947_v62  ;;  %15653 = vmatmul.mubr.bf16.vlgmr.msra.gmra.mxu0 %v26947_v62  ;;  %v21732_v62 = vld [vmem:[%s28090_s4 + $0x8c] ss:$16 sps:$4 sm:$0xff]  }
0x241a   :  { %15580 = vmatpush1.bf16.msra.mxu1 %v21721_v35  ;;  %16124 = vmatprep.mubr.bf16.mxu0 %v27116_v21  ;;  %v21789_v35 = vld [vmem:[%s28093_s6 + $0x84] ss:$16 sps:$4 sm:$0xff]  }
0x241b   :  { %15581 = vmatprep.subr.bf16.mxu1 %v21726_v36  ;;  %15611 = vmatprep.mubr.bf16.mxu1 %v27308_v43  ;;  %v21735_v43 = vld [vmem:[%s28090_s4 + $0x6c] ss:$16 sps:$4 sm:$0xff]  }
0x241c   :  { %16093 = vmatpush1.bf16.msra.mxu0 %v21769_v12  ;;  %v21792_v36 = vld [vmem:[%s28093_s6 + $0x8c] ss:$16 sps:$4 sm:$0xff]   ;;  %v21832_v12 = vld [vmem:[%s28093_s6 + $0x1a8] ss:$16 sps:$4 sm:$0xff]  }
0x241e   :  { %15582 = vmatpush1.bf16.msra.mxu1 %v21724_v11  ;;  %v21787_v11 = vld [vmem:[%s28093_s6 + $0x80] ss:$16 sps:$4 sm:$0xff]  }
0x241f   :  { %15583 = vmatprep.subr.bf16.mxu1 %v21729_v44  ;;  %v21790_v44 = vld [vmem:[%s28093_s6 + $0x88] ss:$16 sps:$4 sm:$0xff]  }
0x2422   :  { %15584 = vmatpush1.bf16.msra.mxu1 %v21727_v38  ;;  %v21795_v38 = vld [vmem:[%s28093_s6 + $0x64] ss:$16 sps:$4 sm:$0xff]  }
0x2423   :  { %15585 = vmatprep.subr.bf16.mxu1 %v21732_v62  ;;  %v21798_v62 = vld [vmem:[%s28093_s6 + $0x6c] ss:$16 sps:$4 sm:$0xff]  }
0x2426   :  { %15586 = vmatpush1.bf16.msra.mxu1 %v21730_v59  ;;  %v21793_v59 = vld [vmem:[%s28093_s6 + $0x60] ss:$16 sps:$4 sm:$0xff]  }
0x2427   :  { %15587 = vmatprep.subr.bf16.mxu1 %v21735_v43  ;;  %v21796_v43 = vld [vmem:[%s28093_s6 + $0x68] ss:$16 sps:$4 sm:$0xff]  }
0x242a   :  { %15588 = vmatpush1.bf16.msra.mxu1 %v21733_v56  ;;  %v21801_v56 = vld [vmem:[%s28093_s6 + $0x44] ss:$16 sps:$4 sm:$0xff]  }
0x242b   :  { %15589 = vmatprep.subr.bf16.mxu1 %v21738_v61  ;;  %v21804_v61 = vld [vmem:[%s28093_s6 + $0x4c] ss:$16 sps:$4 sm:$0xff]  }
0x242e   :  { %15590 = vmatpush1.bf16.msra.mxu1 %v21736_v9  ;;  %v21799_v9 = vld [vmem:[%s28093_s6 + $0x40] ss:$16 sps:$4 sm:$0xff]  }
0x242f   :  { %15591 = vmatprep.subr.bf16.mxu1 %v21741_v29  ;;  %v21802_v29 = vld [vmem:[%s28093_s6 + $0x48] ss:$16 sps:$4 sm:$0xff]  }
0x2432   :  { %15592 = vmatpush1.bf16.msra.mxu1 %v21739_v37  ;;  %v21807_v37 = vld [vmem:[%s28093_s6 + $0x24] ss:$16 sps:$4 sm:$0xff]  }
0x2433   :  { %15593 = vmatprep.subr.bf16.mxu1 %v21744_v42  ;;  %v21810_v42 = vld [vmem:[%s28093_s6 + $0x2c] ss:$16 sps:$4 sm:$0xff]  }
0x2436   :  { %15594 = vmatpush1.bf16.msra.mxu1 %v21742_v47  ;;  %v21805_v47 = vld [vmem:[%s28093_s6 + $0x20] ss:$16 sps:$4 sm:$0xff]  }
0x2437   :  { %15595 = vmatprep.subr.bf16.mxu1 %v21747_v41  ;;  %v21808_v41 = vld [vmem:[%s28093_s6 + $0x28] ss:$16 sps:$4 sm:$0xff]  }
0x243a   :  { %15596 = vmatpush2.bf16.msra.mxu1 %v21745_v17  ;;  %v21813_v17 = vld [vmem:[%s28093_s6 + $0x4] ss:$16 sps:$4 sm:$0xff]  }
0x243b   :  { %15597 = vmatprep.subr.bf16.mxu1 %v21750_v20  ;;  %v21816_v20 = vld [vmem:[%s28093_s6 + $0xc] ss:$16 sps:$4 sm:$0xff]  }
0x243e   :  { %15598 = vmatpush2.bf16.msra.mxu1 %v21748_v40  ;;  %v21811_v40 = vld [vmem:[%s28093_s6] ss:$16 sps:$4 sm:$0xff]  }
0x243f   :  { %15599 = vmatprep.subr.bf16.mxu1 %v21753_v24  ;;  %v21814_v24 = vld [vmem:[%s28093_s6 + $0x8] ss:$16 sps:$4 sm:$0xff]  }
0x2442   :  { %15600 = vmatpush2.bf16.msra.mxu1 %v21751_v31  ;;  %v21819_v31 = vld [vmem:[%s28093_s6 + $0x1e4] ss:$16 sps:$4 sm:$0xff]  }
0x2443   :  { %15601 = vmatprep.subr.bf16.mxu1 %v21756_v1  ;;  %v21822_v1 = vld [vmem:[%s28093_s6 + $0x1ec] ss:$16 sps:$4 sm:$0xff]  }
0x2446   :  { %15602 = vmatpush2.bf16.msra.mxu1 %v21754_v58  ;;  %v21817_v58 = vld [vmem:[%s28093_s6 + $0x1e0] ss:$16 sps:$4 sm:$0xff]  }
0x2447   :  { %15603 = vmatprep.subr.bf16.mxu1 %v21759_v39  ;;  %v21820_v39 = vld [vmem:[%s28093_s6 + $0x1e8] ss:$16 sps:$4 sm:$0xff]  }
0x244a   :  { %15604 = vmatpush2.bf16.msra.mxu1 %v21757_v10  ;;  %v21825_v10 = vld [vmem:[%s28093_s6 + $0x1c4] ss:$16 sps:$4 sm:$0xff]  }
0x244b   :  { %15605 = vmatprep.subr.bf16.mxu1 %v21762_v48  ;;  %v21828_v48 = vld [vmem:[%s28093_s6 + $0x1cc] ss:$16 sps:$4 sm:$0xff]  }
0x244e   :  { %15606 = vmatpush2.bf16.msra.mxu1 %v21760_v28  ;;  %v21823_v28 = vld [vmem:[%s28093_s6 + $0x1c0] ss:$16 sps:$4 sm:$0xff]  }
0x244f   :  { %15607 = vmatprep.subr.bf16.mxu1 %v21765_v16  ;;  %v21826_v16 = vld [vmem:[%s28093_s6 + $0x1c8] ss:$16 sps:$4 sm:$0xff]  }
0x2452   :  { %15608 = vmatpush2.bf16.msra.mxu1 %v21763_v19  ;;  %v21831_v19 = vld [vmem:[%s28093_s6 + $0x1a4] ss:$16 sps:$4 sm:$0xff]  }
0x2453   :  { %15609 = vmatprep.subr.bf16.mxu1 %v21768_v25  ;;  %v21834_v25 = vld [vmem:[%s28093_s6 + $0x1ac] ss:$16 sps:$4 sm:$0xff]  }
0x2456   :  { %15610 = vmatpush2.bf16.msra.mxu1 %v21766_v55  ;;  %v21829_v55 = vld [vmem:[%s28093_s6 + $0x1a0] ss:$16 sps:$4 sm:$0xff]  }
0x2457   :  { %16133 = vmatprep.subr.bf16.mxu1 %v21774_v23  ;;  %v21835_v23 = vld [vmem:[%s28093_s6 + $0x180] ss:$16 sps:$4 sm:$0xff]  }
0x2459   :  { %15612 = vmatmul.mubr.bf16.vlgmr.msra.gmra.mxu1 %v27326_v45  ;;  %v21780_v45 = vld [vmem:[%s28093_s6 + $0xcc] ss:$16 sps:$4 sm:$0xff]  }
0x245a   :  { %16165 = vmatprep.mubr.bf16.mxu1 %v27116_v21  ;;  %v21777_v21 = vld [vmem:[%s28093_s6 + $0xc4] ss:$16 sps:$4 sm:$0xff]   ;;  %16134 = vmatpush1.bf16.msra.mxu1 %v21772_v30  ;;  %v21840_v30 = vld [vmem:[%s28093_s6 + $0x18c] ss:$16 sps:$4 sm:$0xff]  }
0x245b   :  { %16094 = vmatprep.subr.bf16.mxu0 %v21777_v21  ;;  %16135 = vmatprep.subr.bf16.mxu1 %v21780_v45  ;;  %v21838_v21 = vld [vmem:[%s28093_s6 + $0x188] ss:$16 sps:$4 sm:$0xff]   ;;  %v21841_v45 = vld [vmem:[%s28093_s6 + $0x160] ss:$16 sps:$4 sm:$0xff]  }
0x245c   :  { %16095 = vmatpush1.bf16.msra.mxu0 %v21775_v8  ;;  %v21843_v8 = vld [vmem:[%s28093_s6 + $0x164] ss:$16 sps:$4 sm:$0xff]  }
0x245d   :  { %16096 = vmatprep.subr.bf16.mxu0 %v21783_v13  ;;  %v21846_v13 = vld [vmem:[%s28093_s6 + $0x16c] ss:$16 sps:$4 sm:$0xff]  }
0x245e   :  { %16136 = vmatpush1.bf16.msra.mxu1 %v21778_v26  ;;  %v21844_v26 = vld [vmem:[%s28093_s6 + $0x168] ss:$16 sps:$4 sm:$0xff]  }
0x245f   :  { %16137 = vmatprep.subr.bf16.mxu1 %v21786_v57  ;;  %v21849_v57 = vld [vmem:[%s28093_s6 + $0x144] ss:$16 sps:$4 sm:$0xff]  }
0x2460   :  { %16097 = vmatpush1.bf16.msra.mxu0 %v21781_v4  ;;  %v21852_v4 = vld [vmem:[%s28093_s6 + $0x14c] ss:$16 sps:$4 sm:$0xff]  }
0x2461   :  { %16098 = vmatprep.subr.bf16.mxu0 %v21789_v35  ;;  %v21850_v35 = vld [vmem:[%s28093_s6 + $0x148] ss:$16 sps:$4 sm:$0xff]  }
0x2462   :  { %16138 = vmatpush1.bf16.msra.mxu1 %v21784_v51  ;;  %v21847_v51 = vld [vmem:[%s28093_s6 + $0x140] ss:$16 sps:$4 sm:$0xff]  }
0x2463   :  { %16139 = vmatprep.subr.bf16.mxu1 %v21792_v36  ;;  %v21855_v36 = vld [vmem:[%s28093_s6 + $0x124] ss:$16 sps:$4 sm:$0xff]  }
0x2464   :  { %16099 = vmatpush1.bf16.msra.mxu0 %v21787_v11  ;;  %v21858_v11 = vld [vmem:[%s28093_s6 + $0x12c] ss:$16 sps:$4 sm:$0xff]  }
0x2465   :  { %16100 = vmatprep.subr.bf16.mxu0 %v21795_v38 }
0x2466   :  { %16140 = vmatpush1.bf16.msra.mxu1 %v21790_v44 }
0x2467   :  { %16141 = vmatprep.subr.bf16.mxu1 %v21798_v62  ;;  %v21853_v62 = vld [vmem:[%s28093_s6 + $0x120] ss:$16 sps:$4 sm:$0xff]  }
0x2468   :  { %16101 = vmatpush1.bf16.msra.mxu0 %v21793_v59  ;;  %v21856_v59 = vld [vmem:[%s28093_s6 + $0x128] ss:$16 sps:$4 sm:$0xff]  }
0x2469   :  { %16102 = vmatprep.subr.bf16.mxu0 %v21801_v56 }
0x246a   :  { %16142 = vmatpush1.bf16.msra.mxu1 %v21796_v43  ;;  %v21861_v43 = vld [vmem:[%s28093_s6 + $0x104] ss:$16 sps:$4 sm:$0xff]  }
0x246b   :  { %16143 = vmatprep.subr.bf16.mxu1 %v21804_v61 }
0x246c   :  { %16103 = vmatpush1.bf16.msra.mxu0 %v21799_v9  ;;  %v21864_v9 = vld [vmem:[%s28093_s6 + $0x10c] ss:$16 sps:$4 sm:$0xff]  }
0x246d   :  { %16104 = vmatprep.subr.bf16.mxu0 %v21807_v37 }
0x246e   :  { %16144 = vmatpush1.bf16.msra.mxu1 %v21802_v29 }
0x246f   :  { %16145 = vmatprep.subr.bf16.mxu1 %v21810_v42  ;;  %v21859_v42 = vld [vmem:[%s28093_s6 + $0x100] ss:$16 sps:$4 sm:$0xff]  }
0x2470   :  { %16105 = vmatpush1.bf16.msra.mxu0 %v21805_v47  ;;  %v21862_v47 = vld [vmem:[%s28093_s6 + $0x108] ss:$16 sps:$4 sm:$0xff]  }
0x2471   :  { %16106 = vmatprep.subr.bf16.mxu0 %v21813_v17 }
0x2472   :  { %16146 = vmatpush1.bf16.msra.mxu1 %v21808_v41 }
0x2473   :  { %16147 = vmatprep.subr.bf16.mxu1 %v21816_v20 }
0x2474   :  { %16107 = vmatpush1.bf16.msra.mxu0 %v21811_v40 }
0x2475   :  { %16108 = vmatprep.subr.bf16.mxu0 %v21819_v31 }
0x2476   :  { %16148 = vmatpush1.bf16.msra.mxu1 %v21814_v24 }
0x2477   :  { %16149 = vmatprep.subr.bf16.mxu1 %v21822_v1 }
0x2478   :  { %16109 = vmatpush2.bf16.msra.mxu0 %v21817_v58 }
0x2479   :  { %16110 = vmatprep.subr.bf16.mxu0 %v21825_v10 }
0x247a   :  { %16150 = vmatpush2.bf16.msra.mxu1 %v21820_v39 }
0x247b   :  { %16151 = vmatprep.subr.bf16.mxu1 %v21828_v48  ;;  %v14995_v48 = vld [vmem:[%s28094_s5] sm:$0xf] }
0x247c   :  { %16111 = vmatpush2.bf16.msra.mxu0 %v21823_v28  ;;  %v15004_v28 = vrot.slane %v14995_v48, %v22998_v49 }
0x247d   :  { %16112 = vmatprep.subr.bf16.mxu0 %v21831_v19 }
0x247e   :  { %16152 = vmatpush2.bf16.msra.mxu1 %v21826_v16  ;;  %v15000_v16 = vrot.slane %v14995_v48, %v23001_v50 }
0x247f   :  { %16153 = vmatprep.subr.bf16.mxu1 %v21834_v25 }
0x2480   :  { %16113 = vmatpush2.bf16.msra.mxu0 %v21829_v55 }
0x2481   :  { %16114 = vmatprep.subr.bf16.mxu0 %v21837_v32 }
0x2482   :  { %16154 = vmatpush2.bf16.msra.mxu1 %v21832_v12 }
0x2483   :  { %16155 = vmatprep.subr.bf16.mxu1 %v21840_v30 }
0x2484   :  { %16115 = vmatpush2.bf16.msra.mxu0 %v21835_v23 }
0x2485   :  { %16116 = vmatprep.subr.bf16.mxu0 %v21843_v8 }
0x2486   :  { %16156 = vmatpush2.bf16.msra.mxu1 %v21838_v21 }
0x2487   :  { %16157 = vmatprep.subr.bf16.mxu1 %v21846_v13 }
0x2488   :  { %16117 = vmatpush2.bf16.msra.mxu0 %v21841_v45  ;;  %v15008_v45 = vrot.slane %v14995_v48, %v23006_v63 }
0x2489   :  { %16118 = vmatprep.subr.bf16.mxu0 %v21849_v57 }
0x248a   :  { %16158 = vmatpush2.bf16.msra.mxu1 %v21844_v26  ;;  %v15012_v26 = vrot.slane %v14995_v48, %v23009_v0 }
0x248b   :  { %16159 = vmatprep.subr.bf16.mxu1 %v21852_v4 }
0x248c   :  { %16119 = vmatpush2.bf16.msra.mxu0 %v21847_v51 }
0x248d   :  { %16120 = vmatprep.subr.bf16.mxu0 %v21855_v36 }
0x248e   :  { %16160 = vmatpush2.bf16.msra.mxu1 %v21850_v35 }
0x248f   :  { %16161 = vmatprep.subr.bf16.mxu1 %v21858_v11 }
0x2490   :  { %16121 = vmatpush2.bf16.msra.mxu0 %v21853_v62 }
0x2491   :  { %16122 = vmatprep.subr.bf16.mxu0 %v21861_v43 }
0x2492   :  { %16162 = vmatpush2.bf16.msra.mxu1 %v21856_v59 }
0x2493   :  { %16163 = vmatprep.subr.bf16.mxu1 %v21864_v9 }
0x2494   :  { %16123 = vmatpush2.bf16.msra.mxu0 %v21859_v42 }
0x2495   :  { %19911 = vmatprep.subr.bf16.mxu0 %v22429_v33 }
0x2496   :  { %16164 = vmatpush2.bf16.msra.mxu1 %v21862_v47 }
0x2497   :  { %19917 = vmatprep.subr.bf16.mxu1 %v22429_v33 }
0x24b9   :  { %v27692_v44 = vpop.f32.mrf.mxu1  ;;  %v15531_v38 = vpop.f32.mrf.mxu0 }
0x24ba   :  { %v15532_v25 = vadd.f32 %v15531_v38, %v15000_v16 }
0x24bb   :  { %v19909_v56 = vpop.f32.mrf.mxu1  ;;  %v15533_v61 = vpop.f32.mrf.mxu0 }
0x24bc   :  { %v15534_v19 = vadd.f32 %v15533_v61, %v15004_v28 }
0x24bd   :  { %v14881_v29 = vpop.f32.mrf.mxu1  ;;  %v15535_v37 = vpop.f32.mrf.mxu0 }
0x24bf   :  { %v19910_v41 = vpop.f32.mrf.mxu1  ;;  %v15536_v17 = vpop.f32.mrf.mxu0 }
0x24d9   :  { %v15572_v20 = vpop.f32.mrf.mxu1  ;;  %v15654_v40 = vpop.f32.mrf.mxu0 }
0x24da   :  { %v15573_v12 = vadd.f32 %v15572_v20, %v15532_v25 }
0x24db   :  { %v15574_v24 = vpop.f32.mrf.mxu1  ;;  %v15656_v31 = vpop.f32.mrf.mxu0 }
0x24dc   :  { %v15575_v55 = vadd.f32 %v15574_v24, %v15534_v19  ;;  %v18669_v30 = vmul.f32 -1.442695, %v15573_v12  ;;  %v27725_v24 = vld [vmem:[%s28095_s1] sm:$0xff]  }
0x24dd   :  { %v15576_v1 = vpop.f32.mrf.mxu1  ;;  %v15658_v58 = vpop.f32.mrf.mxu0 }
0x24de   :  { %v18670_v32 = vmul.f32 -1.442695, %v15575_v55 }
0x24df   :  { %v15577_v39 = vpop.f32.mrf.mxu1  ;;  %v15659_v10 = vpop.f32.mrf.mxu0 }
0x24e0   :  { %22285 = vpow2.f32 %v18670_v32 }
0x24e1   :  { %22287 = vpow2.f32 %v18669_v30 }
0x24ed   :  { %v22286_v23 = vpop.eup %22285 }
0x24ee   :  { %v22288_v21 = vpop.eup %22287  ;;  %v15670_v8 = vadd.f32 1.0, %v22286_v23 }
0x24ef   :  { %v15664_v13 = vadd.f32 1.0, %v22288_v21 }
0x24f0   :  { %22289 = vrcp.f32 %v15670_v8 }
0x24f1   :  { %22291 = vrcp.f32 %v15664_v13 }
0x24fd   :  { %v22290_v43 = vpop.eup %22289 }
0x24fe   :  { %v22292_v56 = vpop.eup %22291  ;;  %v15680_v9 = vmul.f32 %v22290_v43, %v26944_v60  ;;  %v27731_v60 = vld [vmem:[%s28095_s1 + $0x8] sm:$0xff]  }
0x2519   :  { %v15613_v57 = vpop.f32.mrf.mxu1 }
0x251a   :  { %v15614_v4 = vadd.f32 %v15613_v57, %v15008_v45 }
0x251b   :  { %v15615_v51 = vpop.f32.mrf.mxu1 }
0x251c   :  { %v15655_v35 = vadd.f32 %v15654_v40, %v15614_v4  ;;  %v15616_v36 = vadd.f32 %v15615_v51, %v15012_v26 }
0x251d   :  { %v15617_v11 = vpop.f32.mrf.mxu1 }
0x251e   :  { %22293 = vtanh.f32 %v15655_v35  ;;  %v15657_v38 = vadd.f32 %v15656_v31, %v15616_v36  ;;  %v15750_v31 = vld [vmem:[%s28096_s7] sm:$0xf] }
0x251f   :  { %v15618_v62 = vpop.f32.mrf.mxu1  ;;  %v15755_v1 = vrot.slane %v15750_v31, %v23001_v50  ;;  %v15759_v58 = vrot.slane %v15750_v31, %v22998_v49  ;;  %v15767_v21 = vrot.slane %v15750_v31, %v23009_v0  ;;  %v15763_v50 = vrot.slane %v15750_v31, %v23006_v63 }
0x2520   :  { %v18671_v59 = vmul.f32 -1.442695, %v15657_v38 }
0x2522   :  { %22295 = vpow2.f32 %v18671_v59 }
0x252b   :  { %v22294_v61 = vpop.eup %22293 }
0x252c   :  { %v15681_v29 = vmul.f32 %v22294_v61, %v22292_v56 }
0x252e   :  { %v15682_v37 = vadd.f32 %v15681_v29, %v15680_v9 }
0x252f   :  { %v22296_v42 = vpop.eup %22295 }
0x2530   :  { %v15677_v47 = vadd.f32 1.0, %v22296_v42  ;;  %22297 = vtanh.f32 %v15682_v37 }
0x2532   :  { %22299 = vrcp.f32 %v15677_v47 }
0x253d   :  { %v22298_v41 = vpop.eup %22297 }
0x253f   :  { %v22300_v17 = vpop.eup %22299 }
0x2540   :  { %v15684_v20 = vmul.f32 %v22300_v17, %v22298_v41  ;;  %v27759_v41 = vld [vmem:[%s28095_s1 + $0x10] sm:$0xff]  }
0x2542   :  { %v15685_v40 = vpack.c.bf16 %v15684_v20, %v15684_v20  ;;  %v27768_v20 = vld [vmem:[%s28095_s1 + $0x18] sm:$0xff]  }
0x2544   :  { %16125 = vmatmul.mubr.bf16.vlgmr.msra.gmra.mxu0 %v15685_v40  ;;  %16166 = vmatmul.mubr.bf16.vlgmr.msra.gmra.mxu1 %v15685_v40 }
0x2545   :  { %19912 = vmatpush3.bf16.xpose.msra.mxu0 %v27725_v24  ;;  %19918 = vmatpush3.bf16.xpose.msra.mxu1 %v27731_v60 }
0x2546   :  { %19913 = vmatprep.mubr.msk.bf16.mxu0 %vm22430_vm0, %v22429_v33  ;;  %19923 = vmatprep.subr.bf16.mxu0 %v22429_v33 }
0x2547   :  { %19919 = vmatprep.mubr.msk.bf16.mxu1 %vm22430_vm0, %v22429_v33  ;;  %19929 = vmatprep.subr.bf16.mxu1 %v22429_v33 }
0x2604   :  { %v16126_v39 = vpop.f32.mrf.mxu0  ;;  %v16167_v10 = vpop.f32.mrf.mxu1 }
0x2605   :  { %v16127_v48 = vadd.f32 %v16126_v39, %v15755_v1  ;;  %v16168_v26 = vadd.f32 %v16167_v10, %v15763_v50  ;;  %v27778_v10 = vld [vmem:[%s28095_s1 + $0x20] sm:$0xff]  }
0x2606   :  { %v16128_v28 = vpop.f32.mrf.mxu0  ;;  %v16169_v16 = vpop.f32.mrf.mxu1 }
0x2607   :  { %v18736_v19 = vmul.f32 -1.442695, %v16127_v48  ;;  %v16129_v25 = vadd.f32 %v16128_v28, %v15759_v58  ;;  %v16170_v45 = vadd.f32 %v16169_v16, %v15767_v21  ;;  %v27788_v28 = vld [vmem:[%s28095_s1 + $0x28] sm:$0xff]  }
0x2608   :  { %v16130_v55 = vpop.f32.mrf.mxu0  ;;  %v16171_v12 = vpop.f32.mrf.mxu1 }
0x2609   :  { %22301 = vpow2.f32 %v18736_v19  ;;  %v18737_v32 = vmul.f32 -1.442695, %v16129_v25  ;;  %v18738_v49 = vmul.f32 -1.442695, %v16170_v45  ;;  %v27798_v55 = vld [vmem:[%s28095_s1 + $0x30] sm:$0xff]  }
0x260a   :  { %v16131_v30 = vpop.f32.mrf.mxu0  ;;  %v16172_v23 = vpop.f32.mrf.mxu1 }
0x260b   :  { %22303 = vpow2.f32 %v18737_v32 }
0x260c   :  { %22305 = vpow2.f32 %v18738_v49 }
0x2616   :  { %v22302_v8 = vpop.eup %22301 }
0x2617   :  { %v16177_v13 = vadd.f32 1.0, %v22302_v8 }
0x2618   :  { %v22304_v57 = vpop.eup %22303 }
0x2619   :  { %22307 = vrcp.f32 %v16177_v13  ;;  %v16183_v4 = vadd.f32 1.0, %v22304_v57  ;;  %v22306_v51 = vpop.eup %22305 }
0x261a   :  { %22309 = vtanh.f32 %v16168_v26  ;;  %v16190_v38 = vadd.f32 1.0, %v22306_v51 }
0x261b   :  { %22311 = vrcp.f32 %v16183_v4 }
0x261c   :  { %22313 = vrcp.f32 %v16190_v38 }
0x2626   :  { %v22308_v35 = vpop.eup %22307 }
0x2627   :  { %v22310_v36 = vpop.eup %22309 }
0x2628   :  { %v22312_v11 = vpop.eup %22311  ;;  %v16194_v62 = vmul.f32 %v22310_v36, %v22308_v35 }
0x2629   :  { %v16193_v0 = vmul.f32 %v22312_v11, %v26977_v18  ;;  %v22314_v63 = vpop.eup %22313 }
0x262b   :  { %v16195_v59 = vadd.f32 %v16194_v62, %v16193_v0 }
0x262d   :  { %22315 = vtanh.f32 %v16195_v59 }
0x263a   :  { %v22316_v43 = vpop.eup %22315 }
0x263b   :  { %v27748_v56 = vmul.f32 %v22316_v43, %v22314_v63 }
0x263d   :  { %v16206_v61 = vrot.slane %v27748_v56, %v23051_v14  ;;  %v16199_v18 = vcombine.high %v27748_v56, %v27748_v56 }
0x263f   :  { %v16222_v9 = vrot.slane %v16206_v61, %v23051_v14  ;;  %v16214_v29 = vcombine.high %v16206_v61, %v16206_v61  ;;  %v16213_v31 = vrot.slane %v16199_v18, %v23051_v14 }
0x2641   :  { %v16256_v37 = vpack.c.bf16 %v16222_v9, %v16222_v9  ;;  %v16236_v42 = vrot.slane %v16214_v29, %v23051_v14  ;;  %v16244_v17 = vcombine.high %v16222_v9, %v16222_v9  ;;  %v16215_v39 = vcombine.high %v16213_v31, %v16213_v31 }
0x2642   :  { %v16229_v48 = vrot.slane %v16213_v31, %v23051_v14 }
0x2643   :  { %19914 = vmatmul.mubr.bf16.vlgmr.msra.gmra.mxu0 %v16256_v37  ;;  %v16257_v47 = vpack.c.bf16 %v16236_v42, %v16236_v42  ;;  %v16246_v40 = vcombine.high %v16236_v42, %v16236_v42  ;;  %v16258_v1 = vpack.c.bf16 %v16244_v17, %v16244_v17  ;;  %v16243_v16 = vrot.slane %v16215_v39, %v23051_v14  ;;  %v27807_v14 = vld [vmem:[%s28095_s1 + $0x38] sm:$0xff]  }
0x2644   :  { %19924 = vmatpush3.bf16.xpose.msra.mxu0 %v27759_v41  ;;  %19925 = vmatprep.mubr.msk.bf16.mxu0 %vm22430_vm0, %v22429_v33  ;;  %v16260_v19 = vpack.c.bf16 %v16229_v48, %v16229_v48  ;;  %v16245_v12 = vcombine.high %v16229_v48, %v16229_v48 }
0x2645   :  { %19920 = vmatmul.mubr.bf16.vlgmr.msra.gmra.mxu1 %v16257_v47  ;;  %19935 = vmatprep.subr.bf16.mxu0 %v22429_v33  ;;  %v16259_v58 = vpack.c.bf16 %v16246_v40, %v16246_v40  ;;  %v16261_v25 = vpack.c.bf16 %v16243_v16, %v16243_v16  ;;  %v16247_v32 = vcombine.high %v16243_v16, %v16243_v16 }
0x2646   :  { %19930 = vmatpush3.bf16.xpose.msra.mxu1 %v27768_v20  ;;  %19931 = vmatprep.mubr.msk.bf16.mxu1 %vm22430_vm0, %v22429_v33  ;;  %v16262_v30 = vpack.c.bf16 %v16245_v12, %v16245_v12 }
0x2647   :  { %19941 = vmatprep.subr.bf16.mxu1 %v22429_v33  ;;  %v16263_v23 = vpack.c.bf16 %v16247_v32, %v16247_v32 }
0x264b   :  { %19926 = vmatmul.mubr.bf16.vlgmr.msra.gmra.mxu0 %v16258_v1 }
0x264c   :  { %19936 = vmatpush3.bf16.xpose.msra.mxu0 %v27778_v10  ;;  %19937 = vmatprep.mubr.msk.bf16.mxu0 %vm22430_vm0, %v22429_v33 }
0x264d   :  { %19932 = vmatmul.mubr.bf16.vlgmr.msra.gmra.mxu1 %v16259_v58  ;;  %19947 = vmatprep.subr.bf16.mxu0 %v22429_v33 }
0x264e   :  { %19942 = vmatpush3.bf16.xpose.msra.mxu1 %v27788_v28  ;;  %19943 = vmatprep.mubr.msk.bf16.mxu1 %vm22430_vm0, %v22429_v33 }
0x264f   :  { %19953 = vmatprep.subr.bf16.mxu1 %v22429_v33 }
0x2653   :  { %19938 = vmatmul.mubr.bf16.vlgmr.msra.gmra.mxu0 %v16260_v19 }
0x2654   :  { %19948 = vmatpush3.bf16.xpose.msra.mxu0 %v27798_v55  ;;  %19949 = vmatprep.mubr.msk.bf16.mxu0 %vm22430_vm0, %v22429_v33 }
0x2655   :  { %19944 = vmatmul.mubr.bf16.vlgmr.msra.gmra.mxu1 %v16261_v25  ;;  %19959 = vmatprep.subr.bf16.mxu0 %v22429_v33 }
0x2656   :  { %19954 = vmatpush3.bf16.xpose.msra.mxu1 %v27807_v14  ;;  %19955 = vmatprep.mubr.msk.bf16.mxu1 %vm22430_vm0, %v22429_v33 }
0x2657   :  { %19965 = vmatprep.subr.bf16.mxu1 %v22429_v33 }
0x265b   :  { %19950 = vmatmul.mubr.bf16.vlgmr.msra.gmra.mxu0 %v16262_v30 }
0x265c   :  { %19960 = vmatpush3.bf16.msra.mxu0 %v27725_v24  ;;  %19961 = vmatprep.mubr.msk.bf16.mxu0 %vm22430_vm0, %v22429_v33 }
0x265d   :  { %19956 = vmatmul.mubr.bf16.vlgmr.msra.gmra.mxu1 %v16263_v23  ;;  %19971 = vmatprep.subr.bf16.mxu0 %v22429_v33 }
0x265e   :  { %19966 = vmatpush3.bf16.msra.mxu1 %v27731_v60  ;;  %19967 = vmatprep.mubr.msk.bf16.mxu1 %vm22430_vm0, %v22429_v33 }
0x265f   :  { %19977 = vmatprep.subr.bf16.mxu1 %v22429_v33 }
0x2703   :  { %v16298_v21 = vpop.f32.mrf.mxu0 }
0x2704   :  { %v16299_v45 = vadd.f32 %v16298_v21, %v23131_v53 }
0x2705   :  { %v19915_v50 = vpop.f32.mrf.mxu0  ;;  %v16338_v49 = vpop.f32.mrf.mxu1 }
0x2706   :  { %v16339_v24 = vadd.f32 %v16338_v49, %v23134_v54  ;;  %v16584_v8 = vsel %vm1858_vm1, %v16299_v45, -inf }
0x2707   :  { %16585 = vmax.xlane.f32.xlu0 %v16584_v8  ;;  %v16301_v26 = vpop.f32.mrf.mxu0  ;;  %v19921_v13 = vpop.f32.mrf.mxu1 }
0x2708   :  { %v16587_v57 = vsel %vm1858_vm1, %v16339_v24, -inf }
0x2709   :  { %v19916_v60 = vpop.f32.mrf.mxu0  ;;  %16588 = vmax.xlane.f32.xlu1 %v16587_v57  ;;  %v16341_v4 = vpop.f32.mrf.mxu1 }
0x270b   :  { %v19922_v51 = vpop.f32.mrf.mxu1  ;;  %v16378_v35 = vpop.f32.mrf.mxu0 }
0x270c   :  { %v16379_v36 = vadd.f32 %v16378_v35, %v23146_v2 }
0x270d   :  { %v19927_v11 = vpop.f32.mrf.mxu0  ;;  %v16418_v53 = vpop.f32.mrf.mxu1 }
0x270e   :  { %v16419_v38 = vadd.f32 %v16418_v53, %v23152_v6  ;;  %v16590_v54 = vsel %vm1858_vm1, %v16379_v36, -inf }
0x270f   :  { %16591 = vmax.xlane.f32.xlu0 %v16590_v54  ;;  %v16381_v62 = vpop.f32.mrf.mxu0  ;;  %v19933_v0 = vpop.f32.mrf.mxu1 }
0x2710   :  { %v16593_v59 = vsel %vm1858_vm1, %v16419_v38, -inf }
0x2711   :  { %v19928_v63 = vpop.f32.mrf.mxu0  ;;  %16594 = vmax.xlane.f32.xlu1 %v16593_v59  ;;  %v16421_v43 = vpop.f32.mrf.mxu1 }
0x2713   :  { %v19934_v61 = vpop.f32.mrf.mxu1  ;;  %v16458_v9 = vpop.f32.mrf.mxu0 }
0x2714   :  { %v16459_v29 = vadd.f32 %v16458_v9, %v23159_v22 }
0x2715   :  { %v19939_v37 = vpop.f32.mrf.mxu0  ;;  %v16498_v2 = vpop.f32.mrf.mxu1 }
0x2716   :  { %v16499_v42 = vadd.f32 %v16498_v2, %v23163_v27  ;;  %v16596_v6 = vsel %vm1858_vm1, %v16459_v29, -inf }
0x2717   :  { %16597 = vmax.xlane.f32.xlu0 %v16596_v6  ;;  %v16461_v47 = vpop.f32.mrf.mxu0  ;;  %v19945_v18 = vpop.f32.mrf.mxu1 }
0x2718   :  { %v16599_v17 = vsel %vm1858_vm1, %v16499_v42, -inf }
0x2719   :  { %v19940_v40 = vpop.f32.mrf.mxu0  ;;  %16600 = vmax.xlane.f32.xlu1 %v16599_v17  ;;  %v16501_v31 = vpop.f32.mrf.mxu1 }
0x271b   :  { %v19946_v1 = vpop.f32.mrf.mxu1  ;;  %v16538_v58 = vpop.f32.mrf.mxu0 }
0x271c   :  { %v16539_v39 = vadd.f32 %v16538_v58, %v23171_v46  ;;  %v17553_v1 = vld [vmem:[%s28101_s11] ss:$0 sm:$0xff] }
0x271d   :  { %v19951_v48 = vpop.f32.mrf.mxu0  ;;  %v16578_v22 = vpop.f32.mrf.mxu1 }
0x271e   :  { %v16579_v16 = vadd.f32 %v16578_v22, %v23175_v52  ;;  %v16602_v27 = vsel %vm1858_vm1, %v16539_v39, -inf  ;;  %v17754_v48 = vld [vmem:[%s28101_s11] ss:$0 sm:$0xff] }
0x271f   :  { %16603 = vmax.xlane.f32.xlu0 %v16602_v27  ;;  %v16541_v19 = vpop.f32.mrf.mxu0  ;;  %v19957_v25 = vpop.f32.mrf.mxu1  ;;  %v17956_v27 = vld [vmem:[%s28101_s11] ss:$0 sm:$0xff] }
0x2720   :  { %v16605_v12 = vsel %vm1858_vm1, %v16579_v16, -inf  ;;  %v27880_v19 = vadd.f32 %v17754_v48, %v24580_v3  ;;  %v18158_v25 = vld [vmem:[%s28101_s11] ss:$0 sm:$0xff] }
0x2721   :  { %v19952_v32 = vpop.f32.mrf.mxu0  ;;  %16606 = vmax.xlane.f32.xlu1 %v16605_v12  ;;  %v16581_v30 = vpop.f32.mrf.mxu1  ;;  %v27886_v12 = vadd.f32 %v17956_v27, %v25358_v34  ;;  %v18562_v3 = vld [vmem:[%s28101_s11] ss:$0 sm:$0xff]  ;;  %v21874_v27 = vld [vmem:[%s28098_s8 + $0x18] sm:$0xff]  }
0x2722   :  { %v27893_v32 = vadd.f32 %v18158_v25, %v26136_v15  ;;  %v27904_v34 = vadd.f32 %v18562_v3, %v27692_v44  ;;  %v21871_v48 = vld [vmem:[%s28098_s8 + $0x60] sm:$0xff]   ;;  %v21875_v25 = vld [vmem:[%s28098_s8 + $0x50] sm:$0xff]   ;;  %v21878_v3 = vld [vmem:[%s28098_s8 + $0x8] sm:$0xff]  }
0x2723   :  { %v19958_v23 = vpop.f32.mrf.mxu1 }
0x2790   :  { %v16586_v21 = vpop.xlane.xlu0 %16585 }
0x2791   :  { %v16608_v50 = vsub.f32 %v16299_v45, %v16586_v21 }
0x2792   :  { %v16589_v49 = vpop.xlane.xlu1 %16588 }
0x2793   :  { %v16616_v8 = vmul.f32 1.442695, %v16608_v50  ;;  %v16609_v46 = vsub.f32 %v16339_v24, %v16589_v49 }
0x2795   :  { %22317 = vpow2.f32 %v16616_v8  ;;  %v16618_v26 = vmul.f32 1.442695, %v16609_v46 }
0x2797   :  { %22319 = vpow2.f32 %v16618_v26 }
0x2798   :  { %v16592_v52 = vpop.xlane.xlu0 %16591 }
0x2799   :  { %v16610_v13 = vsub.f32 %v16379_v36, %v16592_v52 }
0x279a   :  { %v16595_v57 = vpop.xlane.xlu1 %16594 }
0x279b   :  { %v16620_v60 = vmul.f32 1.442695, %v16610_v13  ;;  %v16611_v4 = vsub.f32 %v16419_v38, %v16595_v57 }
0x279d   :  { %22321 = vpow2.f32 %v16620_v60  ;;  %v16622_v51 = vmul.f32 1.442695, %v16611_v4 }
0x279f   :  { %22323 = vpow2.f32 %v16622_v51 }
0x27a0   :  { %v16598_v35 = vpop.xlane.xlu0 %16597 }
0x27a1   :  { %v16612_v11 = vsub.f32 %v16459_v29, %v16598_v35 }
0x27a2   :  { %v27837_v53 = vpop.eup %22317  ;;  %v16601_v54 = vpop.xlane.xlu1 %16600 }
0x27a3   :  { %v16624_v45 = vmul.f32 1.442695, %v16612_v11  ;;  %v16613_v62 = vsub.f32 %v16499_v42, %v16601_v54  ;;  %v16632_v24 = vsel %vm1858_vm1, %v27837_v53, 0.0 }
0x27a4   :  { %v27841_v0 = vpop.eup %22319  ;;  %16633 = vadd.xlane.f32.xlu0 %v16632_v24 }
0x27a5   :  { %22325 = vpow2.f32 %v16624_v45  ;;  %v16626_v36 = vmul.f32 1.442695, %v16613_v62  ;;  %v16635_v38 = vsel %vm1858_vm1, %v27841_v0, 0.0 }
0x27a6   :  { %16636 = vadd.xlane.f32.xlu1 %v16635_v38 }
0x27a7   :  { %22327 = vpow2.f32 %v16626_v36 }
0x27a8   :  { %v16604_v59 = vpop.xlane.xlu0 %16603 }
0x27a9   :  { %v16614_v63 = vsub.f32 %v16539_v39, %v16604_v59 }
0x27aa   :  { %v27845_v43 = vpop.eup %22321  ;;  %v16607_v61 = vpop.xlane.xlu1 %16606 }
0x27ab   :  { %v16628_v9 = vmul.f32 1.442695, %v16614_v63  ;;  %v16615_v29 = vsub.f32 %v16579_v16, %v16607_v61  ;;  %v16638_v37 = vsel %vm1858_vm1, %v27845_v43, 0.0  ;;  %v2615_v16 = vadd.f32 %v17553_v1, %v23802_v5  ;;  %v18360_v5 = vld [vmem:[%s28101_s11] ss:$0 sm:$0xff]  ;;  %v21868_v1 = vld [vmem:[%s28098_s8 + $0x30] sm:$0xff]  }
0x27ac   :  { %v27849_v2 = vpop.eup %22323  ;;  %16639 = vadd.xlane.f32.xlu0 %v16638_v37  ;;  %v27900_v30 = vadd.f32 %v18360_v5, %v26914_v7  ;;  %v21877_v5 = vld [vmem:[%s28098_s8 + $0x48] sm:$0xff]  }
0x27ad   :  { %22329 = vpow2.f32 %v16628_v9  ;;  %v16630_v42 = vmul.f32 1.442695, %v16615_v29  ;;  %v16641_v6 = vsel %vm1858_vm1, %v27849_v2, 0.0 }
0x27ae   :  { %16642 = vadd.xlane.f32.xlu1 %v16641_v6  ;;  %v17048_v6 = vpack.c.bf16 %v27748_v56, %v27748_v56  ;;  %v21866_v56 = vld [vmem:[%s28098_s8 + $0x38] sm:$0xff]  }
0x27af   :  { %22331 = vpow2.f32 %v16630_v42 }
0x27b2   :  { %v27853_v47 = vpop.eup %22325 }
0x27b3   :  { %v16644_v18 = vsel %vm1858_vm1, %v27853_v47, 0.0 }
0x27b4   :  { %v27857_v17 = vpop.eup %22327  ;;  %16645 = vadd.xlane.f32.xlu0 %v16644_v18 }
0x27b5   :  { %v16647_v40 = vsel %vm1858_vm1, %v27857_v17, 0.0 }
0x27b6   :  { %16648 = vadd.xlane.f32.xlu1 %v16647_v40  ;;  %v21865_v40 = vld [vmem:[%s28098_s8 + $0x78] sm:$0xff]  }
0x27ba   :  { %v27861_v31 = vpop.eup %22329 }
0x27bb   :  { %v16650_v58 = vsel %vm1858_vm1, %v27861_v31, 0.0 }
0x27bc   :  { %v27868_v39 = vpop.eup %22331  ;;  %16651 = vadd.xlane.f32.xlu0 %v16650_v58  ;;  %v21869_v58 = vld [vmem:[%s28098_s8 + $0x68] sm:$0xff]  }
0x27bd   :  { %v16653_v22 = vsel %vm1858_vm1, %v27868_v39, 0.0 }
0x27be   :  { %16654 = vadd.xlane.f32.xlu1 %v16653_v22  ;;  %v21872_v22 = vld [vmem:[%s28098_s8 + $0x20] sm:$0xff]  }
0x27c0   :  { %2620 = vmax.xlane.f32.xlu0 %v2615_v16 }
0x27c2   :  { %5072 = vmax.xlane.f32.xlu1 %v27880_v19 }
0x27c4   :  { %7525 = vmax.xlane.f32.xlu0 %v27886_v12 }
0x27c6   :  { %9978 = vmax.xlane.f32.xlu1 %v27893_v32 }
0x27c8   :  { %12431 = vmax.xlane.f32.xlu0 %v27900_v30 }
0x27ca   :  { %14884 = vmax.xlane.f32.xlu1 %v27904_v34 }
0x282d   :  { %v16634_v15 = vpop.xlane.xlu0 %16633 }
0x282e   :  { %22333 = vrcp.f32 %v16634_v15  ;;  %v21880_v15 = vld [vmem:[%s28098_s8] sm:$0xff]  }
0x282f   :  { %v16637_v23 = vpop.xlane.xlu1 %16636 }
0x2830   :  { %22335 = vrcp.f32 %v16637_v23  ;;  %v21881_v23 = vld [vmem:[%s28099_s10 + $0x38] sm:$0xff]  }
0x2835   :  { %v16640_v21 = vpop.xlane.xlu0 %16639 }
0x2836   :  { %22337 = vrcp.f32 %v16640_v21  ;;  %v21882_v21 = vld [vmem:[%s28099_s10 + $0x30] sm:$0xff]  }
0x2837   :  { %v16643_v50 = vpop.xlane.xlu1 %16642 }
0x2838   :  { %22339 = vrcp.f32 %v16643_v50 }
0x283b   :  { %v22334_v49 = vpop.eup %22333 }
0x283c   :  { %v16664_v7 = vmul.f32 %v22334_v49, %v27837_v53 }
0x283d   :  { %v22336_v8 = vpop.eup %22335  ;;  %v16646_v46 = vpop.xlane.xlu0 %16645 }
0x283e   :  { %v16672_v26 = vpack.c.bf16 %v16664_v7, %v16664_v7  ;;  %v16665_v44 = vmul.f32 %v22336_v8, %v27841_v0  ;;  %22341 = vrcp.f32 %v16646_v46 }
0x283f   :  { %v16649_v52 = vpop.xlane.xlu1 %16648 }
0x2840   :  { %v16673_v13 = vpack.c.bf16 %v16665_v44, %v16665_v44  ;;  %22343 = vrcp.f32 %v16649_v52  ;;  %19962 = vmatmul.mubr.msk.bf16.vlgmr.msra.gmra.mxu0 %vm1955_vm2, %v16672_v26 }
0x2841   :  { %19972 = vmatpush3.bf16.msra.mxu0 %v27759_v41  ;;  %19973 = vmatprep.mubr.msk.bf16.mxu0 %vm22430_vm0, %v22429_v33 }
0x2842   :  { %19968 = vmatmul.mubr.msk.bf16.vlgmr.msra.gmra.mxu1 %vm1955_vm2, %v16673_v13  ;;  %19983 = vmatprep.subr.bf16.mxu0 %v22429_v33 }
0x2843   :  { %v22338_v57 = vpop.eup %22337  ;;  %19978 = vmatpush3.bf16.msra.mxu1 %v27768_v20  ;;  %19979 = vmatprep.mubr.msk.bf16.mxu1 %vm22430_vm0, %v22429_v33 }
0x2844   :  { %v16666_v60 = vmul.f32 %v22338_v57, %v27845_v43  ;;  %19989 = vmatprep.subr.bf16.mxu1 %v22429_v33 }
0x2845   :  { %v22340_v4 = vpop.eup %22339  ;;  %v16652_v51 = vpop.xlane.xlu0 %16651 }
0x2846   :  { %v16674_v41 = vpack.c.bf16 %v16666_v60, %v16666_v60  ;;  %v16667_v35 = vmul.f32 %v22340_v4, %v27849_v2  ;;  %22345 = vrcp.f32 %v16652_v51 }
0x2847   :  { %v16655_v11 = vpop.xlane.xlu1 %16654 }
0x2848   :  { %v16675_v53 = vpack.c.bf16 %v16667_v35, %v16667_v35  ;;  %22347 = vrcp.f32 %v16655_v11  ;;  %19974 = vmatmul.mubr.msk.bf16.vlgmr.msra.gmra.mxu0 %vm1955_vm2, %v16674_v41 }
0x2849   :  { %19984 = vmatpush3.bf16.msra.mxu0 %v27778_v10  ;;  %v2621_v20 = vpop.xlane.xlu0 %2620  ;;  %19985 = vmatprep.mubr.msk.bf16.mxu0 %vm22430_vm0, %v22429_v33 }
0x284a   :  { %v27926_v54 = vsub.f32 %v2615_v16, %v2621_v20  ;;  %19980 = vmatmul.mubr.msk.bf16.vlgmr.msra.gmra.mxu1 %vm1955_vm2, %v16675_v53  ;;  %19995 = vmatprep.subr.bf16.mxu0 %v22429_v33  ;;  %v21873_v16 = vld [vmem:[%s28098_s8 + $0x58] sm:$0xff]  }
0x284b   :  { %v22342_v45 = vpop.eup %22341  ;;  %19990 = vmatpush3.bf16.msra.mxu1 %v27788_v28  ;;  %19991 = vmatprep.mubr.msk.bf16.mxu1 %vm22430_vm0, %v22429_v33  ;;  %v28018_v50 = vpop.xlane.xlu1 %5072 }
0x284c   :  { %v16668_v62 = vmul.f32 %v22342_v45, %v27853_v47  ;;  %v2623_v10 = vmul.f32 1.442695, %v27926_v54  ;;  %20001 = vmatprep.subr.bf16.mxu1 %v22429_v33 }
0x284d   :  { %v22344_v24 = vpop.eup %22343  ;;  %v7526_v0 = vpop.xlane.xlu0 %7525 }
0x284e   :  { %v16676_v36 = vpack.c.bf16 %v16668_v62, %v16668_v62  ;;  %v16669_v38 = vmul.f32 %v22344_v24, %v27857_v17  ;;  %22349 = vpow2.f32 %v2623_v10  ;;  %v27938_v59 = vsub.f32 %v27886_v12, %v7526_v0  ;;  %v21876_v12 = vld [vmem:[%s28098_s8 + $0x10] sm:$0xff]  }
0x284f   :  { %v28020_v49 = vpop.xlane.xlu1 %9978 }
0x2850   :  { %v16677_v63 = vpack.c.bf16 %v16669_v38, %v16669_v38  ;;  %19986 = vmatmul.mubr.msk.bf16.vlgmr.msra.gmra.mxu0 %vm1955_vm2, %v16676_v36  ;;  %v7528_v28 = vmul.f32 1.442695, %v27938_v59 }
0x2851   :  { %19996 = vmatpush3.bf16.msra.mxu0 %v27798_v55  ;;  %v12432_v43 = vpop.xlane.xlu0 %12431  ;;  %19997 = vmatprep.mubr.msk.bf16.mxu0 %vm22430_vm0, %v22429_v33 }
0x2852   :  { %v27946_v61 = vsub.f32 %v27900_v30, %v12432_v43  ;;  %19992 = vmatmul.mubr.msk.bf16.vlgmr.msra.gmra.mxu1 %vm1955_vm2, %v16677_v63  ;;  %22351 = vpow2.f32 %v7528_v28  ;;  %19184 = vmatprep.subr.bf16.mxu0 %v21865_v40  ;;  %v21879_v30 = vld [vmem:[%s28098_s8 + $0x40] sm:$0xff]  }
0x2853   :  { %v22346_v9 = vpop.eup %22345  ;;  %20002 = vmatpush3.bf16.msra.mxu1 %v27807_v14  ;;  %20003 = vmatprep.mubr.msk.bf16.mxu1 %vm22430_vm0, %v22429_v33  ;;  %v28022_v7 = vpop.xlane.xlu1 %14884 }
0x2854   :  { %v16670_v29 = vmul.f32 %v22346_v9, %v27861_v31  ;;  %v12434_v55 = vmul.f32 1.442695, %v27946_v61  ;;  %20007 = vmatprep.subr.bf16.mxu1 %v22429_v33  ;;  %v21867_v31 = vld [vmem:[%s28098_s8 + $0x70] sm:$0xff]  }
0x2855   :  { %v22348_v37 = vpop.eup %22347 }
0x2856   :  { %v16678_v2 = vpack.c.bf16 %v16670_v29, %v16670_v29  ;;  %v16671_v42 = vmul.f32 %v22348_v37, %v27868_v39  ;;  %22353 = vpow2.f32 %v12434_v55  ;;  %v21870_v39 = vld [vmem:[%s28098_s8 + $0x28] sm:$0xff]  }
0x2858   :  { %v16679_v47 = vpack.c.bf16 %v16671_v42, %v16671_v42  ;;  %19998 = vmatmul.mubr.msk.bf16.vlgmr.msra.gmra.mxu0 %vm1955_vm2, %v16678_v2 }
0x2859   :  { %17216 = vmatprep.mubr.bf16.mxu0 %v17048_v6  ;;  %19185 = vmatpush3.bf16.msra.mxu0 %v21866_v56 }
0x285a   :  { %20004 = vmatmul.mubr.msk.bf16.vlgmr.msra.gmra.mxu1 %vm1955_vm2, %v16679_v47  ;;  %19186 = vmatprep.subr.bf16.mxu0 %v21867_v31 }
0x285b   :  { %v22350_v14 = vpop.eup %22349  ;;  %20023 = vmatprep.mubr.msk.bf16.mxu1 %vm22430_vm0, %v22429_v33  ;;  %20008 = vmatpush3.bf16.msra.mxu1 %v21881_v23 }
0x285c   :  { %2625 = vadd.xlane.f32.xlu1 %v22350_v14  ;;  %20009 = vmatprep.subr.bf16.mxu1 %v22429_v33 }
0x285d   :  { %19187 = vmatpush3.bf16.msra.mxu0 %v21868_v1 }
0x285e   :  { %19188 = vmatprep.subr.bf16.mxu0 %v21869_v58 }
0x285f   :  { %v22352_v18 = vpop.eup %22351  ;;  %20010 = vmatpush3.bf16.msra.mxu1 %v21882_v21 }
0x2860   :  { %7530 = vadd.xlane.f32.xlu1 %v22352_v18  ;;  %20011 = vmatprep.subr.bf16.mxu1 %v22429_v33 }
0x2861   :  { %19189 = vmatpush3.bf16.msra.mxu0 %v21870_v39 }
0x2862   :  { %19190 = vmatprep.subr.bf16.mxu0 %v21871_v48 }
0x2863   :  { %v22354_v17 = vpop.eup %22353 }
0x2864   :  { %12436 = vadd.xlane.f32.xlu1 %v22354_v17 }
0x2865   :  { %19191 = vmatpush3.bf16.msra.mxu0 %v21872_v22 }
0x2866   :  { %19192 = vmatprep.subr.bf16.mxu0 %v21873_v16 }
0x2869   :  { %19193 = vmatpush3.bf16.msra.mxu0 %v21874_v27 }
0x286a   :  { %19194 = vmatprep.subr.bf16.mxu0 %v21875_v25 }
0x286d   :  { %19195 = vmatpush3.bf16.msra.mxu0 %v21876_v12 }
0x286e   :  { %19196 = vmatprep.subr.bf16.mxu0 %v21877_v5 }
0x2871   :  { %19197 = vmatpush3.bf16.msra.mxu0 %v21878_v3 }
0x2872   :  { %19198 = vmatprep.subr.bf16.mxu0 %v21879_v30 }
0x2875   :  { %19199 = vmatpush3.bf16.msra.mxu0 %v21880_v15 }
0x28e5   :  { %v2626_v8 = vpop.xlane.xlu1 %2625 }
0x28e6   :  { %22355 = vlog2.f32 %v2626_v8 }
0x28e9   :  { %v7531_v46 = vpop.xlane.xlu1 %7530 }
0x28ea   :  { %22357 = vlog2.f32 %v7531_v46 }
0x28ed   :  { %v12437_v26 = vpop.xlane.xlu1 %12436 }
0x28ee   :  { %22359 = vlog2.f32 %v12437_v26  ;;  %v21883_v26 = vld [vmem:[%s28099_s10 + $0x28] sm:$0xff]  }
0x28ef   :  { %20012 = vmatpush3.bf16.msra.mxu1 %v21883_v26 }
0x28f0   :  { %20013 = vmatprep.subr.bf16.mxu1 %v22429_v33 }
0x28f3   :  { %v22356_v44 = vpop.eup %22355 }
0x28f4   :  { %v2628_v52 = vmul.f32 0.6931472, %v22356_v44  ;;  %v21884_v44 = vld [vmem:[%s28099_s10 + $0x20] sm:$0xff]  }
0x28f5   :  { %20014 = vmatpush3.bf16.msra.mxu1 %v21884_v44 }
0x28f6   :  { %v2629_v13 = vsub.f32 %v27926_v54, %v2628_v52  ;;  %20015 = vmatprep.subr.bf16.mxu1 %v22429_v33  ;;  %v21885_v52 = vld [vmem:[%s28099_s10 + $0x18] sm:$0xff]  }
0x28f7   :  { %v22358_v57 = vpop.eup %22357 }
0x28f8   :  { %2630 = vst [vmem:[%s28102_s12] sm:$0xff] %v2629_v13  ;;  %v7533_v60 = vmul.f32 0.6931472, %v22358_v57  ;;  %v21886_v13 = vld [vmem:[%s28099_s10 + $0x10] sm:$0xff]   ;;  %v21887_v57 = vld [vmem:[%s28099_s10 + $0x8] sm:$0xff]  }
0x28f9   :  { %20016 = vmatpush3.bf16.msra.mxu1 %v21885_v52 }
0x28fa   :  { %v7534_v4 = vsub.f32 %v27938_v59, %v7533_v60  ;;  %20017 = vmatprep.subr.bf16.mxu1 %v22429_v33  ;;  %v21888_v60 = vld [vmem:[%s28099_s10] sm:$0xff]  }
0x28fb   :  { %v22360_v51 = vpop.eup %22359 }
0x28fc   :  { %17965 = vst [vmem:[%s28102_s12 + $0x10] sm:$0xff] %v7534_v4  ;;  %v12439_v41 = vmul.f32 0.6931472, %v22360_v51  ;;  %v18747_v51 = vld [vmem:[%s28100_s9] ss:$0 sm:$0xff] }
0x28fd   :  { %20018 = vmatpush3.bf16.msra.mxu1 %v21886_v13 }
0x28fe   :  { %v12440_v35 = vsub.f32 %v27946_v61, %v12439_v41  ;;  %20019 = vmatprep.subr.bf16.mxu1 %v22429_v33 }
0x2900   :  { %v16717_v11 = vpop.f32.mrf.mxu0  ;;  %18369 = vst [vmem:[%s28102_s12 + $0x20] sm:$0xff] %v12440_v35 }
0x2901   :  { %20020 = vmatpush3.bf16.msra.mxu1 %v21887_v57 }
0x2902   :  { %v19963_v53 = vpop.f32.mrf.mxu0  ;;  %v16760_v20 = vpop.f32.mrf.mxu1  ;;  %20021 = vmatprep.subr.bf16.mxu1 %v22429_v33  ;;  %v5074_v33 = vsub.f32 %v27880_v19, %v28018_v50 }
0x2903   :  { %v17032_v28 = vrot.slane %v16760_v20, 7 }
0x2904   :  { %v16720_v54 = vpop.f32.mrf.mxu0  ;;  %v19969_v45 = vpop.f32.mrf.mxu1 }
0x2905   :  { %v17033_v37 = vsel %vm2309_vm3, %v17032_v28, %v16717_v11  ;;  %20022 = vmatpush3.bf16.msra.mxu1 %v21888_v60 }
0x2906   :  { %v19964_v62 = vpop.f32.mrf.mxu0  ;;  %v16763_v10 = vpop.f32.mrf.mxu1 }
0x2907   :  { %v5075_v62 = vmul.f32 1.442695, %v5074_v33  ;;  %v9980_v10 = vsub.f32 %v27893_v32, %v28020_v49 }
0x2908   :  { %v19970_v24 = vpop.f32.mrf.mxu1  ;;  %v16803_v0 = vpop.f32.mrf.mxu0 }
0x2909   :  { %v17034_v9 = vrot.slane %v16803_v0, 6  ;;  %v9981_v24 = vmul.f32 1.442695, %v9980_v10  ;;  %v14886_v0 = vsub.f32 %v27904_v34, %v28022_v7 }
0x290a   :  { %v19975_v36 = vpop.f32.mrf.mxu0  ;;  %v16846_v38 = vpop.f32.mrf.mxu1 }
0x290b   :  { %v17036_v2 = vrot.slane %v16846_v38, 5  ;;  %v17035_v47 = vsel %vm2312_vm4, %v17034_v9, %v17033_v37  ;;  %v14887_v36 = vmul.f32 1.442695, %v14886_v0  ;;  %v18764_v38 = vld [vmem:[%s28101_s11] ss:$0 sm:$0xff] }
0x290c   :  { %v16806_v59 = vpop.f32.mrf.mxu0  ;;  %v19981_v63 = vpop.f32.mrf.mxu1 }
0x290d   :  { %v17037_v40 = vsel %vm2315_vm5, %v17036_v2, %v17035_v47 }
0x290e   :  { %v19976_v43 = vpop.f32.mrf.mxu0  ;;  %v16849_v61 = vpop.f32.mrf.mxu1 }
0x2910   :  { %v19982_v29 = vpop.f32.mrf.mxu1  ;;  %v16889_v55 = vpop.f32.mrf.mxu0 }
0x2911   :  { %v17038_v14 = vrot.slane %v16889_v55, 4 }
0x2912   :  { %v19987_v42 = vpop.f32.mrf.mxu0  ;;  %v16932_v6 = vpop.f32.mrf.mxu1 }
0x2913   :  { %v17040_v56 = vrot.slane %v16932_v6, 3  ;;  %v17039_v58 = vsel %vm2318_vm6, %v17038_v14, %v17037_v40 }
0x2914   :  { %v16892_v18 = vpop.f32.mrf.mxu0  ;;  %v19993_v17 = vpop.f32.mrf.mxu1 }
0x2915   :  { %v17041_v16 = vsel %vm2321_vm7, %v17040_v56, %v17039_v58 }
0x2916   :  { %v19988_v31 = vpop.f32.mrf.mxu0  ;;  %v16935_v1 = vpop.f32.mrf.mxu1 }
0x2918   :  { %v19994_v39 = vpop.f32.mrf.mxu1  ;;  %v16975_v48 = vpop.f32.mrf.mxu0 }
0x2919   :  { %v17042_v22 = vrot.slane %v16975_v48, 2 }
0x291a   :  { %v19999_v27 = vpop.f32.mrf.mxu0  ;;  %v17018_v25 = vpop.f32.mrf.mxu1 }
0x291b   :  { %v17043_v12 = vsel %vm2324_vm8, %v17042_v22, %v17041_v16  ;;  %v17044_v5 = vrot.slane %v17018_v25, 1 }
0x291c   :  { %v16978_v3 = vpop.f32.mrf.mxu0  ;;  %v20005_v30 = vpop.f32.mrf.mxu1 }
0x291d   :  { %v17045_v15 = vsel %vm2327_vm9, %v17044_v5, %v17043_v12 }
0x291e   :  { %v17047_v23 = vpack.c.bf16 %v17045_v15, %v17045_v15  ;;  %v20000_v21 = vpop.f32.mrf.mxu0  ;;  %v17021_v8 = vpop.f32.mrf.mxu1 }
0x2920   :  { %v20006_v46 = vpop.f32.mrf.mxu1  ;;  %17217 = vmatmul.mubr.bf16.vlgmr.msra.gmra.mxu0 %v17047_v23 }
0x29e0   :  { %v19200_v4 = vpop.f32.mrf.mxu0 }
0x29e2   :  { %v19201_v41 = vpop.f32.mrf.mxu0 }
0x29e3   :  { %v19202_v35 = vadd.f32 %v19201_v41, %v19200_v4 }
0x29e4   :  { %v19203_v11 = vpop.f32.mrf.mxu0 }
0x29e5   :  { %v17219_v53 = vadd.f32 %v19202_v35, %v18747_v51 }
0x29e6   :  { %v19204_v20 = vpop.f32.mrf.mxu0 }
0x29e7   :  { %22361 = vtanh.f32 %v17219_v53 }
0x29e8   :  { %22363 = vpow2.f32 %v5075_v62 }
0x29e9   :  { %22365 = vpow2.f32 %v9981_v24 }
0x29ea   :  { %22367 = vpow2.f32 %v14887_v36 }
0x29f4   :  { %v22362_v54 = vpop.eup %22361 }
0x29f5   :  { %v17225_v45 = vpack.c.bf16 %v22362_v54, %v22362_v54  ;;  %v22364_v50 = vpop.eup %22363 }
0x29f6   :  { %v22366_v32 = vpop.eup %22365 }
0x29f7   :  { %20024 = vmatmul.mubr.bf16.vlgmr.msra.gmra.mxu1 %v17225_v45  ;;  %v22368_v49 = vpop.eup %22367 }
0x2ab7   :  { %v17331_v59 = vpop.f32.mrf.mxu1 }
0x2ab8   :  { %v17332_v63 = vadd.f32 %v18764_v38, %v17331_v59 }
0x2ab9   :  { %v20025_v28 = vpop.f32.mrf.mxu1 }
0x2aba   :  { %17337 = vmax.xlane.f32.xlu0 %v17332_v63 }
0x2abb   :  { %v17334_v19 = vpop.f32.mrf.mxu1 }
0x2abd   :  { %v20026_v43 = vpop.f32.mrf.mxu1 }
0x2abe   :  { %5077 = vadd.xlane.f32.xlu0 %v22364_v50 }
0x2ac2   :  { %9983 = vadd.xlane.f32.xlu0 %v22366_v32 }
0x2ac6   :  { %14889 = vadd.xlane.f32.xlu0 %v22368_v49 }
0x2b43   :  { %v17338_v34 = vpop.xlane.xlu0 %17337 }
0x2b44   :  { %v17339_v7 = vsub.f32 %v17332_v63, %v17338_v34 }
0x2b46   :  { %v17340_v61 = vmul.f32 1.442695, %v17339_v7 }
0x2b47   :  { %v5078_v9 = vpop.xlane.xlu0 %5077 }
0x2b48   :  { %22369 = vpow2.f32 %v17340_v61 }
0x2b49   :  { %22371 = vlog2.f32 %v5078_v9 }
0x2b4b   :  { %v9984_v29 = vpop.xlane.xlu0 %9983 }
0x2b4c   :  { %22373 = vlog2.f32 %v9984_v29 }
0x2b4f   :  { %v14890_v55 = vpop.xlane.xlu0 %14889 }
0x2b50   :  { %22375 = vlog2.f32 %v14890_v55 }
0x2b55   :  { %v22370_v37 = vpop.eup %22369 }
0x2b56   :  { %v22372_v2 = vpop.eup %22371  ;;  %17342 = vadd.xlane.f32.xlu1 %v22370_v37 }
0x2b57   :  { %v5080_v42 = vmul.f32 0.6931472, %v22372_v2 }
0x2b59   :  { %v22374_v6 = vpop.eup %22373  ;;  %v5081_v47 = vsub.f32 %v5074_v33, %v5080_v42 }
0x2b5a   :  { %v9986_v14 = vmul.f32 0.6931472, %v22374_v6 }
0x2b5b   :  { %17763 = vst [vmem:[%s28102_s12 + $0x8] sm:$0xff] %v5081_v47 }
0x2b5c   :  { %v9987_v18 = vsub.f32 %v9980_v10, %v9986_v14 }
0x2b5d   :  { %v22376_v17 = vpop.eup %22375 }
0x2b5e   :  { %18167 = vst [vmem:[%s28102_s12 + $0x18] sm:$0xff] %v9987_v18  ;;  %v14892_v40 = vmul.f32 0.6931472, %v22376_v17 }
0x2b60   :  { %v14893_v56 = vsub.f32 %v14886_v0, %v14892_v40 }
0x2b62   :  { %18571 = vst [vmem:[%s28102_s12 + $0x28] sm:$0xff] %v14893_v56 }
0x2bdf   :  { %v17343_v31 = vpop.xlane.xlu1 %17342 }
0x2be0   :  { %22377 = vlog2.f32 %v17343_v31 }
0x2bed   :  { %v22378_v1 = vpop.eup %22377 }
0x2bee   :  { %v17345_v58 = vmul.f32 0.6931472, %v22378_v1 }
0x2bf0   :  { %v17346_v39 = vsub.f32 %v17339_v7, %v17345_v58 }
0x2bf2   :  { %18773 = vst [vmem:[%s28102_s12 + $0x30] sm:$0xff] %v17346_v39 }

</bundles_post_ra>
